<compile_context>
chip_gen: v5e
topology: v5e:2x2
jax: 0.10.0
libtpu: 0.0.40
codegen_flags: <defaults>
</compile_context>

<pallas_src>
import jax
import jax.numpy as jnp
from jax.experimental import pallas as pl
from jax.experimental.pallas import tpu as pltpu

NUM_FTRS = 1280
HID1 = 1024
HID2 = 512
NUM_CLASSES = 7          # e.g. 7 skin-disease classes (HAM10000)
CLASSES_PAD = 128        # lane-dense padded output width
LEAKY_SLOPE = 0.01       # nn.LeakyReLU() default negative_slope
BN_EPS = 1e-5


def _round_up(n, m):
    return (n + m - 1) // m * m


def _leaky_relu(h):
    # max(h, a*h) == LeakyReLU(h) for 0 < a < 1 (single VALU max, no select).
    return jnp.maximum(h, LEAKY_SLOPE * h)


# ---------------------------------------------------------------------------
# Kernel: [bt, 1280] bf16 pooled features -> [bt, 128] padded f32 logits
# ---------------------------------------------------------------------------
def head_kernel(x_ref,            # [bt, 1280]  bf16 pooled features
                w1_ref, b1_ref,   # fc1 (BN1-folded): bf16 [1280,1024], f32 [1,1024]
                w2_ref, b2_ref,   # fc2 (BN2-folded): bf16 [1024, 512], f32 [1, 512]
                w3_ref, b3_ref,   # fc3 (padded):     bf16 [ 512, 128], f32 [1, 128]
                o_ref):           # [bt, 128] f32
    # dropout (eval mode) is identity throughout.
    x = x_ref[...]

    # fc1 (+ folded bn1) + LeakyReLU  -- bf16 operands, f32 accumulate/elementwise
    h = jnp.dot(x, w1_ref[...], preferred_element_type=jnp.float32) + b1_ref[...]
    h = _leaky_relu(h)

    # fc2 (+ folded bn2) + LeakyReLU
    h = jnp.dot(h.astype(jnp.bfloat16), w2_ref[...],
                preferred_element_type=jnp.float32) + b2_ref[...]
    h = _leaky_relu(h)

    # fc3 (padded to 128 output lanes)
    o_ref[...] = jnp.dot(h.astype(jnp.bfloat16), w3_ref[...],
                         preferred_element_type=jnp.float32) + b3_ref[...]


# ---------------------------------------------------------------------------
# Parameters
# ---------------------------------------------------------------------------
def init_params(key):
    """PyTorch-style init: Linear uniform(+-1/sqrt(fan_in)); BN running stats."""
    ks = jax.random.split(key, 14)

    def linear(kw, kb, fan_in, fan_out):
        bound = 1.0 / jnp.sqrt(fan_in)
        w = jax.random.uniform(kw, (fan_in, fan_out), jnp.float32, -bound, bound)
        b = jax.random.uniform(kb, (1, fan_out), jnp.float32, -bound, bound)
        return w, b

    w1, b1 = linear(ks[0], ks[1], NUM_FTRS, HID1)
    w2, b2 = linear(ks[2], ks[3], HID1, HID2)
    w3, b3 = linear(ks[4], ks[5], HID2, NUM_CLASSES)

    def bn(kg, kb, km, kv, n):
        gamma = 1.0 + 0.1 * jax.random.normal(kg, (1, n), jnp.float32)
        beta = 0.1 * jax.random.normal(kb, (1, n), jnp.float32)
        rmean = 0.1 * jax.random.normal(km, (1, n), jnp.float32)
        rvar = jnp.abs(1.0 + 0.1 * jax.random.normal(kv, (1, n), jnp.float32))
        # eval-mode BN as scale/shift
        scale = gamma / jnp.sqrt(rvar + BN_EPS)
        shift = beta - rmean * scale
        return scale, shift

    s1, t1 = bn(ks[6], ks[7], ks[8], ks[9], HID1)
    s2, t2 = bn(ks[10], ks[11], ks[12], ks[13], HID2)

    return dict(w1=w1, b1=b1, s1=s1, t1=t1,
                w2=w2, b2=b2, s2=s2, t2=t2,
                w3=w3, b3=b3)


def prepare_params(p):
    """Fold eval-mode BN into the linears, cast weights to bf16, pad fc3.

    Call ONCE at weight-load time; the forward wrapper consumes the result.
    """
    w1 = (p["w1"] * p["s1"]).astype(jnp.bfloat16)            # scale columns
    b1 = (p["b1"] * p["s1"] + p["t1"]).astype(jnp.float32)
    w2 = (p["w2"] * p["s2"]).astype(jnp.bfloat16)
    b2 = (p["b2"] * p["s2"] + p["t2"]).astype(jnp.float32)
    w3 = jnp.zeros((HID2, CLASSES_PAD), jnp.float32)
    w3 = w3.at[:, :NUM_CLASSES].set(p["w3"]).astype(jnp.bfloat16)
    b3 = jnp.zeros((1, CLASSES_PAD), jnp.float32)
    b3 = b3.at[:, :NUM_CLASSES].set(p["b3"])
    return w1, b1, w2, b2, w3, b3


# ---------------------------------------------------------------------------
# BlockSpec helpers
# ---------------------------------------------------------------------------
def _resident_spec(shape):
    """Constant-index (VMEM-resident across grid steps) block.

    Single-buffered when the installed JAX supports pipeline_mode: these blocks
    are fetched once, so double-buffering them only burns VMEM.
    """
    index_map = lambda i: (0,) * len(shape)
    try:
        return pl.BlockSpec(shape, index_map, pipeline_mode=pl.Buffered(1))
    except TypeError:
        return pl.BlockSpec(shape, index_map)


# ---------------------------------------------------------------------------
# Wrapper
# ---------------------------------------------------------------------------
def custom_model_head(x_nchw, folded_params, block_b=256):
    """Forward pass of CustomModel's own layers on a backbone feature map.

    `folded_params` is the output of prepare_params() (computed once offline).
    block_b=256 fills the 256-wide MXU on v6e/v7x; use 128 on v5e if desired.
    """
    w1, b1, w2, b2, w3, b3 = folded_params
    B, C, H, W = x_nchw.shape
    assert C == NUM_FTRS

    # avgpool + flatten in the wrapper on native NCHW (no transpose copy),
    # then cast to bf16 so the kernel streams half the activation bytes.
    pooled = jnp.mean(x_nchw, axis=(2, 3)).astype(jnp.bfloat16)   # [B, 1280]

    # Pad batch to a sublane multiple and pick the batch tile. Small B
    # collapses to a single grid step (one TC streams the weights; on v7x,
    # grid >= 2 is only worth it when B is large enough to pay for the
    # duplicated per-TC weight DMA).
    bt = min(block_b, _round_up(B, 8))
    B_pad = _round_up(B, bt)
    if B_pad != B:
        pooled = jnp.pad(pooled, ((0, B_pad - B), (0, 0)))

    grid_spec = pltpu.PrefetchScalarGridSpec(
        num_scalar_prefetch=0,
        grid=(B_pad // bt,),
        in_specs=[
            pl.BlockSpec((bt, NUM_FTRS), lambda i: (i, 0)),   # pipelined act tile
            _resident_spec((NUM_FTRS, HID1)),                 # weights/biases stay
            _resident_spec((1, HID1)),                        # VMEM-resident,
            _resident_spec((HID1, HID2)),                     # single-buffered
            _resident_spec((1, HID2)),
            _resident_spec((HID2, CLASSES_PAD)),
            _resident_spec((1, CLASSES_PAD)),
        ],
        out_specs=pl.BlockSpec((bt, CLASSES_PAD), lambda i: (i, 0)),
    )

    out = pl.pallas_call(
        head_kernel,
        out_shape=jax.ShapeDtypeStruct((B_pad, CLASSES_PAD), jnp.float32),
        grid_spec=grid_spec,
        compiler_params=pltpu.CompilerParams(
            dimension_semantics=("parallel",),
            vmem_limit_bytes=48 << 20,
        ),
    )(pooled, w1, b1, w2, b2, w3, b3)

    return out[:B, :NUM_CLASSES]


# ---------------------------------------------------------------------------
# References
# ---------------------------------------------------------------------------
def reference_head_f32(x_nchw, p):
    """Pure-JAX f32 reference of the original (unfolded) module math."""
    pooled = jnp.mean(x_nchw, axis=(2, 3))
    h = pooled @ p["w1"] + p["b1"]
    h = h * p["s1"] + p["t1"]
    h = jnp.where(h > 0, h, LEAKY_SLOPE * h)
    h = h @ p["w2"] + p["b2"]
    h = h * p["s2"] + p["t2"]
    h = jnp.where(h > 0, h, LEAKY_SLOPE * h)
    return h @ p["w3"] + p["b3"]


def reference_head_prepared(x_nchw, folded_params):
    """Pure-JAX reference of the exact folded/bf16 math the kernel runs."""
    w1, b1, w2, b2, w3, b3 = folded_params
    pooled = jnp.mean(x_nchw, axis=(2, 3)).astype(jnp.bfloat16)
    h = jnp.dot(pooled, w1, preferred_element_type=jnp.float32) + b1
    h = jnp.maximum(h, LEAKY_SLOPE * h)
    h = jnp.dot(h.astype(jnp.bfloat16), w2,
                preferred_element_type=jnp.float32) + b2
    h = jnp.maximum(h, LEAKY_SLOPE * h)
    out = jnp.dot(h.astype(jnp.bfloat16), w3,
                  preferred_element_type=jnp.float32) + b3
    return out[:, :NUM_CLASSES]


if __name__ == "__main__":
    key = jax.random.PRNGKey(0)
    k_x, k_p = jax.random.split(key)

    # Small backbone feature map: batch=2, channels=1280 (EfficientNet-B0
    # final features), spatial 4x4.
    x = jax.random.normal(k_x, (2, NUM_FTRS, 4, 4), jnp.float32)
    params = init_params(k_p)

    # Fold BN / cast / pad ONCE at weight-load time.
    folded = jax.block_until_ready(prepare_params(params))

    out = custom_model_head(x, folded)
    out = jax.block_until_ready(out)
    assert out.shape == (2, NUM_CLASSES)

    # Exact-math check (same folded bf16 weights, pure JAX).
    ref_exact = reference_head_prepared(x, folded)
    assert jnp.allclose(out, ref_exact, atol=1e-3, rtol=1e-3), \
        "mismatch vs prepared-math reference"

    # Semantic check vs original f32 unfolded module math (bf16-weight tolerance).
    ref_f32 = reference_head_f32(x, params)
    assert jnp.allclose(out, ref_f32, atol=2e-2, rtol=2e-2), \
        "mismatch vs f32 module reference"

    print("KERNEL_OK")
</pallas_src>

<mosaic_0001>
module attributes {stable_mosaic.version = 11 : i64} {
  func.func @head_kernel(%arg0: i32, %arg1: memref<8x1280xbf16, #tpu.memory_space<vmem>>, %arg2: memref<1280x1024xbf16, #tpu.memory_space<vmem>>, %arg3: memref<1x1024xf32, #tpu.memory_space<vmem>>, %arg4: memref<1024x512xbf16, #tpu.memory_space<vmem>>, %arg5: memref<1x512xf32, #tpu.memory_space<vmem>>, %arg6: memref<512x128xbf16, #tpu.memory_space<vmem>>, %arg7: memref<1x128xf32, #tpu.memory_space<vmem>>, %arg8: memref<8x128xf32, #tpu.memory_space<vmem>>) attributes {dimension_semantics = [#tpu.dimension_semantics<parallel>], iteration_bounds = array<i64: 1>, scalar_prefetch = 0 : i64, scratch_operands = 0 : i64, tpu.core_type = #tpu.core_type<tc>, window_params = [{transform_indices = @transform_0, window_bounds = array<i64: 8, 1280>}, {pipeline_mode = #tpu.pipeline_mode<synchronous>, transform_indices = @transform_1, window_bounds = array<i64: 1280, 1024>}, {pipeline_mode = #tpu.pipeline_mode<synchronous>, transform_indices = @transform_2, window_bounds = array<i64: 1, 1024>}, {pipeline_mode = #tpu.pipeline_mode<synchronous>, transform_indices = @transform_3, window_bounds = array<i64: 1024, 512>}, {pipeline_mode = #tpu.pipeline_mode<synchronous>, transform_indices = @transform_4, window_bounds = array<i64: 1, 512>}, {pipeline_mode = #tpu.pipeline_mode<synchronous>, transform_indices = @transform_5, window_bounds = array<i64: 512, 128>}, {pipeline_mode = #tpu.pipeline_mode<synchronous>, transform_indices = @transform_6, window_bounds = array<i64: 1, 128>}, {transform_indices = @transform_7, window_bounds = array<i64: 8, 128>}]} {
    %c0 = arith.constant 0 : index
    %c0_0 = arith.constant 0 : index
    %0 = vector.load %arg1[%c0, %c0_0] : memref<8x1280xbf16, #tpu.memory_space<vmem>>, vector<8x1280xbf16>
    %c0_1 = arith.constant 0 : index
    %c0_2 = arith.constant 0 : index
    %1 = vector.load %arg2[%c0_1, %c0_2] : memref<1280x1024xbf16, #tpu.memory_space<vmem>>, vector<1280x1024xbf16>
    %cst = arith.constant dense<0.000000e+00> : vector<8x1024xf32>
    %2 = tpu.matmul %0, %1, %cst {dimension_numbers = #tpu.dot_dimension_numbers<[1], [0], [0], [1], [0, 0, 1, 1], [], []>} : vector<8x1280xbf16>, vector<1280x1024xbf16>, vector<8x1024xf32> -> vector<8x1024xf32>
    %c0_3 = arith.constant 0 : index
    %c0_4 = arith.constant 0 : index
    %3 = vector.load %arg3[%c0_3, %c0_4] : memref<1x1024xf32, #tpu.memory_space<vmem>>, vector<1x1024xf32>
    %4 = vector.broadcast %3 : vector<1x1024xf32> to vector<8x1024xf32>
    %5 = arith.addf %2, %4 : vector<8x1024xf32>
    %cst_5 = arith.constant 0.00999999977 : f32
    %6 = vector.broadcast %cst_5 : f32 to vector<8x1024xf32>
    %7 = arith.mulf %6, %5 : vector<8x1024xf32>
    %8 = arith.maximumf %5, %7 : vector<8x1024xf32>
    %9 = arith.truncf %8 : vector<8x1024xf32> to vector<8x1024xbf16>
    %c0_6 = arith.constant 0 : index
    %c0_7 = arith.constant 0 : index
    %10 = vector.load %arg4[%c0_6, %c0_7] : memref<1024x512xbf16, #tpu.memory_space<vmem>>, vector<1024x512xbf16>
    %cst_8 = arith.constant dense<0.000000e+00> : vector<8x512xf32>
    %11 = tpu.matmul %9, %10, %cst_8 {dimension_numbers = #tpu.dot_dimension_numbers<[1], [0], [0], [1], [0, 0, 1, 1], [], []>} : vector<8x1024xbf16>, vector<1024x512xbf16>, vector<8x512xf32> -> vector<8x512xf32>
    %c0_9 = arith.constant 0 : index
    %c0_10 = arith.constant 0 : index
    %12 = vector.load %arg5[%c0_9, %c0_10] : memref<1x512xf32, #tpu.memory_space<vmem>>, vector<1x512xf32>
    %13 = vector.broadcast %12 : vector<1x512xf32> to vector<8x512xf32>
    %14 = arith.addf %11, %13 : vector<8x512xf32>
    %cst_11 = arith.constant 0.00999999977 : f32
    %15 = vector.broadcast %cst_11 : f32 to vector<8x512xf32>
    %16 = arith.mulf %15, %14 : vector<8x512xf32>
    %17 = arith.maximumf %14, %16 : vector<8x512xf32>
    %18 = arith.truncf %17 : vector<8x512xf32> to vector<8x512xbf16>
    %c0_12 = arith.constant 0 : index
    %c0_13 = arith.constant 0 : index
    %19 = vector.load %arg6[%c0_12, %c0_13] : memref<512x128xbf16, #tpu.memory_space<vmem>>, vector<512x128xbf16>
    %cst_14 = arith.constant dense<0.000000e+00> : vector<8x128xf32>
    %20 = tpu.matmul %18, %19, %cst_14 {dimension_numbers = #tpu.dot_dimension_numbers<[1], [0], [0], [1], [0, 0, 1, 1], [], []>} : vector<8x512xbf16>, vector<512x128xbf16>, vector<8x128xf32> -> vector<8x128xf32>
    %c0_15 = arith.constant 0 : index
    %c0_16 = arith.constant 0 : index
    %21 = vector.load %arg7[%c0_15, %c0_16] : memref<1x128xf32, #tpu.memory_space<vmem>>, vector<1x128xf32>
    %22 = vector.broadcast %21 : vector<1x128xf32> to vector<8x128xf32>
    %23 = arith.addf %20, %22 : vector<8x128xf32>
    %c0_17 = arith.constant 0 : index
    %c0_18 = arith.constant 0 : index
    %24 = vector.load %arg8[%c0_17, %c0_18] : memref<8x128xf32, #tpu.memory_space<vmem>>, vector<8x128xf32>
    tpu.vector_store %arg8[%c0_17, %c0_18], %23 {strides = array<i32>} : memref<8x128xf32, #tpu.memory_space<vmem>>, vector<8x128xf32>,
    return
  }
  func.func @transform_0(%arg0: i32) -> (i32, i32) {
    %c0_i32 = arith.constant 0 : i32
    %c0_i32_0 = arith.constant 0 : i32
    return %arg0, %c0_i32 : i32, i32
  }
  func.func @transform_1(%arg0: i32) -> (i32, i32) {
    %c0_i32 = arith.constant 0 : i32
    %c0_i32_0 = arith.constant 0 : i32
    %c0_i32_1 = arith.constant 0 : i32
    return %c0_i32, %c0_i32_0 : i32, i32
  }
  func.func @transform_2(%arg0: i32) -> (i32, i32) {
    %c0_i32 = arith.constant 0 : i32
    %c0_i32_0 = arith.constant 0 : i32
    %c0_i32_1 = arith.constant 0 : i32
    return %c0_i32, %c0_i32_0 : i32, i32
  }
  func.func @transform_3(%arg0: i32) -> (i32, i32) {
    %c0_i32 = arith.constant 0 : i32
    %c0_i32_0 = arith.constant 0 : i32
    %c0_i32_1 = arith.constant 0 : i32
    return %c0_i32, %c0_i32_0 : i32, i32
  }
  func.func @transform_4(%arg0: i32) -> (i32, i32) {
    %c0_i32 = arith.constant 0 : i32
    %c0_i32_0 = arith.constant 0 : i32
    %c0_i32_1 = arith.constant 0 : i32
    return %c0_i32, %c0_i32_0 : i32, i32
  }
  func.func @transform_5(%arg0: i32) -> (i32, i32) {
    %c0_i32 = arith.constant 0 : i32
    %c0_i32_0 = arith.constant 0 : i32
    %c0_i32_1 = arith.constant 0 : i32
    return %c0_i32, %c0_i32_0 : i32, i32
  }
  func.func @transform_6(%arg0: i32) -> (i32, i32) {
    %c0_i32 = arith.constant 0 : i32
    %c0_i32_0 = arith.constant 0 : i32
    %c0_i32_1 = arith.constant 0 : i32
    return %c0_i32, %c0_i32_0 : i32, i32
  }
  func.func @transform_7(%arg0: i32) -> (i32, i32) {
    %c0_i32 = arith.constant 0 : i32
    %c0_i32_0 = arith.constant 0 : i32
    return %arg0, %c0_i32 : i32, i32
  }
}

</mosaic_0001>

<bundles_post_ra>
// kernel: tpu_custom_call.1
= control target key start
LH: loop header
LB: loop body
LE: loop exit
PB: predicated region body
PF: predicated region fallthrough
CT: control target
= control target key end

     0   :  { %12 = vsyncpa [#allocation3], 0  ;;  %s12631_s0 = inlined_call_operand.hbm [shape: bf16[8,1280], index: 0, kind: input, shape index: {}]   ;;  %s12632_s1 = inlined_call_operand.hbm [shape: bf16[1280,1024], index: 1, kind: input, shape index: {}]   ;;  %s12633_s2 = inlined_call_operand.hbm [shape: f32[1,1024], index: 2, kind: input, shape index: {}]   ;;  %s12634_s3 = inlined_call_operand.hbm [shape: bf16[1024,512], index: 3, kind: input, shape index: {}]   ;;  %s12635_s4 = inlined_call_operand.hbm [shape: f32[1,512], index: 4, kind: input, shape index: {}]   ;;  %s12636_s5 = inlined_call_operand.hbm [shape: bf16[512,128], index: 5, kind: input, shape index: {}]   ;;  %s12637_s6 = inlined_call_operand.hbm [shape: f32[1,128], index: 6, kind: input, shape index: {}]   ;;  %s12638_s7 = inlined_call_operand.hbm [shape: f32[8,128], index: 7, kind: output, shape index: {}]  }
   0x1   :  { %13 = vsyncpa [#allocation6], 0 }
   0x2   :  { %14 = vsyncpa [#allocation9], 0 }
   0x3   :  { %15 = vsyncpa [#allocation12], 0  ;;  %s32_s26 = sshll.u32 %s12632_s1, 4  ;;  %s33_s26 = int_to_ptr.hbm [resolvable:$true] %s32_s26 }
   0x4   :  { %16 = vsyncpa [#allocation4], 0  ;;  %s12258_s27 = smov [#allocation5]   ;;  %s56_s8 = sshll.u32 %s12634_s3, 4  ;;  %s57_s8 = int_to_ptr.hbm [resolvable:$true] %s56_s8 }
   0x5   :  { %s34_s28 = sshll.u32 %s12258_s27, 4  ;;  %s12259_s9 = smov 512   ;;  %s35_s28 = int_to_ptr.vmem [resolvable:$true] %s34_s28 }
   0x6   :  { %s12260_s10 = smov 32   ;;  %s12261_s11 = smov [#allocation8]  }
   0x7   :  { %40 = dma.hbm_to_vmem [thread:$0]  %s33_s26, 81920, %s35_s28, [#allocation6], %s12259_s9, %s12259_s9, %s12260_s10  }
   0x8   :  { %s58_s12 = sshll.u32 %s12261_s11, 4  ;;  %s12262_s13 = smov 256   ;;  %s59_s12 = int_to_ptr.vmem [resolvable:$true] %s58_s12 }
   0x9   :  { %s12263_s14 = smov 16   ;;  %s80_s16 = sshll.u32 %s12636_s5, 4  ;;  %s81_s16 = int_to_ptr.hbm [resolvable:$true] %s80_s16 }
   0xa   :  { %64 = dma.hbm_to_vmem [thread:$0]  %s57_s8, 32768, %s59_s12, [#allocation9], %s12262_s13, %s12262_s13, %s12263_s14  }
   0xb   :  { %s12264_s17 = smov [#allocation11]   ;;  %s22_s20 = sshll.u32 %s12631_s0, 4  ;;  %s23_s20 = int_to_ptr.hbm [resolvable:$true] %s22_s20 }
   0xc   :  { %s82_s18 = sshll.u32 %s12264_s17, 4  ;;  %s12265_s21 = smov 64   ;;  %s83_s18 = int_to_ptr.vmem [resolvable:$true] %s82_s18 }
   0xd   :  { %s12266_s22 = smov 4   ;;  %s12267_s23 = smov [#allocation2]  }
   0xe   :  { %88 = dma.hbm_to_vmem [thread:$0]  %s81_s16, 4096, %s83_s18, [#allocation12], %s12265_s21, %s12265_s21, %s12266_s22  }
   0xf   :  { %s24_s24 = sshll.u32 %s12267_s23, 4  ;;  %s46_s27 = sshll.u32 %s12633_s2, 4  ;;  %s25_s24 = int_to_ptr.vmem [resolvable:$true] %s24_s24  ;;  %s47_s27 = int_to_ptr.hbm [resolvable:$true] %s46_s27 }
  0x10   :  { %27 = dma.hbm_to_vmem [thread:$0]  %s23_s20, 640, %s25_s24, [#allocation3]  }
  0x11   :  { %s70_s29 = sshll.u32 %s12635_s4, 4  ;;  %s12268_s30 = smov [#allocation7]   ;;  %s71_s29 = int_to_ptr.hbm [resolvable:$true] %s70_s29 }
  0x12   :  { %s48_s8 = sshll.u32 %s12268_s30, 4  ;;  %s12269_s0 = smov [#allocation10]   ;;  %s49_s8 = int_to_ptr.vmem [resolvable:$true] %s48_s8 }
  0x13   :  { %51 = dma.hbm_to_vmem [thread:$0]  %s47_s27, 128, %s49_s8, [#allocation6]  }
  0x14   :  { %s72_s9 = sshll.u32 %s12269_s0, 4  ;;  %s94_s12 = sshll.u32 %s12637_s6, 4  ;;  %s73_s9 = int_to_ptr.vmem [resolvable:$true] %s72_s9  ;;  %s95_s12 = int_to_ptr.hbm [resolvable:$true] %s94_s12 }
  0x15   :  { %75 = dma.hbm_to_vmem [thread:$0]  %s71_s29, 64, %s73_s9, [#allocation9]  }
  0x16   :  { %s12270_s2 = smov [#allocation13]  }
  0x17   :  { %s96_s13 = sshll.u32 %s12270_s2, 4  ;;  %s97_s13 = int_to_ptr.vmem [resolvable:$true] %s96_s13 }
  0x18   :  { %99 = dma.hbm_to_vmem [thread:$0]  %s95_s12, 16, %s97_s13, [#allocation12]  }
  0x19   :  { %12248 = dma.done.wait [#allocation3], 640  }
  0x1a   :  { %12249 = vsyncadd [#allocation3], 4294966656 }
  0x1b   :  { %12250 = dma.done.wait [#allocation6], 82048  }
  0x1c   :  { %12251 = vsyncadd [#allocation6], 4294885248 }
  0x1d   :  { %12252 = dma.done.wait [#allocation9], 32832  }
  0x1e   :  { %12253 = vsyncadd [#allocation9], 4294934464 }
  0x1f   :  { %12254 = dma.done.wait [#allocation12], 4112  }
  0x20   :  { %12255 = vsyncadd [#allocation12], 4294963184  ;;  %v7623_v0 = vld [vmem:[#allocation5 + $0x1c0] sm:$0xf]  ;;  %s12271_s4 = smov [#allocation14]   ;;  %s7384_s15 = sshll.u32 %s12638_s7, 4  ;;  %s7385_s15 = int_to_ptr.hbm [resolvable:$true] %s7384_s15 }
  0x21   :  { %v11169_v1 = vld [vmem:[#allocation5 + $0x1dc] sm:$0xf0]  ;;  %s7382_s6 = sshll.u32 %s12271_s4, 4  ;;  %s7383_s6 = int_to_ptr.vmem [resolvable:$true] %s7382_s6 }
  0x22   :  { %v7879_v2 = vld [vmem:[#allocation5 + $0x3c0] sm:$0xf]  ;;  %v7624_v3 = vor.u32 %v11169_v1, %v7623_v0 }
  0x23   :  { %v11233_v4 = vld [vmem:[#allocation5 + $0x3dc] sm:$0xf0] }
  0x24   :  { %v8135_v5 = vld [vmem:[#allocation5 + $0x5c0] sm:$0xf]  ;;  %v7880_v7 = vor.u32 %v11233_v4, %v7879_v2  ;;  %4026 = vmatpush.bf16.msra.mxu0 %v7624_v3 }
  0x25   :  { %v11297_v6 = vld [vmem:[#allocation5 + $0x5dc] sm:$0xf0] }
  0x26   :  { %v8136_v8 = vor.u32 %v11297_v6, %v8135_v5  ;;  %v8391_v9 = vld [vmem:[#allocation5 + $0x7c0] sm:$0xf]  ;;  %4039 = vmatpush.bf16.msra.mxu1 %v7880_v7 }
  0x27   :  { %v11361_v10 = vld [vmem:[#allocation5 + $0x7dc] sm:$0xf0] }
  0x28   :  { %v7591_v11 = vld [vmem:[#allocation5 + $0x180] sm:$0xf]  ;;  %v8392_v12 = vor.u32 %v11361_v10, %v8391_v9  ;;  %4052 = vmatpush.bf16.msra.mxu2 %v8136_v8 }
  0x29   :  { %v11161_v13 = vld [vmem:[#allocation5 + $0x19c] sm:$0xf0] }
  0x2a   :  { %v7847_v14 = vld [vmem:[#allocation5 + $0x380] sm:$0xf]  ;;  %v7592_v16 = vor.u32 %v11161_v13, %v7591_v11  ;;  %4065 = vmatpush.bf16.msra.mxu3 %v8392_v12 }
  0x2b   :  { %v11225_v15 = vld [vmem:[#allocation5 + $0x39c] sm:$0xf0] }
  0x2c   :  { %v7848_v17 = vor.u32 %v11225_v15, %v7847_v14  ;;  %v8103_v18 = vld [vmem:[#allocation5 + $0x580] sm:$0xf]  ;;  %4027 = vmatpush.bf16.msra.mxu0 %v7592_v16 }
  0x2d   :  { %v11289_v19 = vld [vmem:[#allocation5 + $0x59c] sm:$0xf0] }
  0x2e   :  { %v8359_v20 = vld [vmem:[#allocation5 + $0x780] sm:$0xf]  ;;  %v8104_v21 = vor.u32 %v11289_v19, %v8103_v18  ;;  %4040 = vmatpush.bf16.msra.mxu1 %v7848_v17 }
  0x2f   :  { %v11353_v22 = vld [vmem:[#allocation5 + $0x79c] sm:$0xf0] }
  0x30   :  { %v7559_v23 = vld [vmem:[#allocation5 + $0x140] sm:$0xf]  ;;  %v8360_v25 = vor.u32 %v11353_v22, %v8359_v20  ;;  %4053 = vmatpush.bf16.msra.mxu2 %v8104_v21 }
  0x31   :  { %v11153_v24 = vld [vmem:[#allocation5 + $0x15c] sm:$0xf0] }
  0x32   :  { %v7815_v26 = vld [vmem:[#allocation5 + $0x340] sm:$0xf]  ;;  %v7560_v29 = vor.u32 %v11153_v24, %v7559_v23  ;;  %4066 = vmatpush.bf16.msra.mxu3 %v8360_v25 }
  0x33   :  { %v11217_v27 = vld [vmem:[#allocation5 + $0x35c] sm:$0xf0] }
  0x34   :  { %v8071_v28 = vld [vmem:[#allocation5 + $0x540] sm:$0xf]  ;;  %v7816_v33 = vor.u32 %v11217_v27, %v7815_v26  ;;  %4028 = vmatpush.bf16.msra.mxu0 %v7560_v29 }
  0x35   :  { %v11281_v30 = vld [vmem:[#allocation5 + $0x55c] sm:$0xf0] }
  0x36   :  { %v8327_v31 = vld [vmem:[#allocation5 + $0x740] sm:$0xf]  ;;  %v8072_v34 = vor.u32 %v11281_v30, %v8071_v28  ;;  %4041 = vmatpush.bf16.msra.mxu1 %v7816_v33 }
  0x37   :  { %v11345_v32 = vld [vmem:[#allocation5 + $0x75c] sm:$0xf0] }
  0x38   :  { %v7527_v35 = vld [vmem:[#allocation5 + $0x100] sm:$0xf]  ;;  %v8328_v38 = vor.u32 %v11345_v32, %v8327_v31  ;;  %4054 = vmatpush.bf16.msra.mxu2 %v8072_v34 }
  0x39   :  { %v11145_v36 = vld [vmem:[#allocation5 + $0x11c] sm:$0xf0] }
  0x3a   :  { %v7783_v37 = vld [vmem:[#allocation5 + $0x300] sm:$0xf]  ;;  %v7528_v44 = vor.u32 %v11145_v36, %v7527_v35  ;;  %4067 = vmatpush.bf16.msra.mxu3 %v8328_v38 }
  0x3b   :  { %v11209_v39 = vld [vmem:[#allocation5 + $0x31c] sm:$0xf0] }
  0x3c   :  { %v8039_v40 = vld [vmem:[#allocation5 + $0x500] sm:$0xf]  ;;  %v7784_v45 = vor.u32 %v11209_v39, %v7783_v37  ;;  %4029 = vmatpush.bf16.msra.mxu0 %v7528_v44 }
  0x3d   :  { %v11273_v41 = vld [vmem:[#allocation5 + $0x51c] sm:$0xf0] }
  0x3e   :  { %v8295_v42 = vld [vmem:[#allocation5 + $0x700] sm:$0xf]  ;;  %v8040_v46 = vor.u32 %v11273_v41, %v8039_v40  ;;  %4042 = vmatpush.bf16.msra.mxu1 %v7784_v45 }
  0x3f   :  { %v11337_v43 = vld [vmem:[#allocation5 + $0x71c] sm:$0xf0] }
  0x40   :  { %v7495_v47 = vld [vmem:[#allocation5 + $0xc0] sm:$0xf]  ;;  %v8296_v50 = vor.u32 %v11337_v43, %v8295_v42  ;;  %4055 = vmatpush.bf16.msra.mxu2 %v8040_v46 }
  0x41   :  { %v11137_v48 = vld [vmem:[#allocation5 + $0xdc] sm:$0xf0] }
  0x42   :  { %v7751_v49 = vld [vmem:[#allocation5 + $0x2c0] sm:$0xf]  ;;  %v7496_v56 = vor.u32 %v11137_v48, %v7495_v47  ;;  %4068 = vmatpush.bf16.msra.mxu3 %v8296_v50 }
  0x43   :  { %v11201_v51 = vld [vmem:[#allocation5 + $0x2dc] sm:$0xf0] }
  0x44   :  { %v8007_v52 = vld [vmem:[#allocation5 + $0x4c0] sm:$0xf]  ;;  %v7752_v57 = vor.u32 %v11201_v51, %v7751_v49  ;;  %4030 = vmatpush.bf16.msra.mxu0 %v7496_v56 }
  0x45   :  { %v11265_v53 = vld [vmem:[#allocation5 + $0x4dc] sm:$0xf0] }
  0x46   :  { %v8263_v54 = vld [vmem:[#allocation5 + $0x6c0] sm:$0xf]  ;;  %v8008_v58 = vor.u32 %v11265_v53, %v8007_v52  ;;  %4043 = vmatpush.bf16.msra.mxu1 %v7752_v57 }
  0x47   :  { %v11329_v55 = vld [vmem:[#allocation5 + $0x6dc] sm:$0xf0] }
  0x48   :  { %v7463_v59 = vld [vmem:[#allocation5 + $0x80] sm:$0xf]  ;;  %v8264_v62 = vor.u32 %v11329_v55, %v8263_v54  ;;  %4056 = vmatpush.bf16.msra.mxu2 %v8008_v58 }
  0x49   :  { %v11129_v60 = vld [vmem:[#allocation5 + $0x9c] sm:$0xf0] }
  0x4a   :  { %v7719_v61 = vld [vmem:[#allocation5 + $0x280] sm:$0xf]  ;;  %v7464_v4 = vor.u32 %v11129_v60, %v7463_v59  ;;  %4069 = vmatpush.bf16.msra.mxu3 %v8264_v62 }
  0x4b   :  { %v11193_v63 = vld [vmem:[#allocation5 + $0x29c] sm:$0xf0] }
  0x4c   :  { %v7975_v0 = vld [vmem:[#allocation5 + $0x480] sm:$0xf]  ;;  %v7720_v5 = vor.u32 %v11193_v63, %v7719_v61  ;;  %4031 = vmatpush.bf16.msra.mxu0 %v7464_v4 }
  0x4d   :  { %v11257_v1 = vld [vmem:[#allocation5 + $0x49c] sm:$0xf0] }
  0x4e   :  { %v8231_v2 = vld [vmem:[#allocation5 + $0x680] sm:$0xf]  ;;  %v7976_v6 = vor.u32 %v11257_v1, %v7975_v0  ;;  %4044 = vmatpush.bf16.msra.mxu1 %v7720_v5 }
  0x4f   :  { %v11321_v3 = vld [vmem:[#allocation5 + $0x69c] sm:$0xf0] }
  0x50   :  { %v7431_v7 = vld [vmem:[#allocation5 + $0x40] sm:$0xf]  ;;  %v8232_v10 = vor.u32 %v11321_v3, %v8231_v2  ;;  %4057 = vmatpush.bf16.msra.mxu2 %v7976_v6  ;;  %v128_v3 = vld [vmem:[#allocation2] sm:$0xff] }
  0x51   :  { %v11121_v8 = vld [vmem:[#allocation5 + $0x5c] sm:$0xf0] }
  0x52   :  { %v7687_v9 = vld [vmem:[#allocation5 + $0x240] sm:$0xf]  ;;  %v7432_v16 = vor.u32 %v11121_v8, %v7431_v7  ;;  %4070 = vmatpush.bf16.msra.mxu3 %v8232_v10 }
  0x53   :  { %v11185_v11 = vld [vmem:[#allocation5 + $0x25c] sm:$0xf0] }
  0x54   :  { %v7943_v12 = vld [vmem:[#allocation5 + $0x440] sm:$0xf]  ;;  %v7688_v19 = vor.u32 %v11185_v11, %v7687_v9  ;;  %4032 = vmatpush.bf16.msra.mxu0 %v7432_v16  ;;  %v796_v9 = vunpack.c.l.b16 %v128_v3 }
  0x55   :  { %v11249_v13 = vld [vmem:[#allocation5 + $0x45c] sm:$0xf0] }
  0x56   :  { %v8199_v14 = vld [vmem:[#allocation5 + $0x640] sm:$0xf]  ;;  %v7944_v20 = vor.u32 %v11249_v13, %v7943_v12  ;;  %4045 = vmatpush.bf16.msra.mxu1 %v7688_v19  ;;  %v12335_v19 = vpack.c.b16 %v796_v9, %v796_v9 }
  0x57   :  { %v11313_v15 = vld [vmem:[#allocation5 + $0x65c] sm:$0xf0] }
  0x58   :  { %v7399_v17 = vld [vmem:[#allocation5] sm:$0xf]  ;;  %v8200_v24 = vor.u32 %v11313_v15, %v8199_v14  ;;  %4058 = vmatpush.bf16.msra.mxu2 %v7944_v20  ;;  %v797_v15 = vunpack.c.h.b16 %v128_v3  ;;  %v131_v3 = vld [vmem:[#allocation2 + $0x18] sm:$0xff] }
  0x59   :  { %v11113_v18 = vld [vmem:[#allocation5 + $0x1c] sm:$0xf0] }
  0x5a   :  { %v7655_v21 = vld [vmem:[#allocation5 + $0x200] sm:$0xf]  ;;  %v7400_v31 = vor.u32 %v11113_v18, %v7399_v17  ;;  %4071 = vmatpush.bf16.msra.mxu3 %v8200_v24 }
  0x5b   :  { %v11177_v22 = vld [vmem:[#allocation5 + $0x21c] sm:$0xf0] }
  0x5c   :  { %v7911_v23 = vld [vmem:[#allocation5 + $0x400] sm:$0xf]  ;;  %v7656_v35 = vor.u32 %v11177_v22, %v7655_v21  ;;  %4033 = vmatpush.bf16.msra.mxu0 %v7400_v31  ;;  %v12339_v22 = vpack.c.b16 %v797_v15, %v797_v15  ;;  %v802_v15 = vunpack.c.l.b16 %v131_v3 }
  0x5d   :  { %v11241_v25 = vld [vmem:[#allocation5 + $0x41c] sm:$0xf0] }
  0x5e   :  { %v8167_v26 = vld [vmem:[#allocation5 + $0x600] sm:$0xf]  ;;  %v7912_v36 = vor.u32 %v11241_v25, %v7911_v23  ;;  %4046 = vmatpush.bf16.msra.mxu1 %v7656_v35 }
  0x5f   :  { %v11305_v27 = vld [vmem:[#allocation5 + $0x61c] sm:$0xf0]  ;;  %4034 = vmatmul.bf16.vlgmr.msra.gmra.mxu0 %v12335_v19 }
  0x60   :  { %v8647_v28 = vld [vmem:[#allocation5 + $0x9c0] sm:$0xf]  ;;  %v8168_v39 = vor.u32 %v11305_v27, %v8167_v26  ;;  %4059 = vmatpush.bf16.msra.mxu2 %v7912_v36 }
  0x61   :  { %v11425_v29 = vld [vmem:[#allocation5 + $0x9dc] sm:$0xf0]  ;;  %4047 = vmatmul.bf16.vlgmr.msra.gmra.mxu1 %v12339_v22 }
  0x62   :  { %v8903_v30 = vld [vmem:[#allocation5 + $0xbc0] sm:$0xf]  ;;  %v8648_v40 = vor.u32 %v11425_v29, %v8647_v28  ;;  %4072 = vmatpush.bf16.msra.mxu3 %v8168_v39 }
  0x63   :  { %v11489_v32 = vld [vmem:[#allocation5 + $0xbdc] sm:$0xf0] }
  0x64   :  { %v9159_v33 = vld [vmem:[#allocation5 + $0xdc0] sm:$0xf]  ;;  %v8904_v41 = vor.u32 %v11489_v32, %v8903_v30  ;;  %4078 = vmatpush.bf16.msrb.mxu0 %v8648_v40 }
  0x65   :  { %v11553_v34 = vld [vmem:[#allocation5 + $0xddc] sm:$0xf0] }
  0x66   :  { %v9415_v37 = vld [vmem:[#allocation5 + $0xfc0] sm:$0xf]  ;;  %v9160_v42 = vor.u32 %v11553_v34, %v9159_v33  ;;  %4091 = vmatpush.bf16.msrb.mxu1 %v8904_v41 }
  0x67   :  { %v11617_v38 = vld [vmem:[#allocation5 + $0xfdc] sm:$0xf0] }
  0x68   :  { %v8615_v43 = vld [vmem:[#allocation5 + $0x980] sm:$0xf]  ;;  %v9416_v46 = vor.u32 %v11617_v38, %v9415_v37  ;;  %4104 = vmatpush.bf16.msrb.mxu2 %v9160_v42 }
  0x69   :  { %v11417_v44 = vld [vmem:[#allocation5 + $0x99c] sm:$0xf0] }
  0x6a   :  { %v8871_v45 = vld [vmem:[#allocation5 + $0xb80] sm:$0xf]  ;;  %v8616_v52 = vor.u32 %v11417_v44, %v8615_v43  ;;  %4117 = vmatpush.bf16.msrb.mxu3 %v9416_v46 }
  0x6b   :  { %v11481_v47 = vld [vmem:[#allocation5 + $0xb9c] sm:$0xf0] }
  0x6c   :  { %v9127_v48 = vld [vmem:[#allocation5 + $0xd80] sm:$0xf]  ;;  %v8872_v54 = vor.u32 %v11481_v47, %v8871_v45  ;;  %4079 = vmatpush.bf16.msrb.mxu0 %v8616_v52 }
  0x6d   :  { %v11545_v49 = vld [vmem:[#allocation5 + $0xd9c] sm:$0xf0] }
  0x6e   :  { %v9383_v50 = vld [vmem:[#allocation5 + $0xf80] sm:$0xf]  ;;  %v9128_v55 = vor.u32 %v11545_v49, %v9127_v48  ;;  %4092 = vmatpush.bf16.msrb.mxu1 %v8872_v54 }
  0x6f   :  { %v11609_v51 = vld [vmem:[#allocation5 + $0xf9c] sm:$0xf0] }
  0x70   :  { %v8583_v53 = vld [vmem:[#allocation5 + $0x940] sm:$0xf]  ;;  %v9384_v59 = vor.u32 %v11609_v51, %v9383_v50  ;;  %4105 = vmatpush.bf16.msrb.mxu2 %v9128_v55 }
  0x71   :  { %v11409_v56 = vld [vmem:[#allocation5 + $0x95c] sm:$0xf0] }
  0x72   :  { %v8839_v57 = vld [vmem:[#allocation5 + $0xb40] sm:$0xf]  ;;  %v8584_v0 = vor.u32 %v11409_v56, %v8583_v53  ;;  %4118 = vmatpush.bf16.msrb.mxu3 %v9384_v59 }
  0x73   :  { %v11473_v58 = vld [vmem:[#allocation5 + $0xb5c] sm:$0xf0] }
  0x74   :  { %v9095_v60 = vld [vmem:[#allocation5 + $0xd40] sm:$0xf]  ;;  %v8840_v1 = vor.u32 %v11473_v58, %v8839_v57  ;;  %4080 = vmatpush.bf16.msrb.mxu0 %v8584_v0 }
  0x75   :  { %v11537_v61 = vld [vmem:[#allocation5 + $0xd5c] sm:$0xf0] }
  0x76   :  { %v9351_v62 = vld [vmem:[#allocation5 + $0xf40] sm:$0xf]  ;;  %v9096_v4 = vor.u32 %v11537_v61, %v9095_v60  ;;  %4093 = vmatpush.bf16.msrb.mxu1 %v8840_v1 }
  0x77   :  { %v11601_v63 = vld [vmem:[#allocation5 + $0xf5c] sm:$0xf0] }
  0x78   :  { %v129_v2 = vld [vmem:[#allocation2 + $0x8] sm:$0xff]  ;;  %v9352_v11 = vor.u32 %v11601_v63, %v9351_v62  ;;  %4106 = vmatpush.bf16.msrb.mxu2 %v9096_v4 }
  0x79   :  { %v8551_v5 = vld [vmem:[#allocation5 + $0x900] sm:$0xf]  ;;  %v798_v8 = vunpack.c.l.b16 %v129_v2  ;;  %v799_v10 = vunpack.c.h.b16 %v129_v2 }
  0x7a   :  { %v11401_v6 = vld [vmem:[#allocation5 + $0x91c] sm:$0xf0]  ;;  %4119 = vmatpush.bf16.msrb.mxu3 %v9352_v11 }
  0x7b   :  { %v8807_v7 = vld [vmem:[#allocation5 + $0xb00] sm:$0xf]  ;;  %v12333_v18 = vpack.c.b16 %v798_v8, %v798_v8  ;;  %v12337_v20 = vpack.c.b16 %v799_v10, %v799_v10  ;;  %v8552_v21 = vor.u32 %v11401_v6, %v8551_v5 }
  0x7c   :  { %v11465_v12 = vld [vmem:[#allocation5 + $0xb1c] sm:$0xf0] }
  0x7d   :  { %v9063_v13 = vld [vmem:[#allocation5 + $0xd00] sm:$0xf]  ;;  %v8808_v23 = vor.u32 %v11465_v12, %v8807_v7  ;;  %4060 = vmatmul.bf16.vlgmr.msra.gmra.mxu2 %v12333_v18  ;;  %4073 = vmatmul.bf16.vlgmr.msra.gmra.mxu3 %v12337_v20  ;;  %v130_v7 = vld [vmem:[#allocation2 + $0x10] sm:$0xff] }
  0x7e   :  { %v11529_v14 = vld [vmem:[#allocation5 + $0xd1c] sm:$0xf0]  ;;  %4081 = vmatpush.bf16.msrb.mxu0 %v8552_v21  ;;  %v11229_v21 = vld [vmem:[#allocation5 + $0x3c4] sm:$0xf] }
  0x7f   :  { %v9319_v16 = vld [vmem:[#allocation5 + $0xf00] sm:$0xf]  ;;  %v9064_v24 = vor.u32 %v11529_v14, %v9063_v13  ;;  %4094 = vmatpush.bf16.msrb.mxu1 %v8808_v23  ;;  %v11165_v13 = vld [vmem:[#allocation5 + $0x1c4] sm:$0xf] }
  0x80   :  { %v11593_v17 = vld [vmem:[#allocation5 + $0xf1c] sm:$0xf0]  ;;  %v7625_v14 = vld [vmem:[#allocation5 + $0x1e0] sm:$0xf0] }
  0x81   :  { %v8519_v25 = vld [vmem:[#allocation5 + $0x8c0] sm:$0xf]  ;;  %v9320_v28 = vor.u32 %v11593_v17, %v9319_v16  ;;  %4107 = vmatpush.bf16.msrb.mxu2 %v9064_v24  ;;  %v7881_v23 = vld [vmem:[#allocation5 + $0x3e0] sm:$0xf0]  ;;  %v800_v24 = vunpack.c.l.b16 %v130_v7 }
  0x82   :  { %v11393_v26 = vld [vmem:[#allocation5 + $0x8dc] sm:$0xf0] }
  0x83   :  { %v8775_v27 = vld [vmem:[#allocation5 + $0xac0] sm:$0xf]  ;;  %v8520_v34 = vor.u32 %v11393_v26, %v8519_v25  ;;  %4120 = vmatpush.bf16.msrb.mxu3 %v9320_v28  ;;  %v803_v25 = vunpack.c.h.b16 %v131_v3  ;;  %v801_v28 = vunpack.c.h.b16 %v130_v7  ;;  %v7785_v3 = vld [vmem:[#allocation5 + $0x320] sm:$0xf0] }
  0x84   :  { %v11457_v29 = vld [vmem:[#allocation5 + $0xadc] sm:$0xf0] }
  0x85   :  { %v9031_v30 = vld [vmem:[#allocation5 + $0xcc0] sm:$0xf]  ;;  %v8776_v35 = vor.u32 %v11457_v29, %v8775_v27  ;;  %4082 = vmatpush.bf16.msrb.mxu0 %v8520_v34  ;;  %v7884_v34 = vor.u32 %v11229_v21, %v7881_v23 }
  0x86   :  { %v11521_v31 = vld [vmem:[#allocation5 + $0xcdc] sm:$0xf0] }
  0x87   :  { %v9287_v32 = vld [vmem:[#allocation5 + $0xec0] sm:$0xf]  ;;  %v9032_v36 = vor.u32 %v11521_v31, %v9031_v30  ;;  %4095 = vmatpush.bf16.msrb.mxu1 %v8776_v35  ;;  %v7628_v30 = vor.u32 %v11165_v13, %v7625_v14  ;;  %v7497_v13 = vld [vmem:[#allocation5 + $0xe0] sm:$0xf0] }
  0x88   :  { %v11585_v33 = vld [vmem:[#allocation5 + $0xedc] sm:$0xf0]  ;;  %v11197_v14 = vld [vmem:[#allocation5 + $0x2c4] sm:$0xf] }
  0x89   :  { %v8487_v37 = vld [vmem:[#allocation5 + $0x880] sm:$0xf]  ;;  %v9288_v40 = vor.u32 %v11585_v33, %v9287_v32  ;;  %4108 = vmatpush.bf16.msrb.mxu2 %v9032_v36  ;;  %v11157_v36 = vld [vmem:[#allocation5 + $0x184] sm:$0xf] }
  0x8a   :  { %v11385_v38 = vld [vmem:[#allocation5 + $0x89c] sm:$0xf0] }
  0x8b   :  { %v8743_v39 = vld [vmem:[#allocation5 + $0xa80] sm:$0xf]  ;;  %v8488_v46 = vor.u32 %v11385_v38, %v8487_v37  ;;  %4121 = vmatpush.bf16.msrb.mxu3 %v9288_v40  ;;  %v7593_v37 = vld [vmem:[#allocation5 + $0x1a0] sm:$0xf0]  ;;  %v12345_v38 = vpack.c.b16 %v802_v15, %v802_v15 }
  0x8c   :  { %v11449_v41 = vld [vmem:[#allocation5 + $0xa9c] sm:$0xf0]  ;;  %v7849_v40 = vld [vmem:[#allocation5 + $0x3a0] sm:$0xf0] }
  0x8d   :  { %v8999_v42 = vld [vmem:[#allocation5 + $0xc80] sm:$0xf]  ;;  %v8744_v47 = vor.u32 %v11449_v41, %v8743_v39  ;;  %4083 = vmatpush.bf16.msrb.mxu0 %v8488_v46  ;;  %v11221_v39 = vld [vmem:[#allocation5 + $0x384] sm:$0xf]  ;;  %v12347_v41 = vpack.c.b16 %v800_v24, %v800_v24  ;;  %v7596_v46 = vor.u32 %v11157_v36, %v7593_v37 }
  0x8e   :  { %v11513_v43 = vld [vmem:[#allocation5 + $0xc9c] sm:$0xf0]  ;;  %v7753_v15 = vld [vmem:[#allocation5 + $0x2e0] sm:$0xf0] }
  0x8f   :  { %v9255_v44 = vld [vmem:[#allocation5 + $0xe80] sm:$0xf]  ;;  %v9000_v48 = vor.u32 %v11513_v43, %v8999_v42  ;;  %4096 = vmatpush.bf16.msrb.mxu1 %v8744_v47  ;;  %v12349_v42 = vpack.c.b16 %v803_v25, %v803_v25 }
  0x90   :  { %v11577_v45 = vld [vmem:[#allocation5 + $0xe9c] sm:$0xf0] }
  0x91   :  { %v8455_v49 = vld [vmem:[#allocation5 + $0x840] sm:$0xf]  ;;  %v9256_v52 = vor.u32 %v11577_v45, %v9255_v44  ;;  %4109 = vmatpush.bf16.msrb.mxu2 %v9000_v48  ;;  %v12351_v44 = vpack.c.b16 %v801_v28, %v801_v28  ;;  %v11125_v28 = vld [vmem:[#allocation5 + $0x84] sm:$0xf] }
  0x92   :  { %v11377_v50 = vld [vmem:[#allocation5 + $0x85c] sm:$0xf0] }
  0x93   :  { %v8711_v51 = vld [vmem:[#allocation5 + $0xa40] sm:$0xf]  ;;  %v8456_v59 = vor.u32 %v11377_v50, %v8455_v49  ;;  %4122 = vmatpush.bf16.msrb.mxu3 %v9256_v52  ;;  %v7852_v50 = vor.u32 %v11221_v39, %v7849_v40  ;;  %v11149_v52 = vld [vmem:[#allocation5 + $0x144] sm:$0xf] }
  0x94   :  { %v11441_v53 = vld [vmem:[#allocation5 + $0xa5c] sm:$0xf0] }
  0x95   :  { %v8967_v54 = vld [vmem:[#allocation5 + $0xc40] sm:$0xf]  ;;  %v8712_v63 = vor.u32 %v11441_v53, %v8711_v51  ;;  %4084 = vmatpush.bf16.msrb.mxu0 %v8456_v59  ;;  %v7561_v53 = vld [vmem:[#allocation5 + $0x160] sm:$0xf0] }
  0x96   :  { %v11505_v55 = vld [vmem:[#allocation5 + $0xc5c] sm:$0xf0] }
  0x97   :  { %v9223_v56 = vld [vmem:[#allocation5 + $0xe40] sm:$0xf]  ;;  %v8968_v0 = vor.u32 %v11505_v55, %v8967_v54  ;;  %4097 = vmatpush.bf16.msrb.mxu1 %v8712_v63  ;;  %v11213_v54 = vld [vmem:[#allocation5 + $0x344] sm:$0xf] }
  0x98   :  { %v11569_v57 = vld [vmem:[#allocation5 + $0xe5c] sm:$0xf0]  ;;  %v7817_v55 = vld [vmem:[#allocation5 + $0x360] sm:$0xf0] }
  0x99   :  { %v8423_v58 = vld [vmem:[#allocation5 + $0x800] sm:$0xf]  ;;  %v9224_v4 = vor.u32 %v11569_v57, %v9223_v56  ;;  %4110 = vmatpush.bf16.msrb.mxu2 %v8968_v0  ;;  %v11141_v0 = vld [vmem:[#allocation5 + $0x104] sm:$0xf] }
  0x9a   :  { %v11369_v60 = vld [vmem:[#allocation5 + $0x81c] sm:$0xf0] }
  0x9b   :  { %v8679_v61 = vld [vmem:[#allocation5 + $0xa00] sm:$0xf]  ;;  %v8424_v11 = vor.u32 %v11369_v60, %v8423_v58  ;;  %4123 = vmatpush.bf16.msrb.mxu3 %v9224_v4  ;;  %v7564_v58 = vor.u32 %v11149_v52, %v7561_v53 }
  0x9c   :  { %v11433_v62 = vld [vmem:[#allocation5 + $0xa1c] sm:$0xf0] }
  0x9d   :  { %v8935_v1 = vld [vmem:[#allocation5 + $0xc00] sm:$0xf]  ;;  %v8680_v16 = vor.u32 %v11433_v62, %v8679_v61  ;;  %4085 = vmatpush.bf16.msrb.mxu0 %v8424_v11  ;;  %v7820_v62 = vor.u32 %v11213_v54, %v7817_v55  ;;  %v11109_v55 = vld [vmem:[#allocation5 + $0x4] sm:$0xf] }
  0x9e   :  { %v11497_v2 = vld [vmem:[#allocation5 + $0xc1c] sm:$0xf0] }
  0x9f   :  { %v9191_v5 = vld [vmem:[#allocation5 + $0xe00] sm:$0xf]  ;;  %v8936_v17 = vor.u32 %v11497_v2, %v8935_v1  ;;  %4098 = vmatpush.bf16.msrb.mxu1 %v8680_v16  ;;  %v7529_v1 = vld [vmem:[#allocation5 + $0x120] sm:$0xf0] }
  0xa0   :  { %v11561_v6 = vld [vmem:[#allocation5 + $0xe1c] sm:$0xf0]  ;;  %4086 = vmatmul.bf16.vlgmr.msrb.gmra.mxu0 %v12347_v41  ;;  %v11205_v2 = vld [vmem:[#allocation5 + $0x304] sm:$0xf] }
  0xa1   :  { %v9671_v8 = vld [vmem:[#allocation5 + $0x11c0] sm:$0xf]  ;;  %v9192_v26 = vor.u32 %v11561_v6, %v9191_v5  ;;  %4111 = vmatpush.bf16.msrb.mxu2 %v8936_v17  ;;  %v7532_v6 = vor.u32 %v11141_v0, %v7529_v1  ;;  %v8393_v1 = vld [vmem:[#allocation5 + $0x7e0] sm:$0xf0] }
  0xa2   :  { %v11681_v9 = vld [vmem:[#allocation5 + $0x11dc] sm:$0xf0]  ;;  %4099 = vmatmul.bf16.vlgmr.msrb.gmra.mxu1 %v12351_v44 }
  0xa3   :  { %v9927_v10 = vld [vmem:[#allocation5 + $0x13c0] sm:$0xf]  ;;  %v9672_v27 = vor.u32 %v11681_v9, %v9671_v8  ;;  %4124 = vmatpush.bf16.msrb.mxu3 %v9192_v26  ;;  %v7756_v26 = vor.u32 %v11197_v14, %v7753_v15  ;;  %v11285_v14 = vld [vmem:[#allocation5 + $0x584] sm:$0xf] }
  0xa4   :  { %v11745_v12 = vld [vmem:[#allocation5 + $0x13dc] sm:$0xf0]  ;;  %4112 = vmatmul.bf16.vlgmr.msrb.gmra.mxu2 %v12345_v38  ;;  %v8105_v15 = vld [vmem:[#allocation5 + $0x5a0] sm:$0xf0] }
  0xa5   :  { %v9928_v29 = vor.u32 %v11745_v12, %v9927_v10  ;;  %v9639_v31 = vld [vmem:[#allocation5 + $0x1180] sm:$0xf]  ;;  %4130 = vmatpush.bf16.msra.mxu0 %v9672_v27  ;;  %4156 = vmatpush.bf16.msra.mxu2 %v7628_v30  ;;  %v7788_v10 = vor.u32 %v11205_v2, %v7785_v3  ;;  %v11133_v12 = vld [vmem:[#allocation5 + $0xc4] sm:$0xf] }
  0xa6   :  { %v11673_v32 = vld [vmem:[#allocation5 + $0x119c] sm:$0xf0]  ;;  %4125 = vmatmul.bf16.vlgmr.msrb.gmra.mxu3 %v12349_v42  ;;  %v7500_v21 = vor.u32 %v11133_v12, %v7497_v13  ;;  %v11189_v30 = vld [vmem:[#allocation5 + $0x284] sm:$0xf] }
  0xa7   :  { %v9895_v33 = vld [vmem:[#allocation5 + $0x1380] sm:$0xf]  ;;  %v9640_v43 = vor.u32 %v11673_v32, %v9639_v31  ;;  %4143 = vmatpush.bf16.msra.mxu1 %v9928_v29  ;;  %4169 = vmatpush.bf16.msra.mxu3 %v7884_v34  ;;  %v7465_v29 = vld [vmem:[#allocation5 + $0xa0] sm:$0xf0] }
  0xa8   :  { %v11737_v35 = vld [vmem:[#allocation5 + $0x139c] sm:$0xf0]  ;;  %v7721_v31 = vld [vmem:[#allocation5 + $0x2a0] sm:$0xf0]  ;;  %v7468_v34 = vor.u32 %v11125_v28, %v7465_v29  ;;  %v8108_v29 = vor.u32 %v11285_v14, %v8105_v15 }
  0xa9   :  { %v9896_v45 = vor.u32 %v11737_v35, %v9895_v33  ;;  %v9607_v47 = vld [vmem:[#allocation5 + $0x1140] sm:$0xf]  ;;  %4131 = vmatpush.bf16.msra.mxu0 %v9640_v43  ;;  %4157 = vmatpush.bf16.msra.mxu2 %v7596_v46  ;;  %v7724_v39 = vor.u32 %v11189_v30, %v7721_v31  ;;  %v11117_v43 = vld [vmem:[#allocation5 + $0x44] sm:$0xf] }
  0xaa   :  { %v11665_v48 = vld [vmem:[#allocation5 + $0x115c] sm:$0xf0]  ;;  %v11181_v46 = vld [vmem:[#allocation5 + $0x244] sm:$0xf] }
  0xab   :  { %v9863_v49 = vld [vmem:[#allocation5 + $0x1340] sm:$0xf]  ;;  %v9608_v56 = vor.u32 %v11665_v48, %v9607_v47  ;;  %4144 = vmatpush.bf16.msra.mxu1 %v9896_v45  ;;  %4170 = vmatpush.bf16.msra.mxu3 %v7852_v50  ;;  %v7433_v45 = vld [vmem:[#allocation5 + $0x60] sm:$0xf0] }
  0xac   :  { %v11729_v51 = vld [vmem:[#allocation5 + $0x135c] sm:$0xf0]  ;;  %v7689_v47 = vld [vmem:[#allocation5 + $0x260] sm:$0xf0]  ;;  %v7436_v53 = vor.u32 %v11117_v43, %v7433_v45 }
  0xad   :  { %v9864_v57 = vor.u32 %v11729_v51, %v9863_v49  ;;  %v9575_v59 = vld [vmem:[#allocation5 + $0x1100] sm:$0xf]  ;;  %4132 = vmatpush.bf16.msra.mxu0 %v9608_v56  ;;  %4158 = vmatpush.bf16.msra.mxu2 %v7564_v58  ;;  %v132_v56 = vld [vmem:[#allocation2 + $0x20] sm:$0xff]  ;;  %v7401_v58 = vld [vmem:[#allocation5 + $0x20] sm:$0xf0] }
  0xae   :  { %v11657_v60 = vld [vmem:[#allocation5 + $0x111c] sm:$0xf0]  ;;  %v11421_v2 = vld [vmem:[#allocation5 + $0x9c4] sm:$0xf] }
  0xaf   :  { %v9831_v61 = vld [vmem:[#allocation5 + $0x1300] sm:$0xf]  ;;  %v9576_v4 = vor.u32 %v11657_v60, %v9575_v59  ;;  %4145 = vmatpush.bf16.msra.mxu1 %v9864_v57  ;;  %4171 = vmatpush.bf16.msra.mxu3 %v7820_v62  ;;  %v7692_v57 = vor.u32 %v11181_v46, %v7689_v47  ;;  %v11173_v59 = vld [vmem:[#allocation5 + $0x204] sm:$0xf] }
  0xb0   :  { %v11721_v63 = vld [vmem:[#allocation5 + $0x131c] sm:$0xf0]  ;;  %v7657_v60 = vld [vmem:[#allocation5 + $0x220] sm:$0xf0] }
  0xb1   :  { %v9832_v5 = vor.u32 %v11721_v63, %v9831_v61  ;;  %v9543_v7 = vld [vmem:[#allocation5 + $0x10c0] sm:$0xf]  ;;  %4133 = vmatpush.bf16.msra.mxu0 %v9576_v4  ;;  %4159 = vmatpush.bf16.msra.mxu2 %v7532_v6  ;;  %v11293_v61 = vld [vmem:[#allocation5 + $0x5c4] sm:$0xf]  ;;  %v804_v4 = vunpack.c.l.b16 %v132_v56  ;;  %v7404_v6 = vor.u32 %v11109_v55, %v7401_v58 }
  0xb2   :  { %v11649_v8 = vld [vmem:[#allocation5 + $0x10dc] sm:$0xf0]  ;;  %v8137_v62 = vld [vmem:[#allocation5 + $0x5e0] sm:$0xf0] }
  0xb3   :  { %v9799_v9 = vld [vmem:[#allocation5 + $0x12c0] sm:$0xf]  ;;  %v9544_v16 = vor.u32 %v11649_v8, %v9543_v7  ;;  %4146 = vmatpush.bf16.msra.mxu1 %v9832_v5  ;;  %4172 = vmatpush.bf16.msra.mxu3 %v7788_v10  ;;  %v11357_v63 = vld [vmem:[#allocation5 + $0x7c4] sm:$0xf]  ;;  %v7660_v10 = vor.u32 %v11173_v59, %v7657_v60 }
  0xb4   :  { %v11713_v11 = vld [vmem:[#allocation5 + $0x12dc] sm:$0xf0]  ;;  %v8649_v3 = vld [vmem:[#allocation5 + $0x9e0] sm:$0xf0]  ;;  %v8396_v12 = vor.u32 %v11357_v63, %v8393_v1 }
  0xb5   :  { %v9800_v17 = vor.u32 %v11713_v11, %v9799_v9  ;;  %v9511_v23 = vld [vmem:[#allocation5 + $0x1080] sm:$0xf]  ;;  %4134 = vmatpush.bf16.msra.mxu0 %v9544_v16  ;;  %4160 = vmatpush.bf16.msra.mxu2 %v7500_v21  ;;  %v11485_v7 = vld [vmem:[#allocation5 + $0xbc4] sm:$0xf]  ;;  %v805_v9 = vunpack.c.h.b16 %v132_v56  ;;  %v8140_v11 = vor.u32 %v11293_v61, %v8137_v62  ;;  %v8652_v13 = vor.u32 %v11421_v2, %v8649_v3 }
  0xb6   :  { %v11641_v24 = vld [vmem:[#allocation5 + $0x109c] sm:$0xf0]  ;;  %v8905_v8 = vld [vmem:[#allocation5 + $0xbe0] sm:$0xf0]  ;;  %v12357_v21 = vpack.c.b16 %v804_v4, %v804_v4 }
  0xb7   :  { %v9767_v25 = vld [vmem:[#allocation5 + $0x1280] sm:$0xf]  ;;  %v9512_v32 = vor.u32 %v11641_v24, %v9511_v23  ;;  %4147 = vmatpush.bf16.msra.mxu1 %v9800_v17  ;;  %4173 = vmatpush.bf16.msra.mxu3 %v7756_v26  ;;  %v11349_v16 = vld [vmem:[#allocation5 + $0x784] sm:$0xf]  ;;  %v8908_v17 = vor.u32 %v11485_v7, %v8905_v8  ;;  %v12359_v26 = vpack.c.b16 %v805_v9, %v805_v9 }
  0xb8   :  { %v11705_v27 = vld [vmem:[#allocation5 + $0x129c] sm:$0xf0]  ;;  %v8361_v23 = vld [vmem:[#allocation5 + $0x7a0] sm:$0xf0] }
  0xb9   :  { %v9768_v33 = vor.u32 %v11705_v27, %v9767_v25  ;;  %v9479_v35 = vld [vmem:[#allocation5 + $0x1040] sm:$0xf]  ;;  %4135 = vmatpush.bf16.msra.mxu0 %v9512_v32  ;;  %4161 = vmatpush.bf16.msra.mxu2 %v7468_v34  ;;  %v11413_v24 = vld [vmem:[#allocation5 + $0x984] sm:$0xf]  ;;  %v8364_v30 = vor.u32 %v11349_v16, %v8361_v23 }
  0xba   :  { %v11633_v36 = vld [vmem:[#allocation5 + $0x105c] sm:$0xf0]  ;;  %v8617_v25 = vld [vmem:[#allocation5 + $0x9a0] sm:$0xf0] }
  0xbb   :  { %v9735_v37 = vld [vmem:[#allocation5 + $0x1240] sm:$0xf]  ;;  %v9480_v48 = vor.u32 %v11633_v36, %v9479_v35  ;;  %4148 = vmatpush.bf16.msra.mxu1 %v9768_v33  ;;  %4174 = vmatpush.bf16.msra.mxu3 %v7724_v39  ;;  %v11477_v27 = vld [vmem:[#allocation5 + $0xb84] sm:$0xf]  ;;  %v8620_v31 = vor.u32 %v11413_v24, %v8617_v25 }
  0xbc   :  { %v11697_v40 = vld [vmem:[#allocation5 + $0x125c] sm:$0xf0]  ;;  %v8873_v28 = vld [vmem:[#allocation5 + $0xba0] sm:$0xf0] }
  0xbd   :  { %v9447_v49 = vld [vmem:[#allocation5 + $0x1000] sm:$0xf]  ;;  %v9736_v52 = vor.u32 %v11697_v40, %v9735_v37  ;;  %4136 = vmatpush.bf16.msra.mxu0 %v9480_v48  ;;  %4162 = vmatpush.bf16.msra.mxu2 %v7436_v53  ;;  %v11277_v32 = vld [vmem:[#allocation5 + $0x544] sm:$0xf]  ;;  %v8876_v35 = vor.u32 %v11477_v27, %v8873_v28 }
  0xbe   :  { %v11625_v50 = vld [vmem:[#allocation5 + $0x101c] sm:$0xf0]  ;;  %v8073_v33 = vld [vmem:[#allocation5 + $0x560] sm:$0xf0] }
  0xbf   :  { %v9703_v51 = vld [vmem:[#allocation5 + $0x1200] sm:$0xf]  ;;  %v9448_v0 = vor.u32 %v11625_v50, %v9447_v49  ;;  %4149 = vmatpush.bf16.msra.mxu1 %v9736_v52  ;;  %4175 = vmatpush.bf16.msra.mxu3 %v7692_v57  ;;  %v11341_v34 = vld [vmem:[#allocation5 + $0x744] sm:$0xf]  ;;  %v8076_v45 = vor.u32 %v11277_v32, %v8073_v33 }
  0xc0   :  { %v11689_v54 = vld [vmem:[#allocation5 + $0x121c] sm:$0xf0]  ;;  %v8329_v36 = vld [vmem:[#allocation5 + $0x760] sm:$0xf0] }
  0xc1   :  { %v9704_v5 = vor.u32 %v11689_v54, %v9703_v51  ;;  %4137 = vmatpush.bf16.msra.mxu0 %v9448_v0  ;;  %4163 = vmatpush.bf16.msra.mxu2 %v7404_v6  ;;  %v11405_v37 = vld [vmem:[#allocation5 + $0x944] sm:$0xf]  ;;  %v8332_v46 = vor.u32 %v11341_v34, %v8329_v36 }
  0xc2   :  { %v8585_v39 = vld [vmem:[#allocation5 + $0x960] sm:$0xf0] }
  0xc3   :  { %4150 = vmatpush.bf16.msra.mxu1 %v9704_v5  ;;  %4176 = vmatpush.bf16.msra.mxu3 %v7660_v10  ;;  %v11469_v40 = vld [vmem:[#allocation5 + $0xb44] sm:$0xf]  ;;  %v8588_v47 = vor.u32 %v11405_v37, %v8585_v39 }
  0xc4   :  { %4138 = vmatmul.bf16.vlgmr.msra.gmra.mxu0 %v12357_v21  ;;  %v8841_v43 = vld [vmem:[#allocation5 + $0xb60] sm:$0xf0]  ;;  %4164 = vmatmul.bf16.vlgmr.msra.gmra.mxu2 %v12335_v19 }
  0xc5   :  { %4182 = vmatpush.bf16.msrb.mxu0 %v8140_v11  ;;  %4208 = vmatpush.bf16.msrb.mxu2 %v8652_v13  ;;  %v11269_v48 = vld [vmem:[#allocation5 + $0x504] sm:$0xf]  ;;  %v8844_v51 = vor.u32 %v11469_v40, %v8841_v43 }
  0xc6   :  { %4151 = vmatmul.bf16.vlgmr.msra.gmra.mxu1 %v12359_v26  ;;  %4177 = vmatmul.bf16.vlgmr.msra.gmra.mxu3 %v12339_v22  ;;  %v8041_v49 = vld [vmem:[#allocation5 + $0x520] sm:$0xf0] }
  0xc7   :  { %4195 = vmatpush.bf16.msrb.mxu1 %v8396_v12  ;;  %4221 = vmatpush.bf16.msrb.mxu3 %v8908_v17  ;;  %v11333_v50 = vld [vmem:[#allocation5 + $0x704] sm:$0xf]  ;;  %v8044_v57 = vor.u32 %v11269_v48, %v8041_v49 }
  0xc8   :  { %v8297_v52 = vld [vmem:[#allocation5 + $0x720] sm:$0xf0] }
  0xc9   :  { %4183 = vmatpush.bf16.msrb.mxu0 %v8108_v29  ;;  %4209 = vmatpush.bf16.msrb.mxu2 %v8620_v31  ;;  %v11397_v53 = vld [vmem:[#allocation5 + $0x904] sm:$0xf]  ;;  %v8300_v58 = vor.u32 %v11333_v50, %v8297_v52 }
  0xca   :  { %v8553_v54 = vld [vmem:[#allocation5 + $0x920] sm:$0xf0] }
  0xcb   :  { %4196 = vmatpush.bf16.msrb.mxu1 %v8364_v30  ;;  %4222 = vmatpush.bf16.msrb.mxu3 %v8876_v35  ;;  %v11461_v55 = vld [vmem:[#allocation5 + $0xb04] sm:$0xf]  ;;  %v8556_v59 = vor.u32 %v11397_v53, %v8553_v54 }
  0xcc   :  { %v8809_v56 = vld [vmem:[#allocation5 + $0xb20] sm:$0xf0] }
  0xcd   :  { %4184 = vmatpush.bf16.msrb.mxu0 %v8076_v45  ;;  %4210 = vmatpush.bf16.msrb.mxu2 %v8588_v47  ;;  %v11261_v60 = vld [vmem:[#allocation5 + $0x4c4] sm:$0xf]  ;;  %v8812_v63 = vor.u32 %v11461_v55, %v8809_v56 }
  0xce   :  { %v8009_v61 = vld [vmem:[#allocation5 + $0x4e0] sm:$0xf0] }
  0xcf   :  { %4197 = vmatpush.bf16.msrb.mxu1 %v8332_v46  ;;  %v11325_v62 = vld [vmem:[#allocation5 + $0x6c4] sm:$0xf]  ;;  %4223 = vmatpush.bf16.msrb.mxu3 %v8844_v51  ;;  %v8012_v5 = vor.u32 %v11261_v60, %v8009_v61 }
  0xd0   :  { %v8265_v0 = vld [vmem:[#allocation5 + $0x6e0] sm:$0xf0] }
  0xd1   :  { %v11389_v1 = vld [vmem:[#allocation5 + $0x8c4] sm:$0xf]  ;;  %4185 = vmatpush.bf16.msrb.mxu0 %v8044_v57  ;;  %4211 = vmatpush.bf16.msrb.mxu2 %v8556_v59  ;;  %v8268_v6 = vor.u32 %v11325_v62, %v8265_v0 }
  0xd2   :  { %v8521_v2 = vld [vmem:[#allocation5 + $0x8e0] sm:$0xf0] }
  0xd3   :  { %v11453_v3 = vld [vmem:[#allocation5 + $0xac4] sm:$0xf]  ;;  %4198 = vmatpush.bf16.msrb.mxu1 %v8300_v58  ;;  %v8524_v7 = vor.u32 %v11389_v1, %v8521_v2  ;;  %4224 = vmatpush.bf16.msrb.mxu3 %v8812_v63 }
  0xd4   :  { %v8777_v4 = vld [vmem:[#allocation5 + $0xae0] sm:$0xf0] }
  0xd5   :  { %v11253_v8 = vld [vmem:[#allocation5 + $0x484] sm:$0xf]  ;;  %v8780_v11 = vor.u32 %v11453_v3, %v8777_v4  ;;  %4186 = vmatpush.bf16.msrb.mxu0 %v8012_v5  ;;  %4212 = vmatpush.bf16.msrb.mxu2 %v8524_v7 }
  0xd6   :  { %v7977_v9 = vld [vmem:[#allocation5 + $0x4a0] sm:$0xf0] }
  0xd7   :  { %v11317_v10 = vld [vmem:[#allocation5 + $0x684] sm:$0xf]  ;;  %v7980_v17 = vor.u32 %v11253_v8, %v7977_v9  ;;  %4199 = vmatpush.bf16.msrb.mxu1 %v8268_v6  ;;  %4225 = vmatpush.bf16.msrb.mxu3 %v8780_v11 }
  0xd8   :  { %v8233_v12 = vld [vmem:[#allocation5 + $0x6a0] sm:$0xf0] }
  0xd9   :  { %v11381_v13 = vld [vmem:[#allocation5 + $0x884] sm:$0xf]  ;;  %v8236_v23 = vor.u32 %v11317_v10, %v8233_v12  ;;  %4187 = vmatpush.bf16.msrb.mxu0 %v7980_v17 }
  0xda   :  { %v8489_v14 = vld [vmem:[#allocation5 + $0x8a0] sm:$0xf0] }
  0xdb   :  { %v11445_v15 = vld [vmem:[#allocation5 + $0xa84] sm:$0xf]  ;;  %v8492_v24 = vor.u32 %v11381_v13, %v8489_v14  ;;  %4200 = vmatpush.bf16.msrb.mxu1 %v8236_v23 }
  0xdc   :  { %v8745_v16 = vld [vmem:[#allocation5 + $0xaa0] sm:$0xf0] }
  0xdd   :  { %v11245_v25 = vld [vmem:[#allocation5 + $0x444] sm:$0xf]  ;;  %v8748_v29 = vor.u32 %v11445_v15, %v8745_v16  ;;  %4213 = vmatpush.bf16.msrb.mxu2 %v8492_v24 }
  0xde   :  { %v7945_v27 = vld [vmem:[#allocation5 + $0x460] sm:$0xf0] }
  0xdf   :  { %v11309_v28 = vld [vmem:[#allocation5 + $0x644] sm:$0xf]  ;;  %v7948_v35 = vor.u32 %v11245_v25, %v7945_v27  ;;  %4226 = vmatpush.bf16.msrb.mxu3 %v8748_v29 }
  0xe0   :  { %v8201_v30 = vld [vmem:[#allocation5 + $0x660] sm:$0xf0] }
  0xe1   :  { %v11373_v31 = vld [vmem:[#allocation5 + $0x844] sm:$0xf]  ;;  %v8204_v39 = vor.u32 %v11309_v28, %v8201_v30  ;;  %4188 = vmatpush.bf16.msrb.mxu0 %v7948_v35 }
  0xe2   :  { %v8457_v32 = vld [vmem:[#allocation5 + $0x860] sm:$0xf0] }
  0xe3   :  { %v11437_v33 = vld [vmem:[#allocation5 + $0xa44] sm:$0xf]  ;;  %v8460_v40 = vor.u32 %v11373_v31, %v8457_v32  ;;  %4201 = vmatpush.bf16.msrb.mxu1 %v8204_v39 }
  0xe4   :  { %v8713_v34 = vld [vmem:[#allocation5 + $0xa60] sm:$0xf0] }
  0xe5   :  { %v11237_v36 = vld [vmem:[#allocation5 + $0x404] sm:$0xf]  ;;  %v8716_v47 = vor.u32 %v11437_v33, %v8713_v34  ;;  %4214 = vmatpush.bf16.msrb.mxu2 %v8460_v40 }
  0xe6   :  { %v7913_v37 = vld [vmem:[#allocation5 + $0x420] sm:$0xf0] }
  0xe7   :  { %v11301_v43 = vld [vmem:[#allocation5 + $0x604] sm:$0xf]  ;;  %v7916_v54 = vor.u32 %v11237_v36, %v7913_v37  ;;  %4227 = vmatpush.bf16.msrb.mxu3 %v8716_v47 }
  0xe8   :  { %v8169_v45 = vld [vmem:[#allocation5 + $0x620] sm:$0xf0] }
  0xe9   :  { %v11365_v46 = vld [vmem:[#allocation5 + $0x804] sm:$0xf]  ;;  %v8172_v58 = vor.u32 %v11301_v43, %v8169_v45  ;;  %4189 = vmatpush.bf16.msrb.mxu0 %v7916_v54 }
  0xea   :  { %v8425_v48 = vld [vmem:[#allocation5 + $0x820] sm:$0xf0] }
  0xeb   :  { %v11429_v49 = vld [vmem:[#allocation5 + $0xa04] sm:$0xf]  ;;  %v8428_v59 = vor.u32 %v11365_v46, %v8425_v48  ;;  %4202 = vmatpush.bf16.msrb.mxu1 %v8172_v58 }
  0xec   :  { %v8681_v50 = vld [vmem:[#allocation5 + $0xa20] sm:$0xf0]  ;;  %4190 = vmatmul.bf16.vlgmr.msrb.gmra.mxu0 %v12333_v18 }
  0xed   :  { %v11549_v51 = vld [vmem:[#allocation5 + $0xdc4] sm:$0xf]  ;;  %v8684_v62 = vor.u32 %v11429_v49, %v8681_v50  ;;  %4215 = vmatpush.bf16.msrb.mxu2 %v8428_v59 }
  0xee   :  { %v9161_v52 = vld [vmem:[#allocation5 + $0xde0] sm:$0xf0]  ;;  %4203 = vmatmul.bf16.vlgmr.msrb.gmra.mxu1 %v12337_v20 }
  0xef   :  { %v11613_v53 = vld [vmem:[#allocation5 + $0xfc4] sm:$0xf]  ;;  %v9164_v63 = vor.u32 %v11549_v51, %v9161_v52  ;;  %4228 = vmatpush.bf16.msrb.mxu3 %v8684_v62 }
  0xf0   :  { %v9417_v55 = vld [vmem:[#allocation5 + $0xfe0] sm:$0xf0]  ;;  %4216 = vmatmul.bf16.vlgmr.msrb.gmra.mxu2 %v12347_v41 }
  0xf1   :  { %v11677_v56 = vld [vmem:[#allocation5 + $0x11c4] sm:$0xf]  ;;  %v9420_v0 = vor.u32 %v11613_v53, %v9417_v55  ;;  %4234 = vmatpush.bf16.msra.mxu0 %v9164_v63 }
  0xf2   :  { %v9673_v57 = vld [vmem:[#allocation5 + $0x11e0] sm:$0xf0]  ;;  %4229 = vmatmul.bf16.vlgmr.msrb.gmra.mxu3 %v12351_v44 }
  0xf3   :  { %v11741_v60 = vld [vmem:[#allocation5 + $0x13c4] sm:$0xf]  ;;  %v9676_v1 = vor.u32 %v11677_v56, %v9673_v57  ;;  %4247 = vmatpush.bf16.msra.mxu1 %v9420_v0 }
  0xf4   :  { %v9929_v61 = vld [vmem:[#allocation5 + $0x13e0] sm:$0xf0] }
  0xf5   :  { %v11541_v2 = vld [vmem:[#allocation5 + $0xd84] sm:$0xf]  ;;  %v9932_v5 = vor.u32 %v11741_v60, %v9929_v61  ;;  %4260 = vmatpush.bf16.msra.mxu2 %v9676_v1 }
  0xf6   :  { %v9129_v3 = vld [vmem:[#allocation5 + $0xda0] sm:$0xf0] }
  0xf7   :  { %v11605_v4 = vld [vmem:[#allocation5 + $0xf84] sm:$0xf]  ;;  %v9132_v11 = vor.u32 %v11541_v2, %v9129_v3  ;;  %4273 = vmatpush.bf16.msra.mxu3 %v9932_v5 }
  0xf8   :  { %v9385_v6 = vld [vmem:[#allocation5 + $0xfa0] sm:$0xf0] }
  0xf9   :  { %v11669_v7 = vld [vmem:[#allocation5 + $0x1184] sm:$0xf]  ;;  %v9388_v12 = vor.u32 %v11605_v4, %v9385_v6  ;;  %4235 = vmatpush.bf16.msra.mxu0 %v9132_v11 }
  0xfa   :  { %v9641_v8 = vld [vmem:[#allocation5 + $0x11a0] sm:$0xf0] }
  0xfb   :  { %v11733_v9 = vld [vmem:[#allocation5 + $0x1384] sm:$0xf]  ;;  %v9644_v13 = vor.u32 %v11669_v7, %v9641_v8  ;;  %4248 = vmatpush.bf16.msra.mxu1 %v9388_v12 }
  0xfc   :  { %v9897_v10 = vld [vmem:[#allocation5 + $0x13a0] sm:$0xf0] }
  0xfd   :  { %v11533_v14 = vld [vmem:[#allocation5 + $0xd44] sm:$0xf]  ;;  %v9900_v17 = vor.u32 %v11733_v9, %v9897_v10  ;;  %4261 = vmatpush.bf16.msra.mxu2 %v9644_v13 }
  0xfe   :  { %v9097_v15 = vld [vmem:[#allocation5 + $0xd60] sm:$0xf0] }
  0xff   :  { %v11597_v16 = vld [vmem:[#allocation5 + $0xf44] sm:$0xf]  ;;  %v9100_v29 = vor.u32 %v11533_v14, %v9097_v15  ;;  %4274 = vmatpush.bf16.msra.mxu3 %v9900_v17 }
 0x100   :  { %v9353_v23 = vld [vmem:[#allocation5 + $0xf60] sm:$0xf0] }
 0x101   :  { %v11661_v24 = vld [vmem:[#allocation5 + $0x1144] sm:$0xf]  ;;  %v9356_v30 = vor.u32 %v11597_v16, %v9353_v23  ;;  %4236 = vmatpush.bf16.msra.mxu0 %v9100_v29 }
 0x102   :  { %v9609_v25 = vld [vmem:[#allocation5 + $0x1160] sm:$0xf0] }
 0x103   :  { %v11725_v27 = vld [vmem:[#allocation5 + $0x1344] sm:$0xf]  ;;  %v9612_v31 = vor.u32 %v11661_v24, %v9609_v25  ;;  %4249 = vmatpush.bf16.msra.mxu1 %v9356_v30 }
 0x104   :  { %v9865_v28 = vld [vmem:[#allocation5 + $0x1360] sm:$0xf0] }
 0x105   :  { %v11525_v32 = vld [vmem:[#allocation5 + $0xd04] sm:$0xf]  ;;  %v9868_v35 = vor.u32 %v11725_v27, %v9865_v28  ;;  %4262 = vmatpush.bf16.msra.mxu2 %v9612_v31 }
 0x106   :  { %v9065_v33 = vld [vmem:[#allocation5 + $0xd20] sm:$0xf0] }
 0x107   :  { %v11589_v34 = vld [vmem:[#allocation5 + $0xf04] sm:$0xf]  ;;  %v9068_v45 = vor.u32 %v11525_v32, %v9065_v33  ;;  %4275 = vmatpush.bf16.msra.mxu3 %v9868_v35  ;;  %v7631_v35 = vld [vmem:[#allocation5 + $0x1c8] sm:$0xf] }
 0x108   :  { %v9321_v36 = vld [vmem:[#allocation5 + $0xf20] sm:$0xf0] }
 0x109   :  { %v11653_v37 = vld [vmem:[#allocation5 + $0x1104] sm:$0xf]  ;;  %v9324_v46 = vor.u32 %v11589_v34, %v9321_v36  ;;  %4237 = vmatpush.bf16.msra.mxu0 %v9068_v45  ;;  %v11170_v36 = vld [vmem:[#allocation5 + $0x1e4] sm:$0xf0] }
 0x10a   :  { %v9577_v39 = vld [vmem:[#allocation5 + $0x1120] sm:$0xf0]  ;;  %v11298_v45 = vld [vmem:[#allocation5 + $0x5e4] sm:$0xf0] }
 0x10b   :  { %v11717_v40 = vld [vmem:[#allocation5 + $0x1304] sm:$0xf]  ;;  %v9580_v47 = vor.u32 %v11653_v37, %v9577_v39  ;;  %4250 = vmatpush.bf16.msra.mxu1 %v9324_v46  ;;  %v7887_v37 = vld [vmem:[#allocation5 + $0x3c8] sm:$0xf] }
 0x10c   :  { %v9833_v43 = vld [vmem:[#allocation5 + $0x1320] sm:$0xf0] }
 0x10d   :  { %v11517_v48 = vld [vmem:[#allocation5 + $0xcc4] sm:$0xf]  ;;  %v9836_v51 = vor.u32 %v11717_v40, %v9833_v43  ;;  %4263 = vmatpush.bf16.msra.mxu2 %v9580_v47  ;;  %v11234_v40 = vld [vmem:[#allocation5 + $0x3e4] sm:$0xf0] }
 0x10e   :  { %v9033_v49 = vld [vmem:[#allocation5 + $0xce0] sm:$0xf0]  ;;  %v8143_v43 = vld [vmem:[#allocation5 + $0x5c8] sm:$0xf] }
 0x10f   :  { %v11581_v50 = vld [vmem:[#allocation5 + $0xec4] sm:$0xf]  ;;  %v9036_v57 = vor.u32 %v11517_v48, %v9033_v49  ;;  %4276 = vmatpush.bf16.msra.mxu3 %v9836_v51  ;;  %v8399_v48 = vld [vmem:[#allocation5 + $0x7c8] sm:$0xf]  ;;  %v7632_v51 = vor.u32 %v11170_v36, %v7631_v35 }
 0x110   :  { %v9289_v52 = vld [vmem:[#allocation5 + $0xee0] sm:$0xf0]  ;;  %v11362_v49 = vld [vmem:[#allocation5 + $0x7e4] sm:$0xf0] }
 0x111   :  { %v11645_v53 = vld [vmem:[#allocation5 + $0x10c4] sm:$0xf]  ;;  %v9292_v58 = vor.u32 %v11581_v50, %v9289_v52  ;;  %4238 = vmatpush.bf16.msra.mxu0 %v9036_v57  ;;  %v7888_v52 = vor.u32 %v11234_v40, %v7887_v37  ;;  %v8400_v57 = vor.u32 %v11362_v49, %v8399_v48  ;;  %v11202_v35 = vld [vmem:[#allocation5 + $0x2e4] sm:$0xf0] }
 0x112   :  { %v9545_v54 = vld [vmem:[#allocation5 + $0x10e0] sm:$0xf0]  ;;  %v8015_v37 = vld [vmem:[#allocation5 + $0x4c8] sm:$0xf] }
 0x113   :  { %v11709_v55 = vld [vmem:[#allocation5 + $0x12c4] sm:$0xf]  ;;  %v9548_v59 = vor.u32 %v11645_v53, %v9545_v54  ;;  %4251 = vmatpush.bf16.msra.mxu1 %v9292_v58  ;;  %v8144_v53 = vor.u32 %v11298_v45, %v8143_v43  ;;  %v7599_v54 = vld [vmem:[#allocation5 + $0x188] sm:$0xf] }
 0x114   :  { %v9801_v56 = vld [vmem:[#allocation5 + $0x12e0] sm:$0xf0]  ;;  %v11226_v58 = vld [vmem:[#allocation5 + $0x3a4] sm:$0xf0] }
 0x115   :  { %v11509_v60 = vld [vmem:[#allocation5 + $0xc84] sm:$0xf]  ;;  %v9804_v63 = vor.u32 %v11709_v55, %v9801_v56  ;;  %4264 = vmatpush.bf16.msra.mxu2 %v9548_v59  ;;  %v11162_v55 = vld [vmem:[#allocation5 + $0x1a4] sm:$0xf0] }
 0x116   :  { %v9001_v61 = vld [vmem:[#allocation5 + $0xca0] sm:$0xf0]  ;;  %v7855_v56 = vld [vmem:[#allocation5 + $0x388] sm:$0xf] }
 0x117   :  { %v11573_v62 = vld [vmem:[#allocation5 + $0xe84] sm:$0xf]  ;;  %v9004_v5 = vor.u32 %v11509_v60, %v9001_v61  ;;  %4277 = vmatpush.bf16.msra.mxu3 %v9804_v63  ;;  %v8111_v59 = vld [vmem:[#allocation5 + $0x588] sm:$0xf]  ;;  %v7600_v63 = vor.u32 %v11162_v55, %v7599_v54 }
 0x118   :  { %v9257_v0 = vld [vmem:[#allocation5 + $0xea0] sm:$0xf0]  ;;  %v11290_v60 = vld [vmem:[#allocation5 + $0x5a4] sm:$0xf0] }
 0x119   :  { %v11637_v1 = vld [vmem:[#allocation5 + $0x1084] sm:$0xf]  ;;  %v9260_v6 = vor.u32 %v11573_v62, %v9257_v0  ;;  %4239 = vmatpush.bf16.msra.mxu0 %v9004_v5  ;;  %v8367_v61 = vld [vmem:[#allocation5 + $0x788] sm:$0xf]  ;;  %v7856_v0 = vor.u32 %v11226_v58, %v7855_v56 }
 0x11a   :  { %v9513_v2 = vld [vmem:[#allocation5 + $0x10a0] sm:$0xf0]  ;;  %v11354_v62 = vld [vmem:[#allocation5 + $0x7a4] sm:$0xf0] }
 0x11b   :  { %v11701_v3 = vld [vmem:[#allocation5 + $0x1284] sm:$0xf]  ;;  %v9516_v7 = vor.u32 %v11637_v1, %v9513_v2  ;;  %4252 = vmatpush.bf16.msra.mxu1 %v9260_v6  ;;  %v8112_v1 = vor.u32 %v11290_v60, %v8111_v59  ;;  %v7567_v2 = vld [vmem:[#allocation5 + $0x148] sm:$0xf]  ;;  %v8368_v5 = vor.u32 %v11354_v62, %v8367_v61  ;;  %v4035_v60 = vpop.f32.mrf.mxu0 }
 0x11c   :  { %v9769_v4 = vld [vmem:[#allocation5 + $0x12a0] sm:$0xf0]  ;;  %v11218_v6 = vld [vmem:[#allocation5 + $0x364] sm:$0xf0] }
 0x11d   :  { %v11501_v8 = vld [vmem:[#allocation5 + $0xc44] sm:$0xf]  ;;  %v9772_v11 = vor.u32 %v11701_v3, %v9769_v4  ;;  %4265 = vmatpush.bf16.msra.mxu2 %v9516_v7  ;;  %v11154_v3 = vld [vmem:[#allocation5 + $0x164] sm:$0xf0] }
 0x11e   :  { %v8969_v9 = vld [vmem:[#allocation5 + $0xc60] sm:$0xf0]  ;;  %v7823_v4 = vld [vmem:[#allocation5 + $0x348] sm:$0xf] }
 0x11f   :  { %v11565_v10 = vld [vmem:[#allocation5 + $0xe44] sm:$0xf]  ;;  %v8972_v17 = vor.u32 %v11501_v8, %v8969_v9  ;;  %4278 = vmatpush.bf16.msra.mxu3 %v9772_v11  ;;  %v8079_v7 = vld [vmem:[#allocation5 + $0x548] sm:$0xf]  ;;  %v7568_v11 = vor.u32 %v11154_v3, %v7567_v2  ;;  %v4048_v3 = vpop.f32.mrf.mxu1 }
 0x120   :  { %v9225_v12 = vld [vmem:[#allocation5 + $0xe60] sm:$0xf0]  ;;  %v11282_v8 = vld [vmem:[#allocation5 + $0x564] sm:$0xf0] }
 0x121   :  { %v11629_v13 = vld [vmem:[#allocation5 + $0x1044] sm:$0xf]  ;;  %v9228_v25 = vor.u32 %v11565_v10, %v9225_v12  ;;  %4240 = vmatpush.bf16.msra.mxu0 %v8972_v17  ;;  %v8335_v9 = vld [vmem:[#allocation5 + $0x748] sm:$0xf]  ;;  %v7824_v12 = vor.u32 %v11218_v6, %v7823_v4 }
 0x122   :  { %v9481_v14 = vld [vmem:[#allocation5 + $0x1060] sm:$0xf0]  ;;  %v11346_v10 = vld [vmem:[#allocation5 + $0x764] sm:$0xf0] }
 0x123   :  { %v11693_v15 = vld [vmem:[#allocation5 + $0x1244] sm:$0xf]  ;;  %v9484_v27 = vor.u32 %v11629_v13, %v9481_v14  ;;  %4253 = vmatpush.bf16.msra.mxu1 %v9228_v25  ;;  %v8080_v13 = vor.u32 %v11282_v8, %v8079_v7  ;;  %v7535_v14 = vld [vmem:[#allocation5 + $0x108] sm:$0xf]  ;;  %v8336_v17 = vor.u32 %v11346_v10, %v8335_v9 }
 0x124   :  { %v9737_v16 = vld [vmem:[#allocation5 + $0x1260] sm:$0xf0]  ;;  %v11274_v25 = vld [vmem:[#allocation5 + $0x524] sm:$0xf0] }
 0x125   :  { %v11493_v23 = vld [vmem:[#allocation5 + $0xc04] sm:$0xf]  ;;  %v9740_v31 = vor.u32 %v11693_v15, %v9737_v16  ;;  %4266 = vmatpush.bf16.msra.mxu2 %v9484_v27  ;;  %v11146_v15 = vld [vmem:[#allocation5 + $0x124] sm:$0xf0] }
 0x126   :  { %v8937_v24 = vld [vmem:[#allocation5 + $0xc20] sm:$0xf0]  ;;  %v7791_v16 = vld [vmem:[#allocation5 + $0x308] sm:$0xf] }
 0x127   :  { %v11557_v28 = vld [vmem:[#allocation5 + $0xe04] sm:$0xf]  ;;  %v8940_v39 = vor.u32 %v11493_v23, %v8937_v24  ;;  %4279 = vmatpush.bf16.msra.mxu3 %v9740_v31  ;;  %v11210_v23 = vld [vmem:[#allocation5 + $0x324] sm:$0xf0] }
 0x128   :  { %v9193_v29 = vld [vmem:[#allocation5 + $0xe20] sm:$0xf0]  ;;  %v8047_v24 = vld [vmem:[#allocation5 + $0x508] sm:$0xf]  ;;  %v7792_v31 = vor.u32 %v11210_v23, %v7791_v16 }
 0x129   :  { %v11621_v30 = vld [vmem:[#allocation5 + $0x1004] sm:$0xf]  ;;  %v9196_v46 = vor.u32 %v11557_v28, %v9193_v29  ;;  %4241 = vmatpush.bf16.msra.mxu0 %v8940_v39  ;;  %v8303_v27 = vld [vmem:[#allocation5 + $0x708] sm:$0xf]  ;;  %v7536_v29 = vor.u32 %v11146_v15, %v7535_v14 }
 0x12a   :  { %v9449_v32 = vld [vmem:[#allocation5 + $0x1020] sm:$0xf0]  ;;  %v11338_v28 = vld [vmem:[#allocation5 + $0x724] sm:$0xf0] }
 0x12b   :  { %v11685_v33 = vld [vmem:[#allocation5 + $0x1204] sm:$0xf]  ;;  %v9452_v47 = vor.u32 %v11621_v30, %v9449_v32  ;;  %4254 = vmatpush.bf16.msra.mxu1 %v9196_v46  ;;  %v7503_v30 = vld [vmem:[#allocation5 + $0xc8] sm:$0xf]  ;;  %v8048_v32 = vor.u32 %v11274_v25, %v8047_v24  ;;  %v8304_v36 = vor.u32 %v11338_v28, %v8303_v27  ;;  %v4061_v24 = vpop.f32.mrf.mxu2 }
 0x12c   :  { %v9705_v34 = vld [vmem:[#allocation5 + $0x1220] sm:$0xf0]  ;;  %4242 = vmatmul.bf16.vlgmr.msra.gmra.mxu0 %v12345_v38  ;;  %v11266_v39 = vld [vmem:[#allocation5 + $0x4e4] sm:$0xf0] }
 0x12d   :  { %v9708_v50 = vor.u32 %v11685_v33, %v9705_v34  ;;  %4267 = vmatpush.bf16.msra.mxu2 %v9452_v47  ;;  %4286 = vmatpush.bf16.msrb.mxu0 %v7632_v51  ;;  %v11138_v33 = vld [vmem:[#allocation5 + $0xe4] sm:$0xf0]  ;;  %v12373_v40 = vld [vmem:[#allocation7] sm:$0xff]  ;;  %v8016_v49 = vor.u32 %v11266_v39, %v8015_v37 }
 0x12e   :  { %4255 = vmatmul.bf16.vlgmr.msra.gmra.mxu1 %v12349_v42  ;;  %v7759_v34 = vld [vmem:[#allocation5 + $0x2c8] sm:$0xf]  ;;  %v7504_v46 = vor.u32 %v11138_v33, %v7503_v30 }
 0x12f   :  { %4280 = vmatpush.bf16.msra.mxu3 %v9708_v50  ;;  %4299 = vmatpush.bf16.msrb.mxu1 %v7888_v52  ;;  %v8271_v43 = vld [vmem:[#allocation5 + $0x6c8] sm:$0xf]  ;;  %v7760_v48 = vor.u32 %v11202_v35, %v7759_v34  ;;  %v775_v52 = vperm.slane %v12373_v40, 0 }
 0x130   :  { %4268 = vmatmul.bf16.vlgmr.msra.gmra.mxu2 %v12357_v21  ;;  %v11330_v45 = vld [vmem:[#allocation5 + $0x6e4] sm:$0xf0] }
 0x131   :  { %4312 = vmatpush.bf16.msrb.mxu2 %v8144_v53  ;;  %4287 = vmatpush.bf16.msrb.mxu0 %v7600_v63  ;;  %v7471_v47 = vld [vmem:[#allocation5 + $0x88] sm:$0xf]  ;;  %v8272_v53 = vor.u32 %v11330_v45, %v8271_v43  ;;  %v4036_v2 = vadd.f32 %v4035_v60, %v775_v52  ;;  %v4037_v45 = vpop.f32.mrf.mxu0 }
 0x132   :  { %4281 = vmatmul.bf16.vlgmr.msra.gmra.mxu3 %v12359_v26  ;;  %v11130_v50 = vld [vmem:[#allocation5 + $0xa4] sm:$0xf0] }
 0x133   :  { %4325 = vmatpush.bf16.msrb.mxu3 %v8400_v57  ;;  %4300 = vmatpush.bf16.msrb.mxu1 %v7856_v0  ;;  %v7727_v51 = vld [vmem:[#allocation5 + $0x288] sm:$0xf]  ;;  %v7472_v59 = vor.u32 %v11130_v50, %v7471_v47  ;;  %v4049_v10 = vadd.f32 %v4048_v3, %v4036_v2  ;;  %v4050_v50 = vpop.f32.mrf.mxu1 }
 0x134   :  { %v11194_v54 = vld [vmem:[#allocation5 + $0x2a4] sm:$0xf0] }
 0x135   :  { %4313 = vmatpush.bf16.msrb.mxu2 %v8112_v1  ;;  %4288 = vmatpush.bf16.msrb.mxu0 %v7568_v11  ;;  %v7983_v55 = vld [vmem:[#allocation5 + $0x488] sm:$0xf]  ;;  %v7728_v61 = vor.u32 %v11194_v54, %v7727_v51  ;;  %v4062_v30 = vadd.f32 %v4061_v24, %v4049_v10 }
 0x136   :  { %v11258_v56 = vld [vmem:[#allocation5 + $0x4a4] sm:$0xf0] }
 0x137   :  { %4326 = vmatpush.bf16.msrb.mxu3 %v8368_v5  ;;  %4301 = vmatpush.bf16.msrb.mxu1 %v7824_v12  ;;  %v8239_v57 = vld [vmem:[#allocation5 + $0x688] sm:$0xf]  ;;  %v7984_v62 = vor.u32 %v11258_v56, %v7983_v55 }
 0x138   :  { %v11322_v58 = vld [vmem:[#allocation5 + $0x6a4] sm:$0xf0] }
 0x139   :  { %4314 = vmatpush.bf16.msrb.mxu2 %v8080_v13  ;;  %4289 = vmatpush.bf16.msrb.mxu0 %v7536_v29  ;;  %v7439_v63 = vld [vmem:[#allocation5 + $0x48] sm:$0xf]  ;;  %v8240_v4 = vor.u32 %v11322_v58, %v8239_v57 }
 0x13a   :  { %v11122_v0 = vld [vmem:[#allocation5 + $0x64] sm:$0xf0] }
 0x13b   :  { %4327 = vmatpush.bf16.msrb.mxu3 %v8336_v17  ;;  %4302 = vmatpush.bf16.msrb.mxu1 %v7792_v31  ;;  %v7695_v1 = vld [vmem:[#allocation5 + $0x248] sm:$0xf]  ;;  %v7440_v11 = vor.u32 %v11122_v0, %v7439_v63  ;;  %v4074_v31 = vpop.f32.mrf.mxu3  ;;  %v4063_v0 = vpop.f32.mrf.mxu2 }
 0x13c   :  { %v11186_v5 = vld [vmem:[#allocation5 + $0x264] sm:$0xf0]  ;;  %v12376_v43 = vadd.f32 %v4074_v31, %v4062_v30 }
 0x13d   :  { %4315 = vmatpush.bf16.msrb.mxu2 %v8048_v32  ;;  %4290 = vmatpush.bf16.msrb.mxu0 %v7504_v46  ;;  %v7951_v6 = vld [vmem:[#allocation5 + $0x448] sm:$0xf]  ;;  %v7696_v14 = vor.u32 %v11186_v5, %v7695_v1 }
 0x13e   :  { %v11250_v7 = vld [vmem:[#allocation5 + $0x464] sm:$0xf0] }
 0x13f   :  { %4328 = vmatpush.bf16.msrb.mxu3 %v8304_v36  ;;  %4303 = vmatpush.bf16.msrb.mxu1 %v7760_v48  ;;  %v8207_v8 = vld [vmem:[#allocation5 + $0x648] sm:$0xf]  ;;  %v7952_v15 = vor.u32 %v11250_v7, %v7951_v6 }
 0x140   :  { %v11314_v9 = vld [vmem:[#allocation5 + $0x664] sm:$0xf0] }
 0x141   :  { %4316 = vmatpush.bf16.msrb.mxu2 %v8016_v49  ;;  %4291 = vmatpush.bf16.msrb.mxu0 %v7472_v59  ;;  %v7407_v12 = vld [vmem:[#allocation5 + $0x8] sm:$0xf]  ;;  %v8208_v25 = vor.u32 %v11314_v9, %v8207_v8 }
 0x142   :  { %v11114_v13 = vld [vmem:[#allocation5 + $0x24] sm:$0xf0] }
 0x143   :  { %4329 = vmatpush.bf16.msrb.mxu3 %v8272_v53  ;;  %4304 = vmatpush.bf16.msrb.mxu1 %v7728_v61  ;;  %v7663_v16 = vld [vmem:[#allocation5 + $0x208] sm:$0xf]  ;;  %v7408_v35 = vor.u32 %v11114_v13, %v7407_v12  ;;  %v4076_v2 = vpop.f32.mrf.mxu3 }
 0x144   :  { %v11178_v17 = vld [vmem:[#allocation5 + $0x224] sm:$0xf0] }
 0x145   :  { %4317 = vmatpush.bf16.msrb.mxu2 %v7984_v62  ;;  %v7919_v23 = vld [vmem:[#allocation5 + $0x408] sm:$0xf]  ;;  %4292 = vmatpush.bf16.msrb.mxu0 %v7440_v11  ;;  %v7664_v46 = vor.u32 %v11178_v17, %v7663_v16 }
 0x146   :  { %v11242_v27 = vld [vmem:[#allocation5 + $0x424] sm:$0xf0] }
 0x147   :  { %4330 = vmatpush.bf16.msrb.mxu3 %v8240_v4  ;;  %v8175_v28 = vld [vmem:[#allocation5 + $0x608] sm:$0xf]  ;;  %4305 = vmatpush.bf16.msrb.mxu1 %v7696_v14  ;;  %v7920_v47 = vor.u32 %v11242_v27, %v7919_v23 }
 0x148   :  { %v11306_v29 = vld [vmem:[#allocation5 + $0x624] sm:$0xf0] }
 0x149   :  { %v8655_v32 = vld [vmem:[#allocation5 + $0x9c8] sm:$0xf]  ;;  %4318 = vmatpush.bf16.msrb.mxu2 %v7952_v15  ;;  %v8176_v51 = vor.u32 %v11306_v29, %v8175_v28  ;;  %4293 = vmatpush.bf16.msrb.mxu0 %v7408_v35 }
 0x14a   :  { %v11426_v33 = vld [vmem:[#allocation5 + $0x9e4] sm:$0xf0] }
 0x14b   :  { %v8911_v34 = vld [vmem:[#allocation5 + $0xbc8] sm:$0xf]  ;;  %4331 = vmatpush.bf16.msrb.mxu3 %v8208_v25  ;;  %v8656_v52 = vor.u32 %v11426_v33, %v8655_v32  ;;  %4306 = vmatpush.bf16.msrb.mxu1 %v7664_v46  ;;  %v4087_v33 = vpop.f32.mrf.mxu0  ;;  %v4100_v46 = vpop.f32.mrf.mxu1 }
 0x14c   :  { %v11490_v36 = vld [vmem:[#allocation5 + $0xbe4] sm:$0xf0]  ;;  %4294 = vmatmul.bf16.vlgmr.msrb.gmra.mxu0 %v12335_v19  ;;  %v4088_v45 = vadd.f32 %v4087_v33, %v12376_v43 }
 0x14d   :  { %v9167_v37 = vld [vmem:[#allocation5 + $0xdc8] sm:$0xf]  ;;  %v8912_v53 = vor.u32 %v11490_v36, %v8911_v34  ;;  %4319 = vmatpush.bf16.msrb.mxu2 %v7920_v47  ;;  %4338 = vmatpush.bf16.msra.mxu0 %v8656_v52 }
 0x14e   :  { %v11554_v39 = vld [vmem:[#allocation5 + $0xde4] sm:$0xf0]  ;;  %4307 = vmatmul.bf16.vlgmr.msrb.gmra.mxu1 %v12339_v22 }
 0x14f   :  { %v9423_v48 = vld [vmem:[#allocation5 + $0xfc8] sm:$0xf]  ;;  %v9168_v54 = vor.u32 %v11554_v39, %v9167_v37  ;;  %4332 = vmatpush.bf16.msrb.mxu3 %v8176_v51  ;;  %4351 = vmatpush.bf16.msra.mxu1 %v8912_v53  ;;  %v4101_v53 = vadd.f32 %v4100_v46, %v4088_v45 }
 0x150   :  { %v11618_v49 = vld [vmem:[#allocation5 + $0xfe4] sm:$0xf0]  ;;  %4320 = vmatmul.bf16.vlgmr.msrb.gmra.mxu2 %v12333_v18 }
 0x151   :  { %v8623_v55 = vld [vmem:[#allocation5 + $0x988] sm:$0xf]  ;;  %v9424_v58 = vor.u32 %v11618_v49, %v9423_v48  ;;  %4364 = vmatpush.bf16.msra.mxu2 %v9168_v54 }
 0x152   :  { %v11418_v56 = vld [vmem:[#allocation5 + $0x9a4] sm:$0xf0]  ;;  %4333 = vmatmul.bf16.vlgmr.msrb.gmra.mxu3 %v12337_v20 }
 0x153   :  { %v8879_v57 = vld [vmem:[#allocation5 + $0xb88] sm:$0xf]  ;;  %v8624_v1 = vor.u32 %v11418_v56, %v8623_v55  ;;  %4377 = vmatpush.bf16.msra.mxu3 %v9424_v58 }
 0x154   :  { %v11482_v59 = vld [vmem:[#allocation5 + $0xba4] sm:$0xf0] }
 0x155   :  { %v9135_v60 = vld [vmem:[#allocation5 + $0xd88] sm:$0xf]  ;;  %v8880_v3 = vor.u32 %v11482_v59, %v8879_v57  ;;  %4339 = vmatpush.bf16.msra.mxu0 %v8624_v1  ;;  %v4126_v1 = vpop.f32.mrf.mxu3 }
 0x156   :  { %v11546_v61 = vld [vmem:[#allocation5 + $0xda4] sm:$0xf0] }
 0x157   :  { %v9391_v62 = vld [vmem:[#allocation5 + $0xf88] sm:$0xf]  ;;  %v9136_v4 = vor.u32 %v11546_v61, %v9135_v60  ;;  %4352 = vmatpush.bf16.msra.mxu1 %v8880_v3  ;;  %v4113_v60 = vpop.f32.mrf.mxu2 }
 0x158   :  { %v11610_v63 = vld [vmem:[#allocation5 + $0xfa4] sm:$0xf0]  ;;  %v4114_v0 = vadd.f32 %v4113_v60, %v4101_v53 }
 0x159   :  { %v8591_v5 = vld [vmem:[#allocation5 + $0x948] sm:$0xf]  ;;  %v9392_v8 = vor.u32 %v11610_v63, %v9391_v62  ;;  %4365 = vmatpush.bf16.msra.mxu2 %v9136_v4 }
 0x15a   :  { %v11410_v6 = vld [vmem:[#allocation5 + $0x964] sm:$0xf0] }
 0x15b   :  { %v8847_v7 = vld [vmem:[#allocation5 + $0xb48] sm:$0xf]  ;;  %v8592_v14 = vor.u32 %v11410_v6, %v8591_v5  ;;  %4378 = vmatpush.bf16.msra.mxu3 %v9392_v8  ;;  %v12383_v5 = vadd.f32 %v4126_v1, %v4114_v0  ;;  %v4089_v6 = vpop.f32.mrf.mxu0  ;;  %v11158_v0 = vld [vmem:[#allocation5 + $0x18c] sm:$0xf] }
 0x15c   :  { %v11474_v9 = vld [vmem:[#allocation5 + $0xb64] sm:$0xf0]  ;;  %v7601_v1 = vld [vmem:[#allocation5 + $0x1a8] sm:$0xf0] }
 0x15d   :  { %v9103_v10 = vld [vmem:[#allocation5 + $0xd48] sm:$0xf]  ;;  %v8848_v15 = vor.u32 %v11474_v9, %v8847_v7  ;;  %4340 = vmatpush.bf16.msra.mxu0 %v8592_v14 }
 0x15e   :  { %v11538_v11 = vld [vmem:[#allocation5 + $0xd64] sm:$0xf0] }
 0x15f   :  { %v9359_v12 = vld [vmem:[#allocation5 + $0xf48] sm:$0xf]  ;;  %v9104_v16 = vor.u32 %v11538_v11, %v9103_v10  ;;  %4353 = vmatpush.bf16.msra.mxu1 %v8848_v15  ;;  %v4115_v33 = vpop.f32.mrf.mxu2 }
 0x160   :  { %v11602_v13 = vld [vmem:[#allocation5 + $0xf64] sm:$0xf0] }
 0x161   :  { %v8559_v17 = vld [vmem:[#allocation5 + $0x908] sm:$0xf]  ;;  %v9360_v25 = vor.u32 %v11602_v13, %v9359_v12  ;;  %4366 = vmatpush.bf16.msra.mxu2 %v9104_v16  ;;  %v4102_v12 = vpop.f32.mrf.mxu1 }
 0x162   :  { %v11402_v23 = vld [vmem:[#allocation5 + $0x924] sm:$0xf0] }
 0x163   :  { %v8815_v24 = vld [vmem:[#allocation5 + $0xb08] sm:$0xf]  ;;  %v8560_v32 = vor.u32 %v11402_v23, %v8559_v17  ;;  %4379 = vmatpush.bf16.msra.mxu3 %v9360_v25  ;;  %v4139_v33 = vpop.f32.mrf.mxu0 }
 0x164   :  { %v11466_v27 = vld [vmem:[#allocation5 + $0xb24] sm:$0xf0] }
 0x165   :  { %v9071_v28 = vld [vmem:[#allocation5 + $0xd08] sm:$0xf]  ;;  %v8816_v34 = vor.u32 %v11466_v27, %v8815_v24  ;;  %4341 = vmatpush.bf16.msra.mxu0 %v8560_v32 }
 0x166   :  { %v11530_v29 = vld [vmem:[#allocation5 + $0xd24] sm:$0xf0] }
 0x167   :  { %v9327_v30 = vld [vmem:[#allocation5 + $0xf08] sm:$0xf]  ;;  %v9072_v35 = vor.u32 %v11530_v29, %v9071_v28  ;;  %4354 = vmatpush.bf16.msra.mxu1 %v8816_v34 }
 0x168   :  { %v11594_v31 = vld [vmem:[#allocation5 + $0xf24] sm:$0xf0] }
 0x169   :  { %v8527_v36 = vld [vmem:[#allocation5 + $0x8c8] sm:$0xf]  ;;  %v9328_v47 = vor.u32 %v11594_v31, %v9327_v30  ;;  %4367 = vmatpush.bf16.msra.mxu2 %v9072_v35 }
 0x16a   :  { %v11394_v37 = vld [vmem:[#allocation5 + $0x8e4] sm:$0xf0] }
 0x16b   :  { %v8783_v39 = vld [vmem:[#allocation5 + $0xac8] sm:$0xf]  ;;  %v8528_v54 = vor.u32 %v11394_v37, %v8527_v36  ;;  %4380 = vmatpush.bf16.msra.mxu3 %v9328_v47 }
 0x16c   :  { %v11458_v48 = vld [vmem:[#allocation5 + $0xae4] sm:$0xf0] }
 0x16d   :  { %v9039_v49 = vld [vmem:[#allocation5 + $0xcc8] sm:$0xf]  ;;  %v8784_v55 = vor.u32 %v11458_v48, %v8783_v39  ;;  %4342 = vmatpush.bf16.msra.mxu0 %v8528_v54  ;;  %v4128_v39 = vpop.f32.mrf.mxu3  ;;  %v11230_v54 = vld [vmem:[#allocation5 + $0x3cc] sm:$0xf] }
 0x16e   :  { %v11522_v50 = vld [vmem:[#allocation5 + $0xce4] sm:$0xf0]  ;;  %v4152_v39 = vpop.f32.mrf.mxu1 }
 0x16f   :  { %v9295_v51 = vld [vmem:[#allocation5 + $0xec8] sm:$0xf]  ;;  %v9040_v56 = vor.u32 %v11522_v50, %v9039_v49  ;;  %4355 = vmatpush.bf16.msra.mxu1 %v8784_v55  ;;  %v11166_v50 = vld [vmem:[#allocation5 + $0x1cc] sm:$0xf] }
 0x170   :  { %v11586_v52 = vld [vmem:[#allocation5 + $0xee4] sm:$0xf0]  ;;  %v7889_v55 = vld [vmem:[#allocation5 + $0x3e8] sm:$0xf0] }
 0x171   :  { %v8495_v57 = vld [vmem:[#allocation5 + $0x888] sm:$0xf]  ;;  %v9296_v43 = vor.u32 %v11586_v52, %v9295_v51  ;;  %4368 = vmatpush.bf16.msra.mxu2 %v9040_v56  ;;  %v7633_v51 = vld [vmem:[#allocation5 + $0x1e8] sm:$0xf0] }
 0x172   :  { %v11386_v58 = vld [vmem:[#allocation5 + $0x8a4] sm:$0xf0] }
 0x173   :  { %v8751_v59 = vld [vmem:[#allocation5 + $0xa88] sm:$0xf]  ;;  %v8496_v4 = vor.u32 %v11386_v58, %v8495_v57  ;;  %4381 = vmatpush.bf16.msra.mxu3 %v9296_v43 }
 0x174   :  { %v11450_v61 = vld [vmem:[#allocation5 + $0xaa4] sm:$0xf0] }
 0x175   :  { %v9007_v62 = vld [vmem:[#allocation5 + $0xc88] sm:$0xf]  ;;  %v8752_v7 = vor.u32 %v11450_v61, %v8751_v59  ;;  %4343 = vmatpush.bf16.msra.mxu0 %v8496_v4  ;;  %v7636_v59 = vor.u32 %v11166_v50, %v7633_v51 }
 0x176   :  { %v11514_v63 = vld [vmem:[#allocation5 + $0xca4] sm:$0xf0] }
 0x177   :  { %v9263_v2 = vld [vmem:[#allocation5 + $0xe88] sm:$0xf]  ;;  %v9008_v8 = vor.u32 %v11514_v63, %v9007_v62  ;;  %4356 = vmatpush.bf16.msra.mxu1 %v8752_v7  ;;  %v7892_v62 = vor.u32 %v11230_v54, %v7889_v55  ;;  %v7604_v7 = vor.u32 %v11158_v0, %v7601_v1  ;;  %v7505_v54 = vld [vmem:[#allocation5 + $0xe8] sm:$0xf0] }
 0x178   :  { %v11578_v3 = vld [vmem:[#allocation5 + $0xea4] sm:$0xf0]  ;;  %v11198_v55 = vld [vmem:[#allocation5 + $0x2cc] sm:$0xf] }
 0x179   :  { %v8463_v9 = vld [vmem:[#allocation5 + $0x848] sm:$0xf]  ;;  %v9264_v13 = vor.u32 %v11578_v3, %v9263_v2  ;;  %4369 = vmatpush.bf16.msra.mxu2 %v9008_v8  ;;  %v11222_v2 = vld [vmem:[#allocation5 + $0x38c] sm:$0xf] }
 0x17a   :  { %v11378_v10 = vld [vmem:[#allocation5 + $0x864] sm:$0xf0]  ;;  %v7857_v3 = vld [vmem:[#allocation5 + $0x3a8] sm:$0xf0] }
 0x17b   :  { %v8719_v11 = vld [vmem:[#allocation5 + $0xa48] sm:$0xf]  ;;  %v8464_v24 = vor.u32 %v11378_v10, %v8463_v9  ;;  %4382 = vmatpush.bf16.msra.mxu3 %v9264_v13  ;;  %v11150_v13 = vld [vmem:[#allocation5 + $0x14c] sm:$0xf] }
 0x17c   :  { %v11442_v14 = vld [vmem:[#allocation5 + $0xa64] sm:$0xf0]  ;;  %v11126_v0 = vld [vmem:[#allocation5 + $0x8c] sm:$0xf] }
 0x17d   :  { %v8975_v15 = vld [vmem:[#allocation5 + $0xc48] sm:$0xf]  ;;  %v8720_v28 = vor.u32 %v11442_v14, %v8719_v11  ;;  %4344 = vmatpush.bf16.msra.mxu0 %v8464_v24  ;;  %v7860_v11 = vor.u32 %v11222_v2, %v7857_v3  ;;  %v7569_v14 = vld [vmem:[#allocation5 + $0x168] sm:$0xf0]  ;;  %v4165_v2 = vpop.f32.mrf.mxu2 }
 0x17e   :  { %v11506_v16 = vld [vmem:[#allocation5 + $0xc64] sm:$0xf0]  ;;  %v7572_v24 = vor.u32 %v11150_v13, %v7569_v14  ;;  %v7473_v1 = vld [vmem:[#allocation5 + $0xa8] sm:$0xf0] }
 0x17f   :  { %v9231_v17 = vld [vmem:[#allocation5 + $0xe48] sm:$0xf]  ;;  %v8976_v29 = vor.u32 %v11506_v16, %v8975_v15  ;;  %4357 = vmatpush.bf16.msra.mxu1 %v8720_v28  ;;  %v11214_v15 = vld [vmem:[#allocation5 + $0x34c] sm:$0xf] }
 0x180   :  { %v11570_v23 = vld [vmem:[#allocation5 + $0xe64] sm:$0xf0]  ;;  %v7825_v16 = vld [vmem:[#allocation5 + $0x368] sm:$0xf0] }
 0x181   :  { %v8431_v25 = vld [vmem:[#allocation5 + $0x808] sm:$0xf]  ;;  %v9232_v34 = vor.u32 %v11570_v23, %v9231_v17  ;;  %4370 = vmatpush.bf16.msra.mxu2 %v8976_v29  ;;  %v7828_v29 = vor.u32 %v11214_v15, %v7825_v16  ;;  %v11190_v3 = vld [vmem:[#allocation5 + $0x28c] sm:$0xf] }
 0x182   :  { %v11370_v27 = vld [vmem:[#allocation5 + $0x824] sm:$0xf0] }
 0x183   :  { %v8687_v30 = vld [vmem:[#allocation5 + $0xa08] sm:$0xf]  ;;  %v8432_v48 = vor.u32 %v11370_v27, %v8431_v25  ;;  %4383 = vmatpush.bf16.msra.mxu3 %v9232_v34  ;;  %v11206_v34 = vld [vmem:[#allocation5 + $0x30c] sm:$0xf] }
 0x184   :  { %v11434_v31 = vld [vmem:[#allocation5 + $0xa24] sm:$0xf0] }
 0x185   :  { %v8943_v32 = vld [vmem:[#allocation5 + $0xc08] sm:$0xf]  ;;  %v8688_v52 = vor.u32 %v11434_v31, %v8687_v30  ;;  %4345 = vmatpush.bf16.msra.mxu0 %v8432_v48  ;;  %v11142_v31 = vld [vmem:[#allocation5 + $0x10c] sm:$0xf] }
 0x186   :  { %v11498_v35 = vld [vmem:[#allocation5 + $0xc24] sm:$0xf0] }
 0x187   :  { %v9199_v36 = vld [vmem:[#allocation5 + $0xe08] sm:$0xf]  ;;  %v8944_v53 = vor.u32 %v11498_v35, %v8943_v32  ;;  %4358 = vmatpush.bf16.msra.mxu1 %v8688_v52  ;;  %v7537_v32 = vld [vmem:[#allocation5 + $0x128] sm:$0xf0] }
 0x188   :  { %v11562_v37 = vld [vmem:[#allocation5 + $0xe24] sm:$0xf0]  ;;  %4346 = vmatmul.bf16.vlgmr.msra.gmra.mxu0 %v12347_v41  ;;  %v7793_v35 = vld [vmem:[#allocation5 + $0x328] sm:$0xf0] }
 0x189   :  { %v9679_v45 = vld [vmem:[#allocation5 + $0x11c8] sm:$0xf]  ;;  %v9200_v56 = vor.u32 %v11562_v37, %v9199_v36  ;;  %4371 = vmatpush.bf16.msra.mxu2 %v8944_v53  ;;  %v4140_v36 = vadd.f32 %v4139_v33, %v12383_v5  ;;  %v7796_v50 = vor.u32 %v11206_v34, %v7793_v35  ;;  %v11134_v53 = vld [vmem:[#allocation5 + $0xcc] sm:$0xf]  ;;  %v776_v5 = vperm.slane %v12373_v40, 1  ;;  %v4141_v40 = vpop.f32.mrf.mxu0 }
 0x18a   :  { %v11682_v46 = vld [vmem:[#allocation5 + $0x11e4] sm:$0xf0]  ;;  %4359 = vmatmul.bf16.vlgmr.msra.gmra.mxu1 %v12351_v44  ;;  %v11110_v35 = vld [vmem:[#allocation5 + $0xc] sm:$0xf] }
 0x18b   :  { %v9935_v47 = vld [vmem:[#allocation5 + $0x13c8] sm:$0xf]  ;;  %v9680_v57 = vor.u32 %v11682_v46, %v9679_v45  ;;  %4384 = vmatpush.bf16.msra.mxu3 %v9200_v56  ;;  %v7540_v46 = vor.u32 %v11142_v31, %v7537_v32  ;;  %v12390_v51 = vadd.f32 %v4152_v39, %v4140_v36  ;;  %v7761_v56 = vld [vmem:[#allocation5 + $0x2e8] sm:$0xf0] }
 0x18c   :  { %v11746_v49 = vld [vmem:[#allocation5 + $0x13e4] sm:$0xf0]  ;;  %4372 = vmatmul.bf16.vlgmr.msra.gmra.mxu2 %v12345_v38  ;;  %v11174_v39 = vld [vmem:[#allocation5 + $0x20c] sm:$0xf] }
 0x18d   :  { %v9936_v58 = vor.u32 %v11746_v49, %v9935_v47  ;;  %v9647_v60 = vld [vmem:[#allocation5 + $0x1188] sm:$0xf]  ;;  %4390 = vmatpush.bf16.msrb.mxu0 %v9680_v57  ;;  %4416 = vmatpush.bf16.msrb.mxu2 %v7636_v59  ;;  %v7508_v59 = vor.u32 %v11134_v53, %v7505_v54  ;;  %v8401_v53 = vld [vmem:[#allocation5 + $0x7e8] sm:$0xf0] }
 0x18e   :  { %v11674_v43 = vld [vmem:[#allocation5 + $0x11a4] sm:$0xf0]  ;;  %4385 = vmatmul.bf16.vlgmr.msra.gmra.mxu3 %v12349_v42  ;;  %v11422_v54 = vld [vmem:[#allocation5 + $0x9cc] sm:$0xf] }
 0x18f   :  { %v9903_v61 = vld [vmem:[#allocation5 + $0x1388] sm:$0xf]  ;;  %v9648_v4 = vor.u32 %v11674_v43, %v9647_v60  ;;  %4403 = vmatpush.bf16.msrb.mxu1 %v9936_v58  ;;  %4429 = vmatpush.bf16.msrb.mxu3 %v7892_v62  ;;  %v7764_v62 = vor.u32 %v11198_v55, %v7761_v56  ;;  %v8657_v55 = vld [vmem:[#allocation5 + $0x9e8] sm:$0xf0] }
 0x190   :  { %v11738_v63 = vld [vmem:[#allocation5 + $0x13a4] sm:$0xf0] }
 0x191   :  { %v9904_v6 = vor.u32 %v11738_v63, %v9903_v61  ;;  %v9615_v8 = vld [vmem:[#allocation5 + $0x1148] sm:$0xf]  ;;  %4391 = vmatpush.bf16.msrb.mxu0 %v9648_v4  ;;  %4417 = vmatpush.bf16.msrb.mxu2 %v7604_v7  ;;  %v7729_v4 = vld [vmem:[#allocation5 + $0x2a8] sm:$0xf0]  ;;  %v4178_v7 = vpop.f32.mrf.mxu3 }
 0x192   :  { %v11666_v9 = vld [vmem:[#allocation5 + $0x1164] sm:$0xf0]  ;;  %v7732_v16 = vor.u32 %v11190_v3, %v7729_v4  ;;  %v11414_v3 = vld [vmem:[#allocation5 + $0x98c] sm:$0xf] }
 0x193   :  { %v9871_v10 = vld [vmem:[#allocation5 + $0x1348] sm:$0xf]  ;;  %v9616_v17 = vor.u32 %v11666_v9, %v9615_v8  ;;  %4404 = vmatpush.bf16.msrb.mxu1 %v9904_v6  ;;  %4430 = vmatpush.bf16.msrb.mxu3 %v7860_v11  ;;  %v4166_v6 = vadd.f32 %v4165_v2, %v776_v5  ;;  %v4154_v9 = vpop.f32.mrf.mxu1  ;;  %v7476_v11 = vor.u32 %v11126_v0, %v7473_v1  ;;  %v11350_v0 = vld [vmem:[#allocation5 + $0x78c] sm:$0xf] }
 0x194   :  { %v11730_v12 = vld [vmem:[#allocation5 + $0x1364] sm:$0xf0]  ;;  %v8369_v2 = vld [vmem:[#allocation5 + $0x7a8] sm:$0xf0] }
 0x195   :  { %v9872_v23 = vor.u32 %v11730_v12, %v9871_v10  ;;  %v9583_v25 = vld [vmem:[#allocation5 + $0x1108] sm:$0xf]  ;;  %4392 = vmatpush.bf16.msrb.mxu0 %v9616_v17  ;;  %4418 = vmatpush.bf16.msrb.mxu2 %v7572_v24  ;;  %v12393_v15 = vadd.f32 %v4178_v7, %v4166_v6  ;;  %v7441_v24 = vld [vmem:[#allocation5 + $0x68] sm:$0xf0] }
 0x196   :  { %v11658_v27 = vld [vmem:[#allocation5 + $0x1124] sm:$0xf0]  ;;  %v8625_v4 = vld [vmem:[#allocation5 + $0x9a8] sm:$0xf0] }
 0x197   :  { %v9839_v28 = vld [vmem:[#allocation5 + $0x1308] sm:$0xf]  ;;  %v9584_v37 = vor.u32 %v11658_v27, %v9583_v25  ;;  %4405 = vmatpush.bf16.msrb.mxu1 %v9872_v23  ;;  %4431 = vmatpush.bf16.msrb.mxu3 %v7828_v29  ;;  %v11118_v23 = vld [vmem:[#allocation5 + $0x4c] sm:$0xf]  ;;  %v8628_v9 = vor.u32 %v11414_v3, %v8625_v4 }
 0x198   :  { %v11722_v30 = vld [vmem:[#allocation5 + $0x1324] sm:$0xf0]  ;;  %v11182_v25 = vld [vmem:[#allocation5 + $0x24c] sm:$0xf]  ;;  %v7444_v32 = vor.u32 %v11118_v23, %v7441_v24 }
 0x199   :  { %v9840_v45 = vor.u32 %v11722_v30, %v9839_v28  ;;  %v9551_v47 = vld [vmem:[#allocation5 + $0x10c8] sm:$0xf]  ;;  %4393 = vmatpush.bf16.msrb.mxu0 %v9584_v37  ;;  %4419 = vmatpush.bf16.msrb.mxu2 %v7540_v46  ;;  %v7697_v27 = vld [vmem:[#allocation5 + $0x268] sm:$0xf0]  ;;  %v4167_v46 = vpop.f32.mrf.mxu2 }
 0x19a   :  { %v11650_v48 = vld [vmem:[#allocation5 + $0x10e4] sm:$0xf0]  ;;  %v7700_v36 = vor.u32 %v11182_v25, %v7697_v27  ;;  %v7409_v37 = vld [vmem:[#allocation5 + $0x28] sm:$0xf0] }
 0x19b   :  { %v9807_v49 = vld [vmem:[#allocation5 + $0x12c8] sm:$0xf]  ;;  %v9552_v57 = vor.u32 %v11650_v48, %v9551_v47  ;;  %4406 = vmatpush.bf16.msrb.mxu1 %v9840_v45  ;;  %4432 = vmatpush.bf16.msrb.mxu3 %v7796_v50  ;;  %v7665_v45 = vld [vmem:[#allocation5 + $0x228] sm:$0xf0]  ;;  %v4180_v50 = vpop.f32.mrf.mxu3  ;;  %v7412_v5 = vor.u32 %v11110_v35, %v7409_v37 }
 0x19c   :  { %v11714_v52 = vld [vmem:[#allocation5 + $0x12e4] sm:$0xf0]  ;;  %v11294_v47 = vld [vmem:[#allocation5 + $0x5cc] sm:$0xf] }
 0x19d   :  { %v9808_v58 = vor.u32 %v11714_v52, %v9807_v49  ;;  %v9519_v60 = vld [vmem:[#allocation5 + $0x1088] sm:$0xf]  ;;  %4394 = vmatpush.bf16.msrb.mxu0 %v9552_v57  ;;  %4420 = vmatpush.bf16.msrb.mxu2 %v7508_v59  ;;  %v8145_v48 = vld [vmem:[#allocation5 + $0x5e8] sm:$0xf0]  ;;  %v7668_v59 = vor.u32 %v11174_v39, %v7665_v45  ;;  %v4191_v45 = vpop.f32.mrf.mxu0 }
 0x19e   :  { %v11642_v43 = vld [vmem:[#allocation5 + $0x10a4] sm:$0xf0]  ;;  %v11358_v49 = vld [vmem:[#allocation5 + $0x7cc] sm:$0xf] }
 0x19f   :  { %v9775_v61 = vld [vmem:[#allocation5 + $0x1288] sm:$0xf]  ;;  %v9520_v8 = vor.u32 %v11642_v43, %v9519_v60  ;;  %4407 = vmatpush.bf16.msrb.mxu1 %v9808_v58  ;;  %4433 = vmatpush.bf16.msrb.mxu3 %v7764_v62  ;;  %v11486_v57 = vld [vmem:[#allocation5 + $0xbcc] sm:$0xf]  ;;  %v8148_v60 = vor.u32 %v11294_v47, %v8145_v48  ;;  %v8404_v43 = vor.u32 %v11358_v49, %v8401_v53  ;;  %v4204_v53 = vpop.f32.mrf.mxu1 }
 0x1a0   :  { %v11706_v63 = vld [vmem:[#allocation5 + $0x12a4] sm:$0xf0]  ;;  %v8913_v58 = vld [vmem:[#allocation5 + $0xbe8] sm:$0xf0] }
 0x1a1   :  { %v9776_v10 = vor.u32 %v11706_v63, %v9775_v61  ;;  %v9487_v12 = vld [vmem:[#allocation5 + $0x1048] sm:$0xf]  ;;  %4395 = vmatpush.bf16.msrb.mxu0 %v9520_v8  ;;  %4421 = vmatpush.bf16.msrb.mxu2 %v7476_v11  ;;  %v8660_v61 = vor.u32 %v11422_v54, %v8657_v55  ;;  %v11286_v62 = vld [vmem:[#allocation5 + $0x58c] sm:$0xf]  ;;  %v8916_v1 = vor.u32 %v11486_v57, %v8913_v58 }
 0x1a2   :  { %v11634_v13 = vld [vmem:[#allocation5 + $0x1064] sm:$0xf0]  ;;  %v8113_v63 = vld [vmem:[#allocation5 + $0x5a8] sm:$0xf0]  ;;  %v8372_v8 = vor.u32 %v11350_v0, %v8369_v2 }
 0x1a3   :  { %v9743_v14 = vld [vmem:[#allocation5 + $0x1248] sm:$0xf]  ;;  %v9488_v28 = vor.u32 %v11634_v13, %v9487_v12  ;;  %4408 = vmatpush.bf16.msrb.mxu1 %v9776_v10  ;;  %4434 = vmatpush.bf16.msrb.mxu3 %v7732_v16  ;;  %v11478_v6 = vld [vmem:[#allocation5 + $0xb8c] sm:$0xf]  ;;  %v8116_v40 = vor.u32 %v11286_v62, %v8113_v63 }
 0x1a4   :  { %v11698_v17 = vld [vmem:[#allocation5 + $0x1264] sm:$0xf0]  ;;  %v8881_v7 = vld [vmem:[#allocation5 + $0xba8] sm:$0xf0] }
 0x1a5   :  { %v9455_v29 = vld [vmem:[#allocation5 + $0x1008] sm:$0xf]  ;;  %v9744_v31 = vor.u32 %v11698_v17, %v9743_v14  ;;  %4396 = vmatpush.bf16.msrb.mxu0 %v9488_v28  ;;  %4422 = vmatpush.bf16.msrb.mxu2 %v7444_v32  ;;  %v11278_v10 = vld [vmem:[#allocation5 + $0x54c] sm:$0xf]  ;;  %v8884_v13 = vor.u32 %v11478_v6, %v8881_v7  ;;  %v4230_v7 = vpop.f32.mrf.mxu3 }
 0x1a6   :  { %v11626_v30 = vld [vmem:[#allocation5 + $0x1024] sm:$0xf0]  ;;  %v8081_v11 = vld [vmem:[#allocation5 + $0x568] sm:$0xf0] }
 0x1a7   :  { %v9711_v33 = vld [vmem:[#allocation5 + $0x1208] sm:$0xf]  ;;  %v9456_v52 = vor.u32 %v11626_v30, %v9455_v29  ;;  %4409 = vmatpush.bf16.msrb.mxu1 %v9744_v31  ;;  %4435 = vmatpush.bf16.msrb.mxu3 %v7700_v36  ;;  %v11342_v12 = vld [vmem:[#allocation5 + $0x74c] sm:$0xf]  ;;  %v8084_v25 = vor.u32 %v11278_v10, %v8081_v11  ;;  %v4193_v11 = vpop.f32.mrf.mxu0 }
 0x1a8   :  { %v11690_v34 = vld [vmem:[#allocation5 + $0x1224] sm:$0xf0]  ;;  %v8337_v14 = vld [vmem:[#allocation5 + $0x768] sm:$0xf0] }
 0x1a9   :  { %v9712_v56 = vor.u32 %v11690_v34, %v9711_v33  ;;  %4397 = vmatpush.bf16.msrb.mxu0 %v9456_v52  ;;  %4423 = vmatpush.bf16.msrb.mxu2 %v7412_v5  ;;  %v11406_v16 = vld [vmem:[#allocation5 + $0x94c] sm:$0xf]  ;;  %v8340_v27 = vor.u32 %v11342_v12, %v8337_v14  ;;  %v4192_v52 = vadd.f32 %v4191_v45, %v12393_v15 }
 0x1aa   :  { %v8593_v17 = vld [vmem:[#allocation5 + $0x968] sm:$0xf0] }
 0x1ab   :  { %4410 = vmatpush.bf16.msrb.mxu1 %v9712_v56  ;;  %4436 = vmatpush.bf16.msrb.mxu3 %v7668_v59  ;;  %v11470_v23 = vld [vmem:[#allocation5 + $0xb4c] sm:$0xf]  ;;  %v8596_v28 = vor.u32 %v11406_v16, %v8593_v17  ;;  %v4205_v59 = vadd.f32 %v4204_v53, %v4192_v52 }
 0x1ac   :  { %4398 = vmatmul.bf16.vlgmr.msrb.gmra.mxu0 %v12357_v21  ;;  %v8849_v24 = vld [vmem:[#allocation5 + $0xb68] sm:$0xf0]  ;;  %4424 = vmatmul.bf16.vlgmr.msrb.gmra.mxu2 %v12335_v19 }
 0x1ad   :  { %4442 = vmatpush.bf16.msra.mxu0 %v8148_v60  ;;  %4468 = vmatpush.bf16.msra.mxu2 %v8660_v61  ;;  %v11270_v29 = vld [vmem:[#allocation5 + $0x50c] sm:$0xf]  ;;  %v8852_v32 = vor.u32 %v11470_v23, %v8849_v24  ;;  %v4206_v23 = vpop.f32.mrf.mxu1 }
 0x1ae   :  { %4411 = vmatmul.bf16.vlgmr.msrb.gmra.mxu1 %v12359_v26  ;;  %4437 = vmatmul.bf16.vlgmr.msrb.gmra.mxu3 %v12339_v22  ;;  %v8049_v30 = vld [vmem:[#allocation5 + $0x528] sm:$0xf0] }
 0x1af   :  { %4455 = vmatpush.bf16.msra.mxu1 %v8404_v43  ;;  %4481 = vmatpush.bf16.msra.mxu3 %v8916_v1  ;;  %v11334_v31 = vld [vmem:[#allocation5 + $0x70c] sm:$0xf]  ;;  %v8052_v39 = vor.u32 %v11270_v29, %v8049_v30  ;;  %v4217_v1 = vpop.f32.mrf.mxu2 }
 0x1b0   :  { %v8305_v33 = vld [vmem:[#allocation5 + $0x728] sm:$0xf0]  ;;  %v4218_v6 = vadd.f32 %v4217_v1, %v4205_v59 }
 0x1b1   :  { %4443 = vmatpush.bf16.msra.mxu0 %v8116_v40  ;;  %4469 = vmatpush.bf16.msra.mxu2 %v8628_v9  ;;  %v11398_v34 = vld [vmem:[#allocation5 + $0x90c] sm:$0xf]  ;;  %v8308_v46 = vor.u32 %v11334_v31, %v8305_v33 }
 0x1b2   :  { %v8561_v35 = vld [vmem:[#allocation5 + $0x928] sm:$0xf0]  ;;  %v12400_v10 = vadd.f32 %v4230_v7, %v4218_v6 }
 0x1b3   :  { %4456 = vmatpush.bf16.msra.mxu1 %v8372_v8  ;;  %4482 = vmatpush.bf16.msra.mxu3 %v8884_v13  ;;  %v11462_v36 = vld [vmem:[#allocation5 + $0xb0c] sm:$0xf]  ;;  %v8564_v47 = vor.u32 %v11398_v34, %v8561_v35 }
 0x1b4   :  { %v8817_v37 = vld [vmem:[#allocation5 + $0xb28] sm:$0xf0] }
 0x1b5   :  { %4444 = vmatpush.bf16.msra.mxu0 %v8084_v25  ;;  %4470 = vmatpush.bf16.msra.mxu2 %v8596_v28  ;;  %v11262_v48 = vld [vmem:[#allocation5 + $0x4cc] sm:$0xf]  ;;  %v8820_v54 = vor.u32 %v11462_v36, %v8817_v37 }
 0x1b6   :  { %v8017_v49 = vld [vmem:[#allocation5 + $0x4e8] sm:$0xf0] }
 0x1b7   :  { %4457 = vmatpush.bf16.msra.mxu1 %v8340_v27  ;;  %v11326_v50 = vld [vmem:[#allocation5 + $0x6cc] sm:$0xf]  ;;  %4483 = vmatpush.bf16.msra.mxu3 %v8852_v32  ;;  %v8020_v60 = vor.u32 %v11262_v48, %v8017_v49  ;;  %v4219_v45 = vpop.f32.mrf.mxu2 }
 0x1b8   :  { %v8273_v55 = vld [vmem:[#allocation5 + $0x6e8] sm:$0xf0]  ;;  %v4243_v45 = vpop.f32.mrf.mxu0 }
 0x1b9   :  { %v11390_v56 = vld [vmem:[#allocation5 + $0x8cc] sm:$0xf]  ;;  %4445 = vmatpush.bf16.msra.mxu0 %v8052_v39  ;;  %4471 = vmatpush.bf16.msra.mxu2 %v8564_v47  ;;  %v8276_v43 = vor.u32 %v11326_v50, %v8273_v55  ;;  %v4232_v50 = vpop.f32.mrf.mxu3 }
 0x1ba   :  { %v8529_v5 = vld [vmem:[#allocation5 + $0x8e8] sm:$0xf0]  ;;  %v4256_v50 = vpop.f32.mrf.mxu1 }
 0x1bb   :  { %v11454_v57 = vld [vmem:[#allocation5 + $0xacc] sm:$0xf]  ;;  %4458 = vmatpush.bf16.msra.mxu1 %v8308_v46  ;;  %v8532_v61 = vor.u32 %v11390_v56, %v8529_v5  ;;  %4484 = vmatpush.bf16.msra.mxu3 %v8820_v54 }
 0x1bc   :  { %v8785_v58 = vld [vmem:[#allocation5 + $0xae8] sm:$0xf0] }
 0x1bd   :  { %v11254_v62 = vld [vmem:[#allocation5 + $0x48c] sm:$0xf]  ;;  %v8788_v15 = vor.u32 %v11454_v57, %v8785_v58  ;;  %4446 = vmatpush.bf16.msra.mxu0 %v8020_v60  ;;  %4472 = vmatpush.bf16.msra.mxu2 %v8532_v61 }
 0x1be   :  { %v7985_v63 = vld [vmem:[#allocation5 + $0x4a8] sm:$0xf0] }
 0x1bf   :  { %v11318_v0 = vld [vmem:[#allocation5 + $0x68c] sm:$0xf]  ;;  %v7988_v9 = vor.u32 %v11254_v62, %v7985_v63  ;;  %4459 = vmatpush.bf16.msra.mxu1 %v8276_v43  ;;  %4485 = vmatpush.bf16.msra.mxu3 %v8788_v15 }
 0x1c0   :  { %v8241_v2 = vld [vmem:[#allocation5 + $0x6a8] sm:$0xf0] }
 0x1c1   :  { %v11382_v3 = vld [vmem:[#allocation5 + $0x88c] sm:$0xf]  ;;  %v8244_v12 = vor.u32 %v11318_v0, %v8241_v2  ;;  %4447 = vmatpush.bf16.msra.mxu0 %v7988_v9 }
 0x1c2   :  { %v8497_v4 = vld [vmem:[#allocation5 + $0x8a8] sm:$0xf0] }
 0x1c3   :  { %v11446_v40 = vld [vmem:[#allocation5 + $0xa8c] sm:$0xf]  ;;  %v8500_v13 = vor.u32 %v11382_v3, %v8497_v4  ;;  %4460 = vmatpush.bf16.msra.mxu1 %v8244_v12 }
 0x1c4   :  { %v8753_v8 = vld [vmem:[#allocation5 + $0xaa8] sm:$0xf0] }
 0x1c5   :  { %v11246_v14 = vld [vmem:[#allocation5 + $0x44c] sm:$0xf]  ;;  %v8756_v24 = vor.u32 %v11446_v40, %v8753_v8  ;;  %4473 = vmatpush.bf16.msra.mxu2 %v8500_v13 }
 0x1c6   :  { %v7953_v16 = vld [vmem:[#allocation5 + $0x468] sm:$0xf0] }
 0x1c7   :  { %v11310_v17 = vld [vmem:[#allocation5 + $0x64c] sm:$0xf]  ;;  %v7956_v31 = vor.u32 %v11246_v14, %v7953_v16  ;;  %4486 = vmatpush.bf16.msra.mxu3 %v8756_v24 }
 0x1c8   :  { %v8209_v25 = vld [vmem:[#allocation5 + $0x668] sm:$0xf0] }
 0x1c9   :  { %v11374_v27 = vld [vmem:[#allocation5 + $0x84c] sm:$0xf]  ;;  %v8212_v34 = vor.u32 %v11310_v17, %v8209_v25  ;;  %4448 = vmatpush.bf16.msra.mxu0 %v7956_v31 }
 0x1ca   :  { %v8465_v28 = vld [vmem:[#allocation5 + $0x868] sm:$0xf0] }
 0x1cb   :  { %v11438_v29 = vld [vmem:[#allocation5 + $0xa4c] sm:$0xf]  ;;  %v8468_v35 = vor.u32 %v11374_v27, %v8465_v28  ;;  %4461 = vmatpush.bf16.msra.mxu1 %v8212_v34 }
 0x1cc   :  { %v8721_v30 = vld [vmem:[#allocation5 + $0xa68] sm:$0xf0] }
 0x1cd   :  { %v11238_v32 = vld [vmem:[#allocation5 + $0x40c] sm:$0xf]  ;;  %v8724_v46 = vor.u32 %v11438_v29, %v8721_v30  ;;  %4474 = vmatpush.bf16.msra.mxu2 %v8468_v35 }
 0x1ce   :  { %v7921_v33 = vld [vmem:[#allocation5 + $0x428] sm:$0xf0] }
 0x1cf   :  { %v11302_v36 = vld [vmem:[#allocation5 + $0x60c] sm:$0xf]  ;;  %v7924_v55 = vor.u32 %v11238_v32, %v7921_v33  ;;  %4487 = vmatpush.bf16.msra.mxu3 %v8724_v46 }
 0x1d0   :  { %v8177_v37 = vld [vmem:[#allocation5 + $0x628] sm:$0xf0] }
 0x1d1   :  { %v11366_v39 = vld [vmem:[#allocation5 + $0x80c] sm:$0xf]  ;;  %v8180_v58 = vor.u32 %v11302_v36, %v8177_v37  ;;  %4449 = vmatpush.bf16.msra.mxu0 %v7924_v55 }
 0x1d2   :  { %v8433_v47 = vld [vmem:[#allocation5 + $0x828] sm:$0xf0] }
 0x1d3   :  { %v11430_v48 = vld [vmem:[#allocation5 + $0xa0c] sm:$0xf]  ;;  %v8436_v59 = vor.u32 %v11366_v39, %v8433_v47  ;;  %4462 = vmatpush.bf16.msra.mxu1 %v8180_v58 }
 0x1d4   :  { %v8689_v49 = vld [vmem:[#allocation5 + $0xa28] sm:$0xf0]  ;;  %4450 = vmatmul.bf16.vlgmr.msra.gmra.mxu0 %v12333_v18 }
 0x1d5   :  { %v11550_v52 = vld [vmem:[#allocation5 + $0xdcc] sm:$0xf]  ;;  %v8692_v61 = vor.u32 %v11430_v48, %v8689_v49  ;;  %4475 = vmatpush.bf16.msra.mxu2 %v8436_v59  ;;  %v4244_v48 = vadd.f32 %v4243_v45, %v12400_v10 }
 0x1d6   :  { %v9169_v53 = vld [vmem:[#allocation5 + $0xde8] sm:$0xf0]  ;;  %4463 = vmatmul.bf16.vlgmr.msra.gmra.mxu1 %v12337_v20 }
 0x1d7   :  { %v11614_v54 = vld [vmem:[#allocation5 + $0xfcc] sm:$0xf]  ;;  %v9172_v62 = vor.u32 %v11550_v52, %v9169_v53  ;;  %4488 = vmatpush.bf16.msra.mxu3 %v8692_v61 }
 0x1d8   :  { %v9425_v56 = vld [vmem:[#allocation5 + $0xfe8] sm:$0xf0]  ;;  %4476 = vmatmul.bf16.vlgmr.msra.gmra.mxu2 %v12347_v41 }
 0x1d9   :  { %v11678_v5 = vld [vmem:[#allocation5 + $0x11cc] sm:$0xf]  ;;  %v9428_v63 = vor.u32 %v11614_v54, %v9425_v56  ;;  %4494 = vmatpush.bf16.msrb.mxu0 %v9172_v62 }
 0x1da   :  { %v9681_v57 = vld [vmem:[#allocation5 + $0x11e8] sm:$0xf0]  ;;  %4489 = vmatmul.bf16.vlgmr.msra.gmra.mxu3 %v12351_v44 }
 0x1db   :  { %v11742_v60 = vld [vmem:[#allocation5 + $0x13cc] sm:$0xf]  ;;  %v9684_v0 = vor.u32 %v11678_v5, %v9681_v57  ;;  %4507 = vmatpush.bf16.msrb.mxu1 %v9428_v63  ;;  %v4257_v57 = vadd.f32 %v4256_v50, %v4244_v48 }
 0x1dc   :  { %v9937_v43 = vld [vmem:[#allocation5 + $0x13e8] sm:$0xf0] }
 0x1dd   :  { %v11542_v1 = vld [vmem:[#allocation5 + $0xd8c] sm:$0xf]  ;;  %v9940_v3 = vor.u32 %v11742_v60, %v9937_v43  ;;  %4520 = vmatpush.bf16.msrb.mxu2 %v9684_v0 }
 0x1de   :  { %v9137_v15 = vld [vmem:[#allocation5 + $0xda8] sm:$0xf0] }
 0x1df   :  { %v11606_v2 = vld [vmem:[#allocation5 + $0xf8c] sm:$0xf]  ;;  %v9140_v9 = vor.u32 %v11542_v1, %v9137_v15  ;;  %4533 = vmatpush.bf16.msrb.mxu3 %v9940_v3  ;;  %v4269_v3 = vpop.f32.mrf.mxu2 }
 0x1e0   :  { %v9393_v4 = vld [vmem:[#allocation5 + $0xfa8] sm:$0xf0] }
 0x1e1   :  { %v11670_v6 = vld [vmem:[#allocation5 + $0x118c] sm:$0xf]  ;;  %v9396_v11 = vor.u32 %v11606_v2, %v9393_v4  ;;  %4495 = vmatpush.bf16.msrb.mxu0 %v9140_v9 }
 0x1e2   :  { %v9649_v7 = vld [vmem:[#allocation5 + $0x11a8] sm:$0xf0] }
 0x1e3   :  { %v11734_v40 = vld [vmem:[#allocation5 + $0x138c] sm:$0xf]  ;;  %v9652_v12 = vor.u32 %v11670_v6, %v9649_v7  ;;  %4508 = vmatpush.bf16.msrb.mxu1 %v9396_v11 }
 0x1e4   :  { %v9905_v8 = vld [vmem:[#allocation5 + $0x13a8] sm:$0xf0] }
 0x1e5   :  { %v11534_v13 = vld [vmem:[#allocation5 + $0xd4c] sm:$0xf]  ;;  %v9908_v17 = vor.u32 %v11734_v40, %v9905_v8  ;;  %4521 = vmatpush.bf16.msrb.mxu2 %v9652_v12  ;;  %v4270_v40 = vadd.f32 %v4269_v3, %v4257_v57  ;;  %v4282_v8 = vpop.f32.mrf.mxu3  ;;  %v4245_v12 = vpop.f32.mrf.mxu0  ;;  %v11163_v3 = vld [vmem:[#allocation5 + $0x1ac] sm:$0xf0] }
 0x1e6   :  { %v9105_v14 = vld [vmem:[#allocation5 + $0xd68] sm:$0xf0] }
 0x1e7   :  { %v11598_v16 = vld [vmem:[#allocation5 + $0xf4c] sm:$0xf]  ;;  %v9108_v29 = vor.u32 %v11534_v13, %v9105_v14  ;;  %4534 = vmatpush.bf16.msrb.mxu3 %v9908_v17  ;;  %v4258_v14 = vpop.f32.mrf.mxu1 }
 0x1e8   :  { %v9361_v23 = vld [vmem:[#allocation5 + $0xf68] sm:$0xf0] }
 0x1e9   :  { %v11662_v24 = vld [vmem:[#allocation5 + $0x114c] sm:$0xf]  ;;  %v9364_v30 = vor.u32 %v11598_v16, %v9361_v23  ;;  %4496 = vmatpush.bf16.msrb.mxu0 %v9108_v29  ;;  %v12407_v16 = vadd.f32 %v4282_v8, %v4270_v40  ;;  %v8119_v40 = vld [vmem:[#allocation5 + $0x590] sm:$0xf] }
 0x1ea   :  { %v9617_v25 = vld [vmem:[#allocation5 + $0x1168] sm:$0xf0]  ;;  %v11291_v8 = vld [vmem:[#allocation5 + $0x5ac] sm:$0xf0] }
 0x1eb   :  { %v11726_v27 = vld [vmem:[#allocation5 + $0x134c] sm:$0xf]  ;;  %v9620_v31 = vor.u32 %v11662_v24, %v9617_v25  ;;  %4509 = vmatpush.bf16.msrb.mxu1 %v9364_v30  ;;  %v8120_v14 = vor.u32 %v11291_v8, %v8119_v40 }
 0x1ec   :  { %v9873_v28 = vld [vmem:[#allocation5 + $0x1368] sm:$0xf0] }
 0x1ed   :  { %v11526_v32 = vld [vmem:[#allocation5 + $0xd0c] sm:$0xf]  ;;  %v9876_v35 = vor.u32 %v11726_v27, %v9873_v28  ;;  %4522 = vmatpush.bf16.msrb.mxu2 %v9620_v31 }
 0x1ee   :  { %v9073_v33 = vld [vmem:[#allocation5 + $0xd28] sm:$0xf0] }
 0x1ef   :  { %v11590_v34 = vld [vmem:[#allocation5 + $0xf0c] sm:$0xf]  ;;  %v9076_v49 = vor.u32 %v11526_v32, %v9073_v33  ;;  %4535 = vmatpush.bf16.msrb.mxu3 %v9876_v35 }
 0x1f0   :  { %v9329_v36 = vld [vmem:[#allocation5 + $0xf28] sm:$0xf0] }
 0x1f1   :  { %v11654_v37 = vld [vmem:[#allocation5 + $0x110c] sm:$0xf]  ;;  %v9332_v52 = vor.u32 %v11590_v34, %v9329_v36  ;;  %4497 = vmatpush.bf16.msrb.mxu0 %v9076_v49 }
 0x1f2   :  { %v9585_v39 = vld [vmem:[#allocation5 + $0x1128] sm:$0xf0] }
 0x1f3   :  { %v11718_v46 = vld [vmem:[#allocation5 + $0x130c] sm:$0xf]  ;;  %v9588_v53 = vor.u32 %v11654_v37, %v9585_v39  ;;  %4510 = vmatpush.bf16.msrb.mxu1 %v9332_v52 }
 0x1f4   :  { %v9841_v47 = vld [vmem:[#allocation5 + $0x1328] sm:$0xf0] }
 0x1f5   :  { %v11518_v54 = vld [vmem:[#allocation5 + $0xccc] sm:$0xf]  ;;  %v9844_v5 = vor.u32 %v11718_v46, %v9841_v47  ;;  %4523 = vmatpush.bf16.msrb.mxu2 %v9588_v53  ;;  %v4271_v53 = vpop.f32.mrf.mxu2 }
 0x1f6   :  { %v9041_v55 = vld [vmem:[#allocation5 + $0xce8] sm:$0xf0] }
 0x1f7   :  { %v11582_v56 = vld [vmem:[#allocation5 + $0xecc] sm:$0xf]  ;;  %v9044_v62 = vor.u32 %v11518_v54, %v9041_v55  ;;  %4536 = vmatpush.bf16.msrb.mxu3 %v9844_v5  ;;  %v7639_v54 = vld [vmem:[#allocation5 + $0x1d0] sm:$0xf]  ;;  %v4284_v5 = vpop.f32.mrf.mxu3 }
 0x1f8   :  { %v9297_v58 = vld [vmem:[#allocation5 + $0xee8] sm:$0xf0]  ;;  %v11171_v55 = vld [vmem:[#allocation5 + $0x1ec] sm:$0xf0] }
 0x1f9   :  { %v11646_v59 = vld [vmem:[#allocation5 + $0x10cc] sm:$0xf]  ;;  %v9300_v10 = vor.u32 %v11582_v56, %v9297_v58  ;;  %4498 = vmatpush.bf16.msrb.mxu0 %v9044_v62  ;;  %v7895_v56 = vld [vmem:[#allocation5 + $0x3d0] sm:$0xf] }
 0x1fa   :  { %v9553_v60 = vld [vmem:[#allocation5 + $0x10e8] sm:$0xf0]  ;;  %v11235_v58 = vld [vmem:[#allocation5 + $0x3ec] sm:$0xf0] }
 0x1fb   :  { %v11710_v43 = vld [vmem:[#allocation5 + $0x12cc] sm:$0xf]  ;;  %v9556_v63 = vor.u32 %v11646_v59, %v9553_v60  ;;  %4511 = vmatpush.bf16.msrb.mxu1 %v9300_v10  ;;  %v8151_v59 = vld [vmem:[#allocation5 + $0x5d0] sm:$0xf] }
 0x1fc   :  { %v9809_v61 = vld [vmem:[#allocation5 + $0x12e8] sm:$0xf0]  ;;  %v11299_v60 = vld [vmem:[#allocation5 + $0x5ec] sm:$0xf0] }
 0x1fd   :  { %v11510_v0 = vld [vmem:[#allocation5 + $0xc8c] sm:$0xf]  ;;  %v9812_v2 = vor.u32 %v11710_v43, %v9809_v61  ;;  %4524 = vmatpush.bf16.msrb.mxu2 %v9556_v63  ;;  %v8407_v62 = vld [vmem:[#allocation5 + $0x7d0] sm:$0xf]  ;;  %v4321_v40 = vpop.f32.mrf.mxu2 }
 0x1fe   :  { %v9009_v1 = vld [vmem:[#allocation5 + $0xca8] sm:$0xf0]  ;;  %v11363_v10 = vld [vmem:[#allocation5 + $0x7ec] sm:$0xf0] }
 0x1ff   :  { %v11574_v15 = vld [vmem:[#allocation5 + $0xe8c] sm:$0xf]  ;;  %v9012_v13 = vor.u32 %v11510_v0, %v9009_v1  ;;  %4537 = vmatpush.bf16.msrb.mxu3 %v9812_v2  ;;  %v7640_v0 = vor.u32 %v11171_v55, %v7639_v54  ;;  %v7896_v1 = vor.u32 %v11235_v58, %v7895_v56  ;;  %v7607_v2 = vld [vmem:[#allocation5 + $0x190] sm:$0xf]  ;;  %v4295_v54 = vpop.f32.mrf.mxu0 }
 0x200   :  { %v9265_v4 = vld [vmem:[#allocation5 + $0xea8] sm:$0xf0]  ;;  %v7608_v12 = vor.u32 %v11163_v3, %v7607_v2  ;;  %v7511_v5 = vld [vmem:[#allocation5 + $0xd0] sm:$0xf] }
 0x201   :  { %v11638_v6 = vld [vmem:[#allocation5 + $0x108c] sm:$0xf]  ;;  %v9268_v17 = vor.u32 %v11574_v15, %v9265_v4  ;;  %4499 = vmatpush.bf16.msrb.mxu0 %v9012_v13  ;;  %v8152_v15 = vor.u32 %v11299_v60, %v8151_v59  ;;  %v7863_v4 = vld [vmem:[#allocation5 + $0x390] sm:$0xf]  ;;  %v4308_v60 = vpop.f32.mrf.mxu1 }
 0x202   :  { %v9521_v7 = vld [vmem:[#allocation5 + $0x10a8] sm:$0xf0]  ;;  %v7767_v58 = vld [vmem:[#allocation5 + $0x2d0] sm:$0xf] }
 0x203   :  { %v11702_v9 = vld [vmem:[#allocation5 + $0x128c] sm:$0xf]  ;;  %v9524_v23 = vor.u32 %v11638_v6, %v9521_v7  ;;  %4512 = vmatpush.bf16.msrb.mxu1 %v9268_v17  ;;  %v8408_v6 = vor.u32 %v11363_v10, %v8407_v62  ;;  %v11227_v7 = vld [vmem:[#allocation5 + $0x3ac] sm:$0xf0] }
 0x204   :  { %v9777_v11 = vld [vmem:[#allocation5 + $0x12a8] sm:$0xf0]  ;;  %v7864_v13 = vor.u32 %v11227_v7, %v7863_v4  ;;  %v7575_v17 = vld [vmem:[#allocation5 + $0x150] sm:$0xf] }
 0x205   :  { %v11502_v24 = vld [vmem:[#allocation5 + $0xc4c] sm:$0xf]  ;;  %v9780_v28 = vor.u32 %v11702_v9, %v9777_v11  ;;  %4525 = vmatpush.bf16.msrb.mxu2 %v9524_v23  ;;  %v8375_v9 = vld [vmem:[#allocation5 + $0x790] sm:$0xf] }
 0x206   :  { %v8977_v25 = vld [vmem:[#allocation5 + $0xc68] sm:$0xf0]  ;;  %v11355_v11 = vld [vmem:[#allocation5 + $0x7ac] sm:$0xf0] }
 0x207   :  { %v11566_v27 = vld [vmem:[#allocation5 + $0xe4c] sm:$0xf]  ;;  %v8980_v34 = vor.u32 %v11502_v24, %v8977_v25  ;;  %4538 = vmatpush.bf16.msrb.mxu3 %v9780_v28  ;;  %v11155_v23 = vld [vmem:[#allocation5 + $0x16c] sm:$0xf0]  ;;  %v8376_v25 = vor.u32 %v11355_v11, %v8375_v9 }
 0x208   :  { %v9233_v29 = vld [vmem:[#allocation5 + $0xe68] sm:$0xf0]  ;;  %v7831_v24 = vld [vmem:[#allocation5 + $0x350] sm:$0xf] }
 0x209   :  { %v11630_v30 = vld [vmem:[#allocation5 + $0x104c] sm:$0xf]  ;;  %v9236_v37 = vor.u32 %v11566_v27, %v9233_v29  ;;  %4500 = vmatpush.bf16.msrb.mxu0 %v8980_v34  ;;  %v11219_v27 = vld [vmem:[#allocation5 + $0x36c] sm:$0xf0] }
 0x20a   :  { %v9489_v31 = vld [vmem:[#allocation5 + $0x1068] sm:$0xf0]  ;;  %v8087_v28 = vld [vmem:[#allocation5 + $0x550] sm:$0xf]  ;;  %v7832_v34 = vor.u32 %v11219_v27, %v7831_v24  ;;  %v4297_v27 = vpop.f32.mrf.mxu0 }
 0x20b   :  { %v11694_v32 = vld [vmem:[#allocation5 + $0x124c] sm:$0xf]  ;;  %v9492_v39 = vor.u32 %v11630_v30, %v9489_v31  ;;  %4513 = vmatpush.bf16.msrb.mxu1 %v9236_v37  ;;  %v11283_v29 = vld [vmem:[#allocation5 + $0x56c] sm:$0xf0] }
 0x20c   :  { %v9745_v33 = vld [vmem:[#allocation5 + $0x1268] sm:$0xf0]  ;;  %v8343_v30 = vld [vmem:[#allocation5 + $0x750] sm:$0xf] }
 0x20d   :  { %v11494_v35 = vld [vmem:[#allocation5 + $0xc0c] sm:$0xf]  ;;  %v9748_v48 = vor.u32 %v11694_v32, %v9745_v33  ;;  %4526 = vmatpush.bf16.msrb.mxu2 %v9492_v39  ;;  %v11347_v31 = vld [vmem:[#allocation5 + $0x76c] sm:$0xf0]  ;;  %v7576_v32 = vor.u32 %v11155_v23, %v7575_v17  ;;  %v12413_v39 = vld [vmem:[#allocation7] sm:$0xff] }
 0x20e   :  { %v8945_v36 = vld [vmem:[#allocation5 + $0xc28] sm:$0xf0]  ;;  %v7543_v33 = vld [vmem:[#allocation5 + $0x110] sm:$0xf] }
 0x20f   :  { %v11558_v45 = vld [vmem:[#allocation5 + $0xe0c] sm:$0xf]  ;;  %v8948_v57 = vor.u32 %v11494_v35, %v8945_v36  ;;  %4539 = vmatpush.bf16.msrb.mxu3 %v9748_v48  ;;  %v8088_v35 = vor.u32 %v11283_v29, %v8087_v28  ;;  %v11147_v36 = vld [vmem:[#allocation5 + $0x12c] sm:$0xf0] }
 0x210   :  { %v9201_v46 = vld [vmem:[#allocation5 + $0xe28] sm:$0xf0]  ;;  %v7799_v37 = vld [vmem:[#allocation5 + $0x310] sm:$0xf]  ;;  %v7544_v53 = vor.u32 %v11147_v36, %v7543_v33  ;;  %v4310_v33 = vpop.f32.mrf.mxu1 }
 0x211   :  { %v11622_v47 = vld [vmem:[#allocation5 + $0x100c] sm:$0xf]  ;;  %v9204_v43 = vor.u32 %v11558_v45, %v9201_v46  ;;  %4501 = vmatpush.bf16.msrb.mxu0 %v8948_v57  ;;  %v777_v45 = vperm.slane %v12413_v39, 2  ;;  %v8344_v46 = vor.u32 %v11347_v31, %v8343_v30  ;;  %v8055_v48 = vld [vmem:[#allocation5 + $0x510] sm:$0xf] }
 0x212   :  { %v9457_v49 = vld [vmem:[#allocation5 + $0x1028] sm:$0xf0]  ;;  %v11139_v57 = vld [vmem:[#allocation5 + $0xec] sm:$0xf0] }
 0x213   :  { %v11686_v50 = vld [vmem:[#allocation5 + $0x120c] sm:$0xf]  ;;  %v9460_v61 = vor.u32 %v11622_v47, %v9457_v49  ;;  %4514 = vmatpush.bf16.msrb.mxu1 %v9204_v43  ;;  %v11211_v47 = vld [vmem:[#allocation5 + $0x32c] sm:$0xf0]  ;;  %v4296_v59 = vadd.f32 %v4295_v54, %v777_v45 }
 0x214   :  { %v9713_v52 = vld [vmem:[#allocation5 + $0x1228] sm:$0xf0]  ;;  %4502 = vmatmul.bf16.vlgmr.msrb.gmra.mxu0 %v12345_v38  ;;  %v11275_v49 = vld [vmem:[#allocation5 + $0x52c] sm:$0xf0]  ;;  %v7800_v55 = vor.u32 %v11211_v47, %v7799_v37 }
 0x215   :  { %v9716_v63 = vor.u32 %v11686_v50, %v9713_v52  ;;  %4527 = vmatpush.bf16.msrb.mxu2 %v9460_v61  ;;  %4546 = vmatpush.bf16.msra.mxu0 %v7640_v0  ;;  %v8311_v50 = vld [vmem:[#allocation5 + $0x710] sm:$0xf]  ;;  %v8056_v56 = vor.u32 %v11275_v49, %v8055_v48 }
 0x216   :  { %4515 = vmatmul.bf16.vlgmr.msrb.gmra.mxu1 %v12349_v42  ;;  %v11339_v52 = vld [vmem:[#allocation5 + $0x72c] sm:$0xf0] }
 0x217   :  { %4540 = vmatpush.bf16.msrb.mxu3 %v9716_v63  ;;  %4559 = vmatpush.bf16.msra.mxu1 %v7896_v1  ;;  %v8312_v43 = vor.u32 %v11339_v52, %v8311_v50  ;;  %v11203_v61 = vld [vmem:[#allocation5 + $0x2ec] sm:$0xf0]  ;;  %v4309_v1 = vadd.f32 %v4308_v60, %v4296_v59 }
 0x218   :  { %4528 = vmatmul.bf16.vlgmr.msrb.gmra.mxu2 %v12357_v21  ;;  %v8023_v62 = vld [vmem:[#allocation5 + $0x4d0] sm:$0xf]  ;;  %v7768_v2 = vor.u32 %v11203_v61, %v7767_v58 }
 0x219   :  { %4572 = vmatpush.bf16.msra.mxu2 %v8152_v15  ;;  %4547 = vmatpush.bf16.msra.mxu0 %v7608_v12  ;;  %v11267_v10 = vld [vmem:[#allocation5 + $0x4ec] sm:$0xf0]  ;;  %v7512_v15 = vor.u32 %v11139_v57, %v7511_v5 }
 0x21a   :  { %4541 = vmatmul.bf16.vlgmr.msrb.gmra.mxu3 %v12359_v26  ;;  %v8279_v63 = vld [vmem:[#allocation5 + $0x6d0] sm:$0xf]  ;;  %v8024_v3 = vor.u32 %v11267_v10, %v8023_v62 }
 0x21b   :  { %4585 = vmatpush.bf16.msra.mxu3 %v8408_v6  ;;  %4560 = vmatpush.bf16.msra.mxu1 %v7864_v13  ;;  %v11331_v0 = vld [vmem:[#allocation5 + $0x6ec] sm:$0xf0]  ;;  %v4322_v13 = vadd.f32 %v4321_v40, %v4309_v1 }
 0x21c   :  { %v7479_v4 = vld [vmem:[#allocation5 + $0x90] sm:$0xf]  ;;  %v8280_v8 = vor.u32 %v11331_v0, %v8279_v63 }
 0x21d   :  { %4573 = vmatpush.bf16.msra.mxu2 %v8120_v14  ;;  %4548 = vmatpush.bf16.msra.mxu0 %v7576_v32  ;;  %v11131_v6 = vld [vmem:[#allocation5 + $0xac] sm:$0xf0]  ;;  %v4334_v14 = vpop.f32.mrf.mxu3 }
 0x21e   :  { %v7735_v7 = vld [vmem:[#allocation5 + $0x290] sm:$0xf]  ;;  %v7480_v24 = vor.u32 %v11131_v6, %v7479_v4 }
 0x21f   :  { %4586 = vmatpush.bf16.msra.mxu3 %v8376_v25  ;;  %4561 = vmatpush.bf16.msra.mxu1 %v7832_v34  ;;  %v11195_v9 = vld [vmem:[#allocation5 + $0x2ac] sm:$0xf0]  ;;  %v12416_v25 = vadd.f32 %v4334_v14, %v4322_v13 }
 0x220   :  { %v7991_v11 = vld [vmem:[#allocation5 + $0x490] sm:$0xf]  ;;  %v7736_v28 = vor.u32 %v11195_v9, %v7735_v7 }
 0x221   :  { %4574 = vmatpush.bf16.msra.mxu2 %v8088_v35  ;;  %4549 = vmatpush.bf16.msra.mxu0 %v7544_v53  ;;  %v11259_v12 = vld [vmem:[#allocation5 + $0x4ac] sm:$0xf0] }
 0x222   :  { %v8247_v17 = vld [vmem:[#allocation5 + $0x690] sm:$0xf]  ;;  %v7992_v29 = vor.u32 %v11259_v12, %v7991_v11 }
 0x223   :  { %4587 = vmatpush.bf16.msra.mxu3 %v8344_v46  ;;  %4562 = vmatpush.bf16.msra.mxu1 %v7800_v55  ;;  %v11323_v23 = vld [vmem:[#allocation5 + $0x6ac] sm:$0xf0] }
 0x224   :  { %v7447_v30 = vld [vmem:[#allocation5 + $0x50] sm:$0xf]  ;;  %v8248_v34 = vor.u32 %v11323_v23, %v8247_v17 }
 0x225   :  { %4575 = vmatpush.bf16.msra.mxu2 %v8056_v56  ;;  %4550 = vmatpush.bf16.msra.mxu0 %v7512_v15  ;;  %v11123_v31 = vld [vmem:[#allocation5 + $0x6c] sm:$0xf0]  ;;  %v4323_v56 = vpop.f32.mrf.mxu2  ;;  %v4336_v60 = vpop.f32.mrf.mxu3 }
 0x226   :  { %v7703_v32 = vld [vmem:[#allocation5 + $0x250] sm:$0xf]  ;;  %v7448_v47 = vor.u32 %v11123_v31, %v7447_v30  ;;  %v4347_v60 = vpop.f32.mrf.mxu0 }
 0x227   :  { %4588 = vmatpush.bf16.msra.mxu3 %v8312_v43  ;;  %4563 = vmatpush.bf16.msra.mxu1 %v7768_v2  ;;  %v11187_v35 = vld [vmem:[#allocation5 + $0x26c] sm:$0xf0] }
 0x228   :  { %v7959_v36 = vld [vmem:[#allocation5 + $0x450] sm:$0xf]  ;;  %v7704_v50 = vor.u32 %v11187_v35, %v7703_v32 }
 0x229   :  { %4576 = vmatpush.bf16.msra.mxu2 %v8024_v3  ;;  %v11251_v37 = vld [vmem:[#allocation5 + $0x46c] sm:$0xf0]  ;;  %4551 = vmatpush.bf16.msra.mxu0 %v7480_v24 }
 0x22a   :  { %v8215_v45 = vld [vmem:[#allocation5 + $0x650] sm:$0xf]  ;;  %v7960_v52 = vor.u32 %v11251_v37, %v7959_v36 }
 0x22b   :  { %4589 = vmatpush.bf16.msra.mxu3 %v8280_v8  ;;  %v11315_v46 = vld [vmem:[#allocation5 + $0x66c] sm:$0xf0]  ;;  %4564 = vmatpush.bf16.msra.mxu1 %v7736_v28 }
 0x22c   :  { %v7415_v48 = vld [vmem:[#allocation5 + $0x10] sm:$0xf]  ;;  %v8216_v5 = vor.u32 %v11315_v46, %v8215_v45 }
 0x22d   :  { %v11115_v49 = vld [vmem:[#allocation5 + $0x2c] sm:$0xf0]  ;;  %4577 = vmatpush.bf16.msra.mxu2 %v7992_v29  ;;  %4552 = vmatpush.bf16.msra.mxu0 %v7448_v47 }
 0x22e   :  { %v7671_v53 = vld [vmem:[#allocation5 + $0x210] sm:$0xf]  ;;  %v7416_v10 = vor.u32 %v11115_v49, %v7415_v48 }
 0x22f   :  { %v11179_v54 = vld [vmem:[#allocation5 + $0x22c] sm:$0xf0]  ;;  %4590 = vmatpush.bf16.msra.mxu3 %v8248_v34  ;;  %4565 = vmatpush.bf16.msra.mxu1 %v7704_v50 }
 0x230   :  { %v7927_v55 = vld [vmem:[#allocation5 + $0x410] sm:$0xf]  ;;  %v7672_v15 = vor.u32 %v11179_v54, %v7671_v53 }
 0x231   :  { %v11243_v57 = vld [vmem:[#allocation5 + $0x42c] sm:$0xf0]  ;;  %4578 = vmatpush.bf16.msra.mxu2 %v7960_v52  ;;  %4553 = vmatpush.bf16.msra.mxu0 %v7416_v10 }
 0x232   :  { %v8183_v58 = vld [vmem:[#allocation5 + $0x610] sm:$0xf]  ;;  %v7928_v2 = vor.u32 %v11243_v57, %v7927_v55 }
 0x233   :  { %v11307_v59 = vld [vmem:[#allocation5 + $0x62c] sm:$0xf0]  ;;  %4591 = vmatpush.bf16.msra.mxu3 %v8216_v5  ;;  %4566 = vmatpush.bf16.msra.mxu1 %v7672_v15 }
 0x234   :  { %v8663_v43 = vld [vmem:[#allocation5 + $0x9d0] sm:$0xf]  ;;  %v8184_v6 = vor.u32 %v11307_v59, %v8183_v58  ;;  %4554 = vmatmul.bf16.vlgmr.msra.gmra.mxu0 %v12335_v19 }
 0x235   :  { %v11427_v61 = vld [vmem:[#allocation5 + $0x9ec] sm:$0xf0]  ;;  %4579 = vmatpush.bf16.msra.mxu2 %v7928_v2 }
 0x236   :  { %v8919_v62 = vld [vmem:[#allocation5 + $0xbd0] sm:$0xf]  ;;  %v8664_v7 = vor.u32 %v11427_v61, %v8663_v43  ;;  %4567 = vmatmul.bf16.vlgmr.msra.gmra.mxu1 %v12339_v22 }
 0x237   :  { %v11491_v63 = vld [vmem:[#allocation5 + $0xbec] sm:$0xf0]  ;;  %4592 = vmatpush.bf16.msra.mxu3 %v8184_v6 }
 0x238   :  { %v9175_v0 = vld [vmem:[#allocation5 + $0xdd0] sm:$0xf]  ;;  %v8920_v40 = vor.u32 %v11491_v63, %v8919_v62  ;;  %4598 = vmatpush.bf16.msrb.mxu0 %v8664_v7  ;;  %4580 = vmatmul.bf16.vlgmr.msra.gmra.mxu2 %v12333_v18 }
 0x239   :  { %v11555_v1 = vld [vmem:[#allocation5 + $0xdec] sm:$0xf0] }
 0x23a   :  { %v9431_v3 = vld [vmem:[#allocation5 + $0xfd0] sm:$0xf]  ;;  %v9176_v8 = vor.u32 %v11555_v1, %v9175_v0  ;;  %4611 = vmatpush.bf16.msrb.mxu1 %v8920_v40  ;;  %4593 = vmatmul.bf16.vlgmr.msra.gmra.mxu3 %v12337_v20  ;;  %v4348_v0 = vadd.f32 %v4347_v60, %v12416_v25  ;;  %v4360_v1 = vpop.f32.mrf.mxu1 }
 0x23b   :  { %v11619_v4 = vld [vmem:[#allocation5 + $0xfec] sm:$0xf0] }
 0x23c   :  { %v8631_v9 = vld [vmem:[#allocation5 + $0x990] sm:$0xf]  ;;  %v9432_v13 = vor.u32 %v11619_v4, %v9431_v3  ;;  %4624 = vmatpush.bf16.msrb.mxu2 %v9176_v8  ;;  %v4361_v40 = vadd.f32 %v4360_v1, %v4348_v0 }
 0x23d   :  { %v11419_v11 = vld [vmem:[#allocation5 + $0x9ac] sm:$0xf0] }
 0x23e   :  { %v8887_v12 = vld [vmem:[#allocation5 + $0xb90] sm:$0xf]  ;;  %v8632_v28 = vor.u32 %v11419_v11, %v8631_v9  ;;  %4637 = vmatpush.bf16.msrb.mxu3 %v9432_v13 }
 0x23f   :  { %v11483_v14 = vld [vmem:[#allocation5 + $0xbac] sm:$0xf0] }
 0x240   :  { %v9143_v17 = vld [vmem:[#allocation5 + $0xd90] sm:$0xf]  ;;  %v8888_v29 = vor.u32 %v11483_v14, %v8887_v12  ;;  %4599 = vmatpush.bf16.msrb.mxu0 %v8632_v28 }
 0x241   :  { %v11547_v23 = vld [vmem:[#allocation5 + $0xdac] sm:$0xf0] }
 0x242   :  { %v9399_v24 = vld [vmem:[#allocation5 + $0xf90] sm:$0xf]  ;;  %v9144_v30 = vor.u32 %v11547_v23, %v9143_v17  ;;  %4612 = vmatpush.bf16.msrb.mxu1 %v8888_v29  ;;  %v4373_v17 = vpop.f32.mrf.mxu2  ;;  %v4386_v29 = vpop.f32.mrf.mxu3 }
 0x243   :  { %v11611_v27 = vld [vmem:[#allocation5 + $0xfac] sm:$0xf0]  ;;  %v4374_v28 = vadd.f32 %v4373_v17, %v4361_v40  ;;  %v7641_v40 = vld [vmem:[#allocation5 + $0x1f0] sm:$0xf0] }
 0x244   :  { %v8599_v31 = vld [vmem:[#allocation5 + $0x950] sm:$0xf]  ;;  %v9400_v34 = vor.u32 %v11611_v27, %v9399_v24  ;;  %4625 = vmatpush.bf16.msrb.mxu2 %v9144_v30 }
 0x245   :  { %v11411_v32 = vld [vmem:[#allocation5 + $0x96c] sm:$0xf0] }
 0x246   :  { %v8855_v33 = vld [vmem:[#allocation5 + $0xb50] sm:$0xf]  ;;  %v8600_v47 = vor.u32 %v11411_v32, %v8599_v31  ;;  %4638 = vmatpush.bf16.msrb.mxu3 %v9400_v34  ;;  %v4349_v34 = vpop.f32.mrf.mxu0 }
 0x247   :  { %v11475_v35 = vld [vmem:[#allocation5 + $0xb6c] sm:$0xf0]  ;;  %v7865_v34 = vld [vmem:[#allocation5 + $0x3b0] sm:$0xf0] }
 0x248   :  { %v9111_v36 = vld [vmem:[#allocation5 + $0xd50] sm:$0xf]  ;;  %v8856_v48 = vor.u32 %v11475_v35, %v8855_v33  ;;  %4600 = vmatpush.bf16.msrb.mxu0 %v8600_v47  ;;  %v12423_v33 = vadd.f32 %v4386_v29, %v4374_v28  ;;  %v4362_v47 = vpop.f32.mrf.mxu1 }
 0x249   :  { %v11539_v37 = vld [vmem:[#allocation5 + $0xd6c] sm:$0xf0] }
 0x24a   :  { %v9367_v45 = vld [vmem:[#allocation5 + $0xf50] sm:$0xf]  ;;  %v9112_v49 = vor.u32 %v11539_v37, %v9111_v36  ;;  %4613 = vmatpush.bf16.msrb.mxu1 %v8856_v48  ;;  %v4388_v1 = vpop.f32.mrf.mxu3 }
 0x24b   :  { %v11603_v46 = vld [vmem:[#allocation5 + $0xf6c] sm:$0xf0] }
 0x24c   :  { %v8567_v50 = vld [vmem:[#allocation5 + $0x910] sm:$0xf]  ;;  %v9368_v54 = vor.u32 %v11603_v46, %v9367_v45  ;;  %4626 = vmatpush.bf16.msrb.mxu2 %v9112_v49 }
 0x24d   :  { %v11403_v52 = vld [vmem:[#allocation5 + $0x92c] sm:$0xf0] }
 0x24e   :  { %v8823_v53 = vld [vmem:[#allocation5 + $0xb10] sm:$0xf]  ;;  %v8568_v59 = vor.u32 %v11403_v52, %v8567_v50  ;;  %4639 = vmatpush.bf16.msrb.mxu3 %v9368_v54 }
 0x24f   :  { %v11467_v55 = vld [vmem:[#allocation5 + $0xb2c] sm:$0xf0] }
 0x250   :  { %v9079_v56 = vld [vmem:[#allocation5 + $0xd10] sm:$0xf]  ;;  %v8824_v43 = vor.u32 %v11467_v55, %v8823_v53  ;;  %4601 = vmatpush.bf16.msrb.mxu0 %v8568_v59 }
 0x251   :  { %v11531_v5 = vld [vmem:[#allocation5 + $0xd2c] sm:$0xf0] }
 0x252   :  { %v9335_v57 = vld [vmem:[#allocation5 + $0xf10] sm:$0xf]  ;;  %v9080_v61 = vor.u32 %v11531_v5, %v9079_v56  ;;  %4614 = vmatpush.bf16.msrb.mxu1 %v8824_v43 }
 0x253   :  { %v11595_v58 = vld [vmem:[#allocation5 + $0xf2c] sm:$0xf0] }
 0x254   :  { %v8535_v62 = vld [vmem:[#allocation5 + $0x8d0] sm:$0xf]  ;;  %v9336_v15 = vor.u32 %v11595_v58, %v9335_v57  ;;  %4627 = vmatpush.bf16.msrb.mxu2 %v9080_v61  ;;  %v4375_v61 = vpop.f32.mrf.mxu2 }
 0x255   :  { %v11395_v10 = vld [vmem:[#allocation5 + $0x8ec] sm:$0xf0]  ;;  %v11143_v61 = vld [vmem:[#allocation5 + $0x114] sm:$0xf] }
 0x256   :  { %v8791_v63 = vld [vmem:[#allocation5 + $0xad0] sm:$0xf]  ;;  %v8536_v8 = vor.u32 %v11395_v10, %v8535_v62  ;;  %4640 = vmatpush.bf16.msrb.mxu3 %v9336_v15 }
 0x257   :  { %v11459_v2 = vld [vmem:[#allocation5 + $0xaec] sm:$0xf0] }
 0x258   :  { %v9047_v3 = vld [vmem:[#allocation5 + $0xcd0] sm:$0xf]  ;;  %v8792_v9 = vor.u32 %v11459_v2, %v8791_v63  ;;  %4602 = vmatpush.bf16.msrb.mxu0 %v8536_v8 }
 0x259   :  { %v11523_v4 = vld [vmem:[#allocation5 + $0xcec] sm:$0xf0] }
 0x25a   :  { %v9303_v6 = vld [vmem:[#allocation5 + $0xed0] sm:$0xf]  ;;  %v9048_v11 = vor.u32 %v11523_v4, %v9047_v3  ;;  %4615 = vmatpush.bf16.msrb.mxu1 %v8792_v9 }
 0x25b   :  { %v11587_v7 = vld [vmem:[#allocation5 + $0xeec] sm:$0xf0] }
 0x25c   :  { %v8503_v12 = vld [vmem:[#allocation5 + $0x890] sm:$0xf]  ;;  %v9304_v25 = vor.u32 %v11587_v7, %v9303_v6  ;;  %4628 = vmatpush.bf16.msrb.mxu2 %v9048_v11  ;;  %v11167_v7 = vld [vmem:[#allocation5 + $0x1d4] sm:$0xf] }
 0x25d   :  { %v11387_v13 = vld [vmem:[#allocation5 + $0x8ac] sm:$0xf0]  ;;  %v11231_v11 = vld [vmem:[#allocation5 + $0x3d4] sm:$0xf] }
 0x25e   :  { %v8759_v14 = vld [vmem:[#allocation5 + $0xa90] sm:$0xf]  ;;  %v8504_v32 = vor.u32 %v11387_v13, %v8503_v12  ;;  %4641 = vmatpush.bf16.msrb.mxu3 %v9304_v25  ;;  %v7897_v12 = vld [vmem:[#allocation5 + $0x3f0] sm:$0xf0]  ;;  %v7644_v25 = vor.u32 %v11167_v7, %v7641_v40 }
 0x25f   :  { %v11451_v23 = vld [vmem:[#allocation5 + $0xaac] sm:$0xf0]  ;;  %v7900_v28 = vor.u32 %v11231_v11, %v7897_v12  ;;  %v11135_v12 = vld [vmem:[#allocation5 + $0xd4] sm:$0xf] }
 0x260   :  { %v9015_v24 = vld [vmem:[#allocation5 + $0xc90] sm:$0xf]  ;;  %v8760_v35 = vor.u32 %v11451_v23, %v8759_v14  ;;  %4603 = vmatpush.bf16.msrb.mxu0 %v8504_v32  ;;  %v11223_v32 = vld [vmem:[#allocation5 + $0x394] sm:$0xf] }
 0x261   :  { %v11515_v27 = vld [vmem:[#allocation5 + $0xcac] sm:$0xf0] }
 0x262   :  { %v9271_v30 = vld [vmem:[#allocation5 + $0xe90] sm:$0xf]  ;;  %v9016_v36 = vor.u32 %v11515_v27, %v9015_v24  ;;  %4616 = vmatpush.bf16.msrb.mxu1 %v8760_v35 }
 0x263   :  { %v11579_v31 = vld [vmem:[#allocation5 + $0xeac] sm:$0xf0] }
 0x264   :  { %v8471_v37 = vld [vmem:[#allocation5 + $0x850] sm:$0xf]  ;;  %v9272_v48 = vor.u32 %v11579_v31, %v9271_v30  ;;  %4629 = vmatpush.bf16.msrb.mxu2 %v9016_v36  ;;  %v11159_v30 = vld [vmem:[#allocation5 + $0x194] sm:$0xf] }
 0x265   :  { %v11379_v45 = vld [vmem:[#allocation5 + $0x86c] sm:$0xf0]  ;;  %v7609_v31 = vld [vmem:[#allocation5 + $0x1b0] sm:$0xf0] }
 0x266   :  { %v8727_v46 = vld [vmem:[#allocation5 + $0xa50] sm:$0xf]  ;;  %v8472_v55 = vor.u32 %v11379_v45, %v8471_v37  ;;  %4642 = vmatpush.bf16.msrb.mxu3 %v9272_v48  ;;  %v7612_v37 = vor.u32 %v11159_v30, %v7609_v31  ;;  %v7868_v48 = vor.u32 %v11223_v32, %v7865_v34  ;;  %v11127_v32 = vld [vmem:[#allocation5 + $0x94] sm:$0xf] }
 0x267   :  { %v11443_v49 = vld [vmem:[#allocation5 + $0xa6c] sm:$0xf0]  ;;  %v7481_v34 = vld [vmem:[#allocation5 + $0xb0] sm:$0xf0] }
 0x268   :  { %v8983_v50 = vld [vmem:[#allocation5 + $0xc50] sm:$0xf]  ;;  %v8728_v57 = vor.u32 %v11443_v49, %v8727_v46  ;;  %4604 = vmatpush.bf16.msrb.mxu0 %v8472_v55 }
 0x269   :  { %v11507_v52 = vld [vmem:[#allocation5 + $0xc6c] sm:$0xf0] }
 0x26a   :  { %v9239_v53 = vld [vmem:[#allocation5 + $0xe50] sm:$0xf]  ;;  %v8984_v58 = vor.u32 %v11507_v52, %v8983_v50  ;;  %4617 = vmatpush.bf16.msrb.mxu1 %v8728_v57  ;;  %v11151_v50 = vld [vmem:[#allocation5 + $0x154] sm:$0xf] }
 0x26b   :  { %v11571_v54 = vld [vmem:[#allocation5 + $0xe6c] sm:$0xf0]  ;;  %v7577_v52 = vld [vmem:[#allocation5 + $0x170] sm:$0xf0] }
 0x26c   :  { %v8439_v56 = vld [vmem:[#allocation5 + $0x810] sm:$0xf]  ;;  %v9240_v62 = vor.u32 %v11571_v54, %v9239_v53  ;;  %4630 = vmatpush.bf16.msrb.mxu2 %v8984_v58  ;;  %v11215_v53 = vld [vmem:[#allocation5 + $0x354] sm:$0xf] }
 0x26d   :  { %v11371_v5 = vld [vmem:[#allocation5 + $0x82c] sm:$0xf0]  ;;  %v7833_v54 = vld [vmem:[#allocation5 + $0x370] sm:$0xf0] }
 0x26e   :  { %v8695_v59 = vld [vmem:[#allocation5 + $0xa10] sm:$0xf]  ;;  %v8440_v4 = vor.u32 %v11371_v5, %v8439_v56  ;;  %4643 = vmatpush.bf16.msrb.mxu3 %v9240_v62  ;;  %v7580_v5 = vor.u32 %v11151_v50, %v7577_v52  ;;  %v7545_v62 = vld [vmem:[#allocation5 + $0x130] sm:$0xf0]  ;;  %v7484_v50 = vor.u32 %v11127_v32, %v7481_v34 }
 0x26f   :  { %v11435_v60 = vld [vmem:[#allocation5 + $0xa2c] sm:$0xf0]  ;;  %v11287_v32 = vld [vmem:[#allocation5 + $0x594] sm:$0xf] }
 0x270   :  { %v8951_v43 = vld [vmem:[#allocation5 + $0xc10] sm:$0xf]  ;;  %v8696_v8 = vor.u32 %v11435_v60, %v8695_v59  ;;  %4605 = vmatpush.bf16.msrb.mxu0 %v8440_v4  ;;  %v7836_v60 = vor.u32 %v11215_v53, %v7833_v54  ;;  %v7548_v4 = vor.u32 %v11143_v61, %v7545_v62  ;;  %v8121_v34 = vld [vmem:[#allocation5 + $0x5b0] sm:$0xf0] }
 0x271   :  { %v11499_v10 = vld [vmem:[#allocation5 + $0xc2c] sm:$0xf0] }
 0x272   :  { %v9207_v63 = vld [vmem:[#allocation5 + $0xe10] sm:$0xf]  ;;  %v8952_v9 = vor.u32 %v11499_v10, %v8951_v43  ;;  %4618 = vmatpush.bf16.msrb.mxu1 %v8696_v8  ;;  %v4399_v10 = vpop.f32.mrf.mxu0 }
 0x273   :  { %v11563_v0 = vld [vmem:[#allocation5 + $0xe2c] sm:$0xf0]  ;;  %4606 = vmatmul.bf16.vlgmr.msrb.gmra.mxu0 %v12347_v41  ;;  %v4400_v1 = vadd.f32 %v4399_v10, %v12423_v33  ;;  %v778_v33 = vperm.slane %v12413_v39, 3 }
 0x274   :  { %v9687_v15 = vld [vmem:[#allocation5 + $0x11d0] sm:$0xf]  ;;  %v9208_v13 = vor.u32 %v11563_v0, %v9207_v63  ;;  %4631 = vmatpush.bf16.msrb.mxu2 %v8952_v9  ;;  %v11207_v63 = vld [vmem:[#allocation5 + $0x314] sm:$0xf] }
 0x275   :  { %v11683_v2 = vld [vmem:[#allocation5 + $0x11ec] sm:$0xf0]  ;;  %4619 = vmatmul.bf16.vlgmr.msrb.gmra.mxu1 %v12351_v44  ;;  %v7801_v0 = vld [vmem:[#allocation5 + $0x330] sm:$0xf0] }
 0x276   :  { %v9943_v3 = vld [vmem:[#allocation5 + $0x13d0] sm:$0xf]  ;;  %v9688_v14 = vor.u32 %v11683_v2, %v9687_v15  ;;  %4644 = vmatpush.bf16.msrb.mxu3 %v9208_v13  ;;  %v4412_v2 = vpop.f32.mrf.mxu1  ;;  %v7804_v8 = vor.u32 %v11207_v63, %v7801_v0  ;;  %v7513_v13 = vld [vmem:[#allocation5 + $0xf0] sm:$0xf0] }
 0x277   :  { %v11747_v6 = vld [vmem:[#allocation5 + $0x13ec] sm:$0xf0]  ;;  %4632 = vmatmul.bf16.vlgmr.msrb.gmra.mxu2 %v12345_v38  ;;  %v12430_v9 = vadd.f32 %v4412_v2, %v4400_v1 }
 0x278   :  { %v9944_v17 = vor.u32 %v11747_v6, %v9943_v3  ;;  %v9655_v23 = vld [vmem:[#allocation5 + $0x1190] sm:$0xf]  ;;  %4650 = vmatpush.bf16.msra.mxu0 %v9688_v14  ;;  %4676 = vmatpush.bf16.msra.mxu2 %v7644_v25  ;;  %v11199_v14 = vld [vmem:[#allocation5 + $0x2d4] sm:$0xf] }
 0x279   :  { %v11675_v24 = vld [vmem:[#allocation5 + $0x11ac] sm:$0xf0]  ;;  %4645 = vmatmul.bf16.vlgmr.msrb.gmra.mxu3 %v12349_v42 }
 0x27a   :  { %v9911_v27 = vld [vmem:[#allocation5 + $0x1390] sm:$0xf]  ;;  %v9656_v35 = vor.u32 %v11675_v24, %v9655_v23  ;;  %4663 = vmatpush.bf16.msra.mxu1 %v9944_v17  ;;  %4689 = vmatpush.bf16.msra.mxu3 %v7900_v28  ;;  %v7769_v17 = vld [vmem:[#allocation5 + $0x2f0] sm:$0xf0]  ;;  %v7516_v24 = vor.u32 %v11135_v12, %v7513_v13  ;;  %v4401_v39 = vpop.f32.mrf.mxu0 }
 0x27b   :  { %v11739_v29 = vld [vmem:[#allocation5 + $0x13ac] sm:$0xf0]  ;;  %v7772_v30 = vor.u32 %v11199_v14, %v7769_v17  ;;  %v8409_v14 = vld [vmem:[#allocation5 + $0x7f0] sm:$0xf0] }
 0x27c   :  { %v9912_v36 = vor.u32 %v11739_v29, %v9911_v27  ;;  %v9623_v45 = vld [vmem:[#allocation5 + $0x1150] sm:$0xf]  ;;  %4651 = vmatpush.bf16.msra.mxu0 %v9656_v35  ;;  %4677 = vmatpush.bf16.msra.mxu2 %v7612_v37  ;;  %v4425_v35 = vpop.f32.mrf.mxu2  ;;  %v7737_v37 = vld [vmem:[#allocation5 + $0x2b0] sm:$0xf0] }
 0x27d   :  { %v11667_v46 = vld [vmem:[#allocation5 + $0x116c] sm:$0xf0]  ;;  %v11423_v17 = vld [vmem:[#allocation5 + $0x9d4] sm:$0xf] }
 0x27e   :  { %v9879_v47 = vld [vmem:[#allocation5 + $0x1350] sm:$0xf]  ;;  %v9624_v55 = vor.u32 %v11667_v46, %v9623_v45  ;;  %4664 = vmatpush.bf16.msra.mxu1 %v9912_v36  ;;  %4690 = vmatpush.bf16.msra.mxu3 %v7868_v48  ;;  %v11191_v36 = vld [vmem:[#allocation5 + $0x294] sm:$0xf]  ;;  %v4426_v45 = vadd.f32 %v4425_v35, %v778_v33  ;;  %v4438_v46 = vpop.f32.mrf.mxu3  ;;  %v4414_v48 = vpop.f32.mrf.mxu1 }
 0x27f   :  { %v11731_v49 = vld [vmem:[#allocation5 + $0x136c] sm:$0xf0]  ;;  %v8665_v33 = vld [vmem:[#allocation5 + $0x9f0] sm:$0xf0]  ;;  %v8124_v48 = vor.u32 %v11287_v32, %v8121_v34 }
 0x280   :  { %v9880_v56 = vor.u32 %v11731_v49, %v9879_v47  ;;  %v9591_v57 = vld [vmem:[#allocation5 + $0x1110] sm:$0xf]  ;;  %4652 = vmatpush.bf16.msra.mxu0 %v9624_v55  ;;  %4678 = vmatpush.bf16.msra.mxu2 %v7580_v5  ;;  %v12433_v55 = vadd.f32 %v4438_v46, %v4426_v45  ;;  %v11351_v35 = vld [vmem:[#allocation5 + $0x794] sm:$0xf] }
 0x281   :  { %v11659_v58 = vld [vmem:[#allocation5 + $0x112c] sm:$0xf0]  ;;  %v11415_v45 = vld [vmem:[#allocation5 + $0x994] sm:$0xf] }
 0x282   :  { %v9847_v59 = vld [vmem:[#allocation5 + $0x1310] sm:$0xf]  ;;  %v9592_v15 = vor.u32 %v11659_v58, %v9591_v57  ;;  %4665 = vmatpush.bf16.msra.mxu1 %v9880_v56  ;;  %4691 = vmatpush.bf16.msra.mxu3 %v7836_v60  ;;  %v7740_v56 = vor.u32 %v11191_v36, %v7737_v37  ;;  %v11119_v57 = vld [vmem:[#allocation5 + $0x54] sm:$0xf] }
 0x283   :  { %v11723_v43 = vld [vmem:[#allocation5 + $0x132c] sm:$0xf0]  ;;  %v7449_v58 = vld [vmem:[#allocation5 + $0x70] sm:$0xf0] }
 0x284   :  { %v9848_v3 = vor.u32 %v11723_v43, %v9847_v59  ;;  %v9559_v6 = vld [vmem:[#allocation5 + $0x10d0] sm:$0xf]  ;;  %4653 = vmatpush.bf16.msra.mxu0 %v9592_v15  ;;  %4679 = vmatpush.bf16.msra.mxu2 %v7548_v4  ;;  %v11183_v59 = vld [vmem:[#allocation5 + $0x254] sm:$0xf]  ;;  %v7452_v63 = vor.u32 %v11119_v57, %v7449_v58 }
 0x285   :  { %v11651_v7 = vld [vmem:[#allocation5 + $0x10ec] sm:$0xf0]  ;;  %v7705_v60 = vld [vmem:[#allocation5 + $0x270] sm:$0xf0] }
 0x286   :  { %v9815_v40 = vld [vmem:[#allocation5 + $0x12d0] sm:$0xf]  ;;  %v9560_v25 = vor.u32 %v11651_v7, %v9559_v6  ;;  %4666 = vmatpush.bf16.msra.mxu1 %v9848_v3  ;;  %4692 = vmatpush.bf16.msra.mxu3 %v7804_v8  ;;  %v11111_v15 = vld [vmem:[#allocation5 + $0x14] sm:$0xf]  ;;  %v7708_v2 = vor.u32 %v11183_v59, %v7705_v60  ;;  %v4427_v7 = vpop.f32.mrf.mxu2  ;;  %v4440_v12 = vpop.f32.mrf.mxu3 }
 0x287   :  { %v11715_v11 = vld [vmem:[#allocation5 + $0x12ec] sm:$0xf0]  ;;  %v7417_v3 = vld [vmem:[#allocation5 + $0x30] sm:$0xf0] }
 0x288   :  { %v9816_v23 = vor.u32 %v11715_v11, %v9815_v40  ;;  %v9527_v27 = vld [vmem:[#allocation5 + $0x1090] sm:$0xf]  ;;  %4654 = vmatpush.bf16.msra.mxu0 %v9560_v25  ;;  %4680 = vmatpush.bf16.msra.mxu2 %v7516_v24  ;;  %v11175_v4 = vld [vmem:[#allocation5 + $0x214] sm:$0xf] }
 0x289   :  { %v11643_v28 = vld [vmem:[#allocation5 + $0x10ac] sm:$0xf0]  ;;  %v7673_v6 = vld [vmem:[#allocation5 + $0x230] sm:$0xf0] }
 0x28a   :  { %v9783_v29 = vld [vmem:[#allocation5 + $0x1290] sm:$0xf]  ;;  %v9528_v47 = vor.u32 %v11643_v28, %v9527_v27  ;;  %4667 = vmatpush.bf16.msra.mxu1 %v9816_v23  ;;  %4693 = vmatpush.bf16.msra.mxu3 %v7772_v30  ;;  %v11295_v40 = vld [vmem:[#allocation5 + $0x5d4] sm:$0xf]  ;;  %v7420_v23 = vor.u32 %v11111_v15, %v7417_v3  ;;  %v7676_v28 = vor.u32 %v11175_v4, %v7673_v6 }
 0x28b   :  { %v11707_v31 = vld [vmem:[#allocation5 + $0x12ac] sm:$0xf0]  ;;  %v8153_v8 = vld [vmem:[#allocation5 + $0x5f0] sm:$0xf0] }
 0x28c   :  { %v9784_v49 = vor.u32 %v11707_v31, %v9783_v29  ;;  %v9495_v52 = vld [vmem:[#allocation5 + $0x1050] sm:$0xf]  ;;  %4655 = vmatpush.bf16.msra.mxu0 %v9528_v47  ;;  %4681 = vmatpush.bf16.msra.mxu2 %v7484_v50  ;;  %v11359_v11 = vld [vmem:[#allocation5 + $0x7d4] sm:$0xf]  ;;  %v8156_v29 = vor.u32 %v11295_v40, %v8153_v8  ;;  %v8668_v31 = vor.u32 %v11423_v17, %v8665_v33  ;;  %v4451_v40 = vpop.f32.mrf.mxu0  ;;  %v4464_v33 = vpop.f32.mrf.mxu1 }
 0x28d   :  { %v11635_v53 = vld [vmem:[#allocation5 + $0x106c] sm:$0xf0]  ;;  %v11487_v24 = vld [vmem:[#allocation5 + $0xbd4] sm:$0xf]  ;;  %v8412_v30 = vor.u32 %v11359_v11, %v8409_v14  ;;  %v4452_v17 = vadd.f32 %v4451_v40, %v12433_v55 }
 0x28e   :  { %v9751_v54 = vld [vmem:[#allocation5 + $0x1250] sm:$0xf]  ;;  %v9496_v43 = vor.u32 %v11635_v53, %v9495_v52  ;;  %4668 = vmatpush.bf16.msra.mxu1 %v9784_v49  ;;  %4694 = vmatpush.bf16.msra.mxu3 %v7740_v56  ;;  %v8921_v27 = vld [vmem:[#allocation5 + $0xbf0] sm:$0xf0] }
 0x28f   :  { %v11699_v5 = vld [vmem:[#allocation5 + $0x126c] sm:$0xf0]  ;;  %v8924_v36 = vor.u32 %v11487_v24, %v8921_v27  ;;  %v8377_v37 = vld [vmem:[#allocation5 + $0x7b0] sm:$0xf0] }
 0x290   :  { %v9463_v61 = vld [vmem:[#allocation5 + $0x1010] sm:$0xf]  ;;  %v9752_v10 = vor.u32 %v11699_v5, %v9751_v54  ;;  %4656 = vmatpush.bf16.msra.mxu0 %v9496_v43  ;;  %4682 = vmatpush.bf16.msra.mxu2 %v7452_v63  ;;  %v8633_v46 = vld [vmem:[#allocation5 + $0x9b0] sm:$0xf0]  ;;  %v8380_v49 = vor.u32 %v11351_v35, %v8377_v37 }
 0x291   :  { %v11627_v62 = vld [vmem:[#allocation5 + $0x102c] sm:$0xf0]  ;;  %v11479_v39 = vld [vmem:[#allocation5 + $0xb94] sm:$0xf]  ;;  %v8636_v50 = vor.u32 %v11415_v45, %v8633_v46  ;;  %v4477_v45 = vpop.f32.mrf.mxu2 }
 0x292   :  { %v9719_v0 = vld [vmem:[#allocation5 + $0x1210] sm:$0xf]  ;;  %v9464_v13 = vor.u32 %v11627_v62, %v9463_v61  ;;  %4669 = vmatpush.bf16.msra.mxu1 %v9752_v10  ;;  %4695 = vmatpush.bf16.msra.mxu3 %v7708_v2  ;;  %v8889_v47 = vld [vmem:[#allocation5 + $0xbb0] sm:$0xf0] }
 0x293   :  { %v11691_v1 = vld [vmem:[#allocation5 + $0x122c] sm:$0xf0]  ;;  %v11279_v52 = vld [vmem:[#allocation5 + $0x554] sm:$0xf]  ;;  %v8892_v56 = vor.u32 %v11479_v39, %v8889_v47 }
 0x294   :  { %v9720_v25 = vor.u32 %v11691_v1, %v9719_v0  ;;  %4657 = vmatpush.bf16.msra.mxu0 %v9464_v13  ;;  %4683 = vmatpush.bf16.msra.mxu2 %v7420_v23  ;;  %v8089_v53 = vld [vmem:[#allocation5 + $0x570] sm:$0xf0] }
 0x295   :  { %v11343_v54 = vld [vmem:[#allocation5 + $0x754] sm:$0xf]  ;;  %v8092_v43 = vor.u32 %v11279_v52, %v8089_v53 }
 0x296   :  { %4670 = vmatpush.bf16.msra.mxu1 %v9720_v25  ;;  %4696 = vmatpush.bf16.msra.mxu3 %v7676_v28  ;;  %v8345_v5 = vld [vmem:[#allocation5 + $0x770] sm:$0xf0] }
 0x297   :  { %4658 = vmatmul.bf16.vlgmr.msra.gmra.mxu0 %v12357_v21  ;;  %v11407_v57 = vld [vmem:[#allocation5 + $0x954] sm:$0xf]  ;;  %4684 = vmatmul.bf16.vlgmr.msra.gmra.mxu2 %v12335_v19  ;;  %v8348_v61 = vor.u32 %v11343_v54, %v8345_v5 }
 0x298   :  { %4702 = vmatpush.bf16.msrb.mxu0 %v8156_v29  ;;  %4728 = vmatpush.bf16.msrb.mxu2 %v8668_v31  ;;  %v8601_v58 = vld [vmem:[#allocation5 + $0x970] sm:$0xf0] }
 0x299   :  { %4671 = vmatmul.bf16.vlgmr.msra.gmra.mxu1 %v12359_v26  ;;  %v11471_v59 = vld [vmem:[#allocation5 + $0xb54] sm:$0xf]  ;;  %4697 = vmatmul.bf16.vlgmr.msra.gmra.mxu3 %v12339_v22  ;;  %v8604_v62 = vor.u32 %v11407_v57, %v8601_v58 }
 0x29a   :  { %4715 = vmatpush.bf16.msrb.mxu1 %v8412_v30  ;;  %4741 = vmatpush.bf16.msrb.mxu3 %v8924_v36  ;;  %v8857_v60 = vld [vmem:[#allocation5 + $0xb70] sm:$0xf0]  ;;  %v4465_v30 = vadd.f32 %v4464_v33, %v4452_v17 }
 0x29b   :  { %v11271_v10 = vld [vmem:[#allocation5 + $0x514] sm:$0xf]  ;;  %v8860_v1 = vor.u32 %v11471_v59, %v8857_v60 }
 0x29c   :  { %4703 = vmatpush.bf16.msrb.mxu0 %v8124_v48  ;;  %4729 = vmatpush.bf16.msrb.mxu2 %v8636_v50  ;;  %v8057_v63 = vld [vmem:[#allocation5 + $0x530] sm:$0xf0]  ;;  %v4478_v48 = vadd.f32 %v4477_v45, %v4465_v30 }
 0x29d   :  { %v11335_v0 = vld [vmem:[#allocation5 + $0x714] sm:$0xf]  ;;  %v8060_v7 = vor.u32 %v11271_v10, %v8057_v63 }
 0x29e   :  { %4716 = vmatpush.bf16.msrb.mxu1 %v8380_v49  ;;  %4742 = vmatpush.bf16.msrb.mxu3 %v8892_v56  ;;  %v8313_v15 = vld [vmem:[#allocation5 + $0x730] sm:$0xf0]  ;;  %v4490_v49 = vpop.f32.mrf.mxu3  ;;  %v4453_v56 = vpop.f32.mrf.mxu0 }
 0x29f   :  { %v11399_v2 = vld [vmem:[#allocation5 + $0x914] sm:$0xf]  ;;  %v8316_v8 = vor.u32 %v11335_v0, %v8313_v15  ;;  %v12440_v54 = vadd.f32 %v4490_v49, %v4478_v48 }
 0x2a0   :  { %v8569_v3 = vld [vmem:[#allocation5 + $0x930] sm:$0xf0]  ;;  %4704 = vmatpush.bf16.msrb.mxu0 %v8092_v43  ;;  %4730 = vmatpush.bf16.msrb.mxu2 %v8604_v62  ;;  %v4466_v43 = vpop.f32.mrf.mxu1 }
 0x2a1   :  { %v11463_v4 = vld [vmem:[#allocation5 + $0xb14] sm:$0xf]  ;;  %v8572_v11 = vor.u32 %v11399_v2, %v8569_v3 }
 0x2a2   :  { %v8825_v6 = vld [vmem:[#allocation5 + $0xb30] sm:$0xf0]  ;;  %4717 = vmatpush.bf16.msrb.mxu1 %v8348_v61  ;;  %4743 = vmatpush.bf16.msrb.mxu3 %v8860_v1 }
 0x2a3   :  { %v11263_v12 = vld [vmem:[#allocation5 + $0x4d4] sm:$0xf]  ;;  %v8828_v25 = vor.u32 %v11463_v4, %v8825_v6 }
 0x2a4   :  { %v8025_v13 = vld [vmem:[#allocation5 + $0x4f0] sm:$0xf0]  ;;  %4705 = vmatpush.bf16.msrb.mxu0 %v8060_v7  ;;  %4731 = vmatpush.bf16.msrb.mxu2 %v8572_v11  ;;  %v4479_v11 = vpop.f32.mrf.mxu2 }
 0x2a5   :  { %v11327_v14 = vld [vmem:[#allocation5 + $0x6d4] sm:$0xf]  ;;  %v8028_v31 = vor.u32 %v11263_v12, %v8025_v13 }
 0x2a6   :  { %v8281_v23 = vld [vmem:[#allocation5 + $0x6f0] sm:$0xf0]  ;;  %4718 = vmatpush.bf16.msrb.mxu1 %v8316_v8  ;;  %4744 = vmatpush.bf16.msrb.mxu3 %v8828_v25  ;;  %v4492_v33 = vpop.f32.mrf.mxu3 }
 0x2a7   :  { %v11391_v24 = vld [vmem:[#allocation5 + $0x8d4] sm:$0xf]  ;;  %v8284_v32 = vor.u32 %v11327_v14, %v8281_v23 }
 0x2a8   :  { %v8537_v27 = vld [vmem:[#allocation5 + $0x8f0] sm:$0xf0]  ;;  %4706 = vmatpush.bf16.msrb.mxu0 %v8028_v31 }
 0x2a9   :  { %v11455_v28 = vld [vmem:[#allocation5 + $0xad4] sm:$0xf]  ;;  %v8540_v34 = vor.u32 %v11391_v24, %v8537_v27 }
 0x2aa   :  { %v8793_v29 = vld [vmem:[#allocation5 + $0xaf0] sm:$0xf0]  ;;  %4719 = vmatpush.bf16.msrb.mxu1 %v8284_v32 }
 0x2ab   :  { %v11255_v35 = vld [vmem:[#allocation5 + $0x494] sm:$0xf]  ;;  %v8796_v55 = vor.u32 %v11455_v28, %v8793_v29  ;;  %4732 = vmatpush.bf16.msrb.mxu2 %v8540_v34 }
 0x2ac   :  { %v7993_v36 = vld [vmem:[#allocation5 + $0x4b0] sm:$0xf0] }
 0x2ad   :  { %v11319_v37 = vld [vmem:[#allocation5 + $0x694] sm:$0xf]  ;;  %v7996_v53 = vor.u32 %v11255_v35, %v7993_v36  ;;  %4745 = vmatpush.bf16.msrb.mxu3 %v8796_v55 }
 0x2ae   :  { %v8249_v46 = vld [vmem:[#allocation5 + $0x6b0] sm:$0xf0] }
 0x2af   :  { %v11383_v39 = vld [vmem:[#allocation5 + $0x894] sm:$0xf]  ;;  %v8252_v5 = vor.u32 %v11319_v37, %v8249_v46  ;;  %4707 = vmatpush.bf16.msrb.mxu0 %v7996_v53 }
 0x2b0   :  { %v8505_v47 = vld [vmem:[#allocation5 + $0x8b0] sm:$0xf0] }
 0x2b1   :  { %v11447_v50 = vld [vmem:[#allocation5 + $0xa94] sm:$0xf]  ;;  %v8508_v57 = vor.u32 %v11383_v39, %v8505_v47  ;;  %4720 = vmatpush.bf16.msrb.mxu1 %v8252_v5 }
 0x2b2   :  { %v8761_v52 = vld [vmem:[#allocation5 + $0xab0] sm:$0xf0] }
 0x2b3   :  { %v11247_v58 = vld [vmem:[#allocation5 + $0x454] sm:$0xf]  ;;  %v8764_v61 = vor.u32 %v11447_v50, %v8761_v52  ;;  %4733 = vmatpush.bf16.msrb.mxu2 %v8508_v57 }
 0x2b4   :  { %v7961_v59 = vld [vmem:[#allocation5 + $0x470] sm:$0xf0] }
 0x2b5   :  { %v11311_v60 = vld [vmem:[#allocation5 + $0x654] sm:$0xf]  ;;  %v7964_v15 = vor.u32 %v11247_v58, %v7961_v59  ;;  %4746 = vmatpush.bf16.msrb.mxu3 %v8764_v61 }
 0x2b6   :  { %v8217_v62 = vld [vmem:[#allocation5 + $0x670] sm:$0xf0] }
 0x2b7   :  { %v11375_v10 = vld [vmem:[#allocation5 + $0x854] sm:$0xf]  ;;  %v8220_v4 = vor.u32 %v11311_v60, %v8217_v62  ;;  %4708 = vmatpush.bf16.msrb.mxu0 %v7964_v15 }
 0x2b8   :  { %v8473_v63 = vld [vmem:[#allocation5 + $0x870] sm:$0xf0] }
 0x2b9   :  { %v11439_v0 = vld [vmem:[#allocation5 + $0xa54] sm:$0xf]  ;;  %v8476_v6 = vor.u32 %v11375_v10, %v8473_v63  ;;  %4721 = vmatpush.bf16.msrb.mxu1 %v8220_v4 }
 0x2ba   :  { %v8729_v1 = vld [vmem:[#allocation5 + $0xa70] sm:$0xf0] }
 0x2bb   :  { %v11239_v2 = vld [vmem:[#allocation5 + $0x414] sm:$0xf]  ;;  %v8732_v12 = vor.u32 %v11439_v0, %v8729_v1  ;;  %4734 = vmatpush.bf16.msrb.mxu2 %v8476_v6 }
 0x2bc   :  { %v7929_v3 = vld [vmem:[#allocation5 + $0x430] sm:$0xf0] }
 0x2bd   :  { %v11303_v7 = vld [vmem:[#allocation5 + $0x614] sm:$0xf]  ;;  %v7932_v27 = vor.u32 %v11239_v2, %v7929_v3  ;;  %4747 = vmatpush.bf16.msrb.mxu3 %v8732_v12 }
 0x2be   :  { %v8185_v40 = vld [vmem:[#allocation5 + $0x630] sm:$0xf0] }
 0x2bf   :  { %v11367_v8 = vld [vmem:[#allocation5 + $0x814] sm:$0xf]  ;;  %v8188_v31 = vor.u32 %v11303_v7, %v8185_v40  ;;  %4709 = vmatpush.bf16.msrb.mxu0 %v7932_v27 }
 0x2c0   :  { %v8441_v13 = vld [vmem:[#allocation5 + $0x830] sm:$0xf0] }
 0x2c1   :  { %v11431_v14 = vld [vmem:[#allocation5 + $0xa14] sm:$0xf]  ;;  %v8444_v32 = vor.u32 %v11367_v8, %v8441_v13  ;;  %4722 = vmatpush.bf16.msrb.mxu1 %v8188_v31  ;;  %v4503_v13 = vpop.f32.mrf.mxu0 }
 0x2c2   :  { %v8697_v17 = vld [vmem:[#allocation5 + $0xa30] sm:$0xf0]  ;;  %4710 = vmatmul.bf16.vlgmr.msrb.gmra.mxu0 %v12333_v18  ;;  %v4504_v33 = vadd.f32 %v4503_v13, %v12440_v54 }
 0x2c3   :  { %v11551_v25 = vld [vmem:[#allocation5 + $0xdd4] sm:$0xf]  ;;  %v8700_v36 = vor.u32 %v11431_v14, %v8697_v17  ;;  %4735 = vmatpush.bf16.msrb.mxu2 %v8444_v32 }
 0x2c4   :  { %v9177_v23 = vld [vmem:[#allocation5 + $0xdf0] sm:$0xf0]  ;;  %4723 = vmatmul.bf16.vlgmr.msrb.gmra.mxu1 %v12337_v20 }
 0x2c5   :  { %v11615_v24 = vld [vmem:[#allocation5 + $0xfd4] sm:$0xf]  ;;  %v9180_v37 = vor.u32 %v11551_v25, %v9177_v23  ;;  %4748 = vmatpush.bf16.msrb.mxu3 %v8700_v36  ;;  %v4516_v23 = vpop.f32.mrf.mxu1 }
 0x2c6   :  { %v9433_v28 = vld [vmem:[#allocation5 + $0xff0] sm:$0xf0]  ;;  %4736 = vmatmul.bf16.vlgmr.msrb.gmra.mxu2 %v12347_v41  ;;  %v4517_v32 = vadd.f32 %v4516_v23, %v4504_v33 }
 0x2c7   :  { %v11679_v29 = vld [vmem:[#allocation5 + $0x11d4] sm:$0xf]  ;;  %v9436_v45 = vor.u32 %v11615_v24, %v9433_v28  ;;  %4754 = vmatpush.bf16.msra.mxu0 %v9180_v37 }
 0x2c8   :  { %v9689_v30 = vld [vmem:[#allocation5 + $0x11f0] sm:$0xf0]  ;;  %4749 = vmatmul.bf16.vlgmr.msrb.gmra.mxu3 %v12351_v44 }
 0x2c9   :  { %v11743_v34 = vld [vmem:[#allocation5 + $0x13d4] sm:$0xf]  ;;  %v9692_v55 = vor.u32 %v11679_v29, %v9689_v30  ;;  %4767 = vmatpush.bf16.msra.mxu1 %v9436_v45 }
 0x2ca   :  { %v9945_v35 = vld [vmem:[#allocation5 + $0x13f0] sm:$0xf0] }
 0x2cb   :  { %v11543_v46 = vld [vmem:[#allocation5 + $0xd94] sm:$0xf]  ;;  %v9948_v48 = vor.u32 %v11743_v34, %v9945_v35  ;;  %4780 = vmatpush.bf16.msra.mxu2 %v9692_v55 }
 0x2cc   :  { %v9145_v39 = vld [vmem:[#allocation5 + $0xdb0] sm:$0xf0] }
 0x2cd   :  { %v11607_v47 = vld [vmem:[#allocation5 + $0xf94] sm:$0xf]  ;;  %v9148_v5 = vor.u32 %v11543_v46, %v9145_v39  ;;  %4793 = vmatpush.bf16.msra.mxu3 %v9948_v48 }
 0x2ce   :  { %v9401_v49 = vld [vmem:[#allocation5 + $0xfb0] sm:$0xf0] }
 0x2cf   :  { %v11671_v50 = vld [vmem:[#allocation5 + $0x1194] sm:$0xf]  ;;  %v9404_v57 = vor.u32 %v11607_v47, %v9401_v49  ;;  %4755 = vmatpush.bf16.msra.mxu0 %v9148_v5 }
 0x2d0   :  { %v9657_v52 = vld [vmem:[#allocation5 + $0x11b0] sm:$0xf0] }
 0x2d1   :  { %v11735_v53 = vld [vmem:[#allocation5 + $0x1394] sm:$0xf]  ;;  %v9660_v58 = vor.u32 %v11671_v50, %v9657_v52  ;;  %4768 = vmatpush.bf16.msra.mxu1 %v9404_v57  ;;  %v4529_v50 = vpop.f32.mrf.mxu2  ;;  %v4542_v57 = vpop.f32.mrf.mxu3 }
 0x2d2   :  { %v9913_v56 = vld [vmem:[#allocation5 + $0x13b0] sm:$0xf0]  ;;  %v4530_v5 = vadd.f32 %v4529_v50, %v4517_v32  ;;  %v7903_v32 = vld [vmem:[#allocation5 + $0x3d8] sm:$0xf] }
 0x2d3   :  { %v11535_v59 = vld [vmem:[#allocation5 + $0xd54] sm:$0xf]  ;;  %v9916_v61 = vor.u32 %v11735_v53, %v9913_v56  ;;  %4781 = vmatpush.bf16.msra.mxu2 %v9660_v58 }
 0x2d4   :  { %v9113_v60 = vld [vmem:[#allocation5 + $0xd70] sm:$0xf0] }
 0x2d5   :  { %v11599_v43 = vld [vmem:[#allocation5 + $0xf54] sm:$0xf]  ;;  %v9116_v15 = vor.u32 %v11535_v59, %v9113_v60  ;;  %4794 = vmatpush.bf16.msra.mxu3 %v9916_v61  ;;  %v4505_v60 = vpop.f32.mrf.mxu0  ;;  %v4518_v61 = vpop.f32.mrf.mxu1 }
 0x2d6   :  { %v9369_v62 = vld [vmem:[#allocation5 + $0xf70] sm:$0xf0]  ;;  %v8383_v60 = vld [vmem:[#allocation5 + $0x798] sm:$0xf] }
 0x2d7   :  { %v11663_v10 = vld [vmem:[#allocation5 + $0x1154] sm:$0xf]  ;;  %v9372_v2 = vor.u32 %v11599_v43, %v9369_v62  ;;  %4756 = vmatpush.bf16.msra.mxu0 %v9116_v15  ;;  %v12447_v62 = vadd.f32 %v4542_v57, %v4530_v5  ;;  %v11228_v57 = vld [vmem:[#allocation5 + $0x3b4] sm:$0xf0] }
 0x2d8   :  { %v9625_v63 = vld [vmem:[#allocation5 + $0x1170] sm:$0xf0] }
 0x2d9   :  { %v11727_v0 = vld [vmem:[#allocation5 + $0x1354] sm:$0xf]  ;;  %v9628_v3 = vor.u32 %v11663_v10, %v9625_v63  ;;  %4769 = vmatpush.bf16.msra.mxu1 %v9372_v2 }
 0x2da   :  { %v9881_v1 = vld [vmem:[#allocation5 + $0x1370] sm:$0xf0] }
 0x2db   :  { %v11527_v4 = vld [vmem:[#allocation5 + $0xd14] sm:$0xf]  ;;  %v9884_v40 = vor.u32 %v11727_v0, %v9881_v1  ;;  %4782 = vmatpush.bf16.msra.mxu2 %v9628_v3 }
 0x2dc   :  { %v9081_v6 = vld [vmem:[#allocation5 + $0xd30] sm:$0xf0] }
 0x2dd   :  { %v11591_v7 = vld [vmem:[#allocation5 + $0xf14] sm:$0xf]  ;;  %v9084_v25 = vor.u32 %v11527_v4, %v9081_v6  ;;  %4795 = vmatpush.bf16.msra.mxu3 %v9884_v40 }
 0x2de   :  { %v9337_v8 = vld [vmem:[#allocation5 + $0xf30] sm:$0xf0] }
 0x2df   :  { %v11655_v11 = vld [vmem:[#allocation5 + $0x1114] sm:$0xf]  ;;  %v9340_v24 = vor.u32 %v11591_v7, %v9337_v8  ;;  %4757 = vmatpush.bf16.msra.mxu0 %v9084_v25 }
 0x2e0   :  { %v9593_v12 = vld [vmem:[#allocation5 + $0x1130] sm:$0xf0] }
 0x2e1   :  { %v11719_v14 = vld [vmem:[#allocation5 + $0x1314] sm:$0xf]  ;;  %v9596_v27 = vor.u32 %v11655_v11, %v9593_v12  ;;  %4770 = vmatpush.bf16.msra.mxu1 %v9340_v24 }
 0x2e2   :  { %v9849_v17 = vld [vmem:[#allocation5 + $0x1330] sm:$0xf0] }
 0x2e3   :  { %v11519_v28 = vld [vmem:[#allocation5 + $0xcd4] sm:$0xf]  ;;  %v9852_v31 = vor.u32 %v11719_v14, %v9849_v17  ;;  %4783 = vmatpush.bf16.msra.mxu2 %v9596_v27 }
 0x2e4   :  { %v9049_v29 = vld [vmem:[#allocation5 + $0xcf0] sm:$0xf0] }
 0x2e5   :  { %v11583_v30 = vld [vmem:[#allocation5 + $0xed4] sm:$0xf]  ;;  %v9052_v55 = vor.u32 %v11519_v28, %v9049_v29  ;;  %4796 = vmatpush.bf16.msra.mxu3 %v9852_v31  ;;  %v4531_v29 = vpop.f32.mrf.mxu2  ;;  %v11172_v31 = vld [vmem:[#allocation5 + $0x1f4] sm:$0xf0] }
 0x2e6   :  { %v9305_v34 = vld [vmem:[#allocation5 + $0xef0] sm:$0xf0]  ;;  %v8319_v29 = vld [vmem:[#allocation5 + $0x718] sm:$0xf] }
 0x2e7   :  { %v11647_v35 = vld [vmem:[#allocation5 + $0x10d4] sm:$0xf]  ;;  %v9308_v54 = vor.u32 %v11583_v30, %v9305_v34  ;;  %4758 = vmatpush.bf16.msra.mxu0 %v9052_v55  ;;  %v7647_v30 = vld [vmem:[#allocation5 + $0x1d8] sm:$0xf]  ;;  %v4544_v34 = vpop.f32.mrf.mxu3 }
 0x2e8   :  { %v9561_v36 = vld [vmem:[#allocation5 + $0x10f0] sm:$0xf0] }
 0x2e9   :  { %v11711_v37 = vld [vmem:[#allocation5 + $0x12d4] sm:$0xf]  ;;  %v9564_v46 = vor.u32 %v11647_v35, %v9561_v36  ;;  %4771 = vmatpush.bf16.msra.mxu1 %v9308_v54  ;;  %v11236_v36 = vld [vmem:[#allocation5 + $0x3f4] sm:$0xf0] }
 0x2ea   :  { %v9817_v45 = vld [vmem:[#allocation5 + $0x12f0] sm:$0xf0] }
 0x2eb   :  { %v11511_v39 = vld [vmem:[#allocation5 + $0xc94] sm:$0xf]  ;;  %v9820_v49 = vor.u32 %v11711_v37, %v9817_v45  ;;  %4784 = vmatpush.bf16.msra.mxu2 %v9564_v46  ;;  %v8159_v37 = vld [vmem:[#allocation5 + $0x5d8] sm:$0xf] }
 0x2ec   :  { %v9017_v47 = vld [vmem:[#allocation5 + $0xcb0] sm:$0xf0]  ;;  %v11300_v45 = vld [vmem:[#allocation5 + $0x5f4] sm:$0xf0] }
 0x2ed   :  { %v11575_v48 = vld [vmem:[#allocation5 + $0xe94] sm:$0xf]  ;;  %v9020_v43 = vor.u32 %v11511_v39, %v9017_v47  ;;  %4797 = vmatpush.bf16.msra.mxu3 %v9820_v49  ;;  %v8415_v46 = vld [vmem:[#allocation5 + $0x7d8] sm:$0xf]  ;;  %v7904_v49 = vor.u32 %v11236_v36, %v7903_v32  ;;  %v8160_v50 = vor.u32 %v11300_v45, %v8159_v37  ;;  %v4555_v32 = vpop.f32.mrf.mxu0 }
 0x2ee   :  { %v9273_v52 = vld [vmem:[#allocation5 + $0xeb0] sm:$0xf0]  ;;  %v11364_v39 = vld [vmem:[#allocation5 + $0x7f4] sm:$0xf0] }
 0x2ef   :  { %v11639_v53 = vld [vmem:[#allocation5 + $0x1094] sm:$0xf]  ;;  %v9276_v10 = vor.u32 %v11575_v48, %v9273_v52  ;;  %4759 = vmatpush.bf16.msra.mxu0 %v9020_v43  ;;  %v7648_v48 = vor.u32 %v11172_v31, %v7647_v30  ;;  %v7615_v52 = vld [vmem:[#allocation5 + $0x198] sm:$0xf]  ;;  %v8416_v5 = vor.u32 %v11364_v39, %v8415_v46 }
 0x2f0   :  { %v9529_v56 = vld [vmem:[#allocation5 + $0x10b0] sm:$0xf0]  ;;  %v11356_v43 = vld [vmem:[#allocation5 + $0x7b4] sm:$0xf0] }
 0x2f1   :  { %v11703_v58 = vld [vmem:[#allocation5 + $0x1294] sm:$0xf]  ;;  %v9532_v63 = vor.u32 %v11639_v53, %v9529_v56  ;;  %4772 = vmatpush.bf16.msra.mxu1 %v9276_v10  ;;  %v11164_v53 = vld [vmem:[#allocation5 + $0x1b4] sm:$0xf0] }
 0x2f2   :  { %v9785_v59 = vld [vmem:[#allocation5 + $0x12b0] sm:$0xf0]  ;;  %v7871_v56 = vld [vmem:[#allocation5 + $0x398] sm:$0xf]  ;;  %v7616_v61 = vor.u32 %v11164_v53, %v7615_v52 }
 0x2f3   :  { %v11503_v0 = vld [vmem:[#allocation5 + $0xc54] sm:$0xf]  ;;  %v9788_v2 = vor.u32 %v11703_v58, %v9785_v59  ;;  %4785 = vmatpush.bf16.msra.mxu2 %v9532_v63  ;;  %v8127_v58 = vld [vmem:[#allocation5 + $0x598] sm:$0xf]  ;;  %v7872_v10 = vor.u32 %v11228_v57, %v7871_v56 }
 0x2f4   :  { %v8985_v1 = vld [vmem:[#allocation5 + $0xc70] sm:$0xf0]  ;;  %v11292_v59 = vld [vmem:[#allocation5 + $0x5b4] sm:$0xf0] }
 0x2f5   :  { %v11567_v15 = vld [vmem:[#allocation5 + $0xe54] sm:$0xf]  ;;  %v8988_v8 = vor.u32 %v11503_v0, %v8985_v1  ;;  %4798 = vmatpush.bf16.msra.mxu3 %v9788_v2  ;;  %v8128_v63 = vor.u32 %v11292_v59, %v8127_v58  ;;  %v7583_v0 = vld [vmem:[#allocation5 + $0x158] sm:$0xf]  ;;  %v8384_v2 = vor.u32 %v11356_v43, %v8383_v60  ;;  %v4581_v60 = vpop.f32.mrf.mxu2 }
 0x2f6   :  { %v9241_v3 = vld [vmem:[#allocation5 + $0xe70] sm:$0xf0]  ;;  %v11156_v1 = vld [vmem:[#allocation5 + $0x174] sm:$0xf0] }
 0x2f7   :  { %v11631_v4 = vld [vmem:[#allocation5 + $0x1054] sm:$0xf]  ;;  %v9244_v13 = vor.u32 %v11567_v15, %v9241_v3  ;;  %4760 = vmatpush.bf16.msra.mxu0 %v8988_v8  ;;  %v7839_v15 = vld [vmem:[#allocation5 + $0x358] sm:$0xf]  ;;  %v7584_v8 = vor.u32 %v11156_v1, %v7583_v0  ;;  %v4594_v1 = vpop.f32.mrf.mxu3 }
 0x2f8   :  { %v9497_v6 = vld [vmem:[#allocation5 + $0x1070] sm:$0xf0]  ;;  %v11220_v3 = vld [vmem:[#allocation5 + $0x374] sm:$0xf0] }
 0x2f9   :  { %v11695_v7 = vld [vmem:[#allocation5 + $0x1254] sm:$0xf]  ;;  %v9500_v14 = vor.u32 %v11631_v4, %v9497_v6  ;;  %4773 = vmatpush.bf16.msra.mxu1 %v9244_v13  ;;  %v8095_v4 = vld [vmem:[#allocation5 + $0x558] sm:$0xf] }
 0x2fa   :  { %v9753_v40 = vld [vmem:[#allocation5 + $0x1270] sm:$0xf0]  ;;  %v11284_v6 = vld [vmem:[#allocation5 + $0x574] sm:$0xf0] }
 0x2fb   :  { %v11495_v11 = vld [vmem:[#allocation5 + $0xc14] sm:$0xf]  ;;  %v9756_v23 = vor.u32 %v11695_v7, %v9753_v40  ;;  %4786 = vmatpush.bf16.msra.mxu2 %v9500_v14  ;;  %v8351_v7 = vld [vmem:[#allocation5 + $0x758] sm:$0xf]  ;;  %v8096_v13 = vor.u32 %v11284_v6, %v8095_v4  ;;  %v4557_v6 = vpop.f32.mrf.mxu0 }
 0x2fc   :  { %v8953_v12 = vld [vmem:[#allocation5 + $0xc30] sm:$0xf0]  ;;  %v11348_v40 = vld [vmem:[#allocation5 + $0x774] sm:$0xf0] }
 0x2fd   :  { %v11559_v17 = vld [vmem:[#allocation5 + $0xe14] sm:$0xf]  ;;  %v8956_v35 = vor.u32 %v11495_v11, %v8953_v12  ;;  %4799 = vmatpush.bf16.msra.mxu3 %v9756_v23  ;;  %v7551_v11 = vld [vmem:[#allocation5 + $0x118] sm:$0xf]  ;;  %v7840_v12 = vor.u32 %v11220_v3, %v7839_v15  ;;  %v8352_v23 = vor.u32 %v11348_v40, %v8351_v7 }
 0x2fe   :  { %v9209_v33 = vld [vmem:[#allocation5 + $0xe30] sm:$0xf0]  ;;  %v11148_v14 = vld [vmem:[#allocation5 + $0x134] sm:$0xf0] }
 0x2ff   :  { %v11623_v25 = vld [vmem:[#allocation5 + $0x1014] sm:$0xf]  ;;  %v9212_v55 = vor.u32 %v11559_v17, %v9209_v33  ;;  %4761 = vmatpush.bf16.msra.mxu0 %v8956_v35  ;;  %v7807_v17 = vld [vmem:[#allocation5 + $0x318] sm:$0xf]  ;;  %v12453_v33 = vld [vmem:[#allocation7] sm:$0xff]  ;;  %v7552_v31 = vor.u32 %v11148_v14, %v7551_v11 }
 0x300   :  { %v9465_v24 = vld [vmem:[#allocation5 + $0x1030] sm:$0xf0]  ;;  %v11340_v30 = vld [vmem:[#allocation5 + $0x734] sm:$0xf0] }
 0x301   :  { %v11687_v27 = vld [vmem:[#allocation5 + $0x1214] sm:$0xf]  ;;  %v9468_v54 = vor.u32 %v11623_v25, %v9465_v24  ;;  %4774 = vmatpush.bf16.msra.mxu1 %v9212_v55  ;;  %v779_v25 = vperm.slane %v12453_v33, 4  ;;  %v11212_v24 = vld [vmem:[#allocation5 + $0x334] sm:$0xf0]  ;;  %v8320_v46 = vor.u32 %v11340_v30, %v8319_v29 }
 0x302   :  { %v9721_v28 = vld [vmem:[#allocation5 + $0x1230] sm:$0xf0]  ;;  %4762 = vmatmul.bf16.vlgmr.msra.gmra.mxu0 %v12345_v38  ;;  %v7808_v34 = vor.u32 %v11212_v24, %v7807_v17  ;;  %v7519_v36 = vld [vmem:[#allocation5 + $0xd8] sm:$0xf] }
 0x303   :  { %v9724_v47 = vor.u32 %v11687_v27, %v9721_v28  ;;  %4787 = vmatpush.bf16.msra.mxu2 %v9468_v54  ;;  %4806 = vmatpush.bf16.msrb.mxu0 %v7648_v48  ;;  %v8063_v27 = vld [vmem:[#allocation5 + $0x518] sm:$0xf]  ;;  %v4556_v55 = vadd.f32 %v4555_v32, %v779_v25  ;;  %v4568_v54 = vpop.f32.mrf.mxu1 }
 0x304   :  { %4775 = vmatmul.bf16.vlgmr.msra.gmra.mxu1 %v12349_v42  ;;  %v11276_v28 = vld [vmem:[#allocation5 + $0x534] sm:$0xf0] }
 0x305   :  { %4800 = vmatpush.bf16.msra.mxu3 %v9724_v47  ;;  %4819 = vmatpush.bf16.msrb.mxu1 %v7904_v49  ;;  %v8064_v35 = vor.u32 %v11276_v28, %v8063_v27  ;;  %v11140_v37 = vld [vmem:[#allocation5 + $0xf4] sm:$0xf0]  ;;  %v4569_v52 = vadd.f32 %v4568_v54, %v4556_v55 }
 0x306   :  { %4788 = vmatmul.bf16.vlgmr.msra.gmra.mxu2 %v12357_v21  ;;  %v7775_v45 = vld [vmem:[#allocation5 + $0x2d8] sm:$0xf]  ;;  %v7520_v53 = vor.u32 %v11140_v37, %v7519_v36  ;;  %v4583_v37 = vpop.f32.mrf.mxu2 }
 0x307   :  { %4832 = vmatpush.bf16.msrb.mxu2 %v8160_v50  ;;  %4807 = vmatpush.bf16.msrb.mxu0 %v7616_v61  ;;  %v11204_v39 = vld [vmem:[#allocation5 + $0x2f4] sm:$0xf0]  ;;  %v4582_v0 = vadd.f32 %v4581_v60, %v4569_v52 }
 0x308   :  { %4801 = vmatmul.bf16.vlgmr.msra.gmra.mxu3 %v12359_v26  ;;  %v8031_v47 = vld [vmem:[#allocation5 + $0x4d8] sm:$0xf]  ;;  %v7776_v56 = vor.u32 %v11204_v39, %v7775_v45  ;;  %v4596_v39 = vpop.f32.mrf.mxu3 }
 0x309   :  { %4845 = vmatpush.bf16.msrb.mxu3 %v8416_v5  ;;  %4820 = vmatpush.bf16.msrb.mxu1 %v7872_v10  ;;  %v11268_v48 = vld [vmem:[#allocation5 + $0x4f4] sm:$0xf0]  ;;  %v12456_v4 = vadd.f32 %v4594_v1, %v4582_v0 }
 0x30a   :  { %v8287_v49 = vld [vmem:[#allocation5 + $0x6d8] sm:$0xf]  ;;  %v8032_v5 = vor.u32 %v11268_v48, %v8031_v47 }
 0x30b   :  { %4833 = vmatpush.bf16.msrb.mxu2 %v8128_v63  ;;  %4808 = vmatpush.bf16.msrb.mxu0 %v7584_v8  ;;  %v11332_v50 = vld [vmem:[#allocation5 + $0x6f4] sm:$0xf0] }
 0x30c   :  { %v7487_v57 = vld [vmem:[#allocation5 + $0x98] sm:$0xf]  ;;  %v8288_v43 = vor.u32 %v11332_v50, %v8287_v49 }
 0x30d   :  { %4846 = vmatpush.bf16.msrb.mxu3 %v8384_v2  ;;  %4821 = vmatpush.bf16.msrb.mxu1 %v7840_v12  ;;  %v11132_v58 = vld [vmem:[#allocation5 + $0xb4] sm:$0xf0] }
 0x30e   :  { %v7743_v59 = vld [vmem:[#allocation5 + $0x298] sm:$0xf]  ;;  %v7488_v3 = vor.u32 %v11132_v58, %v7487_v57 }
 0x30f   :  { %4834 = vmatpush.bf16.msrb.mxu2 %v8096_v13  ;;  %4809 = vmatpush.bf16.msrb.mxu0 %v7552_v31  ;;  %v11196_v61 = vld [vmem:[#allocation5 + $0x2b4] sm:$0xf0]  ;;  %v4570_v13 = vpop.f32.mrf.mxu1 }
 0x310   :  { %v7999_v10 = vld [vmem:[#allocation5 + $0x498] sm:$0xf]  ;;  %v7744_v7 = vor.u32 %v11196_v61, %v7743_v59 }
 0x311   :  { %4847 = vmatpush.bf16.msrb.mxu3 %v8352_v23  ;;  %4822 = vmatpush.bf16.msrb.mxu1 %v7808_v34  ;;  %v11260_v63 = vld [vmem:[#allocation5 + $0x4b4] sm:$0xf0] }
 0x312   :  { %v8255_v15 = vld [vmem:[#allocation5 + $0x698] sm:$0xf]  ;;  %v8000_v40 = vor.u32 %v11260_v63, %v7999_v10 }
 0x313   :  { %4835 = vmatpush.bf16.msrb.mxu2 %v8064_v35  ;;  %v11324_v2 = vld [vmem:[#allocation5 + $0x6b4] sm:$0xf0]  ;;  %4810 = vmatpush.bf16.msrb.mxu0 %v7520_v53 }
 0x314   :  { %v7455_v8 = vld [vmem:[#allocation5 + $0x58] sm:$0xf]  ;;  %v8256_v14 = vor.u32 %v11324_v2, %v8255_v15 }
 0x315   :  { %4848 = vmatpush.bf16.msrb.mxu3 %v8320_v46  ;;  %4823 = vmatpush.bf16.msrb.mxu1 %v7776_v56  ;;  %v11124_v11 = vld [vmem:[#allocation5 + $0x74] sm:$0xf0] }
 0x316   :  { %v7711_v12 = vld [vmem:[#allocation5 + $0x258] sm:$0xf]  ;;  %v7456_v28 = vor.u32 %v11124_v11, %v7455_v8 }
 0x317   :  { %4836 = vmatpush.bf16.msrb.mxu2 %v8032_v5  ;;  %v11188_v17 = vld [vmem:[#allocation5 + $0x274] sm:$0xf0]  ;;  %4811 = vmatpush.bf16.msrb.mxu0 %v7488_v3 }
 0x318   :  { %v7967_v25 = vld [vmem:[#allocation5 + $0x458] sm:$0xf]  ;;  %v7712_v31 = vor.u32 %v11188_v17, %v7711_v12 }
 0x319   :  { %4849 = vmatpush.bf16.msrb.mxu3 %v8288_v43  ;;  %v11252_v23 = vld [vmem:[#allocation5 + $0x474] sm:$0xf0]  ;;  %4824 = vmatpush.bf16.msrb.mxu1 %v7744_v7 }
 0x31a   :  { %v8223_v24 = vld [vmem:[#allocation5 + $0x658] sm:$0xf]  ;;  %v7968_v32 = vor.u32 %v11252_v23, %v7967_v25 }
 0x31b   :  { %v11316_v27 = vld [vmem:[#allocation5 + $0x674] sm:$0xf0]  ;;  %4837 = vmatpush.bf16.msrb.mxu2 %v8000_v40  ;;  %4812 = vmatpush.bf16.msrb.mxu0 %v7456_v28 }
 0x31c   :  { %v7423_v29 = vld [vmem:[#allocation5 + $0x18] sm:$0xf]  ;;  %v8224_v45 = vor.u32 %v11316_v27, %v8223_v24 }
 0x31d   :  { %v11116_v30 = vld [vmem:[#allocation5 + $0x34] sm:$0xf0]  ;;  %4850 = vmatpush.bf16.msrb.mxu3 %v8256_v14  ;;  %4825 = vmatpush.bf16.msrb.mxu1 %v7712_v31 }
 0x31e   :  { %v7679_v34 = vld [vmem:[#allocation5 + $0x218] sm:$0xf]  ;;  %v7424_v50 = vor.u32 %v11116_v30, %v7423_v29 }
 0x31f   :  { %v11180_v35 = vld [vmem:[#allocation5 + $0x234] sm:$0xf0]  ;;  %4838 = vmatpush.bf16.msrb.mxu2 %v7968_v32 }
 0x320   :  { %v7935_v36 = vld [vmem:[#allocation5 + $0x418] sm:$0xf]  ;;  %v7680_v5 = vor.u32 %v11180_v35, %v7679_v34  ;;  %4813 = vmatpush.bf16.msrb.mxu0 %v7424_v50 }
 0x321   :  { %v11244_v55 = vld [vmem:[#allocation5 + $0x434] sm:$0xf0]  ;;  %4851 = vmatpush.bf16.msrb.mxu3 %v8224_v45 }
 0x322   :  { %v8191_v54 = vld [vmem:[#allocation5 + $0x618] sm:$0xf]  ;;  %v7936_v57 = vor.u32 %v11244_v55, %v7935_v36  ;;  %4826 = vmatpush.bf16.msrb.mxu1 %v7680_v5 }
 0x323   :  { %v11308_v46 = vld [vmem:[#allocation5 + $0x634] sm:$0xf0]  ;;  %4814 = vmatmul.bf16.vlgmr.msrb.gmra.mxu0 %v12335_v19 }
 0x324   :  { %v8671_v47 = vld [vmem:[#allocation5 + $0x9d8] sm:$0xf]  ;;  %v8192_v60 = vor.u32 %v11308_v46, %v8191_v54  ;;  %4839 = vmatpush.bf16.msrb.mxu2 %v7936_v57  ;;  %v4620_v57 = vpop.f32.mrf.mxu1 }
 0x325   :  { %v11428_v48 = vld [vmem:[#allocation5 + $0x9f4] sm:$0xf0]  ;;  %4827 = vmatmul.bf16.vlgmr.msrb.gmra.mxu1 %v12339_v22 }
 0x326   :  { %v8927_v49 = vld [vmem:[#allocation5 + $0xbd8] sm:$0xf]  ;;  %v8672_v43 = vor.u32 %v11428_v48, %v8671_v47  ;;  %4852 = vmatpush.bf16.msrb.mxu3 %v8192_v60  ;;  %v4607_v48 = vpop.f32.mrf.mxu0 }
 0x327   :  { %v11492_v52 = vld [vmem:[#allocation5 + $0xbf4] sm:$0xf0]  ;;  %4840 = vmatmul.bf16.vlgmr.msrb.gmra.mxu2 %v12333_v18  ;;  %v4608_v5 = vadd.f32 %v4607_v48, %v12456_v4 }
 0x328   :  { %v9183_v53 = vld [vmem:[#allocation5 + $0xdd8] sm:$0xf]  ;;  %v8928_v61 = vor.u32 %v11492_v52, %v8927_v49  ;;  %4858 = vmatpush.bf16.msra.mxu0 %v8672_v43 }
 0x329   :  { %v11556_v56 = vld [vmem:[#allocation5 + $0xdf4] sm:$0xf0]  ;;  %4853 = vmatmul.bf16.vlgmr.msrb.gmra.mxu3 %v12337_v20 }
 0x32a   :  { %v9439_v58 = vld [vmem:[#allocation5 + $0xfd8] sm:$0xf]  ;;  %v9184_v10 = vor.u32 %v11556_v56, %v9183_v53  ;;  %4871 = vmatpush.bf16.msra.mxu1 %v8928_v61 }
 0x32b   :  { %v11620_v59 = vld [vmem:[#allocation5 + $0xff4] sm:$0xf0] }
 0x32c   :  { %v8639_v63 = vld [vmem:[#allocation5 + $0x998] sm:$0xf]  ;;  %v9440_v15 = vor.u32 %v11620_v59, %v9439_v58  ;;  %4884 = vmatpush.bf16.msra.mxu2 %v9184_v10 }
 0x32d   :  { %v11420_v0 = vld [vmem:[#allocation5 + $0x9b4] sm:$0xf0] }
 0x32e   :  { %v8895_v1 = vld [vmem:[#allocation5 + $0xb98] sm:$0xf]  ;;  %v8640_v8 = vor.u32 %v11420_v0, %v8639_v63  ;;  %4897 = vmatpush.bf16.msra.mxu3 %v9440_v15  ;;  %v4621_v63 = vadd.f32 %v4620_v57, %v4608_v5 }
 0x32f   :  { %v11484_v2 = vld [vmem:[#allocation5 + $0xbb4] sm:$0xf0] }
 0x330   :  { %v9151_v3 = vld [vmem:[#allocation5 + $0xd98] sm:$0xf]  ;;  %v8896_v11 = vor.u32 %v11484_v2, %v8895_v1  ;;  %4859 = vmatpush.bf16.msra.mxu0 %v8640_v8 }
 0x331   :  { %v11548_v6 = vld [vmem:[#allocation5 + $0xdb4] sm:$0xf0] }
 0x332   :  { %v9407_v7 = vld [vmem:[#allocation5 + $0xf98] sm:$0xf]  ;;  %v9152_v12 = vor.u32 %v11548_v6, %v9151_v3  ;;  %4872 = vmatpush.bf16.msra.mxu1 %v8896_v11 }
 0x333   :  { %v11612_v40 = vld [vmem:[#allocation5 + $0xfb4] sm:$0xf0] }
 0x334   :  { %v8607_v13 = vld [vmem:[#allocation5 + $0x958] sm:$0xf]  ;;  %v9408_v25 = vor.u32 %v11612_v40, %v9407_v7  ;;  %4885 = vmatpush.bf16.msra.mxu2 %v9152_v12  ;;  %v4633_v7 = vpop.f32.mrf.mxu2 }
 0x335   :  { %v11412_v14 = vld [vmem:[#allocation5 + $0x974] sm:$0xf0]  ;;  %v4634_v12 = vadd.f32 %v4633_v7, %v4621_v63 }
 0x336   :  { %v8863_v17 = vld [vmem:[#allocation5 + $0xb58] sm:$0xf]  ;;  %v8608_v30 = vor.u32 %v11412_v14, %v8607_v13  ;;  %4898 = vmatpush.bf16.msra.mxu3 %v9408_v25  ;;  %v4646_v13 = vpop.f32.mrf.mxu3 }
 0x337   :  { %v11476_v23 = vld [vmem:[#allocation5 + $0xb74] sm:$0xf0] }
 0x338   :  { %v9119_v24 = vld [vmem:[#allocation5 + $0xd58] sm:$0xf]  ;;  %v8864_v31 = vor.u32 %v11476_v23, %v8863_v17  ;;  %4860 = vmatpush.bf16.msra.mxu0 %v8608_v30  ;;  %v12463_v23 = vadd.f32 %v4646_v13, %v4634_v12 }
 0x339   :  { %v11540_v27 = vld [vmem:[#allocation5 + $0xd74] sm:$0xf0] }
 0x33a   :  { %v9375_v28 = vld [vmem:[#allocation5 + $0xf58] sm:$0xf]  ;;  %v9120_v32 = vor.u32 %v11540_v27, %v9119_v24  ;;  %4873 = vmatpush.bf16.msra.mxu1 %v8864_v31  ;;  %v4609_v24 = vpop.f32.mrf.mxu0 }
 0x33b   :  { %v11604_v29 = vld [vmem:[#allocation5 + $0xf74] sm:$0xf0]  ;;  %v7617_v24 = vld [vmem:[#allocation5 + $0x1b8] sm:$0xf0] }
 0x33c   :  { %v8575_v34 = vld [vmem:[#allocation5 + $0x918] sm:$0xf]  ;;  %v9376_v37 = vor.u32 %v11604_v29, %v9375_v28  ;;  %4886 = vmatpush.bf16.msra.mxu2 %v9120_v32  ;;  %v4622_v32 = vpop.f32.mrf.mxu1 }
 0x33d   :  { %v11404_v35 = vld [vmem:[#allocation5 + $0x934] sm:$0xf0] }
 0x33e   :  { %v8831_v36 = vld [vmem:[#allocation5 + $0xb18] sm:$0xf]  ;;  %v8576_v47 = vor.u32 %v11404_v35, %v8575_v34  ;;  %4899 = vmatpush.bf16.msra.mxu3 %v9376_v37 }
 0x33f   :  { %v11468_v45 = vld [vmem:[#allocation5 + $0xb34] sm:$0xf0] }
 0x340   :  { %v9087_v55 = vld [vmem:[#allocation5 + $0xd18] sm:$0xf]  ;;  %v8832_v49 = vor.u32 %v11468_v45, %v8831_v36  ;;  %4861 = vmatpush.bf16.msra.mxu0 %v8576_v47 }
 0x341   :  { %v11532_v54 = vld [vmem:[#allocation5 + $0xd34] sm:$0xf0] }
 0x342   :  { %v9343_v46 = vld [vmem:[#allocation5 + $0xf18] sm:$0xf]  ;;  %v9088_v50 = vor.u32 %v11532_v54, %v9087_v55  ;;  %4874 = vmatpush.bf16.msra.mxu1 %v8832_v49 }
 0x343   :  { %v11596_v39 = vld [vmem:[#allocation5 + $0xf34] sm:$0xf0] }
 0x344   :  { %v8543_v52 = vld [vmem:[#allocation5 + $0x8d8] sm:$0xf]  ;;  %v9344_v58 = vor.u32 %v11596_v39, %v9343_v46  ;;  %4887 = vmatpush.bf16.msra.mxu2 %v9088_v50 }
 0x345   :  { %v11396_v53 = vld [vmem:[#allocation5 + $0x8f4] sm:$0xf0] }
 0x346   :  { %v8799_v56 = vld [vmem:[#allocation5 + $0xad8] sm:$0xf]  ;;  %v8544_v0 = vor.u32 %v11396_v53, %v8543_v52  ;;  %4900 = vmatpush.bf16.msra.mxu3 %v9344_v58  ;;  %v4635_v53 = vpop.f32.mrf.mxu2 }
 0x347   :  { %v11460_v59 = vld [vmem:[#allocation5 + $0xaf4] sm:$0xf0] }
 0x348   :  { %v9055_v60 = vld [vmem:[#allocation5 + $0xcd8] sm:$0xf]  ;;  %v8800_v1 = vor.u32 %v11460_v59, %v8799_v56  ;;  %4862 = vmatpush.bf16.msra.mxu0 %v8544_v0  ;;  %v4648_v59 = vpop.f32.mrf.mxu3  ;;  %v11168_v0 = vld [vmem:[#allocation5 + $0x1dc] sm:$0xf] }
 0x349   :  { %v11524_v43 = vld [vmem:[#allocation5 + $0xcf4] sm:$0xf0]  ;;  %v11208_v59 = vld [vmem:[#allocation5 + $0x31c] sm:$0xf] }
 0x34a   :  { %v9311_v61 = vld [vmem:[#allocation5 + $0xed8] sm:$0xf]  ;;  %v9056_v15 = vor.u32 %v11524_v43, %v9055_v60  ;;  %4875 = vmatpush.bf16.msra.mxu1 %v8800_v1  ;;  %v7649_v1 = vld [vmem:[#allocation5 + $0x1f8] sm:$0xf0] }
 0x34b   :  { %v11588_v10 = vld [vmem:[#allocation5 + $0xef4] sm:$0xf0] }
 0x34c   :  { %v8511_v2 = vld [vmem:[#allocation5 + $0x898] sm:$0xf]  ;;  %v9312_v4 = vor.u32 %v11588_v10, %v9311_v61  ;;  %4888 = vmatpush.bf16.msra.mxu2 %v9056_v15 }
 0x34d   :  { %v11388_v3 = vld [vmem:[#allocation5 + $0x8b4] sm:$0xf0] }
 0x34e   :  { %v8767_v6 = vld [vmem:[#allocation5 + $0xa98] sm:$0xf]  ;;  %v8512_v25 = vor.u32 %v11388_v3, %v8511_v2  ;;  %4901 = vmatpush.bf16.msra.mxu3 %v9312_v4  ;;  %v11232_v3 = vld [vmem:[#allocation5 + $0x3dc] sm:$0xf] }
 0x34f   :  { %v11452_v40 = vld [vmem:[#allocation5 + $0xab4] sm:$0xf0] }
 0x350   :  { %v9023_v8 = vld [vmem:[#allocation5 + $0xc98] sm:$0xf]  ;;  %v8768_v27 = vor.u32 %v11452_v40, %v8767_v6  ;;  %4863 = vmatpush.bf16.msra.mxu0 %v8512_v25  ;;  %v7905_v6 = vld [vmem:[#allocation5 + $0x3f8] sm:$0xf0] }
 0x351   :  { %v11516_v11 = vld [vmem:[#allocation5 + $0xcb4] sm:$0xf0]  ;;  %v11160_v25 = vld [vmem:[#allocation5 + $0x19c] sm:$0xf] }
 0x352   :  { %v9279_v14 = vld [vmem:[#allocation5 + $0xe98] sm:$0xf]  ;;  %v9024_v28 = vor.u32 %v11516_v11, %v9023_v8  ;;  %4876 = vmatpush.bf16.msra.mxu1 %v8768_v27  ;;  %v7652_v8 = vor.u32 %v11168_v0, %v7649_v1  ;;  %v11224_v27 = vld [vmem:[#allocation5 + $0x39c] sm:$0xf] }
 0x353   :  { %v11580_v17 = vld [vmem:[#allocation5 + $0xeb4] sm:$0xf0] }
 0x354   :  { %v8479_v29 = vld [vmem:[#allocation5 + $0x858] sm:$0xf]  ;;  %v9280_v34 = vor.u32 %v11580_v17, %v9279_v14  ;;  %4889 = vmatpush.bf16.msra.mxu2 %v9024_v28  ;;  %v7908_v14 = vor.u32 %v11232_v3, %v7905_v6  ;;  %v7873_v28 = vld [vmem:[#allocation5 + $0x3b8] sm:$0xf0] }
 0x355   :  { %v11380_v30 = vld [vmem:[#allocation5 + $0x874] sm:$0xf0] }
 0x356   :  { %v8735_v31 = vld [vmem:[#allocation5 + $0xa58] sm:$0xf]  ;;  %v8480_v54 = vor.u32 %v11380_v30, %v8479_v29  ;;  %4902 = vmatpush.bf16.msra.mxu3 %v9280_v34 }
 0x357   :  { %v11444_v35 = vld [vmem:[#allocation5 + $0xa74] sm:$0xf0] }
 0x358   :  { %v8991_v36 = vld [vmem:[#allocation5 + $0xc58] sm:$0xf]  ;;  %v8736_v47 = vor.u32 %v11444_v35, %v8735_v31  ;;  %4864 = vmatpush.bf16.msra.mxu0 %v8480_v54  ;;  %v7620_v31 = vor.u32 %v11160_v25, %v7617_v24  ;;  %v11216_v54 = vld [vmem:[#allocation5 + $0x35c] sm:$0xf] }
 0x359   :  { %v11508_v37 = vld [vmem:[#allocation5 + $0xc74] sm:$0xf0] }
 0x35a   :  { %v9247_v45 = vld [vmem:[#allocation5 + $0xe58] sm:$0xf]  ;;  %v8992_v48 = vor.u32 %v11508_v37, %v8991_v36  ;;  %4877 = vmatpush.bf16.msra.mxu1 %v8736_v47  ;;  %v7876_v36 = vor.u32 %v11224_v27, %v7873_v28 }
 0x35b   :  { %v11572_v55 = vld [vmem:[#allocation5 + $0xe74] sm:$0xf0] }
 0x35c   :  { %v8447_v46 = vld [vmem:[#allocation5 + $0x818] sm:$0xf]  ;;  %v9248_v56 = vor.u32 %v11572_v55, %v9247_v45  ;;  %4890 = vmatpush.bf16.msra.mxu2 %v8992_v48  ;;  %v11152_v45 = vld [vmem:[#allocation5 + $0x15c] sm:$0xf] }
 0x35d   :  { %v11372_v39 = vld [vmem:[#allocation5 + $0x834] sm:$0xf0]  ;;  %v7585_v55 = vld [vmem:[#allocation5 + $0x178] sm:$0xf0] }
 0x35e   :  { %v8703_v49 = vld [vmem:[#allocation5 + $0xa18] sm:$0xf]  ;;  %v8448_v10 = vor.u32 %v11372_v39, %v8447_v46  ;;  %4903 = vmatpush.bf16.msra.mxu3 %v9248_v56  ;;  %v7841_v46 = vld [vmem:[#allocation5 + $0x378] sm:$0xf0]  ;;  %v7588_v48 = vor.u32 %v11152_v45, %v7585_v55 }
 0x35f   :  { %v11436_v50 = vld [vmem:[#allocation5 + $0xa34] sm:$0xf0]  ;;  %v7844_v53 = vor.u32 %v11216_v54, %v7841_v46 }
 0x360   :  { %v8959_v52 = vld [vmem:[#allocation5 + $0xc18] sm:$0xf]  ;;  %v8704_v15 = vor.u32 %v11436_v50, %v8703_v49  ;;  %4865 = vmatpush.bf16.msra.mxu0 %v8448_v10  ;;  %v4672_v10 = vpop.f32.mrf.mxu1 }
 0x361   :  { %v11500_v5 = vld [vmem:[#allocation5 + $0xc34] sm:$0xf0] }
 0x362   :  { %v9215_v57 = vld [vmem:[#allocation5 + $0xe18] sm:$0xf]  ;;  %v8960_v2 = vor.u32 %v11500_v5, %v8959_v52  ;;  %4878 = vmatpush.bf16.msra.mxu1 %v8704_v15  ;;  %v11144_v5 = vld [vmem:[#allocation5 + $0x11c] sm:$0xf] }
 0x363   :  { %v11564_v58 = vld [vmem:[#allocation5 + $0xe34] sm:$0xf0]  ;;  %4866 = vmatmul.bf16.vlgmr.msra.gmra.mxu0 %v12347_v41 }
 0x364   :  { %v9695_v60 = vld [vmem:[#allocation5 + $0x11d8] sm:$0xf]  ;;  %v9216_v7 = vor.u32 %v11564_v58, %v9215_v57  ;;  %4891 = vmatpush.bf16.msra.mxu2 %v8960_v2  ;;  %v7553_v57 = vld [vmem:[#allocation5 + $0x138] sm:$0xf0]  ;;  %v4659_v58 = vpop.f32.mrf.mxu0 }
 0x365   :  { %v11684_v43 = vld [vmem:[#allocation5 + $0x11f4] sm:$0xf0]  ;;  %4879 = vmatmul.bf16.vlgmr.msra.gmra.mxu1 %v12351_v44  ;;  %v7556_v0 = vor.u32 %v11144_v5, %v7553_v57  ;;  %v7713_v5 = vld [vmem:[#allocation5 + $0x278] sm:$0xf0] }
 0x366   :  { %v9951_v61 = vld [vmem:[#allocation5 + $0x13d8] sm:$0xf]  ;;  %v9696_v4 = vor.u32 %v11684_v43, %v9695_v60  ;;  %4904 = vmatpush.bf16.msra.mxu3 %v9216_v7  ;;  %v7809_v60 = vld [vmem:[#allocation5 + $0x338] sm:$0xf0]  ;;  %v4660_v43 = vadd.f32 %v4659_v58, %v12463_v23  ;;  %v780_v23 = vperm.slane %v12453_v33, 5 }
 0x367   :  { %v11748_v63 = vld [vmem:[#allocation5 + $0x13f4] sm:$0xf0]  ;;  %4892 = vmatmul.bf16.vlgmr.msra.gmra.mxu2 %v12345_v38  ;;  %v7812_v3 = vor.u32 %v11208_v59, %v7809_v60 }
 0x368   :  { %v9952_v40 = vor.u32 %v11748_v63, %v9951_v61  ;;  %v9663_v11 = vld [vmem:[#allocation5 + $0x1198] sm:$0xf]  ;;  %4910 = vmatpush.bf16.msrb.mxu0 %v9696_v4  ;;  %4936 = vmatpush.bf16.msrb.mxu2 %v7652_v8  ;;  %v12470_v6 = vadd.f32 %v4672_v10, %v4660_v43  ;;  %v11136_v4 = vld [vmem:[#allocation5 + $0xdc] sm:$0xf]  ;;  %v4674_v45 = vpop.f32.mrf.mxu1 }
 0x369   :  { %v11676_v12 = vld [vmem:[#allocation5 + $0x11b4] sm:$0xf0]  ;;  %4905 = vmatmul.bf16.vlgmr.msra.gmra.mxu3 %v12349_v42  ;;  %v11200_v8 = vld [vmem:[#allocation5 + $0x2dc] sm:$0xf] }
 0x36a   :  { %v9919_v13 = vld [vmem:[#allocation5 + $0x1398] sm:$0xf]  ;;  %v9664_v29 = vor.u32 %v11676_v12, %v9663_v11  ;;  %4923 = vmatpush.bf16.msrb.mxu1 %v9952_v40  ;;  %4949 = vmatpush.bf16.msrb.mxu3 %v7908_v14  ;;  %v7521_v40 = vld [vmem:[#allocation5 + $0xf8] sm:$0xf0] }
 0x36b   :  { %v11740_v17 = vld [vmem:[#allocation5 + $0x13b4] sm:$0xf0]  ;;  %v7777_v11 = vld [vmem:[#allocation5 + $0x2f8] sm:$0xf0]  ;;  %v7524_v14 = vor.u32 %v11136_v4, %v7521_v40 }
 0x36c   :  { %v9920_v30 = vor.u32 %v11740_v17, %v9919_v13  ;;  %v9631_v32 = vld [vmem:[#allocation5 + $0x1158] sm:$0xf]  ;;  %4911 = vmatpush.bf16.msrb.mxu0 %v9664_v29  ;;  %4937 = vmatpush.bf16.msrb.mxu2 %v7620_v31  ;;  %v7780_v27 = vor.u32 %v11200_v8, %v7777_v11  ;;  %v11128_v29 = vld [vmem:[#allocation5 + $0x9c] sm:$0xf]  ;;  %v4685_v31 = vpop.f32.mrf.mxu2  ;;  %v4661_v33 = vpop.f32.mrf.mxu0 }
 0x36d   :  { %v11668_v34 = vld [vmem:[#allocation5 + $0x1174] sm:$0xf0]  ;;  %v8161_v4 = vld [vmem:[#allocation5 + $0x5f8] sm:$0xf0] }
 0x36e   :  { %v9887_v35 = vld [vmem:[#allocation5 + $0x1358] sm:$0xf]  ;;  %v9632_v39 = vor.u32 %v11668_v34, %v9631_v32  ;;  %4924 = vmatpush.bf16.msrb.mxu1 %v9920_v30  ;;  %4950 = vmatpush.bf16.msrb.mxu3 %v7876_v36  ;;  %v7489_v30 = vld [vmem:[#allocation5 + $0xb8] sm:$0xf0]  ;;  %v4698_v36 = vpop.f32.mrf.mxu3 }
 0x36f   :  { %v11732_v37 = vld [vmem:[#allocation5 + $0x1374] sm:$0xf0]  ;;  %v11192_v32 = vld [vmem:[#allocation5 + $0x29c] sm:$0xf]  ;;  %v7492_v54 = vor.u32 %v11128_v29, %v7489_v30 }
 0x370   :  { %v9888_v47 = vor.u32 %v11732_v37, %v9887_v35  ;;  %v9599_v49 = vld [vmem:[#allocation5 + $0x1118] sm:$0xf]  ;;  %4912 = vmatpush.bf16.msrb.mxu0 %v9632_v39  ;;  %4938 = vmatpush.bf16.msrb.mxu2 %v7588_v48  ;;  %v7745_v34 = vld [vmem:[#allocation5 + $0x2b8] sm:$0xf0]  ;;  %v4686_v35 = vadd.f32 %v4685_v31, %v780_v23 }
 0x371   :  { %v11660_v50 = vld [vmem:[#allocation5 + $0x1134] sm:$0xf0]  ;;  %v11360_v40 = vld [vmem:[#allocation5 + $0x7dc] sm:$0xf] }
 0x372   :  { %v9855_v52 = vld [vmem:[#allocation5 + $0x1318] sm:$0xf]  ;;  %v9600_v61 = vor.u32 %v11660_v50, %v9599_v49  ;;  %4925 = vmatpush.bf16.msrb.mxu1 %v9888_v47  ;;  %4951 = vmatpush.bf16.msrb.mxu3 %v7844_v53  ;;  %v12473_v48 = vadd.f32 %v4698_v36, %v4686_v35  ;;  %v7748_v49 = vor.u32 %v11192_v32, %v7745_v34  ;;  %v7457_v53 = vld [vmem:[#allocation5 + $0x78] sm:$0xf0] }
 0x373   :  { %v11724_v56 = vld [vmem:[#allocation5 + $0x1334] sm:$0xf0]  ;;  %v8417_v23 = vld [vmem:[#allocation5 + $0x7f8] sm:$0xf0] }
 0x374   :  { %v9856_v63 = vor.u32 %v11724_v56, %v9855_v52  ;;  %v9567_v1 = vld [vmem:[#allocation5 + $0x10d8] sm:$0xf]  ;;  %4913 = vmatpush.bf16.msrb.mxu0 %v9600_v61  ;;  %4939 = vmatpush.bf16.msrb.mxu2 %v7556_v0  ;;  %v11120_v52 = vld [vmem:[#allocation5 + $0x5c] sm:$0xf]  ;;  %v8420_v29 = vor.u32 %v11360_v40, %v8417_v23 }
 0x375   :  { %v11652_v15 = vld [vmem:[#allocation5 + $0x10f4] sm:$0xf0]  ;;  %v11184_v56 = vld [vmem:[#allocation5 + $0x25c] sm:$0xf]  ;;  %v7460_v43 = vor.u32 %v11120_v52, %v7457_v53 }
 0x376   :  { %v9823_v2 = vld [vmem:[#allocation5 + $0x12d8] sm:$0xf]  ;;  %v9568_v12 = vor.u32 %v11652_v15, %v9567_v1  ;;  %4926 = vmatpush.bf16.msrb.mxu1 %v9856_v63  ;;  %4952 = vmatpush.bf16.msrb.mxu3 %v7812_v3  ;;  %v11112_v63 = vld [vmem:[#allocation5 + $0x1c] sm:$0xf]  ;;  %v7716_v0 = vor.u32 %v11184_v56, %v7713_v5  ;;  %v4687_v3 = vpop.f32.mrf.mxu2  ;;  %v4700_v8 = vpop.f32.mrf.mxu3 }
 0x377   :  { %v11716_v7 = vld [vmem:[#allocation5 + $0x12f4] sm:$0xf0]  ;;  %v7425_v1 = vld [vmem:[#allocation5 + $0x38] sm:$0xf0] }
 0x378   :  { %v9824_v13 = vor.u32 %v11716_v7, %v9823_v2  ;;  %v9535_v17 = vld [vmem:[#allocation5 + $0x1098] sm:$0xf]  ;;  %4914 = vmatpush.bf16.msrb.mxu0 %v9568_v12  ;;  %4940 = vmatpush.bf16.msrb.mxu2 %v7524_v14  ;;  %v11176_v15 = vld [vmem:[#allocation5 + $0x21c] sm:$0xf] }
 0x379   :  { %v11644_v25 = vld [vmem:[#allocation5 + $0x10b4] sm:$0xf0]  ;;  %v7681_v2 = vld [vmem:[#allocation5 + $0x238] sm:$0xf0] }
 0x37a   :  { %v9791_v24 = vld [vmem:[#allocation5 + $0x1298] sm:$0xf]  ;;  %v9536_v37 = vor.u32 %v11644_v25, %v9535_v17  ;;  %4927 = vmatpush.bf16.msrb.mxu1 %v9824_v13  ;;  %4953 = vmatpush.bf16.msrb.mxu3 %v7780_v27  ;;  %v11296_v7 = vld [vmem:[#allocation5 + $0x5dc] sm:$0xf]  ;;  %v7428_v17 = vor.u32 %v11112_v63, %v7425_v1  ;;  %v7684_v27 = vor.u32 %v11176_v15, %v7681_v2 }
 0x37b   :  { %v11708_v28 = vld [vmem:[#allocation5 + $0x12b4] sm:$0xf0]  ;;  %v11424_v12 = vld [vmem:[#allocation5 + $0x9dc] sm:$0xf] }
 0x37c   :  { %v9792_v55 = vor.u32 %v11708_v28, %v9791_v24  ;;  %v9503_v46 = vld [vmem:[#allocation5 + $0x1058] sm:$0xf]  ;;  %4915 = vmatpush.bf16.msrb.mxu0 %v9536_v37  ;;  %4941 = vmatpush.bf16.msrb.mxu2 %v7492_v54  ;;  %v8673_v13 = vld [vmem:[#allocation5 + $0x9f8] sm:$0xf0]  ;;  %v8164_v28 = vor.u32 %v11296_v7, %v8161_v4  ;;  %v4711_v4 = vpop.f32.mrf.mxu0 }
 0x37d   :  { %v11636_v39 = vld [vmem:[#allocation5 + $0x1074] sm:$0xf0]  ;;  %v11488_v25 = vld [vmem:[#allocation5 + $0xbdc] sm:$0xf]  ;;  %v8676_v30 = vor.u32 %v11424_v12, %v8673_v13  ;;  %v4712_v12 = vadd.f32 %v4711_v4, %v12473_v48  ;;  %v4724_v13 = vpop.f32.mrf.mxu1 }
 0x37e   :  { %v9759_v47 = vld [vmem:[#allocation5 + $0x1258] sm:$0xf]  ;;  %v9504_v57 = vor.u32 %v11636_v39, %v9503_v46  ;;  %4928 = vmatpush.bf16.msrb.mxu1 %v9792_v55  ;;  %4954 = vmatpush.bf16.msrb.mxu3 %v7748_v49  ;;  %v8929_v24 = vld [vmem:[#allocation5 + $0xbf8] sm:$0xf0] }
 0x37f   :  { %v11700_v50 = vld [vmem:[#allocation5 + $0x1274] sm:$0xf0]  ;;  %v11288_v31 = vld [vmem:[#allocation5 + $0x59c] sm:$0xf]  ;;  %v8932_v35 = vor.u32 %v11488_v25, %v8929_v24 }
 0x380   :  { %v9471_v58 = vld [vmem:[#allocation5 + $0x1018] sm:$0xf]  ;;  %v9760_v60 = vor.u32 %v11700_v50, %v9759_v47  ;;  %4916 = vmatpush.bf16.msrb.mxu0 %v9504_v57  ;;  %4942 = vmatpush.bf16.msrb.mxu2 %v7460_v43  ;;  %v8129_v32 = vld [vmem:[#allocation5 + $0x5b8] sm:$0xf0] }
 0x381   :  { %v11628_v59 = vld [vmem:[#allocation5 + $0x1034] sm:$0xf0]  ;;  %v11352_v34 = vld [vmem:[#allocation5 + $0x79c] sm:$0xf]  ;;  %v8132_v54 = vor.u32 %v11288_v31, %v8129_v32 }
 0x382   :  { %v9727_v61 = vld [vmem:[#allocation5 + $0x1218] sm:$0xf]  ;;  %v9472_v11 = vor.u32 %v11628_v59, %v9471_v58  ;;  %4929 = vmatpush.bf16.msrb.mxu1 %v9760_v60  ;;  %4955 = vmatpush.bf16.msrb.mxu3 %v7716_v0  ;;  %v8385_v36 = vld [vmem:[#allocation5 + $0x7b8] sm:$0xf0] }
 0x383   :  { %v11692_v10 = vld [vmem:[#allocation5 + $0x1234] sm:$0xf0]  ;;  %v11416_v33 = vld [vmem:[#allocation5 + $0x99c] sm:$0xf]  ;;  %v8388_v46 = vor.u32 %v11352_v34, %v8385_v36 }
 0x384   :  { %v9728_v14 = vor.u32 %v11692_v10, %v9727_v61  ;;  %4917 = vmatpush.bf16.msrb.mxu0 %v9472_v11  ;;  %v8641_v37 = vld [vmem:[#allocation5 + $0x9b8] sm:$0xf0]  ;;  %4943 = vmatpush.bf16.msrb.mxu2 %v7428_v17 }
 0x385   :  { %v11480_v45 = vld [vmem:[#allocation5 + $0xb9c] sm:$0xf]  ;;  %v8644_v39 = vor.u32 %v11416_v33, %v8641_v37  ;;  %v4737_v33 = vpop.f32.mrf.mxu2 }
 0x386   :  { %4930 = vmatpush.bf16.msrb.mxu1 %v9728_v14  ;;  %v8897_v55 = vld [vmem:[#allocation5 + $0xbb8] sm:$0xf0]  ;;  %4956 = vmatpush.bf16.msrb.mxu3 %v7684_v27 }
 0x387   :  { %v11280_v47 = vld [vmem:[#allocation5 + $0x55c] sm:$0xf]  ;;  %4918 = vmatmul.bf16.vlgmr.msrb.gmra.mxu0 %v12357_v21  ;;  %v8900_v52 = vor.u32 %v11480_v45, %v8897_v55  ;;  %4944 = vmatmul.bf16.vlgmr.msrb.gmra.mxu2 %v12335_v19 }
 0x388   :  { %4962 = vmatpush.bf16.msra.mxu0 %v8164_v28  ;;  %4988 = vmatpush.bf16.msra.mxu2 %v8676_v30  ;;  %v8097_v49 = vld [vmem:[#allocation5 + $0x578] sm:$0xf0] }
 0x389   :  { %v11344_v50 = vld [vmem:[#allocation5 + $0x75c] sm:$0xf]  ;;  %4931 = vmatmul.bf16.vlgmr.msrb.gmra.mxu1 %v12359_v26  ;;  %v8100_v59 = vor.u32 %v11280_v47, %v8097_v49  ;;  %4957 = vmatmul.bf16.vlgmr.msrb.gmra.mxu3 %v12339_v22 }
 0x38a   :  { %4975 = vmatpush.bf16.msra.mxu1 %v8420_v29  ;;  %5001 = vmatpush.bf16.msra.mxu3 %v8932_v35  ;;  %v8353_v53 = vld [vmem:[#allocation5 + $0x778] sm:$0xf0]  ;;  %v4725_v29 = vadd.f32 %v4724_v13, %v4712_v12 }
 0x38b   :  { %v11408_v56 = vld [vmem:[#allocation5 + $0x95c] sm:$0xf]  ;;  %v8356_v60 = vor.u32 %v11344_v50, %v8353_v53 }
 0x38c   :  { %v8609_v5 = vld [vmem:[#allocation5 + $0x978] sm:$0xf0]  ;;  %4963 = vmatpush.bf16.msra.mxu0 %v8132_v54  ;;  %4989 = vmatpush.bf16.msra.mxu2 %v8644_v39  ;;  %v4738_v54 = vadd.f32 %v4737_v33, %v4725_v29 }
 0x38d   :  { %v11472_v57 = vld [vmem:[#allocation5 + $0xb5c] sm:$0xf]  ;;  %v8612_v43 = vor.u32 %v11408_v56, %v8609_v5 }
 0x38e   :  { %v8865_v58 = vld [vmem:[#allocation5 + $0xb78] sm:$0xf0]  ;;  %4976 = vmatpush.bf16.msra.mxu1 %v8388_v46  ;;  %5002 = vmatpush.bf16.msra.mxu3 %v8900_v52  ;;  %v4750_v46 = vpop.f32.mrf.mxu3  ;;  %v4713_v52 = vpop.f32.mrf.mxu0 }
 0x38f   :  { %v11272_v61 = vld [vmem:[#allocation5 + $0x51c] sm:$0xf]  ;;  %v8868_v0 = vor.u32 %v11472_v57, %v8865_v58  ;;  %v12480_v50 = vadd.f32 %v4750_v46, %v4738_v54 }
 0x390   :  { %v8065_v10 = vld [vmem:[#allocation5 + $0x538] sm:$0xf0]  ;;  %4964 = vmatpush.bf16.msra.mxu0 %v8100_v59  ;;  %4990 = vmatpush.bf16.msra.mxu2 %v8612_v43  ;;  %v4726_v59 = vpop.f32.mrf.mxu1 }
 0x391   :  { %v11336_v63 = vld [vmem:[#allocation5 + $0x71c] sm:$0xf]  ;;  %v8068_v19 = vor.u32 %v11272_v61, %v8065_v10 }
 0x392   :  { %v8321_v1 = vld [vmem:[#allocation5 + $0x738] sm:$0xf0]  ;;  %4977 = vmatpush.bf16.msra.mxu1 %v8356_v60  ;;  %5003 = vmatpush.bf16.msra.mxu3 %v8868_v0 }
 0x393   :  { %v11400_v15 = vld [vmem:[#allocation5 + $0x91c] sm:$0xf]  ;;  %v8324_v22 = vor.u32 %v11336_v63, %v8321_v1 }
 0x394   :  { %v8577_v2 = vld [vmem:[#allocation5 + $0x938] sm:$0xf0]  ;;  %4965 = vmatpush.bf16.msra.mxu0 %v8068_v19 }
 0x395   :  { %v11464_v3 = vld [vmem:[#allocation5 + $0xb1c] sm:$0xf]  ;;  %v8580_v40 = vor.u32 %v11400_v15, %v8577_v2 }
 0x396   :  { %v8833_v7 = vld [vmem:[#allocation5 + $0xb38] sm:$0xf0]  ;;  %4978 = vmatpush.bf16.msra.mxu1 %v8324_v22  ;;  %v4752_v13 = vpop.f32.mrf.mxu3 }
 0x397   :  { %v11264_v8 = vld [vmem:[#allocation5 + $0x4dc] sm:$0xf]  ;;  %v8836_v14 = vor.u32 %v11464_v3, %v8833_v7  ;;  %4991 = vmatpush.bf16.msra.mxu2 %v8580_v40  ;;  %v4739_v40 = vpop.f32.mrf.mxu2 }
 0x398   :  { %v8033_v11 = vld [vmem:[#allocation5 + $0x4f8] sm:$0xf0] }
 0x399   :  { %v11328_v23 = vld [vmem:[#allocation5 + $0x6dc] sm:$0xf]  ;;  %v8036_v30 = vor.u32 %v11264_v8, %v8033_v11  ;;  %5004 = vmatpush.bf16.msra.mxu3 %v8836_v14 }
 0x39a   :  { %v8289_v17 = vld [vmem:[#allocation5 + $0x6f8] sm:$0xf0] }
 0x39b   :  { %v11392_v25 = vld [vmem:[#allocation5 + $0x8dc] sm:$0xf]  ;;  %v8292_v31 = vor.u32 %v11328_v23, %v8289_v17  ;;  %4966 = vmatpush.bf16.msra.mxu0 %v8036_v30 }
 0x39c   :  { %v8545_v24 = vld [vmem:[#allocation5 + $0x8f8] sm:$0xf0] }
 0x39d   :  { %v11456_v27 = vld [vmem:[#allocation5 + $0xadc] sm:$0xf]  ;;  %v8548_v32 = vor.u32 %v11392_v25, %v8545_v24  ;;  %4979 = vmatpush.bf16.msra.mxu1 %v8292_v31 }
 0x39e   :  { %v8801_v28 = vld [vmem:[#allocation5 + $0xaf8] sm:$0xf0] }
 0x39f   :  { %v11256_v34 = vld [vmem:[#allocation5 + $0x49c] sm:$0xf]  ;;  %v8804_v48 = vor.u32 %v11456_v27, %v8801_v28  ;;  %4992 = vmatpush.bf16.msra.mxu2 %v8548_v32 }
 0x3a0   :  { %v8001_v35 = vld [vmem:[#allocation5 + $0x4b8] sm:$0xf0] }
 0x3a1   :  { %v11320_v36 = vld [vmem:[#allocation5 + $0x69c] sm:$0xf]  ;;  %v8004_v49 = vor.u32 %v11256_v34, %v8001_v35  ;;  %5005 = vmatpush.bf16.msra.mxu3 %v8804_v48 }
 0x3a2   :  { %v8257_v37 = vld [vmem:[#allocation5 + $0x6b8] sm:$0xf0] }
 0x3a3   :  { %v11384_v45 = vld [vmem:[#allocation5 + $0x89c] sm:$0xf]  ;;  %v8260_v53 = vor.u32 %v11320_v36, %v8257_v37  ;;  %4967 = vmatpush.bf16.msra.mxu0 %v8004_v49 }
 0x3a4   :  { %v8513_v55 = vld [vmem:[#allocation5 + $0x8b8] sm:$0xf0] }
 0x3a5   :  { %v11448_v39 = vld [vmem:[#allocation5 + $0xa9c] sm:$0xf]  ;;  %v8516_v56 = vor.u32 %v11384_v45, %v8513_v55  ;;  %4980 = vmatpush.bf16.msra.mxu1 %v8260_v53 }
 0x3a6   :  { %v8769_v47 = vld [vmem:[#allocation5 + $0xab8] sm:$0xf0] }
 0x3a7   :  { %v11248_v5 = vld [vmem:[#allocation5 + $0x45c] sm:$0xf]  ;;  %v8772_v60 = vor.u32 %v11448_v39, %v8769_v47  ;;  %4993 = vmatpush.bf16.msra.mxu2 %v8516_v56 }
 0x3a8   :  { %v7969_v57 = vld [vmem:[#allocation5 + $0x478] sm:$0xf0] }
 0x3a9   :  { %v11312_v58 = vld [vmem:[#allocation5 + $0x65c] sm:$0xf]  ;;  %v7972_v1 = vor.u32 %v11248_v5, %v7969_v57  ;;  %5006 = vmatpush.bf16.msra.mxu3 %v8772_v60 }
 0x3aa   :  { %v8225_v43 = vld [vmem:[#allocation5 + $0x678] sm:$0xf0] }
 0x3ab   :  { %v11376_v61 = vld [vmem:[#allocation5 + $0x85c] sm:$0xf]  ;;  %v8228_v3 = vor.u32 %v11312_v58, %v8225_v43  ;;  %4968 = vmatpush.bf16.msra.mxu0 %v7972_v1 }
 0x3ac   :  { %v8481_v10 = vld [vmem:[#allocation5 + $0x878] sm:$0xf0] }
 0x3ad   :  { %v11440_v63 = vld [vmem:[#allocation5 + $0xa5c] sm:$0xf]  ;;  %v8484_v7 = vor.u32 %v11376_v61, %v8481_v10  ;;  %4981 = vmatpush.bf16.msra.mxu1 %v8228_v3 }
 0x3ae   :  { %v8737_v0 = vld [vmem:[#allocation5 + $0xa78] sm:$0xf0] }
 0x3af   :  { %v11240_v15 = vld [vmem:[#allocation5 + $0x41c] sm:$0xf]  ;;  %v8740_v8 = vor.u32 %v11440_v63, %v8737_v0  ;;  %4994 = vmatpush.bf16.msra.mxu2 %v8484_v7 }
 0x3b0   :  { %v7937_v2 = vld [vmem:[#allocation5 + $0x438] sm:$0xf0] }
 0x3b1   :  { %v11304_v19 = vld [vmem:[#allocation5 + $0x61c] sm:$0xf]  ;;  %v7940_v24 = vor.u32 %v11240_v15, %v7937_v2  ;;  %5007 = vmatpush.bf16.msra.mxu3 %v8740_v8  ;;  %v4763_v8 = vpop.f32.mrf.mxu0 }
 0x3b2   :  { %v8193_v4 = vld [vmem:[#allocation5 + $0x638] sm:$0xf0] }
 0x3b3   :  { %v11368_v22 = vld [vmem:[#allocation5 + $0x81c] sm:$0xf]  ;;  %v8196_v30 = vor.u32 %v11304_v19, %v8193_v4  ;;  %4969 = vmatpush.bf16.msra.mxu0 %v7940_v24 }
 0x3b4   :  { %v8449_v11 = vld [vmem:[#allocation5 + $0x838] sm:$0xf0] }
 0x3b5   :  { %v11432_v23 = vld [vmem:[#allocation5 + $0xa1c] sm:$0xf]  ;;  %v8452_v31 = vor.u32 %v11368_v22, %v8449_v11  ;;  %4982 = vmatpush.bf16.msra.mxu1 %v8196_v30 }
 0x3b6   :  { %v8705_v12 = vld [vmem:[#allocation5 + $0xa38] sm:$0xf0]  ;;  %4970 = vmatmul.bf16.vlgmr.msra.gmra.mxu0 %v12333_v18 }
 0x3b7   :  { %v11552_v14 = vld [vmem:[#allocation5 + $0xddc] sm:$0xf]  ;;  %v8708_v35 = vor.u32 %v11432_v23, %v8705_v12  ;;  %4995 = vmatpush.bf16.msra.mxu2 %v8452_v31 }
 0x3b8   :  { %v9185_v17 = vld [vmem:[#allocation5 + $0xdf8] sm:$0xf0]  ;;  %4983 = vmatmul.bf16.vlgmr.msra.gmra.mxu1 %v12337_v20  ;;  %v4776_v20 = vpop.f32.mrf.mxu1 }
 0x3b9   :  { %v11616_v25 = vld [vmem:[#allocation5 + $0xfdc] sm:$0xf]  ;;  %v9188_v36 = vor.u32 %v11552_v14, %v9185_v17  ;;  %5008 = vmatpush.bf16.msra.mxu3 %v8708_v35 }
 0x3ba   :  { %v9441_v27 = vld [vmem:[#allocation5 + $0xff8] sm:$0xf0]  ;;  %4996 = vmatmul.bf16.vlgmr.msra.gmra.mxu2 %v12347_v41 }
 0x3bb   :  { %v11680_v28 = vld [vmem:[#allocation5 + $0x11dc] sm:$0xf]  ;;  %v9444_v33 = vor.u32 %v11616_v25, %v9441_v27  ;;  %5014 = vmatpush.bf16.msrb.mxu0 %v9188_v36 }
 0x3bc   :  { %v9697_v29 = vld [vmem:[#allocation5 + $0x11f8] sm:$0xf0]  ;;  %5009 = vmatmul.bf16.vlgmr.msra.gmra.mxu3 %v12351_v44  ;;  %v4764_v44 = vadd.f32 %v4763_v8, %v12480_v50 }
 0x3bd   :  { %v11744_v32 = vld [vmem:[#allocation5 + $0x13dc] sm:$0xf]  ;;  %v9700_v48 = vor.u32 %v11680_v28, %v9697_v29  ;;  %5027 = vmatpush.bf16.msrb.mxu1 %v9444_v33 }
 0x3be   :  { %v9953_v34 = vld [vmem:[#allocation5 + $0x13f8] sm:$0xf0]  ;;  %v4777_v27 = vadd.f32 %v4776_v20, %v4764_v44 }
 0x3bf   :  { %v11544_v37 = vld [vmem:[#allocation5 + $0xd9c] sm:$0xf]  ;;  %v9956_v54 = vor.u32 %v11744_v32, %v9953_v34  ;;  %5040 = vmatpush.bf16.msrb.mxu2 %v9700_v48 }
 0x3c0   :  { %v9153_v45 = vld [vmem:[#allocation5 + $0xdb8] sm:$0xf0] }
 0x3c1   :  { %v11608_v55 = vld [vmem:[#allocation5 + $0xf9c] sm:$0xf]  ;;  %v9156_v53 = vor.u32 %v11544_v37, %v9153_v45  ;;  %5053 = vmatpush.bf16.msrb.mxu3 %v9956_v54  ;;  %v4789_v45 = vpop.f32.mrf.mxu2 }
 0x3c2   :  { %v9409_v46 = vld [vmem:[#allocation5 + $0xfb8] sm:$0xf0] }
 0x3c3   :  { %v11672_v39 = vld [vmem:[#allocation5 + $0x119c] sm:$0xf]  ;;  %v9412_v56 = vor.u32 %v11608_v55, %v9409_v46  ;;  %5015 = vmatpush.bf16.msrb.mxu0 %v9156_v53  ;;  %v4765_v53 = vpop.f32.mrf.mxu0 }
 0x3c4   :  { %v9665_v47 = vld [vmem:[#allocation5 + $0x11b8] sm:$0xf0] }
 0x3c5   :  { %v11736_v49 = vld [vmem:[#allocation5 + $0x139c] sm:$0xf]  ;;  %v9668_v5 = vor.u32 %v11672_v39, %v9665_v47  ;;  %5028 = vmatpush.bf16.msrb.mxu1 %v9412_v56  ;;  %v4790_v39 = vadd.f32 %v4789_v45, %v4777_v27  ;;  %v4802_v47 = vpop.f32.mrf.mxu3  ;;  %v10327_v27 = vld [vmem:[#allocation8 + $0x2e0] sm:$0xf] }
 0x3c6   :  { %v9921_v52 = vld [vmem:[#allocation5 + $0x13b8] sm:$0xf0] }
 0x3c7   :  { %v11536_v57 = vld [vmem:[#allocation5 + $0xd5c] sm:$0xf]  ;;  %v9924_v60 = vor.u32 %v11736_v49, %v9921_v52  ;;  %5041 = vmatpush.bf16.msrb.mxu2 %v9668_v5  ;;  %v4778_v5 = vpop.f32.mrf.mxu1 }
 0x3c8   :  { %v9121_v58 = vld [vmem:[#allocation5 + $0xd78] sm:$0xf0]  ;;  %v11771_v5 = vld [vmem:[#allocation8 + $0xac] sm:$0xf0] }
 0x3c9   :  { %v11600_v59 = vld [vmem:[#allocation5 + $0xf5c] sm:$0xf]  ;;  %v9124_v1 = vor.u32 %v11536_v57, %v9121_v58  ;;  %5054 = vmatpush.bf16.msrb.mxu3 %v9924_v60  ;;  %v12487_v57 = vadd.f32 %v4802_v47, %v4790_v39  ;;  %v4791_v20 = vpop.f32.mrf.mxu2  ;;  %v10439_v39 = vld [vmem:[#allocation8 + $0x3c0] sm:$0xf]  ;;  %v11871_v47 = vld [vmem:[#allocation8 + $0x3cc] sm:$0xf0] }
 0x3ca   :  { %v9377_v43 = vld [vmem:[#allocation5 + $0xf78] sm:$0xf0] }
 0x3cb   :  { %v11664_v61 = vld [vmem:[#allocation5 + $0x115c] sm:$0xf]  ;;  %v9380_v15 = vor.u32 %v11600_v59, %v9377_v43  ;;  %5016 = vmatpush.bf16.msrb.mxu0 %v9124_v1 }
 0x3cc   :  { %v9633_v10 = vld [vmem:[#allocation5 + $0x1178] sm:$0xf0] }
 0x3cd   :  { %v11728_v63 = vld [vmem:[#allocation5 + $0x135c] sm:$0xf]  ;;  %v9636_v2 = vor.u32 %v11664_v61, %v9633_v10  ;;  %5029 = vmatpush.bf16.msrb.mxu1 %v9380_v15 }
 0x3ce   :  { %v9889_v0 = vld [vmem:[#allocation5 + $0x1378] sm:$0xf0] }
 0x3cf   :  { %v11528_v3 = vld [vmem:[#allocation5 + $0xd1c] sm:$0xf]  ;;  %v9892_v19 = vor.u32 %v11728_v63, %v9889_v0  ;;  %5042 = vmatpush.bf16.msrb.mxu2 %v9636_v2 }
 0x3d0   :  { %v9089_v7 = vld [vmem:[#allocation5 + $0xd38] sm:$0xf0] }
 0x3d1   :  { %v11592_v41 = vld [vmem:[#allocation5 + $0xf1c] sm:$0xf]  ;;  %v9092_v23 = vor.u32 %v11528_v3, %v9089_v7  ;;  %5055 = vmatpush.bf16.msrb.mxu3 %v9892_v19 }
 0x3d2   :  { %v9345_v4 = vld [vmem:[#allocation5 + $0xf38] sm:$0xf0] }
 0x3d3   :  { %v11656_v22 = vld [vmem:[#allocation5 + $0x111c] sm:$0xf]  ;;  %v9348_v12 = vor.u32 %v11592_v41, %v9345_v4  ;;  %5017 = vmatpush.bf16.msrb.mxu0 %v9092_v23 }
 0x3d4   :  { %v9601_v40 = vld [vmem:[#allocation5 + $0x1138] sm:$0xf0] }
 0x3d5   :  { %v11720_v18 = vld [vmem:[#allocation5 + $0x131c] sm:$0xf]  ;;  %v9604_v13 = vor.u32 %v11656_v22, %v9601_v40  ;;  %5030 = vmatpush.bf16.msrb.mxu1 %v9348_v12  ;;  %v10071_v12 = vld [vmem:[#allocation8 + $0xe0] sm:$0xf] }
 0x3d6   :  { %v9857_v11 = vld [vmem:[#allocation5 + $0x1338] sm:$0xf0] }
 0x3d7   :  { %v11520_v14 = vld [vmem:[#allocation5 + $0xcdc] sm:$0xf]  ;;  %v9860_v24 = vor.u32 %v11720_v18, %v9857_v11  ;;  %5043 = vmatpush.bf16.msrb.mxu2 %v9604_v13  ;;  %v11779_v13 = vld [vmem:[#allocation8 + $0xec] sm:$0xf0] }
 0x3d8   :  { %v9057_v17 = vld [vmem:[#allocation5 + $0xcf8] sm:$0xf0] }
 0x3d9   :  { %v11584_v25 = vld [vmem:[#allocation5 + $0xedc] sm:$0xf]  ;;  %v9060_v34 = vor.u32 %v11520_v14, %v9057_v17  ;;  %5056 = vmatpush.bf16.msrb.mxu3 %v9860_v24  ;;  %v10199_v14 = vld [vmem:[#allocation8 + $0x1e0] sm:$0xf]  ;;  %v4804_v17 = vpop.f32.mrf.mxu3  ;;  %v11811_v24 = vld [vmem:[#allocation8 + $0x1ec] sm:$0xf0] }
 0x3da   :  { %v9313_v28 = vld [vmem:[#allocation5 + $0xef8] sm:$0xf0]  ;;  %v10391_v17 = vld [vmem:[#allocation8 + $0x360] sm:$0xf] }
 0x3db   :  { %v11648_v29 = vld [vmem:[#allocation5 + $0x10dc] sm:$0xf]  ;;  %v9316_v50 = vor.u32 %v11584_v25, %v9313_v28  ;;  %5018 = vmatpush.bf16.msrb.mxu0 %v9060_v34  ;;  %v11843_v28 = vld [vmem:[#allocation8 + $0x2ec] sm:$0xf0] }
 0x3dc   :  { %v9569_v30 = vld [vmem:[#allocation5 + $0x10f8] sm:$0xf0] }
 0x3dd   :  { %v11712_v31 = vld [vmem:[#allocation5 + $0x12dc] sm:$0xf]  ;;  %v9572_v35 = vor.u32 %v11648_v29, %v9569_v30  ;;  %5031 = vmatpush.bf16.msrb.mxu1 %v9316_v50  ;;  %v10072_v50 = vor.u32 %v11779_v13, %v10071_v12  ;;  %v11795_v12 = vld [vmem:[#allocation8 + $0x16c] sm:$0xf0]  ;;  %v10263_v13 = vld [vmem:[#allocation8 + $0x260] sm:$0xf] }
 0x3de   :  { %v9825_v32 = vld [vmem:[#allocation5 + $0x12f8] sm:$0xf0] }
 0x3df   :  { %v11512_v36 = vld [vmem:[#allocation5 + $0xc9c] sm:$0xf]  ;;  %v9828_v37 = vor.u32 %v11712_v31, %v9825_v32  ;;  %5044 = vmatpush.bf16.msrb.mxu2 %v9572_v35  ;;  %v10455_v31 = vld [vmem:[#allocation8 + $0x3e0] sm:$0xf]  ;;  %v11875_v32 = vld [vmem:[#allocation8 + $0x3ec] sm:$0xf0]  ;;  %v10200_v35 = vor.u32 %v11811_v24, %v10199_v14 }
 0x3e0   :  { %v9025_v33 = vld [vmem:[#allocation5 + $0xcb8] sm:$0xf0]  ;;  %v10456_v45 = vor.u32 %v11875_v32, %v10455_v31  ;;  %v11827_v14 = vld [vmem:[#allocation8 + $0x26c] sm:$0xf0]  ;;  %v10119_v31 = vld [vmem:[#allocation8 + $0x140] sm:$0xf]  ;;  %v12497_v32 = vpop.f32.mrf.mxu2 }
 0x3e1   :  { %v11576_v48 = vld [vmem:[#allocation5 + $0xe9c] sm:$0xf]  ;;  %v9028_v56 = vor.u32 %v11512_v36, %v9025_v33  ;;  %5057 = vmatpush.bf16.msrb.mxu3 %v9828_v37  ;;  %v10328_v36 = vor.u32 %v11843_v28, %v10327_v27  ;;  %v10055_v33 = vld [vmem:[#allocation8 + $0xc0] sm:$0xf]  ;;  %v10264_v28 = vor.u32 %v11827_v14, %v10263_v13  ;;  %v11971_v13 = vld [vmem:[#allocation8 + $0x6ec] sm:$0xf0] }
 0x3e2   :  { %v9281_v55 = vld [vmem:[#allocation5 + $0xeb8] sm:$0xf0]  ;;  %v10183_v37 = vld [vmem:[#allocation8 + $0x1c0] sm:$0xf] }
 0x3e3   :  { %v11640_v54 = vld [vmem:[#allocation5 + $0x109c] sm:$0xf]  ;;  %v9284_v58 = vor.u32 %v11576_v48, %v9281_v55  ;;  %5019 = vmatpush.bf16.msrb.mxu0 %v9028_v56  ;;  %v11775_v48 = vld [vmem:[#allocation8 + $0xcc] sm:$0xf0]  ;;  %v10039_v56 = vld [vmem:[#allocation8 + $0xa0] sm:$0xf] }
 0x3e4   :  { %v9537_v46 = vld [vmem:[#allocation5 + $0x10b8] sm:$0xf0]  ;;  %v11807_v55 = vld [vmem:[#allocation8 + $0x1cc] sm:$0xf0] }
 0x3e5   :  { %v11704_v49 = vld [vmem:[#allocation5 + $0x129c] sm:$0xf]  ;;  %v9540_v59 = vor.u32 %v11640_v54, %v9537_v46  ;;  %5032 = vmatpush.bf16.msrb.mxu1 %v9284_v58  ;;  %v10311_v54 = vld [vmem:[#allocation8 + $0x2c0] sm:$0xf]  ;;  %v11839_v46 = vld [vmem:[#allocation8 + $0x2cc] sm:$0xf0] }
 0x3e6   :  { %v9793_v52 = vld [vmem:[#allocation5 + $0x12b8] sm:$0xf0]  ;;  %v10312_v53 = vor.u32 %v11839_v46, %v10311_v54  ;;  %v10167_v58 = vld [vmem:[#allocation8 + $0x1a0] sm:$0xf] }
 0x3e7   :  { %v11504_v60 = vld [vmem:[#allocation5 + $0xc5c] sm:$0xf]  ;;  %v9796_v10 = vor.u32 %v11704_v49, %v9793_v52  ;;  %5045 = vmatpush.bf16.msrb.mxu2 %v9540_v59  ;;  %v10056_v49 = vor.u32 %v11775_v48, %v10055_v33  ;;  %v10184_v52 = vor.u32 %v11807_v55, %v10183_v37  ;;  %v10440_v59 = vor.u32 %v11871_v47, %v10439_v39  ;;  %v12499_v33 = vpop.f32.mrf.mxu3  ;;  %v10375_v48 = vld [vmem:[#allocation8 + $0x340] sm:$0xf]  ;;  %v11855_v37 = vld [vmem:[#allocation8 + $0x34c] sm:$0xf0] }
 0x3e8   :  { %v8993_v43 = vld [vmem:[#allocation5 + $0xc78] sm:$0xf0]  ;;  %v5067_v55 = vmul.f32 0.01, %v12407_v16 }
 0x3e9   :  { %v11568_v61 = vld [vmem:[#allocation5 + $0xe5c] sm:$0xf]  ;;  %v8996_v3 = vor.u32 %v11504_v60, %v8993_v43  ;;  %5058 = vmatpush.bf16.msrb.mxu3 %v9796_v10  ;;  %v11803_v60 = vld [vmem:[#allocation8 + $0x1ac] sm:$0xf0]  ;;  %v10295_v43 = vld [vmem:[#allocation8 + $0x2a0] sm:$0xf] }
 0x3ea   :  { %v9249_v63 = vld [vmem:[#allocation5 + $0xe78] sm:$0xf0]  ;;  %v10423_v10 = vld [vmem:[#allocation8 + $0x3a0] sm:$0xf] }
 0x3eb   :  { %v11632_v0 = vld [vmem:[#allocation5 + $0x105c] sm:$0xf]  ;;  %v9252_v19 = vor.u32 %v11568_v61, %v9249_v63  ;;  %5020 = vmatpush.bf16.msrb.mxu0 %v8996_v3  ;;  %v11835_v61 = vld [vmem:[#allocation8 + $0x2ac] sm:$0xf0]  ;;  %v10151_v3 = vld [vmem:[#allocation8 + $0x180] sm:$0xf] }
 0x3ec   :  { %v9505_v1 = vld [vmem:[#allocation5 + $0x1078] sm:$0xf0]  ;;  %v11867_v63 = vld [vmem:[#allocation8 + $0x3ac] sm:$0xf0] }
 0x3ed   :  { %v11696_v15 = vld [vmem:[#allocation5 + $0x125c] sm:$0xf]  ;;  %v9508_v4 = vor.u32 %v11632_v0, %v9505_v1  ;;  %5033 = vmatpush.bf16.msrb.mxu1 %v9252_v19  ;;  %v10040_v0 = vor.u32 %v11771_v5, %v10039_v56  ;;  %v10168_v1 = vor.u32 %v11803_v60, %v10167_v58  ;;  %v10279_v19 = vld [vmem:[#allocation8 + $0x280] sm:$0xf]  ;;  %v10376_v5 = vor.u32 %v11855_v37, %v10375_v48  ;;  %v11787_v58 = vld [vmem:[#allocation8 + $0x12c] sm:$0xf0] }
 0x3ee   :  { %v9761_v2 = vld [vmem:[#allocation5 + $0x1278] sm:$0xf0]  ;;  %v11819_v60 = vld [vmem:[#allocation8 + $0x22c] sm:$0xf0]  ;;  %v10823_v48 = vld [vmem:[#allocation8 + $0x6c0] sm:$0xf] }
 0x3ef   :  { %v11496_v7 = vld [vmem:[#allocation5 + $0xc1c] sm:$0xf]  ;;  %v9764_v18 = vor.u32 %v11696_v15, %v9761_v2  ;;  %5046 = vmatpush.bf16.msrb.mxu2 %v9508_v4  ;;  %v10296_v15 = vor.u32 %v11835_v61, %v10295_v43  ;;  %v10023_v2 = vld [vmem:[#allocation8 + $0x80] sm:$0xf]  ;;  %v5068_v43 = vmul.f32 0.01, %v12430_v9 }
 0x3f0   :  { %v8961_v41 = vld [vmem:[#allocation5 + $0xc38] sm:$0xf0]  ;;  %v10407_v4 = vld [vmem:[#allocation8 + $0x380] sm:$0xf]  ;;  %v11967_v37 = vld [vmem:[#allocation8 + $0x6cc] sm:$0xf0] }
 0x3f1   :  { %v11560_v22 = vld [vmem:[#allocation5 + $0xe1c] sm:$0xf]  ;;  %v8964_v25 = vor.u32 %v11496_v7, %v8961_v41  ;;  %5059 = vmatpush.bf16.msrb.mxu3 %v9764_v18  ;;  %v10424_v7 = vor.u32 %v11867_v63, %v10423_v10  ;;  %v11799_v41 = vld [vmem:[#allocation8 + $0x18c] sm:$0xf0]  ;;  %v10007_v18 = vld [vmem:[#allocation8 + $0x60] sm:$0xf] }
 0x3f2   :  { %v9217_v40 = vld [vmem:[#allocation5 + $0xe38] sm:$0xf0]  ;;  %v10359_v61 = vld [vmem:[#allocation8 + $0x320] sm:$0xf]  ;;  %v11851_v10 = vld [vmem:[#allocation8 + $0x32c] sm:$0xf0] }
 0x3f3   :  { %v11624_v8 = vld [vmem:[#allocation5 + $0x101c] sm:$0xf]  ;;  %v9220_v29 = vor.u32 %v11560_v22, %v9217_v40  ;;  %5021 = vmatpush.bf16.msrb.mxu0 %v8964_v25  ;;  %v12493_v40 = vpop.f32.mrf.mxu0  ;;  %v11859_v25 = vld [vmem:[#allocation8 + $0x36c] sm:$0xf0]  ;;  %v5069_v63 = vmul.f32 0.01, %v12447_v62 }
 0x3f4   :  { %v9473_v11 = vld [vmem:[#allocation5 + $0x1038] sm:$0xf0] }
 0x3f5   :  { %v11688_v44 = vld [vmem:[#allocation5 + $0x121c] sm:$0xf]  ;;  %v9476_v30 = vor.u32 %v11624_v8, %v9473_v11  ;;  %5034 = vmatpush.bf16.msrb.mxu1 %v9220_v29  ;;  %v11763_v11 = vld [vmem:[#allocation8 + $0x6c] sm:$0xf0]  ;;  %v9991_v29 = vld [vmem:[#allocation8 + $0x40] sm:$0xf] }
 0x3f6   :  { %v9729_v23 = vld [vmem:[#allocation5 + $0x1238] sm:$0xf0]  ;;  %5022 = vmatmul.bf16.vlgmr.msrb.gmra.mxu0 %v12345_v38  ;;  %v11767_v38 = vld [vmem:[#allocation8 + $0x8c] sm:$0xf0]  ;;  %v10008_v24 = vor.u32 %v11763_v11, %v10007_v18  ;;  %v10711_v11 = vld [vmem:[#allocation8 + $0x5e0] sm:$0xf] }
 0x3f7   :  { %v9732_v34 = vor.u32 %v11688_v44, %v9729_v23  ;;  %5047 = vmatpush.bf16.msrb.mxu2 %v9476_v30  ;;  %6636 = vmatpush.bf16.msra.mxu0 %v10072_v50  ;;  %v10024_v22 = vor.u32 %v11767_v38, %v10023_v2  ;;  %v10135_v44 = vld [vmem:[#allocation8 + $0x160] sm:$0xf]  ;;  %v12495_v23 = vpop.f32.mrf.mxu1  ;;  %v11759_v30 = vld [vmem:[#allocation8 + $0x4c] sm:$0xf0] }
 0x3f8   :  { %5035 = vmatmul.bf16.vlgmr.msrb.gmra.mxu1 %v12349_v42  ;;  %v11831_v42 = vld [vmem:[#allocation8 + $0x28c] sm:$0xf0]  ;;  %v10136_v27 = vor.u32 %v11795_v12, %v10135_v44  ;;  %v9992_v54 = vor.u32 %v11759_v30, %v9991_v29  ;;  %v10839_v12 = vld [vmem:[#allocation8 + $0x6e0] sm:$0xf]  ;;  %v5077_v30 = vmax.f32 %v12447_v62, %v5069_v63 }
 0x3f9   :  { %5060 = vmatpush.bf16.msrb.mxu3 %v9732_v34  ;;  %6649 = vmatpush.bf16.msra.mxu1 %v10200_v35  ;;  %v10280_v8 = vor.u32 %v11831_v42, %v10279_v19  ;;  %v10392_v34 = vor.u32 %v11859_v25, %v10391_v17  ;;  %v11791_v50 = vld [vmem:[#allocation8 + $0x14c] sm:$0xf0]  ;;  %v10247_v35 = vld [vmem:[#allocation8 + $0x240] sm:$0xf]  ;;  %v4843_v19 = vpop.f32.mrf.mxu2  ;;  %v10360_v42 = vor.u32 %v11851_v10, %v10359_v61 }
 0x3fa   :  { %5048 = vmatmul.bf16.vlgmr.msrb.gmra.mxu2 %v12357_v21  ;;  %v11863_v21 = vld [vmem:[#allocation8 + $0x38c] sm:$0xf0]  ;;  %v10120_v39 = vor.u32 %v11791_v50, %v10119_v31  ;;  %v10567_v50 = vld [vmem:[#allocation8 + $0x4c0] sm:$0xf] }
 0x3fb   :  { %6662 = vmatpush.bf16.msra.mxu2 %v10328_v36  ;;  %6637 = vmatpush.bf16.msra.mxu0 %v10056_v49  ;;  %v10408_v20 = vor.u32 %v11863_v21, %v10407_v4  ;;  %v11823_v36 = vld [vmem:[#allocation8 + $0x24c] sm:$0xf0]  ;;  %v4817_v46 = vpop.f32.mrf.mxu0  ;;  %v9975_v49 = vld [vmem:[#allocation8 + $0x20] sm:$0xf] }
 0x3fc   :  { %5061 = vmatmul.bf16.vlgmr.msrb.gmra.mxu3 %v12359_v26  ;;  %v10152_v26 = vor.u32 %v11799_v41, %v10151_v3  ;;  %v10248_v47 = vor.u32 %v11823_v36, %v10247_v35  ;;  %v10087_v3 = vld [vmem:[#allocation8 + $0x100] sm:$0xf]  ;;  %v11815_v4 = vld [vmem:[#allocation8 + $0x20c] sm:$0xf0]  ;;  %v10824_v46 = vor.u32 %v11967_v37, %v10823_v48 }
 0x3fd   :  { %6675 = vmatpush.bf16.msra.mxu3 %v10456_v45  ;;  %6650 = vmatpush.bf16.msra.mxu1 %v10184_v52  ;;  %v5066_v45 = vmul.f32 0.01, %v12390_v51  ;;  %v11755_v52 = vld [vmem:[#allocation8 + $0x2c] sm:$0xf0]  ;;  %v10215_v41 = vld [vmem:[#allocation8 + $0x200] sm:$0xf] }
 0x3fe   :  { %v10343_v21 = vld [vmem:[#allocation8 + $0x300] sm:$0xf]  ;;  %v11907_v18 = vld [vmem:[#allocation8 + $0x4ec] sm:$0xf0]  ;;  %v10216_v25 = vor.u32 %v11815_v4, %v10215_v41 }
 0x3ff   :  { %6663 = vmatpush.bf16.msra.mxu2 %v10312_v53  ;;  %6638 = vmatpush.bf16.msra.mxu0 %v10040_v0  ;;  %v10103_v53 = vld [vmem:[#allocation8 + $0x120] sm:$0xf]  ;;  %v4830_v56 = vpop.f32.mrf.mxu1  ;;  %v9976_v0 = vor.u32 %v11755_v52, %v9975_v49  ;;  %v5074_v14 = vmax.f32 %v12390_v51, %v5066_v45  ;;  %v11903_v35 = vld [vmem:[#allocation8 + $0x4cc] sm:$0xf0] }
 0x400   :  { %v10104_v2 = vor.u32 %v11787_v58, %v10103_v53  ;;  %v10695_v36 = vld [vmem:[#allocation8 + $0x5c0] sm:$0xf]  ;;  %v11935_v51 = vld [vmem:[#allocation8 + $0x5cc] sm:$0xf0]  ;;  %v10568_v62 = vor.u32 %v11903_v35, %v10567_v50 }
 0x401   :  { %6676 = vmatpush.bf16.msra.mxu3 %v10440_v59  ;;  %6651 = vmatpush.bf16.msra.mxu1 %v10168_v1  ;;  %v10231_v59 = vld [vmem:[#allocation8 + $0x220] sm:$0xf]  ;;  %v12509_v45 = vpack.c.bf16 %v5074_v14, %v5074_v14  ;;  %v11931_v52 = vld [vmem:[#allocation8 + $0x5ac] sm:$0xf0]  ;;  %v12530_v14 = vpop.f32.mrf.mxu2 }
 0x402   :  { %v9959_v1 = vld [vmem:[#allocation8] sm:$0xf]  ;;  %v10232_v38 = vor.u32 %v11819_v60, %v10231_v59  ;;  %v11963_v56 = vld [vmem:[#allocation8 + $0x6ac] sm:$0xf0] }
 0x403   :  { %6664 = vmatpush.bf16.msra.mxu2 %v10296_v15  ;;  %6639 = vmatpush.bf16.msra.mxu0 %v10024_v22  ;;  %v11751_v15 = vld [vmem:[#allocation8 + $0xc] sm:$0xf0]  ;;  %v10679_v49 = vld [vmem:[#allocation8 + $0x5a0] sm:$0xf] }
 0x404   :  { %v11847_v22 = vld [vmem:[#allocation8 + $0x30c] sm:$0xf0]  ;;  %v9960_v44 = vor.u32 %v11751_v15, %v9959_v1  ;;  %v10807_v53 = vld [vmem:[#allocation8 + $0x6a0] sm:$0xf]  ;;  %v10680_v60 = vor.u32 %v11931_v52, %v10679_v49 }
 0x405   :  { %6677 = vmatpush.bf16.msra.mxu3 %v10424_v7  ;;  %6652 = vmatpush.bf16.msra.mxu1 %v10152_v26  ;;  %v11783_v7 = vld [vmem:[#allocation8 + $0x10c] sm:$0xf0]  ;;  %v4856_v26 = vpop.f32.mrf.mxu3  ;;  %v10535_v61 = vld [vmem:[#allocation8 + $0x480] sm:$0xf] }
 0x406   :  { %v10088_v17 = vor.u32 %v11783_v7, %v10087_v3  ;;  %v11895_v10 = vld [vmem:[#allocation8 + $0x48c] sm:$0xf0]  ;;  %v10663_v63 = vld [vmem:[#allocation8 + $0x580] sm:$0xf]  ;;  %v12525_v3 = vpop.f32.mrf.mxu0 }
 0x407   :  { %6665 = vmatpush.bf16.msra.mxu2 %v10280_v8  ;;  %6640 = vmatpush.bf16.msra.mxu0 %v10008_v24  ;;  %v10583_v8 = vld [vmem:[#allocation8 + $0x4e0] sm:$0xf]  ;;  %v5075_v24 = vmax.f32 %v12407_v16, %v5067_v55  ;;  %v12515_v55 = vpack.c.bf16 %v5077_v30, %v5077_v30  ;;  %v11959_v15 = vld [vmem:[#allocation8 + $0x68c] sm:$0xf0] }
 0x408   :  { %v10584_v29 = vor.u32 %v11907_v18, %v10583_v8  ;;  %v10791_v1 = vld [vmem:[#allocation8 + $0x680] sm:$0xf]  ;;  %v11955_v8 = vld [vmem:[#allocation8 + $0x66c] sm:$0xf0] }
 0x409   :  { %6678 = vmatpush.bf16.msra.mxu3 %v10408_v20  ;;  %6653 = vmatpush.bf16.msra.mxu1 %v10136_v27  ;;  %v11939_v20 = vld [vmem:[#allocation8 + $0x5ec] sm:$0xf0]  ;;  %v5076_v27 = vmax.f32 %v12430_v9, %v5068_v43  ;;  %v12511_v16 = vpack.c.bf16 %v5075_v24, %v5075_v24  ;;  %v10808_v43 = vor.u32 %v11963_v56, %v10807_v53  ;;  %v10519_v19 = vld [vmem:[#allocation8 + $0x460] sm:$0xf] }
 0x40a   :  { %v10712_v31 = vor.u32 %v11939_v20, %v10711_v11  ;;  %v10792_v41 = vor.u32 %v11959_v15, %v10791_v1  ;;  %v10647_v4 = vld [vmem:[#allocation8 + $0x560] sm:$0xf]  ;;  %v11951_v24 = vld [vmem:[#allocation8 + $0x64c] sm:$0xf0] }
 0x40b   :  { %6666 = vmatpush.bf16.msra.mxu2 %v10264_v28  ;;  %6641 = vmatpush.bf16.msra.mxu0 %v9992_v54  ;;  %v10344_v28 = vor.u32 %v11847_v22, %v10343_v21  ;;  %v12513_v9 = vpack.c.bf16 %v5076_v27, %v5076_v27  ;;  %v10696_v54 = vor.u32 %v11935_v51, %v10695_v36  ;;  %v12527_v21 = vpop.f32.mrf.mxu1  ;;  %v11923_v22 = vld [vmem:[#allocation8 + $0x56c] sm:$0xf0]  ;;  %v10775_v26 = vld [vmem:[#allocation8 + $0x660] sm:$0xf] }
 0x40c   :  { %v10648_v11 = vor.u32 %v11923_v22, %v10647_v4  ;;  %v10503_v20 = vld [vmem:[#allocation8 + $0x440] sm:$0xf]  ;;  %v11883_v50 = vld [vmem:[#allocation8 + $0x42c] sm:$0xf0] }
 0x40d   :  { %6679 = vmatpush.bf16.msra.mxu3 %v10392_v34  ;;  %6654 = vmatpush.bf16.msra.mxu1 %v10120_v39  ;;  %v10840_v34 = vor.u32 %v11971_v13, %v10839_v12  ;;  %v10551_v39 = vld [vmem:[#allocation8 + $0x4a0] sm:$0xf]  ;;  %v11887_v12 = vld [vmem:[#allocation8 + $0x44c] sm:$0xf0]  ;;  %v12532_v27 = vpop.f32.mrf.mxu3 }
 0x40e   :  { %v10631_v13 = vld [vmem:[#allocation8 + $0x540] sm:$0xf]  ;;  %v11915_v51 = vld [vmem:[#allocation8 + $0x52c] sm:$0xf0] }
 0x40f   :  { %6667 = vmatpush.bf16.msra.mxu2 %v10248_v47  ;;  %6642 = vmatpush.bf16.msra.mxu0 %v9976_v0  ;;  %v11899_v47 = vld [vmem:[#allocation8 + $0x4ac] sm:$0xf0]  ;;  %v10615_v35 = vld [vmem:[#allocation8 + $0x520] sm:$0xf] }
 0x410   :  { %v10552_v59 = vor.u32 %v11899_v47, %v10551_v39  ;;  %v11927_v0 = vld [vmem:[#allocation8 + $0x58c] sm:$0xf0]  ;;  %v10743_v48 = vld [vmem:[#allocation8 + $0x620] sm:$0xf]  ;;  %v10616_v52 = vor.u32 %v11915_v51, %v10615_v35 }
 0x411   :  { %6680 = vmatpush.bf16.msra.mxu3 %v10376_v5  ;;  %6655 = vmatpush.bf16.msra.mxu1 %v10104_v2  ;;  %v12521_v5 = vld [vmem:[#allocation7] sm:$0xff]  ;;  %v10664_v7 = vor.u32 %v11927_v0, %v10663_v63  ;;  %v11947_v37 = vld [vmem:[#allocation8 + $0x62c] sm:$0xf0]  ;;  %v10471_v39 = vld [vmem:[#allocation8 + $0x400] sm:$0xf] }
 0x412   :  { %v781_v58 = vperm.slane %v12521_v5, 6  ;;  %v11879_v47 = vld [vmem:[#allocation8 + $0x40c] sm:$0xf0]  ;;  %v10599_v49 = vld [vmem:[#allocation8 + $0x500] sm:$0xf]  ;;  %v10744_v53 = vor.u32 %v11947_v37, %v10743_v48 }
 0x413   :  { %6668 = vmatpush.bf16.msra.mxu2 %v10232_v38  ;;  %6643 = vmatpush.bf16.msra.mxu0 %v9960_v44  ;;  %v10536_v38 = vor.u32 %v11895_v10, %v10535_v61  ;;  %v10776_v44 = vor.u32 %v11955_v8, %v10775_v26  ;;  %v4882_v36 = vpop.f32.mrf.mxu1  ;;  %v11911_v56 = vld [vmem:[#allocation8 + $0x50c] sm:$0xf0]  ;;  %v10073_v61 = vld [vmem:[#allocation8 + $0xf0] sm:$0xf0]  ;;  %v11809_v10 = vld [vmem:[#allocation8 + $0x1e4] sm:$0xf] }
 0x414   :  { %v4816_v2 = vadd.f32 %v12493_v40, %v781_v58  ;;  %v10727_v58 = vld [vmem:[#allocation8 + $0x600] sm:$0xf]  ;;  %v10201_v0 = vld [vmem:[#allocation8 + $0x1f0] sm:$0xf0]  ;;  %v11995_v48 = vld [vmem:[#allocation8 + $0x7ac] sm:$0xf0] }
 0x415   :  { %6681 = vmatpush.bf16.msra.mxu3 %v10360_v42  ;;  %6656 = vmatpush.bf16.msra.mxu1 %v10088_v17  ;;  %v11891_v42 = vld [vmem:[#allocation8 + $0x46c] sm:$0xf0]  ;;  %v4908_v63 = vpop.f32.mrf.mxu3  ;;  %v10967_v1 = vld [vmem:[#allocation8 + $0x7e0] sm:$0xf]  ;;  %v10204_v8 = vor.u32 %v11809_v10, %v10201_v0  ;;  %v10297_v36 = vld [vmem:[#allocation8 + $0x2b0] sm:$0xf0] }
 0x416   :  { %6644 = vmatmul.bf16.vlgmr.msra.gmra.mxu0 %v12509_v45  ;;  %v4829_v18 = vadd.f32 %v12495_v23, %v4816_v2  ;;  %v10520_v40 = vor.u32 %v11891_v42, %v10519_v19  ;;  %v11919_v17 = vld [vmem:[#allocation8 + $0x54c] sm:$0xf0]  ;;  %v10504_v23 = vor.u32 %v11887_v12, %v10503_v20  ;;  %v10472_v2 = vor.u32 %v11879_v47, %v10471_v39  ;;  %v11837_v20 = vld [vmem:[#allocation8 + $0x2c4] sm:$0xf]  ;;  %v10935_v51 = vld [vmem:[#allocation8 + $0x7a0] sm:$0xf] }
 0x417   :  { %6669 = vmatpush.bf16.msra.mxu2 %v10216_v25  ;;  %6688 = vmatpush.bf16.msrb.mxu0 %v10584_v29  ;;  %v10759_v25 = vld [vmem:[#allocation8 + $0x640] sm:$0xf]  ;;  %v4869_v29 = vpop.f32.mrf.mxu0  ;;  %v10632_v30 = vor.u32 %v11919_v17, %v10631_v13  ;;  %v10600_v42 = vor.u32 %v11911_v56, %v10599_v49  ;;  %v10313_v13 = vld [vmem:[#allocation8 + $0x2d0] sm:$0xf0]  ;;  %v11999_v17 = vld [vmem:[#allocation8 + $0x7cc] sm:$0xf0]  ;;  %v10936_v37 = vor.u32 %v11995_v48, %v10935_v51 }
 0x418   :  { %6657 = vmatmul.bf16.vlgmr.msra.gmra.mxu1 %v12511_v16  ;;  %v11769_v29 = vld [vmem:[#allocation8 + $0xa4] sm:$0xf]  ;;  %v10153_v49 = vld [vmem:[#allocation8 + $0x190] sm:$0xf0]  ;;  %v10919_v56 = vld [vmem:[#allocation8 + $0x780] sm:$0xf] }
 0x419   :  { %6682 = vmatpush.bf16.msra.mxu3 %v10344_v28  ;;  %6701 = vmatpush.bf16.msrb.mxu1 %v10712_v31  ;;  %v4842_v28 = vadd.f32 %v12497_v32, %v4829_v18  ;;  %v10760_v31 = vor.u32 %v11951_v24, %v10759_v25  ;;  %v11773_v18 = vld [vmem:[#allocation8 + $0xc4] sm:$0xf]  ;;  %v10105_v51 = vld [vmem:[#allocation8 + $0x130] sm:$0xf0] }
 0x41a   :  { %6670 = vmatmul.bf16.vlgmr.msra.gmra.mxu2 %v12513_v9  ;;  %v11797_v47 = vld [vmem:[#allocation8 + $0x184] sm:$0xf] }
 0x41b   :  { %6714 = vmatpush.bf16.msrb.mxu2 %v10840_v34  ;;  %6689 = vmatpush.bf16.msrb.mxu0 %v10568_v62  ;;  %v10487_v34 = vld [vmem:[#allocation8 + $0x420] sm:$0xf]  ;;  %v5070_v62 = vmul.f32 0.01, %v12470_v6  ;;  %v4855_v32 = vadd.f32 %v12499_v33, %v4842_v28  ;;  %v12003_v33 = vld [vmem:[#allocation8 + $0x7ec] sm:$0xf0]  ;;  %v10156_v10 = vor.u32 %v11797_v47, %v10153_v49  ;;  %v4932_v63 = vpop.f32.mrf.mxu1 }
 0x41c   :  { %6683 = vmatmul.bf16.vlgmr.msra.gmra.mxu3 %v12515_v55  ;;  %v11761_v0 = vld [vmem:[#allocation8 + $0x64] sm:$0xf]  ;;  %v10089_v47 = vld [vmem:[#allocation8 + $0x110] sm:$0xf0] }
 0x41d   :  { %6702 = vmatpush.bf16.msrb.mxu1 %v10696_v54  ;;  %v5071_v54 = vmul.f32 0.01, %v12487_v57  ;;  %v4868_v15 = vadd.f32 %v12525_v3, %v4855_v32  ;;  %v5078_v19 = vmax.f32 %v12470_v6, %v5070_v62  ;;  %v11805_v3 = vld [vmem:[#allocation8 + $0x1c4] sm:$0xf]  ;;  %v10951_v6 = vld [vmem:[#allocation8 + $0x7c0] sm:$0xf] }
 0x41e   :  { %v11765_v32 = vld [vmem:[#allocation8 + $0x84] sm:$0xf] }
 0x41f   :  { %6715 = vmatpush.bf16.msrb.mxu2 %v10824_v46  ;;  %6690 = vmatpush.bf16.msrb.mxu0 %v10552_v59  ;;  %v10488_v46 = vor.u32 %v11883_v50, %v10487_v34  ;;  %v11943_v59 = vld [vmem:[#allocation8 + $0x60c] sm:$0xf0]  ;;  %v5079_v22 = vmax.f32 %v12487_v57, %v5071_v54  ;;  %v4881_v12 = vadd.f32 %v12527_v21, %v4868_v15  ;;  %v10169_v34 = vld [vmem:[#allocation8 + $0x1b0] sm:$0xf0]  ;;  %v11833_v50 = vld [vmem:[#allocation8 + $0x2a4] sm:$0xf] }
 0x420   :  { %v10728_v4 = vor.u32 %v11943_v59, %v10727_v58  ;;  %v12542_v25 = vpack.c.bf16 %v5078_v19, %v5078_v19  ;;  %v10952_v57 = vor.u32 %v11999_v17, %v10951_v6  ;;  %v10316_v21 = vor.u32 %v11837_v20, %v10313_v13  ;;  %v11991_v58 = vld [vmem:[#allocation8 + $0x78c] sm:$0xf0]  ;;  %v4919_v59 = vpop.f32.mrf.mxu0  ;;  %v11793_v15 = vld [vmem:[#allocation8 + $0x164] sm:$0xf]  ;;  %v10887_v6 = vld [vmem:[#allocation8 + $0x740] sm:$0xf] }
 0x421   :  { %6703 = vmatpush.bf16.msrb.mxu1 %v10680_v60  ;;  %v4895_v60 = vpop.f32.mrf.mxu2  ;;  %v12544_v24 = vpack.c.bf16 %v5079_v22, %v5079_v22  ;;  %v4894_v35 = vadd.f32 %v12530_v14, %v4881_v12  ;;  %v10300_v39 = vor.u32 %v11833_v50, %v10297_v36  ;;  %v11987_v19 = vld [vmem:[#allocation8 + $0x76c] sm:$0xf0]  ;;  %v10249_v12 = vld [vmem:[#allocation8 + $0x250] sm:$0xf0]  ;;  %v11785_v36 = vld [vmem:[#allocation8 + $0x124] sm:$0xf] }
 0x422   :  { %v10920_v60 = vor.u32 %v11991_v58, %v10919_v56  ;;  %v11983_v17 = vld [vmem:[#allocation8 + $0x74c] sm:$0xf0]  ;;  %v11817_v48 = vld [vmem:[#allocation8 + $0x224] sm:$0xf]  ;;  %v10217_v56 = vld [vmem:[#allocation8 + $0x210] sm:$0xf0] }
 0x423   :  { %6716 = vmatpush.bf16.msrb.mxu2 %v10808_v43  ;;  %6691 = vmatpush.bf16.msrb.mxu0 %v10536_v38  ;;  %v11777_v43 = vld [vmem:[#allocation8 + $0xe4] sm:$0xf]  ;;  %v4907_v14 = vadd.f32 %v12532_v27, %v4894_v35  ;;  %v4934_v50 = vpop.f32.mrf.mxu1 }
 0x424   :  { %v11841_v38 = vld [vmem:[#allocation8 + $0x2e4] sm:$0xf]  ;;  %v10076_v26 = vor.u32 %v11777_v43, %v10073_v61 }
 0x425   :  { %6704 = vmatpush.bf16.msrb.mxu1 %v10664_v7  ;;  %v10329_v7 = vld [vmem:[#allocation8 + $0x2f0] sm:$0xf0]  ;;  %v4920_v43 = vadd.f32 %v4919_v59, %v4907_v14  ;;  %v10108_v14 = vor.u32 %v11785_v36, %v10105_v51  ;;  %v11905_v58 = vld [vmem:[#allocation8 + $0x4e4] sm:$0xf] }
 0x426   :  { %v11961_v50 = vld [vmem:[#allocation8 + $0x6a4] sm:$0xf]  ;;  %v10425_v51 = vld [vmem:[#allocation8 + $0x3b0] sm:$0xf0] }
 0x427   :  { %6717 = vmatpush.bf16.msrb.mxu2 %v10792_v41  ;;  %6692 = vmatpush.bf16.msrb.mxu0 %v10520_v40  ;;  %v10968_v41 = vor.u32 %v12003_v33, %v10967_v1  ;;  %v10057_v40 = vld [vmem:[#allocation8 + $0xd0] sm:$0xf0]  ;;  %v4933_v27 = vadd.f32 %v4932_v63, %v4920_v43  ;;  %v11937_v43 = vld [vmem:[#allocation8 + $0x5e4] sm:$0xf]  ;;  %v10855_v63 = vld [vmem:[#allocation8 + $0x700] sm:$0xf] }
 0x428   :  { %v10060_v28 = vor.u32 %v11773_v18, %v10057_v40  ;;  %v10009_v1 = vld [vmem:[#allocation8 + $0x70] sm:$0xf0]  ;;  %v11865_v36 = vld [vmem:[#allocation8 + $0x3a4] sm:$0xf] }
 0x429   :  { %6705 = vmatpush.bf16.msrb.mxu1 %v10648_v11  ;;  %6727 = vmatpush.bf16.msrb.mxu3 %v10968_v41  ;;  %v10332_v11 = vor.u32 %v11841_v38, %v10329_v7  ;;  %v11825_v38 = vld [vmem:[#allocation8 + $0x264] sm:$0xf]  ;;  %v10265_v7 = vld [vmem:[#allocation8 + $0x270] sm:$0xf0]  ;;  %v10903_v41 = vld [vmem:[#allocation8 + $0x760] sm:$0xf]  ;;  %v10012_v22 = vor.u32 %v11761_v0, %v10009_v1  ;;  %v12550_v13 = vpop.f32.mrf.mxu2 }
 0x42a   :  { %v9993_v18 = vld [vmem:[#allocation8 + $0x50] sm:$0xf0]  ;;  %v10268_v40 = vor.u32 %v11825_v38, %v10265_v7  ;;  %v11975_v0 = vld [vmem:[#allocation8 + $0x70c] sm:$0xf0]  ;;  %v11873_v1 = vld [vmem:[#allocation8 + $0x3e4] sm:$0xf] }
 0x42b   :  { %6718 = vmatpush.bf16.msrb.mxu2 %v10776_v44  ;;  %6693 = vmatpush.bf16.msrb.mxu0 %v10504_v23  ;;  %v10185_v44 = vld [vmem:[#allocation8 + $0x1d0] sm:$0xf0]  ;;  %v10856_v38 = vor.u32 %v11975_v0, %v10855_v63 }
 0x42c   :  { %v10188_v23 = vor.u32 %v11805_v3, %v10185_v44  ;;  %v10121_v3 = vld [vmem:[#allocation8 + $0x150] sm:$0xf0]  ;;  %v11821_v44 = vld [vmem:[#allocation8 + $0x244] sm:$0xf] }
 0x42d   :  { %6706 = vmatpush.bf16.msrb.mxu1 %v10632_v30  ;;  %v10041_v30 = vld [vmem:[#allocation8 + $0xb0] sm:$0xf0]  ;;  %6728 = vmatpush.bf16.msrb.mxu3 %v10952_v57  ;;  %v12552_v57 = vpop.f32.mrf.mxu3  ;;  %v10252_v35 = vor.u32 %v11821_v44, %v10249_v12 }
 0x42e   :  { %v10044_v62 = vor.u32 %v11769_v29, %v10041_v30  ;;  %v10825_v44 = vld [vmem:[#allocation8 + $0x6d0] sm:$0xf0] }
 0x42f   :  { %6719 = vmatpush.bf16.msrb.mxu2 %v10760_v31  ;;  %6694 = vmatpush.bf16.msrb.mxu0 %v10488_v46  ;;  %v11801_v31 = vld [vmem:[#allocation8 + $0x1a4] sm:$0xf]  ;;  %v10025_v46 = vld [vmem:[#allocation8 + $0x90] sm:$0xf0] }
 0x430   :  { %v10172_v54 = vor.u32 %v11801_v31, %v10169_v34  ;;  %v10028_v61 = vor.u32 %v11765_v32, %v10025_v46  ;;  %v11753_v31 = vld [vmem:[#allocation8 + $0x24] sm:$0xf]  ;;  %v9977_v34 = vld [vmem:[#allocation8 + $0x30] sm:$0xf0] }
 0x431   :  { %6707 = vmatpush.bf16.msrb.mxu1 %v10616_v52  ;;  %v11829_v52 = vld [vmem:[#allocation8 + $0x284] sm:$0xf]  ;;  %6729 = vmatpush.bf16.msrb.mxu3 %v10936_v37  ;;  %v10233_v37 = vld [vmem:[#allocation8 + $0x230] sm:$0xf0] }
 0x432   :  { %v11749_v32 = vld [vmem:[#allocation8 + $0x4] sm:$0xf]  ;;  %v9961_v46 = vld [vmem:[#allocation8 + $0x10] sm:$0xf0]  ;;  %v10236_v59 = vor.u32 %v11817_v48, %v10233_v37  ;;  %v10428_v37 = vor.u32 %v11865_v36, %v10425_v51 }
 0x433   :  { %6720 = vmatpush.bf16.msrb.mxu2 %v10744_v53  ;;  %6695 = vmatpush.bf16.msrb.mxu0 %v10472_v2  ;;  %v10281_v53 = vld [vmem:[#allocation8 + $0x290] sm:$0xf0]  ;;  %v9964_v7 = vor.u32 %v11749_v32, %v9961_v46  ;;  %v11893_v32 = vld [vmem:[#allocation8 + $0x484] sm:$0xf] }
 0x434   :  { %v10284_v33 = vor.u32 %v11829_v52, %v10281_v53  ;;  %v10137_v2 = vld [vmem:[#allocation8 + $0x170] sm:$0xf0]  ;;  %v9980_v52 = vor.u32 %v11753_v31, %v9977_v34  ;;  %v11813_v53 = vld [vmem:[#allocation8 + $0x204] sm:$0xf] }
 0x435   :  { %6708 = vmatpush.bf16.msrb.mxu1 %v10600_v42  ;;  %6730 = vmatpush.bf16.msrb.mxu3 %v10920_v60  ;;  %v10904_v42 = vor.u32 %v11987_v19, %v10903_v41  ;;  %v10585_v60 = vld [vmem:[#allocation8 + $0x4f0] sm:$0xf0]  ;;  %v11929_v31 = vld [vmem:[#allocation8 + $0x5a4] sm:$0xf] }
 0x436   :  { %6696 = vmatmul.bf16.vlgmr.msrb.gmra.mxu0 %v12542_v25  ;;  %v10441_v12 = vld [vmem:[#allocation8 + $0x3d0] sm:$0xf0]  ;;  %v11849_v51 = vld [vmem:[#allocation8 + $0x324] sm:$0xf] }
 0x437   :  { %6721 = vmatpush.bf16.msrb.mxu2 %v10728_v4  ;;  %6740 = vmatpush.bf16.msra.mxu0 %v10076_v26  ;;  %v5072_v4 = vmul.f32 0.01, %v4933_v27  ;;  %v10140_v26 = vor.u32 %v11793_v15, %v10137_v2  ;;  %v10841_v15 = vld [vmem:[#allocation8 + $0x6f0] sm:$0xf0]  ;;  %v4960_v2 = vpop.f32.mrf.mxu3 }
 0x438   :  { %6709 = vmatmul.bf16.vlgmr.msrb.gmra.mxu1 %v12544_v24  ;;  %v10681_v34 = vld [vmem:[#allocation8 + $0x5b0] sm:$0xf0]  ;;  %v11857_v2 = vld [vmem:[#allocation8 + $0x364] sm:$0xf] }
 0x439   :  { %6753 = vmatpush.bf16.msra.mxu1 %v10204_v8  ;;  %v11757_v8 = vld [vmem:[#allocation8 + $0x44] sm:$0xf]  ;;  %v5080_v20 = vmax.f32 %v4933_v27, %v5072_v4  ;;  %6731 = vmatpush.bf16.msrb.mxu3 %v10904_v42  ;;  %v10457_v27 = vld [vmem:[#allocation8 + $0x3f0] sm:$0xf0]  ;;  %v10220_v42 = vor.u32 %v11813_v53, %v10217_v56  ;;  %v10588_v4 = vor.u32 %v11905_v58, %v10585_v60 }
 0x43a   :  { %v9996_v30 = vor.u32 %v11757_v8, %v9993_v18  ;;  %v10460_v19 = vor.u32 %v11873_v1, %v10457_v27  ;;  %v11901_v8 = vld [vmem:[#allocation8 + $0x4c4] sm:$0xf]  ;;  %v10569_v18 = vld [vmem:[#allocation8 + $0x4d0] sm:$0xf0]  ;;  %v782_v27 = vperm.slane %v12521_v5, 7 }
 0x43b   :  { %6766 = vmatpush.bf16.msra.mxu2 %v10332_v11  ;;  %6741 = vmatpush.bf16.msra.mxu0 %v10060_v28  ;;  %v11789_v11 = vld [vmem:[#allocation8 + $0x144] sm:$0xf]  ;;  %v4921_v28 = vpop.f32.mrf.mxu0  ;;  %v12554_v29 = vpack.c.bf16 %v5080_v20, %v5080_v20  ;;  %v10537_v46 = vld [vmem:[#allocation8 + $0x490] sm:$0xf0] }
 0x43c   :  { %v11869_v20 = vld [vmem:[#allocation8 + $0x3c4] sm:$0xf]  ;;  %v10409_v53 = vld [vmem:[#allocation8 + $0x390] sm:$0xf0]  ;;  %v10540_v56 = vor.u32 %v11893_v32, %v10537_v46 }
 0x43d   :  { %6754 = vmatpush.bf16.msra.mxu1 %v10188_v23  ;;  %v10888_v23 = vor.u32 %v11983_v17, %v10887_v6  ;;  %6722 = vmatmul.bf16.vlgmr.msrb.gmra.mxu2 %v12554_v29  ;;  %v10572_v6 = vor.u32 %v11901_v8, %v10569_v18  ;;  %v10444_v17 = vor.u32 %v11869_v20, %v10441_v12  ;;  %v10649_v0 = vld [vmem:[#allocation8 + $0x570] sm:$0xf0]  ;;  %v11953_v1 = vld [vmem:[#allocation8 + $0x664] sm:$0xf] }
 0x43e   :  { %v10633_v8 = vld [vmem:[#allocation8 + $0x550] sm:$0xf0]  ;;  %v11949_v18 = vld [vmem:[#allocation8 + $0x644] sm:$0xf] }
 0x43f   :  { %6767 = vmatpush.bf16.msra.mxu2 %v10316_v21  ;;  %6742 = vmatpush.bf16.msra.mxu0 %v10044_v62  ;;  %v10124_v21 = vor.u32 %v11789_v11, %v10121_v3  ;;  %v10871_v62 = vld [vmem:[#allocation8 + $0x720] sm:$0xf]  ;;  %v10697_v11 = vld [vmem:[#allocation8 + $0x5d0] sm:$0xf0]  ;;  %v11965_v3 = vld [vmem:[#allocation8 + $0x6c4] sm:$0xf] }
 0x440   :  { %6732 = vmatpush.bf16.msrb.mxu3 %v10888_v23  ;;  %v10828_v23 = vor.u32 %v11965_v3, %v10825_v44  ;;  %v12567_v3 = vpop.f32.mrf.mxu3  ;;  %v11853_v44 = vld [vmem:[#allocation8 + $0x344] sm:$0xf]  ;;  %v10377_v5 = vld [vmem:[#allocation8 + $0x350] sm:$0xf0] }
 0x441   :  { %6755 = vmatpush.bf16.msra.mxu1 %v10172_v54  ;;  %v11979_v54 = vld [vmem:[#allocation8 + $0x72c] sm:$0xf0]  ;;  %v10380_v12 = vor.u32 %v11853_v44, %v10377_v5  ;;  %v11909_v32 = vld [vmem:[#allocation8 + $0x504] sm:$0xf] }
 0x442   :  { %v10872_v49 = vor.u32 %v11979_v54, %v10871_v62  ;;  %v10684_v62 = vor.u32 %v11929_v31, %v10681_v34  ;;  %v4946_v31 = vadd.f32 %v12550_v13, %v782_v27  ;;  %v10617_v34 = vld [vmem:[#allocation8 + $0x530] sm:$0xf0] }
 0x443   :  { %6768 = vmatpush.bf16.msra.mxu2 %v10300_v39  ;;  %6743 = vmatpush.bf16.msra.mxu0 %v10028_v61  ;;  %v11781_v39 = vld [vmem:[#allocation8 + $0x104] sm:$0xf]  ;;  %v10713_v61 = vld [vmem:[#allocation8 + $0x5f0] sm:$0xf0]  ;;  %v12560_v63 = vpop.f32.mrf.mxu0 }
 0x444   :  { %6733 = vmatpush.bf16.msrb.mxu3 %v10872_v49  ;;  %v10092_v41 = vor.u32 %v11781_v39, %v10089_v47  ;;  %v11925_v39 = vld [vmem:[#allocation8 + $0x584] sm:$0xf]  ;;  %v10665_v47 = vld [vmem:[#allocation8 + $0x590] sm:$0xf0] }
 0x445   :  { %6756 = vmatpush.bf16.msra.mxu1 %v10156_v10  ;;  %v4947_v10 = vpop.f32.mrf.mxu2  ;;  %v11957_v49 = vld [vmem:[#allocation8 + $0x684] sm:$0xf]  ;;  %v10729_v13 = vld [vmem:[#allocation8 + $0x610] sm:$0xf0] }
 0x446   :  { %v11921_v10 = vld [vmem:[#allocation8 + $0x564] sm:$0xf] }
 0x447   :  { %6769 = vmatpush.bf16.msra.mxu2 %v10284_v33  ;;  %6744 = vmatpush.bf16.msra.mxu0 %v10012_v22  ;;  %v11969_v33 = vld [vmem:[#allocation8 + $0x6e4] sm:$0xf]  ;;  %v10716_v22 = vor.u32 %v11937_v43, %v10713_v61  ;;  %v10521_v61 = vld [vmem:[#allocation8 + $0x470] sm:$0xf0] }
 0x448   :  { %6734 = vmatpush.bf16.msrb.mxu3 %v10856_v38  ;;  %v11889_v43 = vld [vmem:[#allocation8 + $0x464] sm:$0xf]  ;;  %v10393_v38 = vld [vmem:[#allocation8 + $0x370] sm:$0xf0] }
 0x449   :  { %6757 = vmatpush.bf16.msra.mxu1 %v10140_v26  ;;  %v10844_v26 = vor.u32 %v11969_v33, %v10841_v15  ;;  %v10777_v33 = vld [vmem:[#allocation8 + $0x670] sm:$0xf0]  ;;  %v12562_v15 = vpop.f32.mrf.mxu1 }
 0x44b   :  { %6770 = vmatpush.bf16.msra.mxu2 %v10268_v40  ;;  %6745 = vmatpush.bf16.msra.mxu0 %v9996_v30  ;;  %v11933_v40 = vld [vmem:[#allocation8 + $0x5c4] sm:$0xf] }
 0x44c   :  { %6779 = vmatpush.bf16.msra.mxu3 %v10460_v19  ;;  %v10700_v28 = vor.u32 %v11933_v40, %v10697_v11  ;;  %v11897_v30 = vld [vmem:[#allocation8 + $0x4a4] sm:$0xf]  ;;  %v10652_v19 = vor.u32 %v11921_v10, %v10649_v0  ;;  %v10761_v40 = vld [vmem:[#allocation8 + $0x650] sm:$0xf0] }
 0x44d   :  { %6758 = vmatpush.bf16.msra.mxu1 %v10124_v21  ;;  %v10553_v21 = vld [vmem:[#allocation8 + $0x4b0] sm:$0xf0]  ;;  %v12565_v11 = vpop.f32.mrf.mxu2 }
 0x44e   :  { %v10556_v48 = vor.u32 %v11897_v30, %v10553_v21  ;;  %v11913_v30 = vld [vmem:[#allocation8 + $0x524] sm:$0xf]  ;;  %v4973_v21 = vpop.f32.mrf.mxu0  ;;  %v10345_v10 = vld [vmem:[#allocation8 + $0x310] sm:$0xf0] }
 0x44f   :  { %6771 = vmatpush.bf16.msra.mxu2 %v10252_v35  ;;  %6746 = vmatpush.bf16.msra.mxu0 %v9980_v52  ;;  %v10809_v35 = vld [vmem:[#allocation8 + $0x6b0] sm:$0xf0] }
 0x450   :  { %6780 = vmatpush.bf16.msra.mxu3 %v10444_v17  ;;  %v10812_v54 = vor.u32 %v11961_v50, %v10809_v35  ;;  %v10793_v52 = vld [vmem:[#allocation8 + $0x690] sm:$0xf0]  ;;  %v10764_v17 = vor.u32 %v11949_v18, %v10761_v40  ;;  %v11945_v50 = vld [vmem:[#allocation8 + $0x624] sm:$0xf]  ;;  %v11840_v18 = vld [vmem:[#allocation8 + $0x2d4] sm:$0xf0] }
 0x451   :  { %6759 = vmatpush.bf16.msra.mxu1 %v10108_v14  ;;  %v11861_v14 = vld [vmem:[#allocation8 + $0x384] sm:$0xf]  ;;  %v10796_v60 = vor.u32 %v11957_v49, %v10793_v52  ;;  %v10745_v35 = vld [vmem:[#allocation8 + $0x630] sm:$0xf0]  ;;  %v4986_v36 = vpop.f32.mrf.mxu1 }
 0x452   :  { %v10412_v58 = vor.u32 %v11861_v14, %v10409_v53  ;;  %v10601_v49 = vld [vmem:[#allocation8 + $0x510] sm:$0xf0]  ;;  %v11941_v52 = vld [vmem:[#allocation8 + $0x604] sm:$0xf]  ;;  %v4959_v14 = vadd.f32 %v12552_v57, %v4946_v31  ;;  %v10079_v53 = vld [vmem:[#allocation8 + $0xe8] sm:$0xf] }
 0x453   :  { %6772 = vmatpush.bf16.msra.mxu2 %v10236_v59  ;;  %6747 = vmatpush.bf16.msra.mxu0 %v9964_v7  ;;  %v10668_v59 = vor.u32 %v11925_v39, %v10665_v47  ;;  %v10524_v7 = vor.u32 %v11889_v43, %v10521_v61  ;;  %v10620_v39 = vor.u32 %v11913_v30, %v10617_v34  ;;  %v5012_v43 = vpop.f32.mrf.mxu3  ;;  %v11845_v61 = vld [vmem:[#allocation8 + $0x304] sm:$0xf]  ;;  %v10031_v31 = vld [vmem:[#allocation8 + $0x88] sm:$0xf]  ;;  %v11800_v36 = vld [vmem:[#allocation8 + $0x194] sm:$0xf0] }
 0x454   :  { %6781 = vmatpush.bf16.msra.mxu3 %v10428_v37  ;;  %v10748_v47 = vor.u32 %v11945_v50, %v10745_v35  ;;  %v10732_v27 = vor.u32 %v11941_v52, %v10729_v13  ;;  %v4972_v57 = vadd.f32 %v12560_v63, %v4959_v14  ;;  %v10047_v63 = vld [vmem:[#allocation8 + $0xa8] sm:$0xf]  ;;  %v11768_v50 = vld [vmem:[#allocation8 + $0x94] sm:$0xf0] }
 0x455   :  { %6760 = vmatpush.bf16.msra.mxu1 %v10092_v41  ;;  %v10396_v41 = vor.u32 %v11857_v2, %v10393_v38  ;;  %v10348_v2 = vor.u32 %v11845_v61, %v10345_v10  ;;  %v10604_v38 = vor.u32 %v11909_v32, %v10601_v49  ;;  %v10159_v35 = vld [vmem:[#allocation8 + $0x188] sm:$0xf]  ;;  %v11796_v52 = vld [vmem:[#allocation8 + $0x174] sm:$0xf0] }
 0x456   :  { %6748 = vmatmul.bf16.vlgmr.msra.gmra.mxu0 %v12509_v45  ;;  %v4985_v40 = vadd.f32 %v12562_v15, %v4972_v57  ;;  %v10160_v32 = vor.u32 %v11800_v36, %v10159_v35  ;;  %v10143_v49 = vld [vmem:[#allocation8 + $0x168] sm:$0xf]  ;;  %v11792_v61 = vld [vmem:[#allocation8 + $0x154] sm:$0xf0] }
 0x457   :  { %6773 = vmatpush.bf16.msra.mxu2 %v10220_v42  ;;  %6792 = vmatpush.bf16.msrb.mxu0 %v10588_v4  ;;  %v10780_v42 = vor.u32 %v11953_v1, %v10777_v33  ;;  %v11885_v4 = vld [vmem:[#allocation8 + $0x444] sm:$0xf]  ;;  %v10335_v1 = vld [vmem:[#allocation8 + $0x2e8] sm:$0xf]  ;;  %v11844_v33 = vld [vmem:[#allocation8 + $0x2f4] sm:$0xf0] }
 0x458   :  { %6761 = vmatmul.bf16.vlgmr.msra.gmra.mxu1 %v12511_v16  ;;  %6782 = vmatpush.bf16.msra.mxu3 %v10412_v58  ;;  %v10207_v58 = vld [vmem:[#allocation8 + $0x1e8] sm:$0xf]  ;;  %v4998_v15 = vadd.f32 %v12565_v11, %v4985_v40  ;;  %v11820_v40 = vld [vmem:[#allocation8 + $0x234] sm:$0xf0] }
 0x459   :  { %6805 = vmatpush.bf16.msrb.mxu1 %v10716_v22  ;;  %v10505_v22 = vld [vmem:[#allocation8 + $0x450] sm:$0xf0]  ;;  %v10015_v11 = vld [vmem:[#allocation8 + $0x68] sm:$0xf] }
 0x45a   :  { %6774 = vmatmul.bf16.vlgmr.msra.gmra.mxu2 %v12513_v9  ;;  %v10508_v20 = vor.u32 %v11885_v4, %v10505_v22  ;;  %v11776_v4 = vld [vmem:[#allocation8 + $0xd4] sm:$0xf0]  ;;  %v10191_v22 = vld [vmem:[#allocation8 + $0x1c8] sm:$0xf] }
 0x45b   :  { %6818 = vmatpush.bf16.msrb.mxu2 %v10844_v26  ;;  %6793 = vmatpush.bf16.msrb.mxu0 %v10572_v6  ;;  %v11917_v26 = vld [vmem:[#allocation8 + $0x544] sm:$0xf]  ;;  %v10271_v14 = vld [vmem:[#allocation8 + $0x268] sm:$0xf] }
 0x45c   :  { %6783 = vmatpush.bf16.msra.mxu3 %v10396_v41  ;;  %v10636_v6 = vor.u32 %v11917_v26, %v10633_v8  ;;  %v11808_v26 = vld [vmem:[#allocation8 + $0x1d4] sm:$0xf0]  ;;  %v10319_v8 = vld [vmem:[#allocation8 + $0x2c8] sm:$0xf] }
 0x45d   :  { %6806 = vmatpush.bf16.msrb.mxu1 %v10700_v28  ;;  %v11881_v28 = vld [vmem:[#allocation8 + $0x424] sm:$0xf]  ;;  %v10192_v5 = vor.u32 %v11808_v26, %v10191_v22  ;;  %v10127_v43 = vld [vmem:[#allocation8 + $0x148] sm:$0xf]  ;;  %v11788_v26 = vld [vmem:[#allocation8 + $0x134] sm:$0xf0] }
 0x45e   :  { %v10111_v22 = vld [vmem:[#allocation8 + $0x128] sm:$0xf] }
 0x45f   :  { %6819 = vmatpush.bf16.msrb.mxu2 %v10828_v23  ;;  %6794 = vmatpush.bf16.msrb.mxu0 %v10556_v48  ;;  %v10489_v23 = vld [vmem:[#allocation8 + $0x430] sm:$0xf0]  ;;  %v10719_v35 = vld [vmem:[#allocation8 + $0x5e8] sm:$0xf] }
 0x460   :  { %6784 = vmatpush.bf16.msra.mxu3 %v10380_v12  ;;  %v10361_v48 = vld [vmem:[#allocation8 + $0x330] sm:$0xf0]  ;;  %v10492_v37 = vor.u32 %v11881_v28, %v10489_v23  ;;  %v11772_v12 = vld [vmem:[#allocation8 + $0xb4] sm:$0xf0]  ;;  %v10303_v28 = vld [vmem:[#allocation8 + $0x2a8] sm:$0xf] }
 0x461   :  { %6807 = vmatpush.bf16.msrb.mxu1 %v10684_v62  ;;  %v11877_v62 = vld [vmem:[#allocation8 + $0x404] sm:$0xf]  ;;  %v10364_v46 = vor.u32 %v11849_v51, %v10361_v48  ;;  %v11836_v23 = vld [vmem:[#allocation8 + $0x2b4] sm:$0xf0]  ;;  %v10048_v30 = vor.u32 %v11772_v12, %v10047_v63  ;;  %v10287_v51 = vld [vmem:[#allocation8 + $0x288] sm:$0xf] }
 0x462   :  { %v10304_v34 = vor.u32 %v11836_v23, %v10303_v28  ;;  %v11832_v48 = vld [vmem:[#allocation8 + $0x294] sm:$0xf0]  ;;  %v9967_v63 = vld [vmem:[#allocation8 + $0x8] sm:$0xf] }
 0x463   :  { %6820 = vmatpush.bf16.msrb.mxu2 %v10812_v54  ;;  %6795 = vmatpush.bf16.msrb.mxu0 %v10540_v56  ;;  %v10473_v54 = vld [vmem:[#allocation8 + $0x410] sm:$0xf0]  ;;  %v11780_v56 = vld [vmem:[#allocation8 + $0xf4] sm:$0xf0]  ;;  %v10095_v28 = vld [vmem:[#allocation8 + $0x108] sm:$0xf] }
 0x464   :  { %6785 = vmatpush.bf16.msra.mxu3 %v10364_v46  ;;  %v10476_v0 = vor.u32 %v11877_v62, %v10473_v54  ;;  %v10032_v54 = vor.u32 %v11768_v50, %v10031_v31  ;;  %v11908_v50 = vld [vmem:[#allocation8 + $0x4f4] sm:$0xf0] }
 0x465   :  { %6808 = vmatpush.bf16.msrb.mxu1 %v10668_v59  ;;  %v4999_v59 = vpop.f32.mrf.mxu2 }
 0x467   :  { %6821 = vmatpush.bf16.msrb.mxu2 %v10796_v60  ;;  %6796 = vmatpush.bf16.msrb.mxu0 %v10524_v7  ;;  %v11812_v60 = vld [vmem:[#allocation8 + $0x1f4] sm:$0xf0]  ;;  %v10080_v7 = vor.u32 %v11780_v56, %v10079_v53 }
 0x468   :  { %v10208_v41 = vor.u32 %v11812_v60, %v10207_v58  ;;  %6786 = vmatpush.bf16.msra.mxu3 %v10348_v2  ;;  %v11828_v53 = vld [vmem:[#allocation8 + $0x274] sm:$0xf0]  ;;  %v10144_v58 = vor.u32 %v11796_v52, %v10143_v49  ;;  %v11997_v49 = vld [vmem:[#allocation8 + $0x7c4] sm:$0xf]  ;;  %v10953_v52 = vld [vmem:[#allocation8 + $0x7d0] sm:$0xf0] }
 0x469   :  { %6809 = vmatpush.bf16.msrb.mxu1 %v10652_v19  ;;  %v10063_v19 = vld [vmem:[#allocation8 + $0xc8] sm:$0xf]  ;;  %v10272_v59 = vor.u32 %v11828_v53, %v10271_v14  ;;  %v11760_v60 = vld [vmem:[#allocation8 + $0x54] sm:$0xf0] }
 0x46a   :  { %v10064_v44 = vor.u32 %v11776_v4, %v10063_v19  ;;  %v11756_v4 = vld [vmem:[#allocation8 + $0x34] sm:$0xf0]  ;;  %v10575_v53 = vld [vmem:[#allocation8 + $0x4c8] sm:$0xf] }
 0x46b   :  { %6822 = vmatpush.bf16.msrb.mxu2 %v10780_v42  ;;  %6797 = vmatpush.bf16.msrb.mxu0 %v10508_v20  ;;  %v10336_v42 = vor.u32 %v11844_v33, %v10335_v1  ;;  %v10320_v20 = vor.u32 %v11840_v18, %v10319_v8  ;;  %v11824_v1 = vld [vmem:[#allocation8 + $0x254] sm:$0xf0]  ;;  %v10239_v18 = vld [vmem:[#allocation8 + $0x228] sm:$0xf] }
 0x46c   :  { %v10240_v23 = vor.u32 %v11820_v40, %v10239_v18 }
 0x46d   :  { %6810 = vmatpush.bf16.msrb.mxu1 %v10636_v6  ;;  %v10175_v6 = vld [vmem:[#allocation8 + $0x1a8] sm:$0xf] }
 0x46f   :  { %6823 = vmatpush.bf16.msrb.mxu2 %v10764_v17  ;;  %6798 = vmatpush.bf16.msrb.mxu0 %v10492_v37  ;;  %v11804_v17 = vld [vmem:[#allocation8 + $0x1b4] sm:$0xf0]  ;;  %v5011_v37 = vadd.f32 %v12567_v3, %v4998_v15  ;;  %v9999_v3 = vld [vmem:[#allocation8 + $0x48] sm:$0xf] }
 0x470   :  { %v10176_v21 = vor.u32 %v11804_v17, %v10175_v6  ;;  %v10000_v57 = vor.u32 %v11760_v60, %v9999_v3  ;;  %v10112_v6 = vor.u32 %v11788_v26, %v10111_v22  ;;  %v11752_v17 = vld [vmem:[#allocation8 + $0x14] sm:$0xf0]  ;;  %v11989_v26 = vld [vmem:[#allocation8 + $0x784] sm:$0xf] }
 0x471   :  { %6811 = vmatpush.bf16.msrb.mxu1 %v10620_v39  ;;  %v10288_v39 = vor.u32 %v11832_v48, %v10287_v51  ;;  %v11784_v15 = vld [vmem:[#allocation8 + $0x114] sm:$0xf0] }
 0x472   :  { %v11940_v48 = vld [vmem:[#allocation8 + $0x5f4] sm:$0xf0] }
 0x473   :  { %6824 = vmatpush.bf16.msrb.mxu2 %v10748_v47  ;;  %6799 = vmatpush.bf16.msrb.mxu0 %v10476_v0  ;;  %v5023_v62 = vpop.f32.mrf.mxu0  ;;  %v11764_v47 = vld [vmem:[#allocation8 + $0x74] sm:$0xf0]  ;;  %v10255_v0 = vld [vmem:[#allocation8 + $0x248] sm:$0xf] }
 0x474   :  { %v5024_v13 = vadd.f32 %v5023_v62, %v5011_v37  ;;  %v10016_v56 = vor.u32 %v11764_v47, %v10015_v11  ;;  %v10847_v37 = vld [vmem:[#allocation8 + $0x6e8] sm:$0xf]  ;;  %v11972_v62 = vld [vmem:[#allocation8 + $0x6f4] sm:$0xf0]  ;;  %v9968_v11 = vor.u32 %v11752_v17, %v9967_v63 }
 0x475   :  { %6812 = vmatpush.bf16.msrb.mxu1 %v10604_v38  ;;  %v5036_v46 = vpop.f32.mrf.mxu1  ;;  %v10848_v14 = vor.u32 %v11972_v62, %v10847_v37  ;;  %v11936_v3 = vld [vmem:[#allocation8 + $0x5d4] sm:$0xf0]  ;;  %v10671_v63 = vld [vmem:[#allocation8 + $0x588] sm:$0xf] }
 0x476   :  { %6800 = vmatmul.bf16.vlgmr.msrb.gmra.mxu0 %v12542_v25  ;;  %v5037_v10 = vadd.f32 %v5036_v46, %v5024_v13  ;;  %v10096_v46 = vor.u32 %v11784_v15, %v10095_v28  ;;  %v10720_v13 = vor.u32 %v11940_v48, %v10719_v35  ;;  %v11968_v60 = vld [vmem:[#allocation8 + $0x6d4] sm:$0xf0]  ;;  %v10905_v15 = vld [vmem:[#allocation8 + $0x770] sm:$0xf0]  ;;  %v10783_v37 = vld [vmem:[#allocation8 + $0x668] sm:$0xf] }
 0x477   :  { %6825 = vmatpush.bf16.msrb.mxu2 %v10732_v27  ;;  %6844 = vmatpush.bf16.msra.mxu0 %v10080_v7  ;;  %v10128_v7 = vor.u32 %v11792_v61, %v10127_v43  ;;  %v10956_v43 = vor.u32 %v11997_v49, %v10953_v52  ;;  %v11892_v35 = vld [vmem:[#allocation8 + $0x474] sm:$0xf0] }
 0x478   :  { %6813 = vmatmul.bf16.vlgmr.msrb.gmra.mxu1 %v12544_v24  ;;  %v11924_v48 = vld [vmem:[#allocation8 + $0x574] sm:$0xf0] }
 0x479   :  { %6857 = vmatpush.bf16.msra.mxu1 %v10208_v41  ;;  %v9983_v41 = vld [vmem:[#allocation8 + $0x28] sm:$0xf]  ;;  %v11956_v62 = vld [vmem:[#allocation8 + $0x674] sm:$0xf0] }
 0x47a   :  { %6826 = vmatmul.bf16.vlgmr.msrb.gmra.mxu2 %v12554_v29  ;;  %v9984_v12 = vor.u32 %v11756_v4, %v9983_v41  ;;  %v10815_v41 = vld [vmem:[#allocation8 + $0x6a8] sm:$0xf]  ;;  %v10784_v52 = vor.u32 %v11956_v62, %v10783_v37  ;;  %v11842_v62 = vld [vmem:[#allocation8 + $0x2ec] sm:$0xf] }
 0x47b   :  { %6870 = vmatpush.bf16.msra.mxu2 %v10336_v42  ;;  %6845 = vmatpush.bf16.msra.mxu0 %v10064_v44  ;;  %v5025_v27 = vpop.f32.mrf.mxu0  ;;  %v10256_v42 = vor.u32 %v11824_v1, %v10255_v0  ;;  %v12001_v44 = vld [vmem:[#allocation8 + $0x7e4] sm:$0xf]  ;;  %v10937_v0 = vld [vmem:[#allocation8 + $0x7b0] sm:$0xf0]  ;;  %v10559_v1 = vld [vmem:[#allocation8 + $0x4a8] sm:$0xf] }
 0x47c   :  { %v10687_v27 = vld [vmem:[#allocation8 + $0x5a8] sm:$0xf] }
 0x47d   :  { %6858 = vmatpush.bf16.msra.mxu1 %v10192_v5  ;;  %v5049_v33 = vpop.f32.mrf.mxu2  ;;  %v5038_v19 = vpop.f32.mrf.mxu1  ;;  %v10969_v5 = vld [vmem:[#allocation8 + $0x7f0] sm:$0xf0] }
 0x47e   :  { %v5050_v2 = vadd.f32 %v5049_v33, %v5037_v10  ;;  %v10972_v51 = vor.u32 %v12001_v44, %v10969_v5  ;;  %v11993_v10 = vld [vmem:[#allocation8 + $0x7a4] sm:$0xf]  ;;  %v11964_v19 = vld [vmem:[#allocation8 + $0x6b4] sm:$0xf0]  ;;  %v10543_v44 = vld [vmem:[#allocation8 + $0x488] sm:$0xf] }
 0x47f   :  { %6871 = vmatpush.bf16.msra.mxu2 %v10320_v20  ;;  %6846 = vmatpush.bf16.msra.mxu0 %v10048_v30  ;;  %v5062_v38 = vpop.f32.mrf.mxu3  ;;  %v10223_v30 = vld [vmem:[#allocation8 + $0x208] sm:$0xf]  ;;  %v10816_v40 = vor.u32 %v11964_v19, %v10815_v41  ;;  %v11896_v5 = vld [vmem:[#allocation8 + $0x494] sm:$0xf0] }
 0x480   :  { %v5063_v8 = vadd.f32 %v5062_v38, %v5050_v2  ;;  %v11900_v38 = vld [vmem:[#allocation8 + $0x4b4] sm:$0xf0]  ;;  %v10544_v28 = vor.u32 %v11896_v5, %v10543_v44  ;;  %v10623_v19 = vld [vmem:[#allocation8 + $0x528] sm:$0xf] }
 0x481   :  { %6859 = vmatpush.bf16.msra.mxu1 %v10176_v21  ;;  %v11816_v21 = vld [vmem:[#allocation8 + $0x214] sm:$0xf0]  ;;  %v10560_v4 = vor.u32 %v11900_v38, %v10559_v1  ;;  %v10463_v5 = vld [vmem:[#allocation8 + $0x3e8] sm:$0xf] }
 0x482   :  { %v5073_v20 = vmul.f32 0.01, %v5063_v8  ;;  %v11884_v41 = vld [vmem:[#allocation8 + $0x434] sm:$0xf0] }
 0x483   :  { %6872 = vmatpush.bf16.msra.mxu2 %v10304_v34  ;;  %6847 = vmatpush.bf16.msra.mxu0 %v10032_v54  ;;  %v10591_v34 = vld [vmem:[#allocation8 + $0x4e8] sm:$0xf] }
 0x484   :  { %v5081_v31 = vmax.f32 %v5063_v8, %v5073_v20  ;;  %v10592_v47 = vor.u32 %v11908_v50, %v10591_v34  ;;  %v10921_v8 = vld [vmem:[#allocation8 + $0x790] sm:$0xf0]  ;;  %v11928_v20 = vld [vmem:[#allocation8 + $0x594] sm:$0xf0]  ;;  %v10527_v50 = vld [vmem:[#allocation8 + $0x468] sm:$0xf] }
 0x485   :  { %6860 = vmatpush.bf16.msra.mxu1 %v10160_v32  ;;  %v5051_v36 = vpop.f32.mrf.mxu2  ;;  %v10924_v17 = vor.u32 %v11989_v26, %v10921_v8 }
 0x486   :  { %v12578_v54 = vpack.c.bf16 %v5081_v31, %v5081_v31  ;;  %v10672_v31 = vor.u32 %v11928_v20, %v10671_v63  ;;  %v10655_v36 = vld [vmem:[#allocation8 + $0x568] sm:$0xf]  ;;  %v11876_v63 = vld [vmem:[#allocation8 + $0x3f4] sm:$0xf0] }
 0x487   :  { %6873 = vmatpush.bf16.msra.mxu2 %v10288_v39  ;;  %6848 = vmatpush.bf16.msra.mxu0 %v10016_v56  ;;  %v5064_v32 = vpop.f32.mrf.mxu3  ;;  %v10224_v39 = vor.u32 %v11816_v21, %v10223_v30  ;;  %v11904_v56 = vld [vmem:[#allocation8 + $0x4d4] sm:$0xf0]  ;;  %v10656_v49 = vor.u32 %v11924_v48, %v10655_v36  ;;  %v10479_v20 = vld [vmem:[#allocation8 + $0x408] sm:$0xf]  ;;  %v10464_v48 = vor.u32 %v11876_v63, %v10463_v5  ;;  %v11798_v5 = vld [vmem:[#allocation8 + $0x18c] sm:$0xf] }
 0x488   :  { %6735 = vmatmul.bf16.vlgmr.msrb.gmra.mxu3 %v12578_v54  ;;  %v10576_v61 = vor.u32 %v11904_v56, %v10575_v53  ;;  %v10639_v53 = vld [vmem:[#allocation8 + $0x548] sm:$0xf]  ;;  %v11920_v56 = vld [vmem:[#allocation8 + $0x554] sm:$0xf0]  ;;  %v10161_v63 = vld [vmem:[#allocation8 + $0x198] sm:$0xf0] }
 0x489   :  { %6861 = vmatpush.bf16.msra.mxu1 %v10144_v58  ;;  %v10703_v58 = vld [vmem:[#allocation8 + $0x5c8] sm:$0xf]  ;;  %6831 = vmatpush.bf16.msrb.mxu3 %v10972_v51  ;;  %v10640_v38 = vor.u32 %v11920_v56, %v10639_v53  ;;  %v10065_v53 = vld [vmem:[#allocation8 + $0xd8] sm:$0xf0]  ;;  %v11806_v56 = vld [vmem:[#allocation8 + $0x1cc] sm:$0xf] }
 0x48a   :  { %v10704_v33 = vor.u32 %v11936_v3, %v10703_v58  ;;  %v10767_v58 = vld [vmem:[#allocation8 + $0x648] sm:$0xf]  ;;  %v11952_v3 = vld [vmem:[#allocation8 + $0x654] sm:$0xf0] }
 0x48b   :  { %6874 = vmatpush.bf16.msra.mxu2 %v10272_v59  ;;  %6849 = vmatpush.bf16.msra.mxu0 %v10000_v57  ;;  %v10831_v59 = vld [vmem:[#allocation8 + $0x6c8] sm:$0xf]  ;;  %v12581_v57 = vld [vmem:[#allocation10] sm:$0xf] }
 0x48c   :  { %v10832_v2 = vor.u32 %v11968_v60, %v10831_v59  ;;  %v5348_v22 = vperm.slane %v12581_v57, 0 }
 0x48d   :  { %6862 = vmatpush.bf16.msra.mxu1 %v10128_v7  ;;  %v11932_v7 = vld [vmem:[#allocation8 + $0x5b4] sm:$0xf0]  ;;  %6832 = vmatpush.bf16.msrb.mxu3 %v10956_v43 }
 0x48e   :  { %v10688_v18 = vor.u32 %v11932_v7, %v10687_v27  ;;  %v10768_v27 = vor.u32 %v11952_v3, %v10767_v58  ;;  %v10495_v7 = vld [vmem:[#allocation8 + $0x428] sm:$0xf]  ;;  %v10193_v58 = vld [vmem:[#allocation8 + $0x1d8] sm:$0xf0]  ;;  %v11838_v3 = vld [vmem:[#allocation8 + $0x2cc] sm:$0xf] }
 0x48f   :  { %6875 = vmatpush.bf16.msra.mxu2 %v10256_v42  ;;  %6850 = vmatpush.bf16.msra.mxu0 %v9984_v12  ;;  %v10940_v42 = vor.u32 %v11993_v10, %v10937_v0  ;;  %v10799_v12 = vld [vmem:[#allocation8 + $0x688] sm:$0xf]  ;;  %v11977_v10 = vld [vmem:[#allocation8 + $0x724] sm:$0xf]  ;;  %v10873_v0 = vld [vmem:[#allocation8 + $0x730] sm:$0xf0]  ;;  %v10496_v44 = vor.u32 %v11884_v41, %v10495_v7 }
 0x490   :  { %v10876_v8 = vor.u32 %v11977_v10, %v10873_v0  ;;  %v10431_v10 = vld [vmem:[#allocation8 + $0x3a8] sm:$0xf]  ;;  %v11868_v0 = vld [vmem:[#allocation8 + $0x3b4] sm:$0xf0]  ;;  %v11834_v7 = vld [vmem:[#allocation8 + $0x2ac] sm:$0xf] }
 0x491   :  { %6863 = vmatpush.bf16.msra.mxu1 %v10112_v6  ;;  %v11960_v6 = vld [vmem:[#allocation8 + $0x694] sm:$0xf0]  ;;  %6833 = vmatpush.bf16.msrb.mxu3 %v10940_v42  ;;  %v10305_v41 = vld [vmem:[#allocation8 + $0x2b8] sm:$0xf0] }
 0x492   :  { %v10800_v34 = vor.u32 %v11960_v6, %v10799_v12  ;;  %v11916_v42 = vld [vmem:[#allocation8 + $0x534] sm:$0xf0] }
 0x493   :  { %6876 = vmatpush.bf16.msra.mxu2 %v10240_v23  ;;  %6851 = vmatpush.bf16.msra.mxu0 %v9968_v11  ;;  %v11985_v23 = vld [vmem:[#allocation8 + $0x764] sm:$0xf]  ;;  %v6645_v30 = vpop.f32.mrf.mxu0  ;;  %v10624_v12 = vor.u32 %v11916_v42, %v10623_v19  ;;  %v10432_v19 = vor.u32 %v11868_v0, %v10431_v10  ;;  %v11754_v10 = vld [vmem:[#allocation8 + $0x2c] sm:$0xf] }
 0x494   :  { %v6646_v51 = vadd.f32 %v6645_v30, %v5348_v22  ;;  %v10908_v32 = vor.u32 %v11985_v23, %v10905_v15  ;;  %v11948_v22 = vld [vmem:[#allocation8 + $0x634] sm:$0xf0]  ;;  %v10735_v15 = vld [vmem:[#allocation8 + $0x608] sm:$0xf] }
 0x495   :  { %6864 = vmatpush.bf16.msra.mxu1 %v10096_v46  ;;  %v6658_v21 = vpop.f32.mrf.mxu1  ;;  %6834 = vmatpush.bf16.msrb.mxu3 %v10924_v17  ;;  %v10528_v46 = vor.u32 %v11892_v35, %v10527_v50  ;;  %v11880_v17 = vld [vmem:[#allocation8 + $0x414] sm:$0xf0]  ;;  %v11810_v50 = vld [vmem:[#allocation8 + $0x1ec] sm:$0xf]  ;;  %v10209_v35 = vld [vmem:[#allocation8 + $0x1f8] sm:$0xf0] }
 0x496   :  { %6852 = vmatmul.bf16.vlgmr.msra.gmra.mxu0 %v12509_v45  ;;  %v6659_v11 = vadd.f32 %v6658_v21, %v6646_v51  ;;  %v11912_v23 = vld [vmem:[#allocation8 + $0x514] sm:$0xf0]  ;;  %v11778_v21 = vld [vmem:[#allocation8 + $0xec] sm:$0xf]  ;;  %v10480_v37 = vor.u32 %v11880_v17, %v10479_v20 }
 0x497   :  { %6877 = vmatpush.bf16.msra.mxu2 %v10224_v39  ;;  %6896 = vmatpush.bf16.msrb.mxu0 %v10592_v47  ;;  %v11981_v39 = vld [vmem:[#allocation8 + $0x744] sm:$0xf]  ;;  %v10889_v47 = vld [vmem:[#allocation8 + $0x750] sm:$0xf0]  ;;  %v11944_v30 = vld [vmem:[#allocation8 + $0x614] sm:$0xf0] }
 0x498   :  { %6865 = vmatmul.bf16.vlgmr.msra.gmra.mxu1 %v12511_v16  ;;  %6787 = vmatmul.bf16.vlgmr.msra.gmra.mxu3 %v12515_v55  ;;  %v10892_v59 = vor.u32 %v11981_v39, %v10889_v47  ;;  %v10212_v47 = vor.u32 %v11810_v50, %v10209_v35  ;;  %v11830_v20 = vld [vmem:[#allocation8 + $0x28c] sm:$0xf]  ;;  %v10017_v35 = vld [vmem:[#allocation8 + $0x78] sm:$0xf0] }
 0x499   :  { %6909 = vmatpush.bf16.msrb.mxu1 %v10720_v13  ;;  %v10511_v13 = vld [vmem:[#allocation8 + $0x448] sm:$0xf]  ;;  %6835 = vmatpush.bf16.msrb.mxu3 %v10908_v32  ;;  %v10337_v32 = vld [vmem:[#allocation8 + $0x2f8] sm:$0xf0] }
 0x49a   :  { %6878 = vmatmul.bf16.vlgmr.msra.gmra.mxu2 %v12513_v9 }
 0x49b   :  { %6922 = vmatpush.bf16.msrb.mxu2 %v10848_v14  ;;  %6897 = vmatpush.bf16.msrb.mxu0 %v10576_v61  ;;  %v11888_v14 = vld [vmem:[#allocation8 + $0x454] sm:$0xf0] }
 0x49c   :  { %v10512_v61 = vor.u32 %v11888_v14, %v10511_v13  ;;  %v11774_v13 = vld [vmem:[#allocation8 + $0xcc] sm:$0xf]  ;;  %v10340_v14 = vor.u32 %v11842_v62, %v10337_v32 }
 0x49d   :  { %6910 = vmatpush.bf16.msrb.mxu1 %v10704_v33  ;;  %v6671_v60 = vpop.f32.mrf.mxu2  ;;  %v6647_v33 = vpop.f32.mrf.mxu0  ;;  %6836 = vmatpush.bf16.msrb.mxu3 %v10892_v59  ;;  %v10321_v59 = vld [vmem:[#allocation8 + $0x2d8] sm:$0xf0] }
 0x49e   :  { %v6672_v1 = vadd.f32 %v6671_v60, %v6659_v11  ;;  %v10324_v33 = vor.u32 %v11838_v3, %v10321_v59 }
 0x49f   :  { %6923 = vmatpush.bf16.msrb.mxu2 %v10832_v2  ;;  %6898 = vmatpush.bf16.msrb.mxu0 %v10560_v4  ;;  %v6684_v43 = vpop.f32.mrf.mxu3  ;;  %v6660_v2 = vpop.f32.mrf.mxu1  ;;  %v10751_v4 = vld [vmem:[#allocation8 + $0x628] sm:$0xf] }
 0x4a0   :  { %v12588_v26 = vadd.f32 %v6684_v43, %v6672_v1  ;;  %v10752_v6 = vor.u32 %v11948_v22, %v10751_v4  ;;  %v10068_v43 = vor.u32 %v11774_v13, %v10065_v53  ;;  %v11770_v1 = vld [vmem:[#allocation8 + $0xac] sm:$0xf]  ;;  %v10049_v2 = vld [vmem:[#allocation8 + $0xb8] sm:$0xf0]  ;;  %v10415_v22 = vld [vmem:[#allocation8 + $0x388] sm:$0xf] }
 0x4a1   :  { %6911 = vmatpush.bf16.msrb.mxu1 %v10688_v18  ;;  %v11973_v18 = vld [vmem:[#allocation8 + $0x704] sm:$0xf]  ;;  %6837 = vmatpush.bf16.msrb.mxu3 %v10876_v8  ;;  %v10052_v42 = vor.u32 %v11770_v1, %v10049_v2  ;;  %v11864_v8 = vld [vmem:[#allocation8 + $0x394] sm:$0xf0]  ;;  %v11790_v13 = vld [vmem:[#allocation8 + $0x14c] sm:$0xf] }
 0x4a2   :  { %v11822_v53 = vld [vmem:[#allocation8 + $0x24c] sm:$0xf] }
 0x4a3   :  { %6924 = vmatpush.bf16.msrb.mxu2 %v10816_v40  ;;  %6899 = vmatpush.bf16.msrb.mxu0 %v10544_v28  ;;  %v10857_v40 = vld [vmem:[#allocation8 + $0x710] sm:$0xf0]  ;;  %v10607_v28 = vld [vmem:[#allocation8 + $0x508] sm:$0xf]  ;;  %v11786_v2 = vld [vmem:[#allocation8 + $0x12c] sm:$0xf] }
 0x4a4   :  { %v10608_v11 = vor.u32 %v11912_v23, %v10607_v28  ;;  %v10164_v23 = vor.u32 %v11798_v5, %v10161_v63  ;;  %v9969_v5 = vld [vmem:[#allocation8 + $0x18] sm:$0xf0]  ;;  %v11782_v63 = vld [vmem:[#allocation8 + $0x10c] sm:$0xf] }
 0x4a5   :  { %6912 = vmatpush.bf16.msrb.mxu1 %v10672_v31  ;;  %v10860_v31 = vor.u32 %v11973_v18, %v10857_v40  ;;  %v6673_v36 = vpop.f32.mrf.mxu2  ;;  %v11766_v18 = vld [vmem:[#allocation8 + $0x8c] sm:$0xf]  ;;  %v10308_v40 = vor.u32 %v11834_v7, %v10305_v41  ;;  %v10241_v7 = vld [vmem:[#allocation8 + $0x238] sm:$0xf0] }
 0x4a6   :  { %v11794_v36 = vld [vmem:[#allocation8 + $0x16c] sm:$0xf] }
 0x4a7   :  { %6925 = vmatpush.bf16.msrb.mxu2 %v10800_v34  ;;  %6900 = vmatpush.bf16.msrb.mxu0 %v10528_v46  ;;  %v10081_v34 = vld [vmem:[#allocation8 + $0xf8] sm:$0xf0]  ;;  %v6686_v51 = vpop.f32.mrf.mxu3  ;;  %v10736_v46 = vor.u32 %v11944_v30, %v10735_v15  ;;  %v10399_v15 = vld [vmem:[#allocation8 + $0x368] sm:$0xf]  ;;  %v11860_v30 = vld [vmem:[#allocation8 + $0x374] sm:$0xf0] }
 0x4a8   :  { %v10084_v39 = vor.u32 %v11778_v21, %v10081_v34  ;;  %6838 = vmatpush.bf16.msrb.mxu3 %v10860_v31  ;;  %v11762_v21 = vld [vmem:[#allocation8 + $0x6c] sm:$0xf]  ;;  %v10145_v51 = vld [vmem:[#allocation8 + $0x178] sm:$0xf0]  ;;  %v10400_v32 = vor.u32 %v11860_v30, %v10399_v15 }
 0x4a9   :  { %6913 = vmatpush.bf16.msrb.mxu1 %v10656_v49  ;;  %v10447_v49 = vld [vmem:[#allocation8 + $0x3c8] sm:$0xf]  ;;  %v11938_v15 = vld [vmem:[#allocation8 + $0x5ec] sm:$0xf]  ;;  %v10721_v30 = vld [vmem:[#allocation8 + $0x5f8] sm:$0xf0] }
 0x4ab   :  { %6926 = vmatpush.bf16.msrb.mxu2 %v10784_v52  ;;  %6901 = vmatpush.bf16.msrb.mxu0 %v10512_v61  ;;  %v11872_v52 = vld [vmem:[#allocation8 + $0x3d4] sm:$0xf0]  ;;  %v10196_v61 = vor.u32 %v11806_v56, %v10193_v58  ;;  %v10257_v56 = vld [vmem:[#allocation8 + $0x258] sm:$0xf0] }
 0x4ac   :  { %6883 = vmatpush.bf16.msra.mxu3 %v10464_v48  ;;  %v10448_v60 = vor.u32 %v11872_v52, %v10447_v49  ;;  %v11826_v48 = vld [vmem:[#allocation8 + $0x26c] sm:$0xf]  ;;  %v10001_v52 = vld [vmem:[#allocation8 + $0x58] sm:$0xf0]  ;;  %v10260_v1 = vor.u32 %v11822_v53, %v10257_v56  ;;  %v10943_v56 = vld [vmem:[#allocation8 + $0x7a8] sm:$0xf] }
 0x4ad   :  { %6914 = vmatpush.bf16.msrb.mxu1 %v10640_v38  ;;  %6839 = vmatmul.bf16.vlgmr.msrb.gmra.mxu3 %v12578_v54  ;;  %v11802_v38 = vld [vmem:[#allocation8 + $0x1ac] sm:$0xf] }
 0x4ae   :  { %v11758_v49 = vld [vmem:[#allocation8 + $0x4c] sm:$0xf] }
 0x4af   :  { %6927 = vmatpush.bf16.msrb.mxu2 %v10768_v27  ;;  %6902 = vmatpush.bf16.msrb.mxu0 %v10496_v44  ;;  %v10177_v27 = vld [vmem:[#allocation8 + $0x1b8] sm:$0xf0]  ;;  %v10004_v59 = vor.u32 %v11758_v49, %v10001_v52 }
 0x4b0   :  { %6884 = vmatpush.bf16.msra.mxu3 %v10448_v60  ;;  %v10180_v4 = vor.u32 %v11802_v38, %v10177_v27  ;;  %v10033_v44 = vld [vmem:[#allocation8 + $0x98] sm:$0xf0]  ;;  %v11818_v27 = vld [vmem:[#allocation8 + $0x22c] sm:$0xf] }
 0x4b1   :  { %6915 = vmatpush.bf16.msrb.mxu1 %v10624_v12  ;;  %v10289_v12 = vld [vmem:[#allocation8 + $0x298] sm:$0xf0]  ;;  %v10036_v28 = vor.u32 %v11766_v18, %v10033_v44  ;;  %v12004_v18 = vld [vmem:[#allocation8 + $0x7f4] sm:$0xf0]  ;;  %v10244_v44 = vor.u32 %v11818_v27, %v10241_v7 }
 0x4b2   :  { %v10292_v50 = vor.u32 %v11830_v20, %v10289_v12  ;;  %v10113_v38 = vld [vmem:[#allocation8 + $0x138] sm:$0xf0]  ;;  %v11814_v12 = vld [vmem:[#allocation8 + $0x20c] sm:$0xf] }
 0x4b3   :  { %6928 = vmatpush.bf16.msrb.mxu2 %v10752_v6  ;;  %6903 = vmatpush.bf16.msrb.mxu0 %v10480_v37  ;;  %v10416_v6 = vor.u32 %v11864_v8, %v10415_v22  ;;  %v6697_v17 = vpop.f32.mrf.mxu0  ;;  %v10273_v37 = vld [vmem:[#allocation8 + $0x278] sm:$0xf0]  ;;  %v10116_v22 = vor.u32 %v11786_v2, %v10113_v38  ;;  %v10975_v8 = vld [vmem:[#allocation8 + $0x7e8] sm:$0xf]  ;;  %v5349_v38 = vperm.slane %v12581_v57, 1 }
 0x4b4   :  { %6885 = vmatpush.bf16.msra.mxu3 %v10432_v19  ;;  %v6698_v31 = vadd.f32 %v6697_v17, %v12588_v26  ;;  %v10276_v26 = vor.u32 %v11826_v48, %v10273_v37  ;;  %v10351_v19 = vld [vmem:[#allocation8 + $0x308] sm:$0xf]  ;;  %v10097_v20 = vld [vmem:[#allocation8 + $0x118] sm:$0xf0]  ;;  %v11906_v17 = vld [vmem:[#allocation8 + $0x4ec] sm:$0xf]  ;;  %v10724_v48 = vor.u32 %v11938_v15, %v10721_v30 }
 0x4b5   :  { %6916 = vmatpush.bf16.msrb.mxu1 %v10608_v11  ;;  %v6710_v34 = vpop.f32.mrf.mxu1  ;;  %v10020_v11 = vor.u32 %v11762_v21, %v10017_v35  ;;  %v10976_v21 = vor.u32 %v12004_v18, %v10975_v8  ;;  %v10100_v35 = vor.u32 %v11782_v63, %v10097_v20  ;;  %v10959_v37 = vld [vmem:[#allocation8 + $0x7c8] sm:$0xf]  ;;  %v10705_v49 = vld [vmem:[#allocation8 + $0x5d8] sm:$0xf0]  ;;  %v11988_v20 = vld [vmem:[#allocation8 + $0x774] sm:$0xf0] }
 0x4b6   :  { %6904 = vmatmul.bf16.vlgmr.msrb.gmra.mxu0 %v12542_v25  ;;  %v12595_v62 = vadd.f32 %v6710_v34, %v6698_v31  ;;  %v11970_v34 = vld [vmem:[#allocation8 + $0x6ec] sm:$0xf]  ;;  %v10833_v52 = vld [vmem:[#allocation8 + $0x6d8] sm:$0xf0]  ;;  %v10911_v63 = vld [vmem:[#allocation8 + $0x768] sm:$0xf] }
 0x4b7   :  { %6929 = vmatpush.bf16.msrb.mxu2 %v10736_v46  ;;  %6948 = vmatpush.bf16.msra.mxu0 %v10084_v39  ;;  %v10148_v46 = vor.u32 %v11794_v36, %v10145_v51  ;;  %v10383_v39 = vld [vmem:[#allocation8 + $0x348] sm:$0xf]  ;;  %v10801_v8 = vld [vmem:[#allocation8 + $0x698] sm:$0xf0]  ;;  %v11922_v15 = vld [vmem:[#allocation8 + $0x56c] sm:$0xf] }
 0x4b8   :  { %6917 = vmatmul.bf16.vlgmr.msrb.gmra.mxu1 %v12544_v24  ;;  %6886 = vmatpush.bf16.msra.mxu3 %v10416_v6  ;;  %v10225_v6 = vld [vmem:[#allocation8 + $0x218] sm:$0xf0] }
 0x4b9   :  { %6961 = vmatpush.bf16.msra.mxu1 %v10212_v47  ;;  %v11856_v47 = vld [vmem:[#allocation8 + $0x354] sm:$0xf0]  ;;  %v10228_v36 = vor.u32 %v11814_v12, %v10225_v6  ;;  %v11890_v12 = vld [vmem:[#allocation8 + $0x46c] sm:$0xf]  ;;  %v10657_v30 = vld [vmem:[#allocation8 + $0x578] sm:$0xf0] }
 0x4ba   :  { %6930 = vmatmul.bf16.vlgmr.msrb.gmra.mxu2 %v12554_v29  ;;  %v10384_v58 = vor.u32 %v11856_v47, %v10383_v39  ;;  %v10577_v39 = vld [vmem:[#allocation8 + $0x4d8] sm:$0xf0]  ;;  %v11934_v47 = vld [vmem:[#allocation8 + $0x5cc] sm:$0xf] }
 0x4bb   :  { %6974 = vmatpush.bf16.msra.mxu2 %v10340_v14  ;;  %6949 = vmatpush.bf16.msra.mxu0 %v10068_v43  ;;  %v10129_v14 = vld [vmem:[#allocation8 + $0x158] sm:$0xf0]  ;;  %v6699_v3 = vpop.f32.mrf.mxu0  ;;  %v10367_v43 = vld [vmem:[#allocation8 + $0x328] sm:$0xf]  ;;  %v10708_v53 = vor.u32 %v11934_v47, %v10705_v49  ;;  %v11950_v47 = vld [vmem:[#allocation8 + $0x64c] sm:$0xf] }
 0x4bc   :  { %6887 = vmatpush.bf16.msra.mxu3 %v10400_v32  ;;  %v10132_v60 = vor.u32 %v11790_v13, %v10129_v14  ;;  %v12000_v32 = vld [vmem:[#allocation8 + $0x7d4] sm:$0xf0]  ;;  %v11898_v3 = vld [vmem:[#allocation8 + $0x4ac] sm:$0xf]  ;;  %v10769_v49 = vld [vmem:[#allocation8 + $0x658] sm:$0xf0] }
 0x4bd   :  { %6962 = vmatpush.bf16.msra.mxu1 %v10196_v61  ;;  %v11852_v61 = vld [vmem:[#allocation8 + $0x334] sm:$0xf0]  ;;  %v6712_v0 = vpop.f32.mrf.mxu1  ;;  %v10960_v13 = vor.u32 %v12000_v32, %v10959_v37  ;;  %v11886_v37 = vld [vmem:[#allocation8 + $0x44c] sm:$0xf] }
 0x4be   :  { %v10368_v41 = vor.u32 %v11852_v61, %v10367_v43  ;;  %v10561_v43 = vld [vmem:[#allocation8 + $0x4b8] sm:$0xf0]  ;;  %v11930_v61 = vld [vmem:[#allocation8 + $0x5ac] sm:$0xf] }
 0x4bf   :  { %6975 = vmatpush.bf16.msra.mxu2 %v10324_v33  ;;  %6950 = vmatpush.bf16.msra.mxu0 %v10052_v42  ;;  %v9985_v33 = vld [vmem:[#allocation8 + $0x38] sm:$0xf0]  ;;  %v11848_v42 = vld [vmem:[#allocation8 + $0x314] sm:$0xf0]  ;;  %v10564_v27 = vor.u32 %v11898_v3, %v10561_v43  ;;  %v11882_v3 = vld [vmem:[#allocation8 + $0x42c] sm:$0xf] }
 0x4c0   :  { %6888 = vmatpush.bf16.msra.mxu3 %v10384_v58  ;;  %v11996_v58 = vld [vmem:[#allocation8 + $0x7b4] sm:$0xf0]  ;;  %v11914_v43 = vld [vmem:[#allocation8 + $0x52c] sm:$0xf] }
 0x4c1   :  { %6963 = vmatpush.bf16.msra.mxu1 %v10180_v4  ;;  %v9988_v4 = vor.u32 %v11754_v10, %v9985_v33  ;;  %v10689_v10 = vld [vmem:[#allocation8 + $0x5b8] sm:$0xf0]  ;;  %v10944_v2 = vor.u32 %v11996_v58, %v10943_v56  ;;  %v10879_v56 = vld [vmem:[#allocation8 + $0x728] sm:$0xf]  ;;  %v11980_v58 = vld [vmem:[#allocation8 + $0x734] sm:$0xf0] }
 0x4c2   :  { %v10817_v33 = vld [vmem:[#allocation8 + $0x6b8] sm:$0xf0]  ;;  %v10692_v7 = vor.u32 %v11930_v61, %v10689_v10 }
 0x4c3   :  { %6976 = vmatpush.bf16.msra.mxu2 %v10308_v40  ;;  %6951 = vmatpush.bf16.msra.mxu0 %v10036_v28  ;;  %v11750_v40 = vld [vmem:[#allocation8 + $0xc] sm:$0xf]  ;;  %v10352_v28 = vor.u32 %v11848_v42, %v10351_v19  ;;  %v11992_v19 = vld [vmem:[#allocation8 + $0x794] sm:$0xf0]  ;;  %v10545_v42 = vld [vmem:[#allocation8 + $0x498] sm:$0xf0] }
 0x4c4   :  { %6889 = vmatpush.bf16.msra.mxu3 %v10368_v41  ;;  %v9972_v31 = vor.u32 %v11750_v40, %v9969_v5  ;;  %v10927_v41 = vld [vmem:[#allocation8 + $0x788] sm:$0xf]  ;;  %v10625_v61 = vld [vmem:[#allocation8 + $0x538] sm:$0xf0] }
 0x4c5   :  { %6964 = vmatpush.bf16.msra.mxu1 %v10164_v23  ;;  %v10593_v23 = vld [vmem:[#allocation8 + $0x4f8] sm:$0xf0] }
 0x4c6   :  { %v10596_v51 = vor.u32 %v11906_v17, %v10593_v23  ;;  %v10529_v23 = vld [vmem:[#allocation8 + $0x478] sm:$0xf0] }
 0x4c7   :  { %6977 = vmatpush.bf16.msra.mxu2 %v10292_v50  ;;  %6952 = vmatpush.bf16.msra.mxu0 %v10020_v11  ;;  %v10849_v50 = vld [vmem:[#allocation8 + $0x6f8] sm:$0xf0]  ;;  %v11902_v11 = vld [vmem:[#allocation8 + $0x4cc] sm:$0xf] }
 0x4c8   :  { %6890 = vmatpush.bf16.msra.mxu3 %v10352_v28  ;;  %v10580_v14 = vor.u32 %v11902_v11, %v10577_v39  ;;  %v10513_v11 = vld [vmem:[#allocation8 + $0x458] sm:$0xf0] }
 0x4c9   :  { %6965 = vmatpush.bf16.msra.mxu1 %v10148_v46  ;;  %v10852_v46 = vor.u32 %v11970_v34, %v10849_v50  ;;  %v10912_v50 = vor.u32 %v11988_v20, %v10911_v63  ;;  %v10641_v39 = vld [vmem:[#allocation8 + $0x558] sm:$0xf0] }
 0x4cb   :  { %6978 = vmatpush.bf16.msra.mxu2 %v10276_v26  ;;  %6953 = vmatpush.bf16.msra.mxu0 %v10004_v59  ;;  %v11966_v26 = vld [vmem:[#allocation8 + $0x6cc] sm:$0xf] }
 0x4cc   :  { %6935 = vmatpush.bf16.msrb.mxu3 %v10976_v21  ;;  %v10836_v59 = vor.u32 %v11966_v26, %v10833_v52  ;;  %v11954_v21 = vld [vmem:[#allocation8 + $0x66c] sm:$0xf] }
 0x4cd   :  { %6966 = vmatpush.bf16.msra.mxu1 %v10132_v60  ;;  %6891 = vmatmul.bf16.vlgmr.msra.gmra.mxu3 %v12515_v55  ;;  %v6723_v60 = vpop.f32.mrf.mxu2 }
 0x4ce   :  { %v12601_v0 = vadd.f32 %v6723_v60, %v12595_v62  ;;  %v11926_v62 = vld [vmem:[#allocation8 + $0x58c] sm:$0xf]  ;;  %v10497_v60 = vld [vmem:[#allocation8 + $0x438] sm:$0xf0] }
 0x4cf   :  { %6979 = vmatpush.bf16.msra.mxu2 %v10260_v1  ;;  %6954 = vmatpush.bf16.msra.mxu0 %v9988_v4  ;;  %v11962_v1 = vld [vmem:[#allocation8 + $0x6ac] sm:$0xf]  ;;  %v10673_v4 = vld [vmem:[#allocation8 + $0x598] sm:$0xf0] }
 0x4d0   :  { %6936 = vmatpush.bf16.msrb.mxu3 %v10960_v13  ;;  %v10676_v5 = vor.u32 %v11926_v62, %v10673_v4  ;;  %v11878_v62 = vld [vmem:[#allocation8 + $0x40c] sm:$0xf]  ;;  %v10481_v4 = vld [vmem:[#allocation8 + $0x418] sm:$0xf0] }
 0x4d1   :  { %6967 = vmatpush.bf16.msra.mxu1 %v10116_v22  ;;  %v11958_v22 = vld [vmem:[#allocation8 + $0x68c] sm:$0xf] }
 0x4d2   :  { %v10804_v17 = vor.u32 %v11958_v22, %v10801_v8  ;;  %v11910_v22 = vld [vmem:[#allocation8 + $0x50c] sm:$0xf]  ;;  %v10609_v8 = vld [vmem:[#allocation8 + $0x518] sm:$0xf0] }
 0x4d3   :  { %6980 = vmatpush.bf16.msra.mxu2 %v10244_v44  ;;  %6955 = vmatpush.bf16.msra.mxu0 %v9972_v31  ;;  %v6749_v18 = vpop.f32.mrf.mxu0  ;;  %v10785_v31 = vld [vmem:[#allocation8 + $0x678] sm:$0xf0]  ;;  %v10612_v63 = vor.u32 %v11910_v22, %v10609_v8  ;;  %v5350_v8 = vperm.slane %v12581_v57, 2 }
 0x4d4   :  { %6937 = vmatpush.bf16.msrb.mxu3 %v10944_v2  ;;  %v6750_v6 = vadd.f32 %v6749_v18, %v5349_v38  ;;  %v10788_v32 = vor.u32 %v11954_v21, %v10785_v31  ;;  %v10880_v2 = vor.u32 %v11980_v58, %v10879_v56  ;;  %v10737_v18 = vld [vmem:[#allocation8 + $0x618] sm:$0xf0]  ;;  %v12011_v21 = vld [vmem:[#allocation11 + $0x30] sm:$0xff]  ;;  %v11846_v58 = vld [vmem:[#allocation8 + $0x30c] sm:$0xf] }
 0x4d5   :  { %6968 = vmatpush.bf16.msra.mxu1 %v10100_v35  ;;  %v6762_v40 = vpop.f32.mrf.mxu1  ;;  %v6725_v28 = vpop.f32.mrf.mxu2  ;;  %v10532_v35 = vor.u32 %v11890_v12, %v10529_v23  ;;  %v12020_v56 = vld [vmem:[#allocation11 + $0x78] sm:$0xff] }
 0x4d6   :  { %6956 = vmatmul.bf16.vlgmr.msra.gmra.mxu0 %v12509_v45  ;;  %v11894_v45 = vld [vmem:[#allocation8 + $0x48c] sm:$0xf]  ;;  %v6763_v34 = vadd.f32 %v6762_v40, %v6750_v6  ;;  %v12012_v28 = vld [vmem:[#allocation11 + $0x38] sm:$0xff] }
 0x4d7   :  { %6981 = vmatpush.bf16.msra.mxu2 %v10228_v36  ;;  %7000 = vmatpush.bf16.msrb.mxu0 %v10596_v51  ;;  %v10548_v44 = vor.u32 %v11894_v45, %v10545_v42  ;;  %v10660_v36 = vor.u32 %v11922_v15, %v10657_v30  ;;  %v10895_v51 = vld [vmem:[#allocation8 + $0x748] sm:$0xf]  ;;  %v11874_v45 = vld [vmem:[#allocation8 + $0x3ec] sm:$0xf]  ;;  %v10433_v30 = vld [vmem:[#allocation8 + $0x3b8] sm:$0xf0] }
 0x4d8   :  { %6969 = vmatmul.bf16.vlgmr.msra.gmra.mxu1 %v12511_v16  ;;  %v10820_v16 = vor.u32 %v11962_v1, %v10817_v33  ;;  %v11946_v1 = vld [vmem:[#allocation8 + $0x62c] sm:$0xf]  ;;  %v10753_v33 = vld [vmem:[#allocation8 + $0x638] sm:$0xf0] }
 0x4d9   :  { %7013 = vmatpush.bf16.msrb.mxu1 %v10724_v48  ;;  %v11984_v48 = vld [vmem:[#allocation8 + $0x754] sm:$0xf0]  ;;  %v10756_v42 = vor.u32 %v11946_v1, %v10753_v33  ;;  %v11870_v6 = vld [vmem:[#allocation8 + $0x3cc] sm:$0xf]  ;;  %v10929_v22 = vld [vmem:[#allocation8 + $0x798] sm:$0xf0] }
 0x4da   :  { %6982 = vmatmul.bf16.vlgmr.msra.gmra.mxu2 %v12513_v9  ;;  %v10928_v9 = vor.u32 %v11992_v19, %v10927_v41  ;;  %v10896_v26 = vor.u32 %v11984_v48, %v10895_v51  ;;  %v10628_v41 = vor.u32 %v11914_v43, %v10625_v61  ;;  %v11976_v19 = vld [vmem:[#allocation8 + $0x714] sm:$0xf0]  ;;  %v11866_v15 = vld [vmem:[#allocation8 + $0x3ac] sm:$0xf]  ;;  %v10977_v43 = vld [vmem:[#allocation8 + $0x7f8] sm:$0xf0] }
 0x4db   :  { %7026 = vmatpush.bf16.msrb.mxu2 %v10852_v46  ;;  %7001 = vmatpush.bf16.msrb.mxu0 %v10580_v14  ;;  %v11918_v46 = vld [vmem:[#allocation8 + $0x54c] sm:$0xf]  ;;  %v6751_v52 = vpop.f32.mrf.mxu0  ;;  %v10516_v14 = vor.u32 %v11886_v37, %v10513_v11  ;;  %v10436_v31 = vor.u32 %v11866_v15, %v10433_v30  ;;  %v12019_v1 = vld [vmem:[#allocation11 + $0x70] sm:$0xff]  ;;  %v10897_v30 = vld [vmem:[#allocation8 + $0x758] sm:$0xf0] }
 0x4dc   :  { %6938 = vmatpush.bf16.msrb.mxu3 %v10928_v9  ;;  %v11942_v9 = vld [vmem:[#allocation8 + $0x60c] sm:$0xf] }
 0x4dd   :  { %7014 = vmatpush.bf16.msrb.mxu1 %v10708_v53  ;;  %v6764_v13 = vpop.f32.mrf.mxu1  ;;  %v10644_v53 = vor.u32 %v11918_v46, %v10641_v39  ;;  %v6775_v10 = vpop.f32.mrf.mxu2  ;;  %v10740_v20 = vor.u32 %v11942_v9, %v10737_v18  ;;  %v11858_v37 = vld [vmem:[#allocation8 + $0x36c] sm:$0xf]  ;;  %v12008_v46 = vld [vmem:[#allocation11 + $0x18] sm:$0xff] }
 0x4de   :  { %v12605_v38 = vadd.f32 %v6775_v10, %v6763_v34  ;;  %v11862_v34 = vld [vmem:[#allocation8 + $0x38c] sm:$0xf]  ;;  %v10369_v13 = vld [vmem:[#allocation8 + $0x338] sm:$0xf0] }
 0x4df   :  { %7027 = vmatpush.bf16.msrb.mxu2 %v10836_v59  ;;  %7002 = vmatpush.bf16.msrb.mxu0 %v10564_v27  ;;  %v10772_v59 = vor.u32 %v11950_v47, %v10769_v49  ;;  %v10863_v27 = vld [vmem:[#allocation8 + $0x708] sm:$0xf]  ;;  %v11854_v11 = vld [vmem:[#allocation8 + $0x34c] sm:$0xf]  ;;  %v12016_v9 = vld [vmem:[#allocation11 + $0x58] sm:$0xff] }
 0x4e0   :  { %6939 = vmatpush.bf16.msrb.mxu3 %v10912_v50  ;;  %v10864_v40 = vor.u32 %v11976_v19, %v10863_v27  ;;  %v10417_v50 = vld [vmem:[#allocation8 + $0x398] sm:$0xf0]  ;;  %v11850_v52 = vld [vmem:[#allocation8 + $0x32c] sm:$0xf] }
 0x4e1   :  { %7015 = vmatpush.bf16.msrb.mxu1 %v10692_v7  ;;  %v10500_v7 = vor.u32 %v11882_v3, %v10497_v60  ;;  %v10420_v51 = vor.u32 %v11862_v34, %v10417_v50  ;;  %v10353_v3 = vld [vmem:[#allocation8 + $0x318] sm:$0xf0]  ;;  %v12002_v60 = vld [vmem:[#allocation8 + $0x7ec] sm:$0xf] }
 0x4e2   :  { %v10356_v10 = vor.u32 %v11846_v58, %v10353_v3  ;;  %v10980_v33 = vor.u32 %v12002_v60, %v10977_v43  ;;  %v11998_v27 = vld [vmem:[#allocation8 + $0x7cc] sm:$0xf]  ;;  %v12028_v43 = vld [vmem:[#allocation11 + $0xb8] sm:$0xff] }
 0x4e3   :  { %7028 = vmatpush.bf16.msrb.mxu2 %v10820_v16  ;;  %7003 = vmatpush.bf16.msrb.mxu0 %v10548_v44  ;;  %v10465_v16 = vld [vmem:[#allocation8 + $0x3f8] sm:$0xf0]  ;;  %v11982_v15 = vld [vmem:[#allocation8 + $0x74c] sm:$0xf] }
 0x4e4   :  { %6940 = vmatpush.bf16.msrb.mxu3 %v10896_v26  ;;  %v10468_v44 = vor.u32 %v11874_v45, %v10465_v16  ;;  %v11994_v45 = vld [vmem:[#allocation8 + $0x7ac] sm:$0xf]  ;;  %v10945_v16 = vld [vmem:[#allocation8 + $0x7b8] sm:$0xf0]  ;;  %v10900_v34 = vor.u32 %v11982_v15, %v10897_v30 }
 0x4e5   :  { %7016 = vmatpush.bf16.msrb.mxu1 %v10676_v5  ;;  %v10484_v5 = vor.u32 %v11878_v62, %v10481_v4  ;;  %v6777_v12 = vpop.f32.mrf.mxu2  ;;  %v10948_v62 = vor.u32 %v11994_v45, %v10945_v16  ;;  %v11990_v4 = vld [vmem:[#allocation8 + $0x78c] sm:$0xf]  ;;  %v12023_v45 = vld [vmem:[#allocation11 + $0x90] sm:$0xff] }
 0x4e6   :  { %v10932_v18 = vor.u32 %v11990_v4, %v10929_v22  ;;  %v12022_v22 = vld [vmem:[#allocation11 + $0x88] sm:$0xff] }
 0x4e7   :  { %7029 = vmatpush.bf16.msrb.mxu2 %v10804_v17  ;;  %7004 = vmatpush.bf16.msrb.mxu0 %v10532_v35  ;;  %v10449_v17 = vld [vmem:[#allocation8 + $0x3d8] sm:$0xf0]  ;;  %v12010_v35 = vld [vmem:[#allocation11 + $0x28] sm:$0xff] }
 0x4e8   :  { %6941 = vmatpush.bf16.msrb.mxu3 %v10880_v2  ;;  %v10452_v23 = vor.u32 %v11870_v6, %v10449_v17  ;;  %v12005_v2 = vld [vmem:[#allocation11] sm:$0xff] }
 0x4e9   :  { %7017 = vmatpush.bf16.msrb.mxu1 %v10660_v36 }
 0x4eb   :  { %7030 = vmatpush.bf16.msrb.mxu2 %v10788_v32  ;;  %7005 = vmatpush.bf16.msrb.mxu0 %v10516_v14  ;;  %v10401_v32 = vld [vmem:[#allocation8 + $0x378] sm:$0xf0]  ;;  %v12007_v14 = vld [vmem:[#allocation11 + $0x10] sm:$0xff] }
 0x4ec   :  { %6942 = vmatpush.bf16.msrb.mxu3 %v10864_v40 }
 0x4ed   :  { %7018 = vmatpush.bf16.msrb.mxu1 %v10644_v53  ;;  %v10372_v53 = vor.u32 %v11850_v52, %v10369_v13 }
 0x4ef   :  { %7031 = vmatpush.bf16.msrb.mxu2 %v10772_v59  ;;  %7006 = vmatpush.bf16.msrb.mxu0 %v10500_v7  ;;  %v12006_v59 = vld [vmem:[#allocation11 + $0x8] sm:$0xff]  ;;  %v10961_v7 = vld [vmem:[#allocation8 + $0x7d8] sm:$0xf0] }
 0x4f0   :  { %6987 = vmatpush.bf16.msra.mxu3 %v10468_v44  ;;  %v10964_v19 = vor.u32 %v11998_v27, %v10961_v7  ;;  %v12027_v27 = vld [vmem:[#allocation11 + $0xb0] sm:$0xff]  ;;  %v12026_v7 = vld [vmem:[#allocation11 + $0xa8] sm:$0xff] }
 0x4f1   :  { %7019 = vmatpush.bf16.msrb.mxu1 %v10628_v41  ;;  %6943 = vmatmul.bf16.vlgmr.msrb.gmra.mxu3 %v12578_v54  ;;  %v12018_v41 = vld [vmem:[#allocation11 + $0x68] sm:$0xff] }
 0x4f3   :  { %7032 = vmatpush.bf16.msrb.mxu2 %v10756_v42  ;;  %7007 = vmatpush.bf16.msrb.mxu0 %v10484_v5  ;;  %v12611_v36 = vpop.f32.mrf.mxu0  ;;  %v12017_v42 = vld [vmem:[#allocation11 + $0x60] sm:$0xff]  ;;  %v11986_v5 = vld [vmem:[#allocation8 + $0x76c] sm:$0xf] }
 0x4f4   :  { %6988 = vmatpush.bf16.msra.mxu3 %v10452_v23 }
 0x4f5   :  { %7020 = vmatpush.bf16.msrb.mxu1 %v10612_v63  ;;  %v12613_v48 = vpop.f32.mrf.mxu1  ;;  %v10913_v63 = vld [vmem:[#allocation8 + $0x778] sm:$0xf0] }
 0x4f6   :  { %7008 = vmatmul.bf16.vlgmr.msrb.gmra.mxu0 %v12542_v25  ;;  %v12009_v25 = vld [vmem:[#allocation11 + $0x20] sm:$0xff] }
 0x4f7   :  { %7033 = vmatpush.bf16.msrb.mxu2 %v10740_v20  ;;  %7324 = vmatpush.bf16.msra.mxu0 %v12012_v28  ;;  %v12015_v20 = vld [vmem:[#allocation11 + $0x50] sm:$0xff]  ;;  %v10916_v28 = vor.u32 %v11986_v5, %v10913_v63 }
 0x4f8   :  { %7021 = vmatmul.bf16.vlgmr.msrb.gmra.mxu1 %v12544_v24  ;;  %6989 = vmatpush.bf16.msra.mxu3 %v10436_v31  ;;  %v10404_v24 = vor.u32 %v11858_v37, %v10401_v32  ;;  %v11978_v32 = vld [vmem:[#allocation8 + $0x72c] sm:$0xf] }
 0x4f9   :  { %7337 = vmatpush.bf16.msra.mxu1 %v12020_v56 }
 0x4fa   :  { %7034 = vmatmul.bf16.vlgmr.msrb.gmra.mxu2 %v12554_v29  ;;  %v10385_v29 = vld [vmem:[#allocation8 + $0x358] sm:$0xf0] }
 0x4fb   :  { %7325 = vmatpush.bf16.msra.mxu0 %v12011_v21  ;;  %v6803_v47 = vpop.f32.mrf.mxu0  ;;  %v10388_v49 = vor.u32 %v11854_v11, %v10385_v29  ;;  %v12014_v21 = vld [vmem:[#allocation11 + $0x48] sm:$0xff]  ;;  %7350 = vmatpush.bf16.msra.mxu2 %v12028_v43 }
 0x4fc   :  { %6990 = vmatpush.bf16.msra.mxu3 %v10420_v51  ;;  %v11974_v29 = vld [vmem:[#allocation8 + $0x70c] sm:$0xf] }
 0x4fd   :  { %v12615_v39 = vpop.f32.mrf.mxu2  ;;  %v6816_v26 = vpop.f32.mrf.mxu1  ;;  %7338 = vmatpush.bf16.msra.mxu1 %v12019_v1 }
 0x4ff   :  { %7326 = vmatpush.bf16.msra.mxu0 %v12010_v35  ;;  %7351 = vmatpush.bf16.msra.mxu2 %v12027_v27 }
 0x500   :  { %6991 = vmatpush.bf16.msra.mxu3 %v10404_v24  ;;  %v12013_v24 = vld [vmem:[#allocation11 + $0x40] sm:$0xff] }
 0x501   :  { %7339 = vmatpush.bf16.msra.mxu1 %v12018_v41  ;;  %v12055_v41 = vld [vmem:[#allocation10] sm:$0xf] }
 0x503   :  { %7327 = vmatpush.bf16.msra.mxu0 %v12009_v25  ;;  %v10881_v25 = vld [vmem:[#allocation8 + $0x738] sm:$0xf0]  ;;  %7352 = vmatpush.bf16.msra.mxu2 %v12026_v7 }
 0x504   :  { %6992 = vmatpush.bf16.msra.mxu3 %v10388_v49  ;;  %v10884_v11 = vor.u32 %v11978_v32, %v10881_v25 }
 0x505   :  { %v6829_v61 = vpop.f32.mrf.mxu2  ;;  %7340 = vmatpush.bf16.msra.mxu1 %v12017_v42 }
 0x507   :  { %7328 = vmatpush.bf16.msra.mxu0 %v12008_v46  ;;  %v10865_v46 = vld [vmem:[#allocation8 + $0x718] sm:$0xf0] }
 0x508   :  { %6993 = vmatpush.bf16.msra.mxu3 %v10372_v53  ;;  %v10868_v49 = vor.u32 %v11974_v29, %v10865_v46  ;;  %v12031_v29 = vld [vmem:[#allocation11 + $0xd0] sm:$0xff]  ;;  %v12030_v46 = vld [vmem:[#allocation11 + $0xc8] sm:$0xff] }
 0x509   :  { %7341 = vmatpush.bf16.msra.mxu1 %v12016_v9 }
 0x50b   :  { %7329 = vmatpush.bf16.msra.mxu0 %v12007_v14  ;;  %v6736_v6 = vpop.f32.mrf.mxu3 }
 0x50c   :  { %6994 = vmatpush.bf16.msra.mxu3 %v10356_v10 }
 0x50d   :  { %7342 = vmatpush.bf16.msra.mxu1 %v12015_v20 }
 0x50f   :  { %7330 = vmatpush.bf16.msra.mxu0 %v12006_v59  ;;  %6995 = vmatmul.bf16.vlgmr.msra.gmra.mxu3 %v12515_v55  ;;  %v6737_v55 = vadd.f32 %v6736_v6, %v12601_v0 }
 0x510   :  { %7039 = vmatpush.bf16.msrb.mxu3 %v10980_v33 }
 0x511   :  { %v7052_v23 = vmul.f32 0.01, %v6737_v55  ;;  %7343 = vmatpush.bf16.msra.mxu1 %v12014_v21 }
 0x513   :  { %7331 = vmatpush.bf16.msra.mxu0 %v12005_v2  ;;  %v6853_v40 = vpop.f32.mrf.mxu0  ;;  %v7056_v57 = vmax.f32 %v6737_v55, %v7052_v23  ;;  %v6738_v0 = vpop.f32.mrf.mxu3 }
 0x514   :  { %7040 = vmatpush.bf16.msrb.mxu3 %v10964_v19  ;;  %v6854_v12 = vadd.f32 %v6853_v40, %v5350_v8  ;;  %v5351_v19 = vperm.slane %v12055_v41, 3  ;;  %v12034_v0 = vld [vmem:[#allocation11 + $0xe8] sm:$0xff] }
 0x515   :  { %v6866_v44 = vpop.f32.mrf.mxu1  ;;  %v7060_v50 = vpack.c.bf16 %v7056_v57, %v7056_v57  ;;  %7344 = vmatpush.bf16.msra.mxu1 %v12013_v24  ;;  %v12036_v57 = vld [vmem:[#allocation11 + $0xf8] sm:$0xff]  ;;  %v12033_v24 = vld [vmem:[#allocation11 + $0xe0] sm:$0xff] }
 0x516   :  { %v6867_v17 = vadd.f32 %v6866_v44, %v6854_v12 }
 0x517   :  { %7332 = vmatmul.bf16.vlgmr.msra.gmra.mxu0 %v7060_v50 }
 0x518   :  { %7041 = vmatpush.bf16.msrb.mxu3 %v10948_v62 }
 0x51b   :  { %v6855_v51 = vpop.f32.mrf.mxu0  ;;  %v6788_v26 = vpop.f32.mrf.mxu3 }
 0x51c   :  { %7042 = vmatpush.bf16.msrb.mxu3 %v10932_v18  ;;  %v6789_v52 = vadd.f32 %v6788_v26, %v12605_v38  ;;  %v12021_v18 = vld [vmem:[#allocation11 + $0x80] sm:$0xff] }
 0x51d   :  { %v6879_v31 = vpop.f32.mrf.mxu2  ;;  %v6868_v37 = vpop.f32.mrf.mxu1 }
 0x51e   :  { %v12620_v35 = vadd.f32 %v6879_v31, %v6867_v17  ;;  %v6802_v13 = vadd.f32 %v12611_v36, %v6789_v52  ;;  %v12035_v37 = vld [vmem:[#allocation11 + $0xf0] sm:$0xff] }
 0x520   :  { %7043 = vmatpush.bf16.msrb.mxu3 %v10916_v28  ;;  %v6815_v58 = vadd.f32 %v12613_v48, %v6802_v13  ;;  %v12025_v48 = vld [vmem:[#allocation11 + $0xa0] sm:$0xff] }
 0x521   :  { %7353 = vmatpush.bf16.msra.mxu2 %v12025_v48 }
 0x522   :  { %v6828_v3 = vadd.f32 %v12615_v39, %v6815_v58  ;;  %v12024_v39 = vld [vmem:[#allocation11 + $0x98] sm:$0xff] }
 0x523   :  { %v6790_v14 = vpop.f32.mrf.mxu3 }
 0x524   :  { %7044 = vmatpush.bf16.msrb.mxu3 %v10900_v34 }
 0x525   :  { %v6881_v47 = vpop.f32.mrf.mxu2  ;;  %7354 = vmatpush.bf16.msra.mxu2 %v12024_v39 }
 0x528   :  { %7045 = vmatpush.bf16.msrb.mxu3 %v10884_v11  ;;  %v12032_v11 = vld [vmem:[#allocation11 + $0xd8] sm:$0xff] }
 0x529   :  { %7355 = vmatpush.bf16.msra.mxu2 %v12023_v45 }
 0x52c   :  { %7046 = vmatpush.bf16.msrb.mxu3 %v10868_v49  ;;  %v12029_v49 = vld [vmem:[#allocation11 + $0xc0] sm:$0xff] }
 0x52d   :  { %7356 = vmatpush.bf16.msra.mxu2 %v12022_v22 }
 0x52f   :  { %7047 = vmatmul.bf16.vlgmr.msrb.gmra.mxu3 %v12578_v54 }
 0x530   :  { %v6840_v59 = vpop.f32.mrf.mxu3  ;;  %7363 = vmatpush.bf16.msra.mxu3 %v12036_v57 }
 0x531   :  { %v6841_v60 = vadd.f32 %v6840_v59, %v6828_v3  ;;  %7357 = vmatpush.bf16.msra.mxu2 %v12021_v18 }
 0x533   :  { %v6905_v53 = vpop.f32.mrf.mxu0  ;;  %v7053_v10 = vmul.f32 0.01, %v6841_v60 }
 0x534   :  { %7364 = vmatpush.bf16.msra.mxu3 %v12035_v37 }
 0x535   :  { %v6918_v56 = vpop.f32.mrf.mxu1  ;;  %v7057_v38 = vmax.f32 %v6841_v60, %v7053_v10 }
 0x537   :  { %v7061_v2 = vpack.c.bf16 %v7057_v38, %v7057_v38 }
 0x538   :  { %v6842_v54 = vpop.f32.mrf.mxu3  ;;  %7365 = vmatpush.bf16.msra.mxu3 %v12034_v0 }
 0x539   :  { %7345 = vmatmul.bf16.vlgmr.msra.gmra.mxu1 %v7061_v2 }
 0x53b   :  { %v6907_v1 = vpop.f32.mrf.mxu0 }
 0x53c   :  { %7366 = vmatpush.bf16.msra.mxu3 %v12033_v24  ;;  %v12051_v1 = vld [vmem:[#allocation13] ss:$0 sm:$0xff] }
 0x53d   :  { %v6931_v61 = vpop.f32.mrf.mxu2  ;;  %v6920_v33 = vpop.f32.mrf.mxu1 }
 0x540   :  { %7367 = vmatpush.bf16.msra.mxu3 %v12032_v11 }
 0x544   :  { %7368 = vmatpush.bf16.msra.mxu3 %v12031_v29 }
 0x545   :  { %v6933_v36 = vpop.f32.mrf.mxu2 }
 0x548   :  { %7369 = vmatpush.bf16.msra.mxu3 %v12030_v46 }
 0x54c   :  { %7370 = vmatpush.bf16.msra.mxu3 %v12029_v49 }
 0x550   :  { %v6892_v8 = vpop.f32.mrf.mxu3 }
 0x551   :  { %v6893_v12 = vadd.f32 %v6892_v8, %v12620_v35 }
 0x553   :  { %v6957_v16 = vpop.f32.mrf.mxu0  ;;  %v6906_v6 = vadd.f32 %v6905_v53, %v6893_v12 }
 0x554   :  { %v6958_v62 = vadd.f32 %v6957_v16, %v5351_v19 }
 0x555   :  { %v6970_v42 = vpop.f32.mrf.mxu1  ;;  %v6919_v17 = vadd.f32 %v6918_v56, %v6906_v6 }
 0x556   :  { %v6971_v4 = vadd.f32 %v6970_v42, %v6958_v62 }
 0x557   :  { %v6932_v23 = vadd.f32 %v6931_v61, %v6919_v17 }
 0x558   :  { %v6894_v63 = vpop.f32.mrf.mxu3 }
 0x55b   :  { %v6959_v44 = vpop.f32.mrf.mxu0 }
 0x55d   :  { %v6983_v9 = vpop.f32.mrf.mxu2  ;;  %v6972_v5 = vpop.f32.mrf.mxu1 }
 0x55e   :  { %v6984_v40 = vadd.f32 %v6983_v9, %v6971_v4 }
 0x565   :  { %v6985_v20 = vpop.f32.mrf.mxu2 }
 0x573   :  { %v7009_v55 = vpop.f32.mrf.mxu0 }
 0x574   :  { %v6944_v15 = vpop.f32.mrf.mxu3 }
 0x575   :  { %v7022_v28 = vpop.f32.mrf.mxu1  ;;  %v6945_v30 = vadd.f32 %v6944_v15, %v6932_v23 }
 0x577   :  { %v7054_v31 = vmul.f32 0.01, %v6945_v30 }
 0x579   :  { %v7058_v51 = vmax.f32 %v6945_v30, %v7054_v31 }
 0x57b   :  { %v7011_v34 = vpop.f32.mrf.mxu0  ;;  %v7062_v32 = vpack.c.bf16 %v7058_v51, %v7058_v51 }
 0x57c   :  { %v6946_v25 = vpop.f32.mrf.mxu3 }
 0x57d   :  { %v7035_v21 = vpop.f32.mrf.mxu2  ;;  %v7024_v50 = vpop.f32.mrf.mxu1  ;;  %7358 = vmatmul.bf16.vlgmr.msra.gmra.mxu2 %v7062_v32 }
 0x585   :  { %v7037_v35 = vpop.f32.mrf.mxu2 }
 0x592   :  { %v6996_v47 = vpop.f32.mrf.mxu3 }
 0x593   :  { %v6997_v13 = vadd.f32 %v6996_v47, %v6984_v40 }
 0x594   :  { %v7333_v52 = vpop.f32.mrf.mxu0 }
 0x595   :  { %v7010_v53 = vadd.f32 %v7009_v55, %v6997_v13  ;;  %v7334_v33 = vadd.f32 %v12051_v1, %v7333_v52 }
 0x597   :  { %v7023_v56 = vadd.f32 %v7022_v28, %v7010_v53 }
 0x599   :  { %v7036_v58 = vadd.f32 %v7035_v21, %v7023_v56 }
 0x59a   :  { %v6998_v26 = vpop.f32.mrf.mxu3 }
 0x59c   :  { %v7335_v14 = vpop.f32.mrf.mxu0 }
 0x5b2   :  { %v7048_v3 = vpop.f32.mrf.mxu3 }
 0x5b3   :  { %v7049_v59 = vadd.f32 %v7048_v3, %v7036_v58 }
 0x5b5   :  { %v7055_v60 = vmul.f32 0.01, %v7049_v59 }
 0x5b6   :  { %v7346_v38 = vpop.f32.mrf.mxu1 }
 0x5b7   :  { %v7059_v43 = vmax.f32 %v7049_v59, %v7055_v60  ;;  %v7347_v2 = vadd.f32 %v7346_v38, %v7334_v33 }
 0x5b9   :  { %v7063_v61 = vpack.c.bf16 %v7059_v43, %v7059_v43 }
 0x5ba   :  { %v7050_v10 = vpop.f32.mrf.mxu3 }
 0x5bb   :  { %7371 = vmatmul.bf16.vlgmr.msra.gmra.mxu3 %v7063_v61 }
 0x5be   :  { %v7348_v54 = vpop.f32.mrf.mxu1 }
 0x600   :  { %v7359_v27 = vpop.f32.mrf.mxu2 }
 0x601   :  { %v7360_v7 = vadd.f32 %v7359_v27, %v7347_v2 }
 0x608   :  { %v7361_v36 = vpop.f32.mrf.mxu2 }
 0x63e   :  { %v7372_v48 = vpop.f32.mrf.mxu3 }
 0x63f   :  { %v7373_v39 = vadd.f32 %v7372_v48, %v7360_v7 }
 0x641   :  { %7376 = vst [vmem:[#allocation14] sm:$0xff] %v7373_v39 }
 0x642   :  { %7387 = dma.vmem_to_hbm [thread:$0]  %s7383_s6, 128, %s7385_s15, [#allocation4]  }
 0x646   :  { %v7374_v41 = vpop.f32.mrf.mxu3 }
 0x647   :  { %12256 = dma.done.wait [#allocation4], 128  }
 0x648   :  { %12257 = vsyncadd [#allocation4], 4294967168 }
 0x649   :  { %7392 = vsyncpa [#allocation3], 1 }
 0x64a   :  { %7393 = vsyncpa [#allocation6], 1 }
 0x64b   :  { %7394 = vsyncpa [#allocation9], 1 }
 0x64c   :  { %7395 = vsyncpa [#allocation12], 1 }
 0x64d   :  { %7396 = vsyncpa [#allocation4], 1 }

</bundles_post_ra>
